<compile_context>
chip_gen: v7x
topology: tpu7x:2x2x1
jax: 0.10.0
libtpu: 0.0.40
codegen_flags: <defaults>
</compile_context>

<pallas_src>
import numpy as np
import jax
import jax.numpy as jnp
from jax.experimental import pallas as pl
from jax.experimental.pallas import tpu as pltpu

# ---- module constants: ConvTranspose2d(64, 128, 55, stride=(channels,1), padding=66) ----
CIN, COUT = 64, 128
KH, KW = 55, 55
PH, PW = 66, 66


def _make_kernel(Wo, T):
    """One grid step = one output row; all T taps and KW width offsets in-kernel.

    Refs (after squeezing None block dims):
      q_tab/img_tab/res_tab/out_tab : SMEM scalar-prefetch schedule tables
      x_ref (Hpad, Wp, CIN)   f32   padded image strip (VMEM-resident per image)
      w_ref (T*KW*CIN, COUT)  bf16  residue-class weight slab (resident per class)
      b_ref (1, COUT)         f32   bias
      o_ref (Wo, COUT)        f32   one output row
      a_ref (Wo, T*KW*CIN)    bf16  VMEM im2col scratch
    """

    def kernel(q_tab, img_tab, res_tab, out_tab, x_ref, w_ref, b_ref, o_ref, a_ref):
        m = pl.program_id(0)
        q = q_tab[m]                                    # base padded input row for this output row

        # ---- build im2col slab  A[w, (t, j, c)] = strip[q + (T-1-t), j + w, c] ----
        for t in range(T):                              # T = ceil(KH/stride_h), small
            row = q + (T - 1 - t)                       # dynamic leading-dim index
            base = t * KW * CIN
            for j in range(KW):                         # independent stores, short live ranges
                win = x_ref[row, j:j + Wo, :].astype(jnp.bfloat16)      # (Wo, CIN)
                a_ref[:, base + j * CIN: base + (j + 1) * CIN] = win

        # ---- single lane-dense MXU contraction + fused bias / hard-sigmoid ----
        acc = jnp.dot(a_ref[...], w_ref[...], preferred_element_type=jnp.float32)
        v = acc + b_ref[...] + 3.0
        o_ref[...] = jnp.minimum(jnp.maximum(v, 0.0), 6.0) * (1.0 / 6.0)

    return kernel


def prepare_weights(w, b, stride_h):
    """Hoisted one-time weight prep.

    wr[r, (t*KW + j)*CIN + c, co] = W[c, co, r + t*stride_h, KW-1-j]
    (zero slab when r + t*stride_h >= KH);  bias returned as f32 (1, COUT).
    """
    T = -(-KH // stride_h)
    wf = jnp.transpose(jnp.flip(w, axis=3), (2, 3, 0, 1))       # (KH, KW, CIN, COUT)
    wf = wf.reshape(KH, KW * CIN, COUT)
    pad = stride_h * T - KH
    if pad:
        wf = jnp.concatenate([wf, jnp.zeros((pad, KW * CIN, COUT), wf.dtype)], axis=0)
    wr = wf.reshape(T, stride_h, KW * CIN, COUT).transpose(1, 0, 2, 3)  # [r, t] = wf[r + t*sh]
    wr = wr.reshape(stride_h, T * KW * CIN, COUT).astype(jnp.bfloat16)
    bias = b.reshape(1, COUT).astype(jnp.float32)
    return wr, bias


def model_forward(x_nchw, wr, bias, stride_h, stride_w=1):
    """Forward pass of Model: ConvTranspose2d + (x+3).clamp(0,6)/6 (NCHW in/out)."""
    N, Cin, Hin, Win = x_nchw.shape
    assert Cin == CIN and stride_w == 1

    T = -(-KH // stride_h)                             # active kh taps per output row
    Kdim = T * KW * CIN
    assert wr.shape == (stride_h, Kdim, COUT)

    crop_w = PW - (KW - 1)                             # 12 >= 0 for this module
    assert crop_w >= 0, "padding_w < kernel_w - 1 not supported by this kernel"
    Ho = (Hin - 1) * stride_h - 2 * PH + KH
    Wo = Win - 2 * PW + KW - 1
    assert Ho >= 1 and Wo >= 1, "empty output for this input size"
    Wp = Wo + KW - 1                                   # cropped strip width
    Hpad = Hin + T - 1                                 # T-1 zero rows on top per image

    # ---- layout only (no FLOPs): NCHW -> NHWC, width crop, top zero-padding ----
    x = jnp.transpose(x_nchw, (0, 2, 3, 1)).astype(jnp.float32)         # (N, Hin, Win, CIN)
    strip = x[:, :, crop_w:crop_w + Wp, :]                              # (N, Hin, Wp, CIN)
    if T > 1:
        zpad = jnp.zeros((N, T - 1, Wp, CIN), strip.dtype)
        strip = jnp.concatenate([zpad, strip], axis=1)                  # ih -> row ih + T - 1

    # ---- row schedule grouped by residue class (keeps wr[r] resident in VMEM) ----
    order = [(n, oh) for r in range(stride_h) for n in range(N)
             for oh in range(Ho) if (oh + PH) % stride_h == r]
    R = N * Ho
    assert len(order) == R
    q_tab = jnp.asarray([(oh + PH) // stride_h for n, oh in order], jnp.int32)
    img_tab = jnp.asarray([n for n, oh in order], jnp.int32)
    res_tab = jnp.asarray([(oh + PH) % stride_h for n, oh in order], jnp.int32)
    out_tab = jnp.asarray([n * Ho + oh for n, oh in order], jnp.int32)

    out3 = pl.pallas_call(
        _make_kernel(Wo, T),
        out_shape=jax.ShapeDtypeStruct((R, Wo, COUT), jnp.float32),
        grid_spec=pltpu.PrefetchScalarGridSpec(
            num_scalar_prefetch=4,
            grid=(R,),
            in_specs=[
                # whole padded image strip: index depends only on the image id
                pl.BlockSpec((None, Hpad, Wp, CIN),
                             lambda m, q, im, rs, ot: (im[m], 0, 0, 0)),
                # residue-class weight slab: index depends only on the residue
                pl.BlockSpec((None, Kdim, COUT),
                             lambda m, q, im, rs, ot: (rs[m], 0, 0)),
                pl.BlockSpec((1, COUT), lambda m, q, im, rs, ot: (0, 0)),
            ],
            out_specs=pl.BlockSpec((None, Wo, COUT),
                                   lambda m, q, im, rs, ot: (ot[m], 0, 0)),
            scratch_shapes=[pltpu.VMEM((Wo, Kdim), jnp.bfloat16)],
        ),
        compiler_params=pltpu.CompilerParams(
            dimension_semantics=("parallel",)),          # megacore row split on v7x
    )(q_tab, img_tab, res_tab, out_tab, strip, wr, bias)

    return out3.reshape(N, Ho, Wo, COUT).transpose(0, 3, 1, 2)          # NCHW f32


def ref_model(x, w, b, sh, sw, ph, pw):
    """Independent numpy reference (direct transposed-conv scatter formula)."""
    x = np.asarray(x, np.float64)
    w = np.asarray(w, np.float64)
    b = np.asarray(b, np.float64)
    N, Cin, Hin, Win = x.shape
    _, Cout, kh_, kw_ = w.shape
    Ho = (Hin - 1) * sh - 2 * ph + (kh_ - 1) + 1
    Wo = (Win - 1) * sw - 2 * pw + (kw_ - 1) + 1
    out = np.zeros((N, Cout, Ho, Wo), np.float64)
    for oh in range(Ho):
        for ow in range(Wo):
            acc = np.tile(b[None, :], (N, 1))
            for kh in range(kh_):
                tv = oh + ph - kh
                if tv < 0 or (tv % sh) != 0:
                    continue
                ih = tv // sh
                if ih >= Hin:
                    continue
                for kw in range(kw_):
                    u = ow + pw - kw
                    if u < 0 or (u % sw) != 0:
                        continue
                    iw = u // sw
                    if iw >= Win:
                        continue
                    acc = acc + x[:, :, ih, iw] @ w[:, :, kh, kw]
            out[:, :, oh, ow] = acc
    return np.clip(out + 3.0, 0.0, 6.0) / 6.0


if __name__ == "__main__":
    # Small shapes consistent with the module: padding=66 with a 55x55 kernel
    # needs stride_h / width large enough for a non-empty output.
    batch = 2
    channels = 16          # -> stride = (16, 1), T = ceil(55/16) = 4
    Hin, Win = 6, 80       # -> output spatial = (3, 2)

    key = jax.random.PRNGKey(0)
    kx, kw_key, kb = jax.random.split(key, 3)
    x1 = jax.random.normal(kx, (batch, CIN, Hin, Win), dtype=jnp.float32)
    w_scale = 1.0 / np.sqrt(CIN * KH * KW)
    w = jax.random.normal(kw_key, (CIN, COUT, KH, KW), dtype=jnp.float32) * w_scale
    b = jax.random.normal(kb, (COUT,), dtype=jnp.float32) * w_scale

    wr, bias = prepare_weights(w, b, stride_h=channels)   # hoisted: weights are constants
    out = model_forward(x1, wr, bias, stride_h=channels, stride_w=1)
    out = jax.block_until_ready(out)

    ref = ref_model(x1, w, b, channels, 1, PH, PW)
    assert out.shape == ref.shape, (out.shape, ref.shape)
    np.testing.assert_allclose(np.asarray(out), ref, rtol=5e-3, atol=5e-3)

    print("KERNEL_OK")
</pallas_src>

<mosaic_0001>
module attributes {stable_mosaic.version = 11 : i64} {
  func.func @kernel(%arg0: i32, %arg1: memref<6xi32, #tpu.memory_space<smem>>, %arg2: memref<6xi32, #tpu.memory_space<smem>>, %arg3: memref<6xi32, #tpu.memory_space<smem>>, %arg4: memref<6xi32, #tpu.memory_space<smem>>, %arg5: memref<1x9x56x64xf32, #tpu.memory_space<vmem>>, %arg6: memref<1x14080x128xbf16, #tpu.memory_space<vmem>>, %arg7: memref<1x128xf32, #tpu.memory_space<vmem>>, %arg8: memref<1x2x128xf32, #tpu.memory_space<vmem>>, %arg9: memref<2x14080xbf16, #tpu.memory_space<vmem>>) attributes {dimension_semantics = [#tpu.dimension_semantics<parallel>], iteration_bounds = array<i64: 6>, scalar_prefetch = 4 : i64, scratch_operands = 1 : i64, tpu.core_type = #tpu.core_type<tc>, window_params = [{transform_indices = @transform_0, window_bounds = array<i64: 1, 9, 56, 64>}, {transform_indices = @transform_1, window_bounds = array<i64: 1, 14080, 128>}, {pipeline_mode = #tpu.pipeline_mode<synchronous>, transform_indices = @transform_2, window_bounds = array<i64: 1, 128>}, {transform_indices = @transform_3, window_bounds = array<i64: 1, 2, 128>}]} {
    %0 = arith.index_cast %arg0 : i32 to index
    %1 = memref.load %arg1[%0] : memref<6xi32, #tpu.memory_space<smem>>
    %c3_i32 = arith.constant 3 : i32
    %2 = arith.addi %1, %c3_i32 : i32
    %c0 = arith.constant 0 : index
    %3 = arith.index_cast %2 : i32 to index
    %c0_0 = arith.constant 0 : index
    %c0_1 = arith.constant 0 : index
    %4 = vector.load %arg5[%c0, %3, %c0_0, %c0_1] : memref<1x9x56x64xf32, #tpu.memory_space<vmem>>, vector<1x1x2x64xf32>
    %5 = vector.shape_cast %4 : vector<1x1x2x64xf32> to vector<2x64xf32>
    %6 = arith.truncf %5 : vector<2x64xf32> to vector<2x64xbf16>
    %c0_2 = arith.constant 0 : index
    %c0_3 = arith.constant 0 : index
    %7 = vector.load %arg9[%c0_2, %c0_3] : memref<2x14080xbf16, #tpu.memory_space<vmem>>, vector<2x64xbf16>
    tpu.vector_store %arg9[%c0_2, %c0_3], %6 {strides = array<i32>} : memref<2x14080xbf16, #tpu.memory_space<vmem>>, vector<2x64xbf16>,
    %c0_4 = arith.constant 0 : index
    %8 = arith.index_cast %2 : i32 to index
    %c1 = arith.constant 1 : index
    %c0_5 = arith.constant 0 : index
    %9 = vector.load %arg5[%c0_4, %8, %c1, %c0_5] : memref<1x9x56x64xf32, #tpu.memory_space<vmem>>, vector<1x1x2x64xf32>
    %10 = vector.shape_cast %9 : vector<1x1x2x64xf32> to vector<2x64xf32>
    %11 = arith.truncf %10 : vector<2x64xf32> to vector<2x64xbf16>
    %c0_6 = arith.constant 0 : index
    %c64 = arith.constant 64 : index
    %12 = vector.load %arg9[%c0_6, %c64] : memref<2x14080xbf16, #tpu.memory_space<vmem>>, vector<2x64xbf16>
    tpu.vector_store %arg9[%c0_6, %c64], %11 {strides = array<i32>} : memref<2x14080xbf16, #tpu.memory_space<vmem>>, vector<2x64xbf16>,
    %c0_7 = arith.constant 0 : index
    %13 = arith.index_cast %2 : i32 to index
    %c2 = arith.constant 2 : index
    %c0_8 = arith.constant 0 : index
    %14 = vector.load %arg5[%c0_7, %13, %c2, %c0_8] : memref<1x9x56x64xf32, #tpu.memory_space<vmem>>, vector<1x1x2x64xf32>
    %15 = vector.shape_cast %14 : vector<1x1x2x64xf32> to vector<2x64xf32>
    %16 = arith.truncf %15 : vector<2x64xf32> to vector<2x64xbf16>
    %c0_9 = arith.constant 0 : index
    %c128 = arith.constant 128 : index
    %17 = vector.load %arg9[%c0_9, %c128] : memref<2x14080xbf16, #tpu.memory_space<vmem>>, vector<2x64xbf16>
    tpu.vector_store %arg9[%c0_9, %c128], %16 {strides = array<i32>} : memref<2x14080xbf16, #tpu.memory_space<vmem>>, vector<2x64xbf16>,
    %c0_10 = arith.constant 0 : index
    %18 = arith.index_cast %2 : i32 to index
    %c3 = arith.constant 3 : index
    %c0_11 = arith.constant 0 : index
    %19 = vector.load %arg5[%c0_10, %18, %c3, %c0_11] : memref<1x9x56x64xf32, #tpu.memory_space<vmem>>, vector<1x1x2x64xf32>
    %20 = vector.shape_cast %19 : vector<1x1x2x64xf32> to vector<2x64xf32>
    %21 = arith.truncf %20 : vector<2x64xf32> to vector<2x64xbf16>
    %c0_12 = arith.constant 0 : index
    %c192 = arith.constant 192 : index
    %22 = vector.load %arg9[%c0_12, %c192] : memref<2x14080xbf16, #tpu.memory_space<vmem>>, vector<2x64xbf16>
    tpu.vector_store %arg9[%c0_12, %c192], %21 {strides = array<i32>} : memref<2x14080xbf16, #tpu.memory_space<vmem>>, vector<2x64xbf16>,
    %c0_13 = arith.constant 0 : index
    %23 = arith.index_cast %2 : i32 to index
    %c4 = arith.constant 4 : index
    %c0_14 = arith.constant 0 : index
    %24 = vector.load %arg5[%c0_13, %23, %c4, %c0_14] : memref<1x9x56x64xf32, #tpu.memory_space<vmem>>, vector<1x1x2x64xf32>
    %25 = vector.shape_cast %24 : vector<1x1x2x64xf32> to vector<2x64xf32>
    %26 = arith.truncf %25 : vector<2x64xf32> to vector<2x64xbf16>
    %c0_15 = arith.constant 0 : index
    %c256 = arith.constant 256 : index
    %27 = vector.load %arg9[%c0_15, %c256] : memref<2x14080xbf16, #tpu.memory_space<vmem>>, vector<2x64xbf16>
    tpu.vector_store %arg9[%c0_15, %c256], %26 {strides = array<i32>} : memref<2x14080xbf16, #tpu.memory_space<vmem>>, vector<2x64xbf16>,
    %c0_16 = arith.constant 0 : index
    %28 = arith.index_cast %2 : i32 to index
    %c5 = arith.constant 5 : index
    %c0_17 = arith.constant 0 : index
    %29 = vector.load %arg5[%c0_16, %28, %c5, %c0_17] : memref<1x9x56x64xf32, #tpu.memory_space<vmem>>, vector<1x1x2x64xf32>
    %30 = vector.shape_cast %29 : vector<1x1x2x64xf32> to vector<2x64xf32>
    %31 = arith.truncf %30 : vector<2x64xf32> to vector<2x64xbf16>
    %c0_18 = arith.constant 0 : index
    %c320 = arith.constant 320 : index
    %32 = vector.load %arg9[%c0_18, %c320] : memref<2x14080xbf16, #tpu.memory_space<vmem>>, vector<2x64xbf16>
    tpu.vector_store %arg9[%c0_18, %c320], %31 {strides = array<i32>} : memref<2x14080xbf16, #tpu.memory_space<vmem>>, vector<2x64xbf16>,
    %c0_19 = arith.constant 0 : index
    %33 = arith.index_cast %2 : i32 to index
    %c6 = arith.constant 6 : index
    %c0_20 = arith.constant 0 : index
    %34 = vector.load %arg5[%c0_19, %33, %c6, %c0_20] : memref<1x9x56x64xf32, #tpu.memory_space<vmem>>, vector<1x1x2x64xf32>
    %35 = vector.shape_cast %34 : vector<1x1x2x64xf32> to vector<2x64xf32>
    %36 = arith.truncf %35 : vector<2x64xf32> to vector<2x64xbf16>
    %c0_21 = arith.constant 0 : index
    %c384 = arith.constant 384 : index
    %37 = vector.load %arg9[%c0_21, %c384] : memref<2x14080xbf16, #tpu.memory_space<vmem>>, vector<2x64xbf16>
    tpu.vector_store %arg9[%c0_21, %c384], %36 {strides = array<i32>} : memref<2x14080xbf16, #tpu.memory_space<vmem>>, vector<2x64xbf16>,
    %c0_22 = arith.constant 0 : index
    %38 = arith.index_cast %2 : i32 to index
    %c7 = arith.constant 7 : index
    %c0_23 = arith.constant 0 : index
    %39 = vector.load %arg5[%c0_22, %38, %c7, %c0_23] : memref<1x9x56x64xf32, #tpu.memory_space<vmem>>, vector<1x1x2x64xf32>
    %40 = vector.shape_cast %39 : vector<1x1x2x64xf32> to vector<2x64xf32>
    %41 = arith.truncf %40 : vector<2x64xf32> to vector<2x64xbf16>
    %c0_24 = arith.constant 0 : index
    %c448 = arith.constant 448 : index
    %42 = vector.load %arg9[%c0_24, %c448] : memref<2x14080xbf16, #tpu.memory_space<vmem>>, vector<2x64xbf16>
    tpu.vector_store %arg9[%c0_24, %c448], %41 {strides = array<i32>} : memref<2x14080xbf16, #tpu.memory_space<vmem>>, vector<2x64xbf16>,
    %c0_25 = arith.constant 0 : index
    %43 = arith.index_cast %2 : i32 to index
    %c8 = arith.constant 8 : index
    %c0_26 = arith.constant 0 : index
    %44 = vector.load %arg5[%c0_25, %43, %c8, %c0_26] : memref<1x9x56x64xf32, #tpu.memory_space<vmem>>, vector<1x1x2x64xf32>
    %45 = vector.shape_cast %44 : vector<1x1x2x64xf32> to vector<2x64xf32>
    %46 = arith.truncf %45 : vector<2x64xf32> to vector<2x64xbf16>
    %c0_27 = arith.constant 0 : index
    %c512 = arith.constant 512 : index
    %47 = vector.load %arg9[%c0_27, %c512] : memref<2x14080xbf16, #tpu.memory_space<vmem>>, vector<2x64xbf16>
    tpu.vector_store %arg9[%c0_27, %c512], %46 {strides = array<i32>} : memref<2x14080xbf16, #tpu.memory_space<vmem>>, vector<2x64xbf16>,
    %c0_28 = arith.constant 0 : index
    %48 = arith.index_cast %2 : i32 to index
    %c9 = arith.constant 9 : index
    %c0_29 = arith.constant 0 : index
    %49 = vector.load %arg5[%c0_28, %48, %c9, %c0_29] : memref<1x9x56x64xf32, #tpu.memory_space<vmem>>, vector<1x1x2x64xf32>
    %50 = vector.shape_cast %49 : vector<1x1x2x64xf32> to vector<2x64xf32>
    %51 = arith.truncf %50 : vector<2x64xf32> to vector<2x64xbf16>
    %c0_30 = arith.constant 0 : index
    %c576 = arith.constant 576 : index
    %52 = vector.load %arg9[%c0_30, %c576] : memref<2x14080xbf16, #tpu.memory_space<vmem>>, vector<2x64xbf16>
    tpu.vector_store %arg9[%c0_30, %c576], %51 {strides = array<i32>} : memref<2x14080xbf16, #tpu.memory_space<vmem>>, vector<2x64xbf16>,
    %c0_31 = arith.constant 0 : index
    %53 = arith.index_cast %2 : i32 to index
    %c10 = arith.constant 10 : index
    %c0_32 = arith.constant 0 : index
    %54 = vector.load %arg5[%c0_31, %53, %c10, %c0_32] : memref<1x9x56x64xf32, #tpu.memory_space<vmem>>, vector<1x1x2x64xf32>
    %55 = vector.shape_cast %54 : vector<1x1x2x64xf32> to vector<2x64xf32>
    %56 = arith.truncf %55 : vector<2x64xf32> to vector<2x64xbf16>
    %c0_33 = arith.constant 0 : index
    %c640 = arith.constant 640 : index
    %57 = vector.load %arg9[%c0_33, %c640] : memref<2x14080xbf16, #tpu.memory_space<vmem>>, vector<2x64xbf16>
    tpu.vector_store %arg9[%c0_33, %c640], %56 {strides = array<i32>} : memref<2x14080xbf16, #tpu.memory_space<vmem>>, vector<2x64xbf16>,
    %c0_34 = arith.constant 0 : index
    %58 = arith.index_cast %2 : i32 to index
    %c11 = arith.constant 11 : index
    %c0_35 = arith.constant 0 : index
    %59 = vector.load %arg5[%c0_34, %58, %c11, %c0_35] : memref<1x9x56x64xf32, #tpu.memory_space<vmem>>, vector<1x1x2x64xf32>
    %60 = vector.shape_cast %59 : vector<1x1x2x64xf32> to vector<2x64xf32>
    %61 = arith.truncf %60 : vector<2x64xf32> to vector<2x64xbf16>
    %c0_36 = arith.constant 0 : index
    %c704 = arith.constant 704 : index
    %62 = vector.load %arg9[%c0_36, %c704] : memref<2x14080xbf16, #tpu.memory_space<vmem>>, vector<2x64xbf16>
    tpu.vector_store %arg9[%c0_36, %c704], %61 {strides = array<i32>} : memref<2x14080xbf16, #tpu.memory_space<vmem>>, vector<2x64xbf16>,
    %c0_37 = arith.constant 0 : index
    %63 = arith.index_cast %2 : i32 to index
    %c12 = arith.constant 12 : index
    %c0_38 = arith.constant 0 : index
    %64 = vector.load %arg5[%c0_37, %63, %c12, %c0_38] : memref<1x9x56x64xf32, #tpu.memory_space<vmem>>, vector<1x1x2x64xf32>
    %65 = vector.shape_cast %64 : vector<1x1x2x64xf32> to vector<2x64xf32>
    %66 = arith.truncf %65 : vector<2x64xf32> to vector<2x64xbf16>
    %c0_39 = arith.constant 0 : index
    %c768 = arith.constant 768 : index
    %67 = vector.load %arg9[%c0_39, %c768] : memref<2x14080xbf16, #tpu.memory_space<vmem>>, vector<2x64xbf16>
    tpu.vector_store %arg9[%c0_39, %c768], %66 {strides = array<i32>} : memref<2x14080xbf16, #tpu.memory_space<vmem>>, vector<2x64xbf16>,
    %c0_40 = arith.constant 0 : index
    %68 = arith.index_cast %2 : i32 to index
    %c13 = arith.constant 13 : index
    %c0_41 = arith.constant 0 : index
    %69 = vector.load %arg5[%c0_40, %68, %c13, %c0_41] : memref<1x9x56x64xf32, #tpu.memory_space<vmem>>, vector<1x1x2x64xf32>
    %70 = vector.shape_cast %69 : vector<1x1x2x64xf32> to vector<2x64xf32>
    %71 = arith.truncf %70 : vector<2x64xf32> to vector<2x64xbf16>
    %c0_42 = arith.constant 0 : index
    %c832 = arith.constant 832 : index
    %72 = vector.load %arg9[%c0_42, %c832] : memref<2x14080xbf16, #tpu.memory_space<vmem>>, vector<2x64xbf16>
    tpu.vector_store %arg9[%c0_42, %c832], %71 {strides = array<i32>} : memref<2x14080xbf16, #tpu.memory_space<vmem>>, vector<2x64xbf16>,
    %c0_43 = arith.constant 0 : index
    %73 = arith.index_cast %2 : i32 to index
    %c14 = arith.constant 14 : index
    %c0_44 = arith.constant 0 : index
    %74 = vector.load %arg5[%c0_43, %73, %c14, %c0_44] : memref<1x9x56x64xf32, #tpu.memory_space<vmem>>, vector<1x1x2x64xf32>
    %75 = vector.shape_cast %74 : vector<1x1x2x64xf32> to vector<2x64xf32>
    %76 = arith.truncf %75 : vector<2x64xf32> to vector<2x64xbf16>
    %c0_45 = arith.constant 0 : index
    %c896 = arith.constant 896 : index
    %77 = vector.load %arg9[%c0_45, %c896] : memref<2x14080xbf16, #tpu.memory_space<vmem>>, vector<2x64xbf16>
    tpu.vector_store %arg9[%c0_45, %c896], %76 {strides = array<i32>} : memref<2x14080xbf16, #tpu.memory_space<vmem>>, vector<2x64xbf16>,
    %c0_46 = arith.constant 0 : index
    %78 = arith.index_cast %2 : i32 to index
    %c15 = arith.constant 15 : index
    %c0_47 = arith.constant 0 : index
    %79 = vector.load %arg5[%c0_46, %78, %c15, %c0_47] : memref<1x9x56x64xf32, #tpu.memory_space<vmem>>, vector<1x1x2x64xf32>
    %80 = vector.shape_cast %79 : vector<1x1x2x64xf32> to vector<2x64xf32>
    %81 = arith.truncf %80 : vector<2x64xf32> to vector<2x64xbf16>
    %c0_48 = arith.constant 0 : index
    %c960 = arith.constant 960 : index
    %82 = vector.load %arg9[%c0_48, %c960] : memref<2x14080xbf16, #tpu.memory_space<vmem>>, vector<2x64xbf16>
    tpu.vector_store %arg9[%c0_48, %c960], %81 {strides = array<i32>} : memref<2x14080xbf16, #tpu.memory_space<vmem>>, vector<2x64xbf16>,
    %c0_49 = arith.constant 0 : index
    %83 = arith.index_cast %2 : i32 to index
    %c16 = arith.constant 16 : index
    %c0_50 = arith.constant 0 : index
    %84 = vector.load %arg5[%c0_49, %83, %c16, %c0_50] : memref<1x9x56x64xf32, #tpu.memory_space<vmem>>, vector<1x1x2x64xf32>
    %85 = vector.shape_cast %84 : vector<1x1x2x64xf32> to vector<2x64xf32>
    %86 = arith.truncf %85 : vector<2x64xf32> to vector<2x64xbf16>
    %c0_51 = arith.constant 0 : index
    %c1024 = arith.constant 1024 : index
    %87 = vector.load %arg9[%c0_51, %c1024] : memref<2x14080xbf16, #tpu.memory_space<vmem>>, vector<2x64xbf16>
    tpu.vector_store %arg9[%c0_51, %c1024], %86 {strides = array<i32>} : memref<2x14080xbf16, #tpu.memory_space<vmem>>, vector<2x64xbf16>,
    %c0_52 = arith.constant 0 : index
    %88 = arith.index_cast %2 : i32 to index
    %c17 = arith.constant 17 : index
    %c0_53 = arith.constant 0 : index
    %89 = vector.load %arg5[%c0_52, %88, %c17, %c0_53] : memref<1x9x56x64xf32, #tpu.memory_space<vmem>>, vector<1x1x2x64xf32>
    %90 = vector.shape_cast %89 : vector<1x1x2x64xf32> to vector<2x64xf32>
    %91 = arith.truncf %90 : vector<2x64xf32> to vector<2x64xbf16>
    %c0_54 = arith.constant 0 : index
    %c1088 = arith.constant 1088 : index
    %92 = vector.load %arg9[%c0_54, %c1088] : memref<2x14080xbf16, #tpu.memory_space<vmem>>, vector<2x64xbf16>
    tpu.vector_store %arg9[%c0_54, %c1088], %91 {strides = array<i32>} : memref<2x14080xbf16, #tpu.memory_space<vmem>>, vector<2x64xbf16>,
    %c0_55 = arith.constant 0 : index
    %93 = arith.index_cast %2 : i32 to index
    %c18 = arith.constant 18 : index
    %c0_56 = arith.constant 0 : index
    %94 = vector.load %arg5[%c0_55, %93, %c18, %c0_56] : memref<1x9x56x64xf32, #tpu.memory_space<vmem>>, vector<1x1x2x64xf32>
    %95 = vector.shape_cast %94 : vector<1x1x2x64xf32> to vector<2x64xf32>
    %96 = arith.truncf %95 : vector<2x64xf32> to vector<2x64xbf16>
    %c0_57 = arith.constant 0 : index
    %c1152 = arith.constant 1152 : index
    %97 = vector.load %arg9[%c0_57, %c1152] : memref<2x14080xbf16, #tpu.memory_space<vmem>>, vector<2x64xbf16>
    tpu.vector_store %arg9[%c0_57, %c1152], %96 {strides = array<i32>} : memref<2x14080xbf16, #tpu.memory_space<vmem>>, vector<2x64xbf16>,
    %c0_58 = arith.constant 0 : index
    %98 = arith.index_cast %2 : i32 to index
    %c19 = arith.constant 19 : index
    %c0_59 = arith.constant 0 : index
    %99 = vector.load %arg5[%c0_58, %98, %c19, %c0_59] : memref<1x9x56x64xf32, #tpu.memory_space<vmem>>, vector<1x1x2x64xf32>
    %100 = vector.shape_cast %99 : vector<1x1x2x64xf32> to vector<2x64xf32>
    %101 = arith.truncf %100 : vector<2x64xf32> to vector<2x64xbf16>
    %c0_60 = arith.constant 0 : index
    %c1216 = arith.constant 1216 : index
    %102 = vector.load %arg9[%c0_60, %c1216] : memref<2x14080xbf16, #tpu.memory_space<vmem>>, vector<2x64xbf16>
    tpu.vector_store %arg9[%c0_60, %c1216], %101 {strides = array<i32>} : memref<2x14080xbf16, #tpu.memory_space<vmem>>, vector<2x64xbf16>,
    %c0_61 = arith.constant 0 : index
    %103 = arith.index_cast %2 : i32 to index
    %c20 = arith.constant 20 : index
    %c0_62 = arith.constant 0 : index
    %104 = vector.load %arg5[%c0_61, %103, %c20, %c0_62] : memref<1x9x56x64xf32, #tpu.memory_space<vmem>>, vector<1x1x2x64xf32>
    %105 = vector.shape_cast %104 : vector<1x1x2x64xf32> to vector<2x64xf32>
    %106 = arith.truncf %105 : vector<2x64xf32> to vector<2x64xbf16>
    %c0_63 = arith.constant 0 : index
    %c1280 = arith.constant 1280 : index
    %107 = vector.load %arg9[%c0_63, %c1280] : memref<2x14080xbf16, #tpu.memory_space<vmem>>, vector<2x64xbf16>
    tpu.vector_store %arg9[%c0_63, %c1280], %106 {strides = array<i32>} : memref<2x14080xbf16, #tpu.memory_space<vmem>>, vector<2x64xbf16>,
    %c0_64 = arith.constant 0 : index
    %108 = arith.index_cast %2 : i32 to index
    %c21 = arith.constant 21 : index
    %c0_65 = arith.constant 0 : index
    %109 = vector.load %arg5[%c0_64, %108, %c21, %c0_65] : memref<1x9x56x64xf32, #tpu.memory_space<vmem>>, vector<1x1x2x64xf32>
    %110 = vector.shape_cast %109 : vector<1x1x2x64xf32> to vector<2x64xf32>
    %111 = arith.truncf %110 : vector<2x64xf32> to vector<2x64xbf16>
    %c0_66 = arith.constant 0 : index
    %c1344 = arith.constant 1344 : index
    %112 = vector.load %arg9[%c0_66, %c1344] : memref<2x14080xbf16, #tpu.memory_space<vmem>>, vector<2x64xbf16>
    tpu.vector_store %arg9[%c0_66, %c1344], %111 {strides = array<i32>} : memref<2x14080xbf16, #tpu.memory_space<vmem>>, vector<2x64xbf16>,
    %c0_67 = arith.constant 0 : index
    %113 = arith.index_cast %2 : i32 to index
    %c22 = arith.constant 22 : index
    %c0_68 = arith.constant 0 : index
    %114 = vector.load %arg5[%c0_67, %113, %c22, %c0_68] : memref<1x9x56x64xf32, #tpu.memory_space<vmem>>, vector<1x1x2x64xf32>
    %115 = vector.shape_cast %114 : vector<1x1x2x64xf32> to vector<2x64xf32>
    %116 = arith.truncf %115 : vector<2x64xf32> to vector<2x64xbf16>
    %c0_69 = arith.constant 0 : index
    %c1408 = arith.constant 1408 : index
    %117 = vector.load %arg9[%c0_69, %c1408] : memref<2x14080xbf16, #tpu.memory_space<vmem>>, vector<2x64xbf16>
    tpu.vector_store %arg9[%c0_69, %c1408], %116 {strides = array<i32>} : memref<2x14080xbf16, #tpu.memory_space<vmem>>, vector<2x64xbf16>,
    %c0_70 = arith.constant 0 : index
    %118 = arith.index_cast %2 : i32 to index
    %c23 = arith.constant 23 : index
    %c0_71 = arith.constant 0 : index
    %119 = vector.load %arg5[%c0_70, %118, %c23, %c0_71] : memref<1x9x56x64xf32, #tpu.memory_space<vmem>>, vector<1x1x2x64xf32>
    %120 = vector.shape_cast %119 : vector<1x1x2x64xf32> to vector<2x64xf32>
    %121 = arith.truncf %120 : vector<2x64xf32> to vector<2x64xbf16>
    %c0_72 = arith.constant 0 : index
    %c1472 = arith.constant 1472 : index
    %122 = vector.load %arg9[%c0_72, %c1472] : memref<2x14080xbf16, #tpu.memory_space<vmem>>, vector<2x64xbf16>
    tpu.vector_store %arg9[%c0_72, %c1472], %121 {strides = array<i32>} : memref<2x14080xbf16, #tpu.memory_space<vmem>>, vector<2x64xbf16>,
    %c0_73 = arith.constant 0 : index
    %123 = arith.index_cast %2 : i32 to index
    %c24 = arith.constant 24 : index
    %c0_74 = arith.constant 0 : index
    %124 = vector.load %arg5[%c0_73, %123, %c24, %c0_74] : memref<1x9x56x64xf32, #tpu.memory_space<vmem>>, vector<1x1x2x64xf32>
    %125 = vector.shape_cast %124 : vector<1x1x2x64xf32> to vector<2x64xf32>
    %126 = arith.truncf %125 : vector<2x64xf32> to vector<2x64xbf16>
    %c0_75 = arith.constant 0 : index
    %c1536 = arith.constant 1536 : index
    %127 = vector.load %arg9[%c0_75, %c1536] : memref<2x14080xbf16, #tpu.memory_space<vmem>>, vector<2x64xbf16>
    tpu.vector_store %arg9[%c0_75, %c1536], %126 {strides = array<i32>} : memref<2x14080xbf16, #tpu.memory_space<vmem>>, vector<2x64xbf16>,
    %c0_76 = arith.constant 0 : index
    %128 = arith.index_cast %2 : i32 to index
    %c25 = arith.constant 25 : index
    %c0_77 = arith.constant 0 : index
    %129 = vector.load %arg5[%c0_76, %128, %c25, %c0_77] : memref<1x9x56x64xf32, #tpu.memory_space<vmem>>, vector<1x1x2x64xf32>
    %130 = vector.shape_cast %129 : vector<1x1x2x64xf32> to vector<2x64xf32>
    %131 = arith.truncf %130 : vector<2x64xf32> to vector<2x64xbf16>
    %c0_78 = arith.constant 0 : index
    %c1600 = arith.constant 1600 : index
    %132 = vector.load %arg9[%c0_78, %c1600] : memref<2x14080xbf16, #tpu.memory_space<vmem>>, vector<2x64xbf16>
    tpu.vector_store %arg9[%c0_78, %c1600], %131 {strides = array<i32>} : memref<2x14080xbf16, #tpu.memory_space<vmem>>, vector<2x64xbf16>,
    %c0_79 = arith.constant 0 : index
    %133 = arith.index_cast %2 : i32 to index
    %c26 = arith.constant 26 : index
    %c0_80 = arith.constant 0 : index
    %134 = vector.load %arg5[%c0_79, %133, %c26, %c0_80] : memref<1x9x56x64xf32, #tpu.memory_space<vmem>>, vector<1x1x2x64xf32>
    %135 = vector.shape_cast %134 : vector<1x1x2x64xf32> to vector<2x64xf32>
    %136 = arith.truncf %135 : vector<2x64xf32> to vector<2x64xbf16>
    %c0_81 = arith.constant 0 : index
    %c1664 = arith.constant 1664 : index
    %137 = vector.load %arg9[%c0_81, %c1664] : memref<2x14080xbf16, #tpu.memory_space<vmem>>, vector<2x64xbf16>
    tpu.vector_store %arg9[%c0_81, %c1664], %136 {strides = array<i32>} : memref<2x14080xbf16, #tpu.memory_space<vmem>>, vector<2x64xbf16>,
    %c0_82 = arith.constant 0 : index
    %138 = arith.index_cast %2 : i32 to index
    %c27 = arith.constant 27 : index
    %c0_83 = arith.constant 0 : index
    %139 = vector.load %arg5[%c0_82, %138, %c27, %c0_83] : memref<1x9x56x64xf32, #tpu.memory_space<vmem>>, vector<1x1x2x64xf32>
    %140 = vector.shape_cast %139 : vector<1x1x2x64xf32> to vector<2x64xf32>
    %141 = arith.truncf %140 : vector<2x64xf32> to vector<2x64xbf16>
    %c0_84 = arith.constant 0 : index
    %c1728 = arith.constant 1728 : index
    %142 = vector.load %arg9[%c0_84, %c1728] : memref<2x14080xbf16, #tpu.memory_space<vmem>>, vector<2x64xbf16>
    tpu.vector_store %arg9[%c0_84, %c1728], %141 {strides = array<i32>} : memref<2x14080xbf16, #tpu.memory_space<vmem>>, vector<2x64xbf16>,
    %c0_85 = arith.constant 0 : index
    %143 = arith.index_cast %2 : i32 to index
    %c28 = arith.constant 28 : index
    %c0_86 = arith.constant 0 : index
    %144 = vector.load %arg5[%c0_85, %143, %c28, %c0_86] : memref<1x9x56x64xf32, #tpu.memory_space<vmem>>, vector<1x1x2x64xf32>
    %145 = vector.shape_cast %144 : vector<1x1x2x64xf32> to vector<2x64xf32>
    %146 = arith.truncf %145 : vector<2x64xf32> to vector<2x64xbf16>
    %c0_87 = arith.constant 0 : index
    %c1792 = arith.constant 1792 : index
    %147 = vector.load %arg9[%c0_87, %c1792] : memref<2x14080xbf16, #tpu.memory_space<vmem>>, vector<2x64xbf16>
    tpu.vector_store %arg9[%c0_87, %c1792], %146 {strides = array<i32>} : memref<2x14080xbf16, #tpu.memory_space<vmem>>, vector<2x64xbf16>,
    %c0_88 = arith.constant 0 : index
    %148 = arith.index_cast %2 : i32 to index
    %c29 = arith.constant 29 : index
    %c0_89 = arith.constant 0 : index
    %149 = vector.load %arg5[%c0_88, %148, %c29, %c0_89] : memref<1x9x56x64xf32, #tpu.memory_space<vmem>>, vector<1x1x2x64xf32>
    %150 = vector.shape_cast %149 : vector<1x1x2x64xf32> to vector<2x64xf32>
    %151 = arith.truncf %150 : vector<2x64xf32> to vector<2x64xbf16>
    %c0_90 = arith.constant 0 : index
    %c1856 = arith.constant 1856 : index
    %152 = vector.load %arg9[%c0_90, %c1856] : memref<2x14080xbf16, #tpu.memory_space<vmem>>, vector<2x64xbf16>
    tpu.vector_store %arg9[%c0_90, %c1856], %151 {strides = array<i32>} : memref<2x14080xbf16, #tpu.memory_space<vmem>>, vector<2x64xbf16>,
    %c0_91 = arith.constant 0 : index
    %153 = arith.index_cast %2 : i32 to index
    %c30 = arith.constant 30 : index
    %c0_92 = arith.constant 0 : index
    %154 = vector.load %arg5[%c0_91, %153, %c30, %c0_92] : memref<1x9x56x64xf32, #tpu.memory_space<vmem>>, vector<1x1x2x64xf32>
    %155 = vector.shape_cast %154 : vector<1x1x2x64xf32> to vector<2x64xf32>
    %156 = arith.truncf %155 : vector<2x64xf32> to vector<2x64xbf16>
    %c0_93 = arith.constant 0 : index
    %c1920 = arith.constant 1920 : index
    %157 = vector.load %arg9[%c0_93, %c1920] : memref<2x14080xbf16, #tpu.memory_space<vmem>>, vector<2x64xbf16>
    tpu.vector_store %arg9[%c0_93, %c1920], %156 {strides = array<i32>} : memref<2x14080xbf16, #tpu.memory_space<vmem>>, vector<2x64xbf16>,
    %c0_94 = arith.constant 0 : index
    %158 = arith.index_cast %2 : i32 to index
    %c31 = arith.constant 31 : index
    %c0_95 = arith.constant 0 : index
    %159 = vector.load %arg5[%c0_94, %158, %c31, %c0_95] : memref<1x9x56x64xf32, #tpu.memory_space<vmem>>, vector<1x1x2x64xf32>
    %160 = vector.shape_cast %159 : vector<1x1x2x64xf32> to vector<2x64xf32>
    %161 = arith.truncf %160 : vector<2x64xf32> to vector<2x64xbf16>
    %c0_96 = arith.constant 0 : index
    %c1984 = arith.constant 1984 : index
    %162 = vector.load %arg9[%c0_96, %c1984] : memref<2x14080xbf16, #tpu.memory_space<vmem>>, vector<2x64xbf16>
    tpu.vector_store %arg9[%c0_96, %c1984], %161 {strides = array<i32>} : memref<2x14080xbf16, #tpu.memory_space<vmem>>, vector<2x64xbf16>,
    %c0_97 = arith.constant 0 : index
    %163 = arith.index_cast %2 : i32 to index
    %c32 = arith.constant 32 : index
    %c0_98 = arith.constant 0 : index
    %164 = vector.load %arg5[%c0_97, %163, %c32, %c0_98] : memref<1x9x56x64xf32, #tpu.memory_space<vmem>>, vector<1x1x2x64xf32>
    %165 = vector.shape_cast %164 : vector<1x1x2x64xf32> to vector<2x64xf32>
    %166 = arith.truncf %165 : vector<2x64xf32> to vector<2x64xbf16>
    %c0_99 = arith.constant 0 : index
    %c2048 = arith.constant 2048 : index
    %167 = vector.load %arg9[%c0_99, %c2048] : memref<2x14080xbf16, #tpu.memory_space<vmem>>, vector<2x64xbf16>
    tpu.vector_store %arg9[%c0_99, %c2048], %166 {strides = array<i32>} : memref<2x14080xbf16, #tpu.memory_space<vmem>>, vector<2x64xbf16>,
    %c0_100 = arith.constant 0 : index
    %168 = arith.index_cast %2 : i32 to index
    %c33 = arith.constant 33 : index
    %c0_101 = arith.constant 0 : index
    %169 = vector.load %arg5[%c0_100, %168, %c33, %c0_101] : memref<1x9x56x64xf32, #tpu.memory_space<vmem>>, vector<1x1x2x64xf32>
    %170 = vector.shape_cast %169 : vector<1x1x2x64xf32> to vector<2x64xf32>
    %171 = arith.truncf %170 : vector<2x64xf32> to vector<2x64xbf16>
    %c0_102 = arith.constant 0 : index
    %c2112 = arith.constant 2112 : index
    %172 = vector.load %arg9[%c0_102, %c2112] : memref<2x14080xbf16, #tpu.memory_space<vmem>>, vector<2x64xbf16>
    tpu.vector_store %arg9[%c0_102, %c2112], %171 {strides = array<i32>} : memref<2x14080xbf16, #tpu.memory_space<vmem>>, vector<2x64xbf16>,
    %c0_103 = arith.constant 0 : index
    %173 = arith.index_cast %2 : i32 to index
    %c34 = arith.constant 34 : index
    %c0_104 = arith.constant 0 : index
    %174 = vector.load %arg5[%c0_103, %173, %c34, %c0_104] : memref<1x9x56x64xf32, #tpu.memory_space<vmem>>, vector<1x1x2x64xf32>
    %175 = vector.shape_cast %174 : vector<1x1x2x64xf32> to vector<2x64xf32>
    %176 = arith.truncf %175 : vector<2x64xf32> to vector<2x64xbf16>
    %c0_105 = arith.constant 0 : index
    %c2176 = arith.constant 2176 : index
    %177 = vector.load %arg9[%c0_105, %c2176] : memref<2x14080xbf16, #tpu.memory_space<vmem>>, vector<2x64xbf16>
    tpu.vector_store %arg9[%c0_105, %c2176], %176 {strides = array<i32>} : memref<2x14080xbf16, #tpu.memory_space<vmem>>, vector<2x64xbf16>,
    %c0_106 = arith.constant 0 : index
    %178 = arith.index_cast %2 : i32 to index
    %c35 = arith.constant 35 : index
    %c0_107 = arith.constant 0 : index
    %179 = vector.load %arg5[%c0_106, %178, %c35, %c0_107] : memref<1x9x56x64xf32, #tpu.memory_space<vmem>>, vector<1x1x2x64xf32>
    %180 = vector.shape_cast %179 : vector<1x1x2x64xf32> to vector<2x64xf32>
    %181 = arith.truncf %180 : vector<2x64xf32> to vector<2x64xbf16>
    %c0_108 = arith.constant 0 : index
    %c2240 = arith.constant 2240 : index
    %182 = vector.load %arg9[%c0_108, %c2240] : memref<2x14080xbf16, #tpu.memory_space<vmem>>, vector<2x64xbf16>
    tpu.vector_store %arg9[%c0_108, %c2240], %181 {strides = array<i32>} : memref<2x14080xbf16, #tpu.memory_space<vmem>>, vector<2x64xbf16>,
    %c0_109 = arith.constant 0 : index
    %183 = arith.index_cast %2 : i32 to index
    %c36 = arith.constant 36 : index
    %c0_110 = arith.constant 0 : index
    %184 = vector.load %arg5[%c0_109, %183, %c36, %c0_110] : memref<1x9x56x64xf32, #tpu.memory_space<vmem>>, vector<1x1x2x64xf32>
    %185 = vector.shape_cast %184 : vector<1x1x2x64xf32> to vector<2x64xf32>
    %186 = arith.truncf %185 : vector<2x64xf32> to vector<2x64xbf16>
    %c0_111 = arith.constant 0 : index
    %c2304 = arith.constant 2304 : index
    %187 = vector.load %arg9[%c0_111, %c2304] : memref<2x14080xbf16, #tpu.memory_space<vmem>>, vector<2x64xbf16>
    tpu.vector_store %arg9[%c0_111, %c2304], %186 {strides = array<i32>} : memref<2x14080xbf16, #tpu.memory_space<vmem>>, vector<2x64xbf16>,
    %c0_112 = arith.constant 0 : index
    %188 = arith.index_cast %2 : i32 to index
    %c37 = arith.constant 37 : index
    %c0_113 = arith.constant 0 : index
    %189 = vector.load %arg5[%c0_112, %188, %c37, %c0_113] : memref<1x9x56x64xf32, #tpu.memory_space<vmem>>, vector<1x1x2x64xf32>
    %190 = vector.shape_cast %189 : vector<1x1x2x64xf32> to vector<2x64xf32>
    %191 = arith.truncf %190 : vector<2x64xf32> to vector<2x64xbf16>
    %c0_114 = arith.constant 0 : index
    %c2368 = arith.constant 2368 : index
    %192 = vector.load %arg9[%c0_114, %c2368] : memref<2x14080xbf16, #tpu.memory_space<vmem>>, vector<2x64xbf16>
    tpu.vector_store %arg9[%c0_114, %c2368], %191 {strides = array<i32>} : memref<2x14080xbf16, #tpu.memory_space<vmem>>, vector<2x64xbf16>,
    %c0_115 = arith.constant 0 : index
    %193 = arith.index_cast %2 : i32 to index
    %c38 = arith.constant 38 : index
    %c0_116 = arith.constant 0 : index
    %194 = vector.load %arg5[%c0_115, %193, %c38, %c0_116] : memref<1x9x56x64xf32, #tpu.memory_space<vmem>>, vector<1x1x2x64xf32>
    %195 = vector.shape_cast %194 : vector<1x1x2x64xf32> to vector<2x64xf32>
    %196 = arith.truncf %195 : vector<2x64xf32> to vector<2x64xbf16>
    %c0_117 = arith.constant 0 : index
    %c2432 = arith.constant 2432 : index
    %197 = vector.load %arg9[%c0_117, %c2432] : memref<2x14080xbf16, #tpu.memory_space<vmem>>, vector<2x64xbf16>
    tpu.vector_store %arg9[%c0_117, %c2432], %196 {strides = array<i32>} : memref<2x14080xbf16, #tpu.memory_space<vmem>>, vector<2x64xbf16>,
    %c0_118 = arith.constant 0 : index
    %198 = arith.index_cast %2 : i32 to index
    %c39 = arith.constant 39 : index
    %c0_119 = arith.constant 0 : index
    %199 = vector.load %arg5[%c0_118, %198, %c39, %c0_119] : memref<1x9x56x64xf32, #tpu.memory_space<vmem>>, vector<1x1x2x64xf32>
    %200 = vector.shape_cast %199 : vector<1x1x2x64xf32> to vector<2x64xf32>
    %201 = arith.truncf %200 : vector<2x64xf32> to vector<2x64xbf16>
    %c0_120 = arith.constant 0 : index
    %c2496 = arith.constant 2496 : index
    %202 = vector.load %arg9[%c0_120, %c2496] : memref<2x14080xbf16, #tpu.memory_space<vmem>>, vector<2x64xbf16>
    tpu.vector_store %arg9[%c0_120, %c2496], %201 {strides = array<i32>} : memref<2x14080xbf16, #tpu.memory_space<vmem>>, vector<2x64xbf16>,
    %c0_121 = arith.constant 0 : index
    %203 = arith.index_cast %2 : i32 to index
    %c40 = arith.constant 40 : index
    %c0_122 = arith.constant 0 : index
    %204 = vector.load %arg5[%c0_121, %203, %c40, %c0_122] : memref<1x9x56x64xf32, #tpu.memory_space<vmem>>, vector<1x1x2x64xf32>
    %205 = vector.shape_cast %204 : vector<1x1x2x64xf32> to vector<2x64xf32>
    %206 = arith.truncf %205 : vector<2x64xf32> to vector<2x64xbf16>
    %c0_123 = arith.constant 0 : index
    %c2560 = arith.constant 2560 : index
    %207 = vector.load %arg9[%c0_123, %c2560] : memref<2x14080xbf16, #tpu.memory_space<vmem>>, vector<2x64xbf16>
    tpu.vector_store %arg9[%c0_123, %c2560], %206 {strides = array<i32>} : memref<2x14080xbf16, #tpu.memory_space<vmem>>, vector<2x64xbf16>,
    %c0_124 = arith.constant 0 : index
    %208 = arith.index_cast %2 : i32 to index
    %c41 = arith.constant 41 : index
    %c0_125 = arith.constant 0 : index
    %209 = vector.load %arg5[%c0_124, %208, %c41, %c0_125] : memref<1x9x56x64xf32, #tpu.memory_space<vmem>>, vector<1x1x2x64xf32>
    %210 = vector.shape_cast %209 : vector<1x1x2x64xf32> to vector<2x64xf32>
    %211 = arith.truncf %210 : vector<2x64xf32> to vector<2x64xbf16>
    %c0_126 = arith.constant 0 : index
    %c2624 = arith.constant 2624 : index
    %212 = vector.load %arg9[%c0_126, %c2624] : memref<2x14080xbf16, #tpu.memory_space<vmem>>, vector<2x64xbf16>
    tpu.vector_store %arg9[%c0_126, %c2624], %211 {strides = array<i32>} : memref<2x14080xbf16, #tpu.memory_space<vmem>>, vector<2x64xbf16>,
    %c0_127 = arith.constant 0 : index
    %213 = arith.index_cast %2 : i32 to index
    %c42 = arith.constant 42 : index
    %c0_128 = arith.constant 0 : index
    %214 = vector.load %arg5[%c0_127, %213, %c42, %c0_128] : memref<1x9x56x64xf32, #tpu.memory_space<vmem>>, vector<1x1x2x64xf32>
    %215 = vector.shape_cast %214 : vector<1x1x2x64xf32> to vector<2x64xf32>
    %216 = arith.truncf %215 : vector<2x64xf32> to vector<2x64xbf16>
    %c0_129 = arith.constant 0 : index
    %c2688 = arith.constant 2688 : index
    %217 = vector.load %arg9[%c0_129, %c2688] : memref<2x14080xbf16, #tpu.memory_space<vmem>>, vector<2x64xbf16>
    tpu.vector_store %arg9[%c0_129, %c2688], %216 {strides = array<i32>} : memref<2x14080xbf16, #tpu.memory_space<vmem>>, vector<2x64xbf16>,
    %c0_130 = arith.constant 0 : index
    %218 = arith.index_cast %2 : i32 to index
    %c43 = arith.constant 43 : index
    %c0_131 = arith.constant 0 : index
    %219 = vector.load %arg5[%c0_130, %218, %c43, %c0_131] : memref<1x9x56x64xf32, #tpu.memory_space<vmem>>, vector<1x1x2x64xf32>
    %220 = vector.shape_cast %219 : vector<1x1x2x64xf32> to vector<2x64xf32>
    %221 = arith.truncf %220 : vector<2x64xf32> to vector<2x64xbf16>
    %c0_132 = arith.constant 0 : index
    %c2752 = arith.constant 2752 : index
    %222 = vector.load %arg9[%c0_132, %c2752] : memref<2x14080xbf16, #tpu.memory_space<vmem>>, vector<2x64xbf16>
    tpu.vector_store %arg9[%c0_132, %c2752], %221 {strides = array<i32>} : memref<2x14080xbf16, #tpu.memory_space<vmem>>, vector<2x64xbf16>,
    %c0_133 = arith.constant 0 : index
    %223 = arith.index_cast %2 : i32 to index
    %c44 = arith.constant 44 : index
    %c0_134 = arith.constant 0 : index
    %224 = vector.load %arg5[%c0_133, %223, %c44, %c0_134] : memref<1x9x56x64xf32, #tpu.memory_space<vmem>>, vector<1x1x2x64xf32>
    %225 = vector.shape_cast %224 : vector<1x1x2x64xf32> to vector<2x64xf32>
    %226 = arith.truncf %225 : vector<2x64xf32> to vector<2x64xbf16>
    %c0_135 = arith.constant 0 : index
    %c2816 = arith.constant 2816 : index
    %227 = vector.load %arg9[%c0_135, %c2816] : memref<2x14080xbf16, #tpu.memory_space<vmem>>, vector<2x64xbf16>
    tpu.vector_store %arg9[%c0_135, %c2816], %226 {strides = array<i32>} : memref<2x14080xbf16, #tpu.memory_space<vmem>>, vector<2x64xbf16>,
    %c0_136 = arith.constant 0 : index
    %228 = arith.index_cast %2 : i32 to index
    %c45 = arith.constant 45 : index
    %c0_137 = arith.constant 0 : index
    %229 = vector.load %arg5[%c0_136, %228, %c45, %c0_137] : memref<1x9x56x64xf32, #tpu.memory_space<vmem>>, vector<1x1x2x64xf32>
    %230 = vector.shape_cast %229 : vector<1x1x2x64xf32> to vector<2x64xf32>
    %231 = arith.truncf %230 : vector<2x64xf32> to vector<2x64xbf16>
    %c0_138 = arith.constant 0 : index
    %c2880 = arith.constant 2880 : index
    %232 = vector.load %arg9[%c0_138, %c2880] : memref<2x14080xbf16, #tpu.memory_space<vmem>>, vector<2x64xbf16>
    tpu.vector_store %arg9[%c0_138, %c2880], %231 {strides = array<i32>} : memref<2x14080xbf16, #tpu.memory_space<vmem>>, vector<2x64xbf16>,
    %c0_139 = arith.constant 0 : index
    %233 = arith.index_cast %2 : i32 to index
    %c46 = arith.constant 46 : index
    %c0_140 = arith.constant 0 : index
    %234 = vector.load %arg5[%c0_139, %233, %c46, %c0_140] : memref<1x9x56x64xf32, #tpu.memory_space<vmem>>, vector<1x1x2x64xf32>
    %235 = vector.shape_cast %234 : vector<1x1x2x64xf32> to vector<2x64xf32>
    %236 = arith.truncf %235 : vector<2x64xf32> to vector<2x64xbf16>
    %c0_141 = arith.constant 0 : index
    %c2944 = arith.constant 2944 : index
    %237 = vector.load %arg9[%c0_141, %c2944] : memref<2x14080xbf16, #tpu.memory_space<vmem>>, vector<2x64xbf16>
    tpu.vector_store %arg9[%c0_141, %c2944], %236 {strides = array<i32>} : memref<2x14080xbf16, #tpu.memory_space<vmem>>, vector<2x64xbf16>,
    %c0_142 = arith.constant 0 : index
    %238 = arith.index_cast %2 : i32 to index
    %c47 = arith.constant 47 : index
    %c0_143 = arith.constant 0 : index
    %239 = vector.load %arg5[%c0_142, %238, %c47, %c0_143] : memref<1x9x56x64xf32, #tpu.memory_space<vmem>>, vector<1x1x2x64xf32>
    %240 = vector.shape_cast %239 : vector<1x1x2x64xf32> to vector<2x64xf32>
    %241 = arith.truncf %240 : vector<2x64xf32> to vector<2x64xbf16>
    %c0_144 = arith.constant 0 : index
    %c3008 = arith.constant 3008 : index
    %242 = vector.load %arg9[%c0_144, %c3008] : memref<2x14080xbf16, #tpu.memory_space<vmem>>, vector<2x64xbf16>
    tpu.vector_store %arg9[%c0_144, %c3008], %241 {strides = array<i32>} : memref<2x14080xbf16, #tpu.memory_space<vmem>>, vector<2x64xbf16>,
    %c0_145 = arith.constant 0 : index
    %243 = arith.index_cast %2 : i32 to index
    %c48 = arith.constant 48 : index
    %c0_146 = arith.constant 0 : index
    %244 = vector.load %arg5[%c0_145, %243, %c48, %c0_146] : memref<1x9x56x64xf32, #tpu.memory_space<vmem>>, vector<1x1x2x64xf32>
    %245 = vector.shape_cast %244 : vector<1x1x2x64xf32> to vector<2x64xf32>
    %246 = arith.truncf %245 : vector<2x64xf32> to vector<2x64xbf16>
    %c0_147 = arith.constant 0 : index
    %c3072 = arith.constant 3072 : index
    %247 = vector.load %arg9[%c0_147, %c3072] : memref<2x14080xbf16, #tpu.memory_space<vmem>>, vector<2x64xbf16>
    tpu.vector_store %arg9[%c0_147, %c3072], %246 {strides = array<i32>} : memref<2x14080xbf16, #tpu.memory_space<vmem>>, vector<2x64xbf16>,
    %c0_148 = arith.constant 0 : index
    %248 = arith.index_cast %2 : i32 to index
    %c49 = arith.constant 49 : index
    %c0_149 = arith.constant 0 : index
    %249 = vector.load %arg5[%c0_148, %248, %c49, %c0_149] : memref<1x9x56x64xf32, #tpu.memory_space<vmem>>, vector<1x1x2x64xf32>
    %250 = vector.shape_cast %249 : vector<1x1x2x64xf32> to vector<2x64xf32>
    %251 = arith.truncf %250 : vector<2x64xf32> to vector<2x64xbf16>
    %c0_150 = arith.constant 0 : index
    %c3136 = arith.constant 3136 : index
    %252 = vector.load %arg9[%c0_150, %c3136] : memref<2x14080xbf16, #tpu.memory_space<vmem>>, vector<2x64xbf16>
    tpu.vector_store %arg9[%c0_150, %c3136], %251 {strides = array<i32>} : memref<2x14080xbf16, #tpu.memory_space<vmem>>, vector<2x64xbf16>,
    %c0_151 = arith.constant 0 : index
    %253 = arith.index_cast %2 : i32 to index
    %c50 = arith.constant 50 : index
    %c0_152 = arith.constant 0 : index
    %254 = vector.load %arg5[%c0_151, %253, %c50, %c0_152] : memref<1x9x56x64xf32, #tpu.memory_space<vmem>>, vector<1x1x2x64xf32>
    %255 = vector.shape_cast %254 : vector<1x1x2x64xf32> to vector<2x64xf32>
    %256 = arith.truncf %255 : vector<2x64xf32> to vector<2x64xbf16>
    %c0_153 = arith.constant 0 : index
    %c3200 = arith.constant 3200 : index
    %257 = vector.load %arg9[%c0_153, %c3200] : memref<2x14080xbf16, #tpu.memory_space<vmem>>, vector<2x64xbf16>
    tpu.vector_store %arg9[%c0_153, %c3200], %256 {strides = array<i32>} : memref<2x14080xbf16, #tpu.memory_space<vmem>>, vector<2x64xbf16>,
    %c0_154 = arith.constant 0 : index
    %258 = arith.index_cast %2 : i32 to index
    %c51 = arith.constant 51 : index
    %c0_155 = arith.constant 0 : index
    %259 = vector.load %arg5[%c0_154, %258, %c51, %c0_155] : memref<1x9x56x64xf32, #tpu.memory_space<vmem>>, vector<1x1x2x64xf32>
    %260 = vector.shape_cast %259 : vector<1x1x2x64xf32> to vector<2x64xf32>
    %261 = arith.truncf %260 : vector<2x64xf32> to vector<2x64xbf16>
    %c0_156 = arith.constant 0 : index
    %c3264 = arith.constant 3264 : index
    %262 = vector.load %arg9[%c0_156, %c3264] : memref<2x14080xbf16, #tpu.memory_space<vmem>>, vector<2x64xbf16>
    tpu.vector_store %arg9[%c0_156, %c3264], %261 {strides = array<i32>} : memref<2x14080xbf16, #tpu.memory_space<vmem>>, vector<2x64xbf16>,
    %c0_157 = arith.constant 0 : index
    %263 = arith.index_cast %2 : i32 to index
    %c52 = arith.constant 52 : index
    %c0_158 = arith.constant 0 : index
    %264 = vector.load %arg5[%c0_157, %263, %c52, %c0_158] : memref<1x9x56x64xf32, #tpu.memory_space<vmem>>, vector<1x1x2x64xf32>
    %265 = vector.shape_cast %264 : vector<1x1x2x64xf32> to vector<2x64xf32>
    %266 = arith.truncf %265 : vector<2x64xf32> to vector<2x64xbf16>
    %c0_159 = arith.constant 0 : index
    %c3328 = arith.constant 3328 : index
    %267 = vector.load %arg9[%c0_159, %c3328] : memref<2x14080xbf16, #tpu.memory_space<vmem>>, vector<2x64xbf16>
    tpu.vector_store %arg9[%c0_159, %c3328], %266 {strides = array<i32>} : memref<2x14080xbf16, #tpu.memory_space<vmem>>, vector<2x64xbf16>,
    %c0_160 = arith.constant 0 : index
    %268 = arith.index_cast %2 : i32 to index
    %c53 = arith.constant 53 : index
    %c0_161 = arith.constant 0 : index
    %269 = vector.load %arg5[%c0_160, %268, %c53, %c0_161] : memref<1x9x56x64xf32, #tpu.memory_space<vmem>>, vector<1x1x2x64xf32>
    %270 = vector.shape_cast %269 : vector<1x1x2x64xf32> to vector<2x64xf32>
    %271 = arith.truncf %270 : vector<2x64xf32> to vector<2x64xbf16>
    %c0_162 = arith.constant 0 : index
    %c3392 = arith.constant 3392 : index
    %272 = vector.load %arg9[%c0_162, %c3392] : memref<2x14080xbf16, #tpu.memory_space<vmem>>, vector<2x64xbf16>
    tpu.vector_store %arg9[%c0_162, %c3392], %271 {strides = array<i32>} : memref<2x14080xbf16, #tpu.memory_space<vmem>>, vector<2x64xbf16>,
    %c0_163 = arith.constant 0 : index
    %273 = arith.index_cast %2 : i32 to index
    %c54 = arith.constant 54 : index
    %c0_164 = arith.constant 0 : index
    %274 = vector.load %arg5[%c0_163, %273, %c54, %c0_164] : memref<1x9x56x64xf32, #tpu.memory_space<vmem>>, vector<1x1x2x64xf32>
    %275 = vector.shape_cast %274 : vector<1x1x2x64xf32> to vector<2x64xf32>
    %276 = arith.truncf %275 : vector<2x64xf32> to vector<2x64xbf16>
    %c0_165 = arith.constant 0 : index
    %c3456 = arith.constant 3456 : index
    %277 = vector.load %arg9[%c0_165, %c3456] : memref<2x14080xbf16, #tpu.memory_space<vmem>>, vector<2x64xbf16>
    tpu.vector_store %arg9[%c0_165, %c3456], %276 {strides = array<i32>} : memref<2x14080xbf16, #tpu.memory_space<vmem>>, vector<2x64xbf16>,
    %c2_i32 = arith.constant 2 : i32
    %278 = arith.addi %1, %c2_i32 : i32
    %c0_166 = arith.constant 0 : index
    %279 = arith.index_cast %278 : i32 to index
    %c0_167 = arith.constant 0 : index
    %c0_168 = arith.constant 0 : index
    %280 = vector.load %arg5[%c0_166, %279, %c0_167, %c0_168] : memref<1x9x56x64xf32, #tpu.memory_space<vmem>>, vector<1x1x2x64xf32>
    %281 = vector.shape_cast %280 : vector<1x1x2x64xf32> to vector<2x64xf32>
    %282 = arith.truncf %281 : vector<2x64xf32> to vector<2x64xbf16>
    %c0_169 = arith.constant 0 : index
    %c3520 = arith.constant 3520 : index
    %283 = vector.load %arg9[%c0_169, %c3520] : memref<2x14080xbf16, #tpu.memory_space<vmem>>, vector<2x64xbf16>
    tpu.vector_store %arg9[%c0_169, %c3520], %282 {strides = array<i32>} : memref<2x14080xbf16, #tpu.memory_space<vmem>>, vector<2x64xbf16>,
    %c0_170 = arith.constant 0 : index
    %284 = arith.index_cast %278 : i32 to index
    %c1_171 = arith.constant 1 : index
    %c0_172 = arith.constant 0 : index
    %285 = vector.load %arg5[%c0_170, %284, %c1_171, %c0_172] : memref<1x9x56x64xf32, #tpu.memory_space<vmem>>, vector<1x1x2x64xf32>
    %286 = vector.shape_cast %285 : vector<1x1x2x64xf32> to vector<2x64xf32>
    %287 = arith.truncf %286 : vector<2x64xf32> to vector<2x64xbf16>
    %c0_173 = arith.constant 0 : index
    %c3584 = arith.constant 3584 : index
    %288 = vector.load %arg9[%c0_173, %c3584] : memref<2x14080xbf16, #tpu.memory_space<vmem>>, vector<2x64xbf16>
    tpu.vector_store %arg9[%c0_173, %c3584], %287 {strides = array<i32>} : memref<2x14080xbf16, #tpu.memory_space<vmem>>, vector<2x64xbf16>,
    %c0_174 = arith.constant 0 : index
    %289 = arith.index_cast %278 : i32 to index
    %c2_175 = arith.constant 2 : index
    %c0_176 = arith.constant 0 : index
    %290 = vector.load %arg5[%c0_174, %289, %c2_175, %c0_176] : memref<1x9x56x64xf32, #tpu.memory_space<vmem>>, vector<1x1x2x64xf32>
    %291 = vector.shape_cast %290 : vector<1x1x2x64xf32> to vector<2x64xf32>
    %292 = arith.truncf %291 : vector<2x64xf32> to vector<2x64xbf16>
    %c0_177 = arith.constant 0 : index
    %c3648 = arith.constant 3648 : index
    %293 = vector.load %arg9[%c0_177, %c3648] : memref<2x14080xbf16, #tpu.memory_space<vmem>>, vector<2x64xbf16>
    tpu.vector_store %arg9[%c0_177, %c3648], %292 {strides = array<i32>} : memref<2x14080xbf16, #tpu.memory_space<vmem>>, vector<2x64xbf16>,
    %c0_178 = arith.constant 0 : index
    %294 = arith.index_cast %278 : i32 to index
    %c3_179 = arith.constant 3 : index
    %c0_180 = arith.constant 0 : index
    %295 = vector.load %arg5[%c0_178, %294, %c3_179, %c0_180] : memref<1x9x56x64xf32, #tpu.memory_space<vmem>>, vector<1x1x2x64xf32>
    %296 = vector.shape_cast %295 : vector<1x1x2x64xf32> to vector<2x64xf32>
    %297 = arith.truncf %296 : vector<2x64xf32> to vector<2x64xbf16>
    %c0_181 = arith.constant 0 : index
    %c3712 = arith.constant 3712 : index
    %298 = vector.load %arg9[%c0_181, %c3712] : memref<2x14080xbf16, #tpu.memory_space<vmem>>, vector<2x64xbf16>
    tpu.vector_store %arg9[%c0_181, %c3712], %297 {strides = array<i32>} : memref<2x14080xbf16, #tpu.memory_space<vmem>>, vector<2x64xbf16>,
    %c0_182 = arith.constant 0 : index
    %299 = arith.index_cast %278 : i32 to index
    %c4_183 = arith.constant 4 : index
    %c0_184 = arith.constant 0 : index
    %300 = vector.load %arg5[%c0_182, %299, %c4_183, %c0_184] : memref<1x9x56x64xf32, #tpu.memory_space<vmem>>, vector<1x1x2x64xf32>
    %301 = vector.shape_cast %300 : vector<1x1x2x64xf32> to vector<2x64xf32>
    %302 = arith.truncf %301 : vector<2x64xf32> to vector<2x64xbf16>
    %c0_185 = arith.constant 0 : index
    %c3776 = arith.constant 3776 : index
    %303 = vector.load %arg9[%c0_185, %c3776] : memref<2x14080xbf16, #tpu.memory_space<vmem>>, vector<2x64xbf16>
    tpu.vector_store %arg9[%c0_185, %c3776], %302 {strides = array<i32>} : memref<2x14080xbf16, #tpu.memory_space<vmem>>, vector<2x64xbf16>,
    %c0_186 = arith.constant 0 : index
    %304 = arith.index_cast %278 : i32 to index
    %c5_187 = arith.constant 5 : index
    %c0_188 = arith.constant 0 : index
    %305 = vector.load %arg5[%c0_186, %304, %c5_187, %c0_188] : memref<1x9x56x64xf32, #tpu.memory_space<vmem>>, vector<1x1x2x64xf32>
    %306 = vector.shape_cast %305 : vector<1x1x2x64xf32> to vector<2x64xf32>
    %307 = arith.truncf %306 : vector<2x64xf32> to vector<2x64xbf16>
    %c0_189 = arith.constant 0 : index
    %c3840 = arith.constant 3840 : index
    %308 = vector.load %arg9[%c0_189, %c3840] : memref<2x14080xbf16, #tpu.memory_space<vmem>>, vector<2x64xbf16>
    tpu.vector_store %arg9[%c0_189, %c3840], %307 {strides = array<i32>} : memref<2x14080xbf16, #tpu.memory_space<vmem>>, vector<2x64xbf16>,
    %c0_190 = arith.constant 0 : index
    %309 = arith.index_cast %278 : i32 to index
    %c6_191 = arith.constant 6 : index
    %c0_192 = arith.constant 0 : index
    %310 = vector.load %arg5[%c0_190, %309, %c6_191, %c0_192] : memref<1x9x56x64xf32, #tpu.memory_space<vmem>>, vector<1x1x2x64xf32>
    %311 = vector.shape_cast %310 : vector<1x1x2x64xf32> to vector<2x64xf32>
    %312 = arith.truncf %311 : vector<2x64xf32> to vector<2x64xbf16>
    %c0_193 = arith.constant 0 : index
    %c3904 = arith.constant 3904 : index
    %313 = vector.load %arg9[%c0_193, %c3904] : memref<2x14080xbf16, #tpu.memory_space<vmem>>, vector<2x64xbf16>
    tpu.vector_store %arg9[%c0_193, %c3904], %312 {strides = array<i32>} : memref<2x14080xbf16, #tpu.memory_space<vmem>>, vector<2x64xbf16>,
    %c0_194 = arith.constant 0 : index
    %314 = arith.index_cast %278 : i32 to index
    %c7_195 = arith.constant 7 : index
    %c0_196 = arith.constant 0 : index
    %315 = vector.load %arg5[%c0_194, %314, %c7_195, %c0_196] : memref<1x9x56x64xf32, #tpu.memory_space<vmem>>, vector<1x1x2x64xf32>
    %316 = vector.shape_cast %315 : vector<1x1x2x64xf32> to vector<2x64xf32>
    %317 = arith.truncf %316 : vector<2x64xf32> to vector<2x64xbf16>
    %c0_197 = arith.constant 0 : index
    %c3968 = arith.constant 3968 : index
    %318 = vector.load %arg9[%c0_197, %c3968] : memref<2x14080xbf16, #tpu.memory_space<vmem>>, vector<2x64xbf16>
    tpu.vector_store %arg9[%c0_197, %c3968], %317 {strides = array<i32>} : memref<2x14080xbf16, #tpu.memory_space<vmem>>, vector<2x64xbf16>,
    %c0_198 = arith.constant 0 : index
    %319 = arith.index_cast %278 : i32 to index
    %c8_199 = arith.constant 8 : index
    %c0_200 = arith.constant 0 : index
    %320 = vector.load %arg5[%c0_198, %319, %c8_199, %c0_200] : memref<1x9x56x64xf32, #tpu.memory_space<vmem>>, vector<1x1x2x64xf32>
    %321 = vector.shape_cast %320 : vector<1x1x2x64xf32> to vector<2x64xf32>
    %322 = arith.truncf %321 : vector<2x64xf32> to vector<2x64xbf16>
    %c0_201 = arith.constant 0 : index
    %c4032 = arith.constant 4032 : index
    %323 = vector.load %arg9[%c0_201, %c4032] : memref<2x14080xbf16, #tpu.memory_space<vmem>>, vector<2x64xbf16>
    tpu.vector_store %arg9[%c0_201, %c4032], %322 {strides = array<i32>} : memref<2x14080xbf16, #tpu.memory_space<vmem>>, vector<2x64xbf16>,
    %c0_202 = arith.constant 0 : index
    %324 = arith.index_cast %278 : i32 to index
    %c9_203 = arith.constant 9 : index
    %c0_204 = arith.constant 0 : index
    %325 = vector.load %arg5[%c0_202, %324, %c9_203, %c0_204] : memref<1x9x56x64xf32, #tpu.memory_space<vmem>>, vector<1x1x2x64xf32>
    %326 = vector.shape_cast %325 : vector<1x1x2x64xf32> to vector<2x64xf32>
    %327 = arith.truncf %326 : vector<2x64xf32> to vector<2x64xbf16>
    %c0_205 = arith.constant 0 : index
    %c4096 = arith.constant 4096 : index
    %328 = vector.load %arg9[%c0_205, %c4096] : memref<2x14080xbf16, #tpu.memory_space<vmem>>, vector<2x64xbf16>
    tpu.vector_store %arg9[%c0_205, %c4096], %327 {strides = array<i32>} : memref<2x14080xbf16, #tpu.memory_space<vmem>>, vector<2x64xbf16>,
    %c0_206 = arith.constant 0 : index
    %329 = arith.index_cast %278 : i32 to index
    %c10_207 = arith.constant 10 : index
    %c0_208 = arith.constant 0 : index
    %330 = vector.load %arg5[%c0_206, %329, %c10_207, %c0_208] : memref<1x9x56x64xf32, #tpu.memory_space<vmem>>, vector<1x1x2x64xf32>
    %331 = vector.shape_cast %330 : vector<1x1x2x64xf32> to vector<2x64xf32>
    %332 = arith.truncf %331 : vector<2x64xf32> to vector<2x64xbf16>
    %c0_209 = arith.constant 0 : index
    %c4160 = arith.constant 4160 : index
    %333 = vector.load %arg9[%c0_209, %c4160] : memref<2x14080xbf16, #tpu.memory_space<vmem>>, vector<2x64xbf16>
    tpu.vector_store %arg9[%c0_209, %c4160], %332 {strides = array<i32>} : memref<2x14080xbf16, #tpu.memory_space<vmem>>, vector<2x64xbf16>,
    %c0_210 = arith.constant 0 : index
    %334 = arith.index_cast %278 : i32 to index
    %c11_211 = arith.constant 11 : index
    %c0_212 = arith.constant 0 : index
    %335 = vector.load %arg5[%c0_210, %334, %c11_211, %c0_212] : memref<1x9x56x64xf32, #tpu.memory_space<vmem>>, vector<1x1x2x64xf32>
    %336 = vector.shape_cast %335 : vector<1x1x2x64xf32> to vector<2x64xf32>
    %337 = arith.truncf %336 : vector<2x64xf32> to vector<2x64xbf16>
    %c0_213 = arith.constant 0 : index
    %c4224 = arith.constant 4224 : index
    %338 = vector.load %arg9[%c0_213, %c4224] : memref<2x14080xbf16, #tpu.memory_space<vmem>>, vector<2x64xbf16>
    tpu.vector_store %arg9[%c0_213, %c4224], %337 {strides = array<i32>} : memref<2x14080xbf16, #tpu.memory_space<vmem>>, vector<2x64xbf16>,
    %c0_214 = arith.constant 0 : index
    %339 = arith.index_cast %278 : i32 to index
    %c12_215 = arith.constant 12 : index
    %c0_216 = arith.constant 0 : index
    %340 = vector.load %arg5[%c0_214, %339, %c12_215, %c0_216] : memref<1x9x56x64xf32, #tpu.memory_space<vmem>>, vector<1x1x2x64xf32>
    %341 = vector.shape_cast %340 : vector<1x1x2x64xf32> to vector<2x64xf32>
    %342 = arith.truncf %341 : vector<2x64xf32> to vector<2x64xbf16>
    %c0_217 = arith.constant 0 : index
    %c4288 = arith.constant 4288 : index
    %343 = vector.load %arg9[%c0_217, %c4288] : memref<2x14080xbf16, #tpu.memory_space<vmem>>, vector<2x64xbf16>
    tpu.vector_store %arg9[%c0_217, %c4288], %342 {strides = array<i32>} : memref<2x14080xbf16, #tpu.memory_space<vmem>>, vector<2x64xbf16>,
    %c0_218 = arith.constant 0 : index
    %344 = arith.index_cast %278 : i32 to index
    %c13_219 = arith.constant 13 : index
    %c0_220 = arith.constant 0 : index
    %345 = vector.load %arg5[%c0_218, %344, %c13_219, %c0_220] : memref<1x9x56x64xf32, #tpu.memory_space<vmem>>, vector<1x1x2x64xf32>
    %346 = vector.shape_cast %345 : vector<1x1x2x64xf32> to vector<2x64xf32>
    %347 = arith.truncf %346 : vector<2x64xf32> to vector<2x64xbf16>
    %c0_221 = arith.constant 0 : index
    %c4352 = arith.constant 4352 : index
    %348 = vector.load %arg9[%c0_221, %c4352] : memref<2x14080xbf16, #tpu.memory_space<vmem>>, vector<2x64xbf16>
    tpu.vector_store %arg9[%c0_221, %c4352], %347 {strides = array<i32>} : memref<2x14080xbf16, #tpu.memory_space<vmem>>, vector<2x64xbf16>,
    %c0_222 = arith.constant 0 : index
    %349 = arith.index_cast %278 : i32 to index
    %c14_223 = arith.constant 14 : index
    %c0_224 = arith.constant 0 : index
    %350 = vector.load %arg5[%c0_222, %349, %c14_223, %c0_224] : memref<1x9x56x64xf32, #tpu.memory_space<vmem>>, vector<1x1x2x64xf32>
    %351 = vector.shape_cast %350 : vector<1x1x2x64xf32> to vector<2x64xf32>
    %352 = arith.truncf %351 : vector<2x64xf32> to vector<2x64xbf16>
    %c0_225 = arith.constant 0 : index
    %c4416 = arith.constant 4416 : index
    %353 = vector.load %arg9[%c0_225, %c4416] : memref<2x14080xbf16, #tpu.memory_space<vmem>>, vector<2x64xbf16>
    tpu.vector_store %arg9[%c0_225, %c4416], %352 {strides = array<i32>} : memref<2x14080xbf16, #tpu.memory_space<vmem>>, vector<2x64xbf16>,
    %c0_226 = arith.constant 0 : index
    %354 = arith.index_cast %278 : i32 to index
    %c15_227 = arith.constant 15 : index
    %c0_228 = arith.constant 0 : index
    %355 = vector.load %arg5[%c0_226, %354, %c15_227, %c0_228] : memref<1x9x56x64xf32, #tpu.memory_space<vmem>>, vector<1x1x2x64xf32>
    %356 = vector.shape_cast %355 : vector<1x1x2x64xf32> to vector<2x64xf32>
    %357 = arith.truncf %356 : vector<2x64xf32> to vector<2x64xbf16>
    %c0_229 = arith.constant 0 : index
    %c4480 = arith.constant 4480 : index
    %358 = vector.load %arg9[%c0_229, %c4480] : memref<2x14080xbf16, #tpu.memory_space<vmem>>, vector<2x64xbf16>
    tpu.vector_store %arg9[%c0_229, %c4480], %357 {strides = array<i32>} : memref<2x14080xbf16, #tpu.memory_space<vmem>>, vector<2x64xbf16>,
    %c0_230 = arith.constant 0 : index
    %359 = arith.index_cast %278 : i32 to index
    %c16_231 = arith.constant 16 : index
    %c0_232 = arith.constant 0 : index
    %360 = vector.load %arg5[%c0_230, %359, %c16_231, %c0_232] : memref<1x9x56x64xf32, #tpu.memory_space<vmem>>, vector<1x1x2x64xf32>
    %361 = vector.shape_cast %360 : vector<1x1x2x64xf32> to vector<2x64xf32>
    %362 = arith.truncf %361 : vector<2x64xf32> to vector<2x64xbf16>
    %c0_233 = arith.constant 0 : index
    %c4544 = arith.constant 4544 : index
    %363 = vector.load %arg9[%c0_233, %c4544] : memref<2x14080xbf16, #tpu.memory_space<vmem>>, vector<2x64xbf16>
    tpu.vector_store %arg9[%c0_233, %c4544], %362 {strides = array<i32>} : memref<2x14080xbf16, #tpu.memory_space<vmem>>, vector<2x64xbf16>,
    %c0_234 = arith.constant 0 : index
    %364 = arith.index_cast %278 : i32 to index
    %c17_235 = arith.constant 17 : index
    %c0_236 = arith.constant 0 : index
    %365 = vector.load %arg5[%c0_234, %364, %c17_235, %c0_236] : memref<1x9x56x64xf32, #tpu.memory_space<vmem>>, vector<1x1x2x64xf32>
    %366 = vector.shape_cast %365 : vector<1x1x2x64xf32> to vector<2x64xf32>
    %367 = arith.truncf %366 : vector<2x64xf32> to vector<2x64xbf16>
    %c0_237 = arith.constant 0 : index
    %c4608 = arith.constant 4608 : index
    %368 = vector.load %arg9[%c0_237, %c4608] : memref<2x14080xbf16, #tpu.memory_space<vmem>>, vector<2x64xbf16>
    tpu.vector_store %arg9[%c0_237, %c4608], %367 {strides = array<i32>} : memref<2x14080xbf16, #tpu.memory_space<vmem>>, vector<2x64xbf16>,
    %c0_238 = arith.constant 0 : index
    %369 = arith.index_cast %278 : i32 to index
    %c18_239 = arith.constant 18 : index
    %c0_240 = arith.constant 0 : index
    %370 = vector.load %arg5[%c0_238, %369, %c18_239, %c0_240] : memref<1x9x56x64xf32, #tpu.memory_space<vmem>>, vector<1x1x2x64xf32>
    %371 = vector.shape_cast %370 : vector<1x1x2x64xf32> to vector<2x64xf32>
    %372 = arith.truncf %371 : vector<2x64xf32> to vector<2x64xbf16>
    %c0_241 = arith.constant 0 : index
    %c4672 = arith.constant 4672 : index
    %373 = vector.load %arg9[%c0_241, %c4672] : memref<2x14080xbf16, #tpu.memory_space<vmem>>, vector<2x64xbf16>
    tpu.vector_store %arg9[%c0_241, %c4672], %372 {strides = array<i32>} : memref<2x14080xbf16, #tpu.memory_space<vmem>>, vector<2x64xbf16>,
    %c0_242 = arith.constant 0 : index
    %374 = arith.index_cast %278 : i32 to index
    %c19_243 = arith.constant 19 : index
    %c0_244 = arith.constant 0 : index
    %375 = vector.load %arg5[%c0_242, %374, %c19_243, %c0_244] : memref<1x9x56x64xf32, #tpu.memory_space<vmem>>, vector<1x1x2x64xf32>
    %376 = vector.shape_cast %375 : vector<1x1x2x64xf32> to vector<2x64xf32>
    %377 = arith.truncf %376 : vector<2x64xf32> to vector<2x64xbf16>
    %c0_245 = arith.constant 0 : index
    %c4736 = arith.constant 4736 : index
    %378 = vector.load %arg9[%c0_245, %c4736] : memref<2x14080xbf16, #tpu.memory_space<vmem>>, vector<2x64xbf16>
    tpu.vector_store %arg9[%c0_245, %c4736], %377 {strides = array<i32>} : memref<2x14080xbf16, #tpu.memory_space<vmem>>, vector<2x64xbf16>,
    %c0_246 = arith.constant 0 : index
    %379 = arith.index_cast %278 : i32 to index
    %c20_247 = arith.constant 20 : index
    %c0_248 = arith.constant 0 : index
    %380 = vector.load %arg5[%c0_246, %379, %c20_247, %c0_248] : memref<1x9x56x64xf32, #tpu.memory_space<vmem>>, vector<1x1x2x64xf32>
    %381 = vector.shape_cast %380 : vector<1x1x2x64xf32> to vector<2x64xf32>
    %382 = arith.truncf %381 : vector<2x64xf32> to vector<2x64xbf16>
    %c0_249 = arith.constant 0 : index
    %c4800 = arith.constant 4800 : index
    %383 = vector.load %arg9[%c0_249, %c4800] : memref<2x14080xbf16, #tpu.memory_space<vmem>>, vector<2x64xbf16>
    tpu.vector_store %arg9[%c0_249, %c4800], %382 {strides = array<i32>} : memref<2x14080xbf16, #tpu.memory_space<vmem>>, vector<2x64xbf16>,
    %c0_250 = arith.constant 0 : index
    %384 = arith.index_cast %278 : i32 to index
    %c21_251 = arith.constant 21 : index
    %c0_252 = arith.constant 0 : index
    %385 = vector.load %arg5[%c0_250, %384, %c21_251, %c0_252] : memref<1x9x56x64xf32, #tpu.memory_space<vmem>>, vector<1x1x2x64xf32>
    %386 = vector.shape_cast %385 : vector<1x1x2x64xf32> to vector<2x64xf32>
    %387 = arith.truncf %386 : vector<2x64xf32> to vector<2x64xbf16>
    %c0_253 = arith.constant 0 : index
    %c4864 = arith.constant 4864 : index
    %388 = vector.load %arg9[%c0_253, %c4864] : memref<2x14080xbf16, #tpu.memory_space<vmem>>, vector<2x64xbf16>
    tpu.vector_store %arg9[%c0_253, %c4864], %387 {strides = array<i32>} : memref<2x14080xbf16, #tpu.memory_space<vmem>>, vector<2x64xbf16>,
    %c0_254 = arith.constant 0 : index
    %389 = arith.index_cast %278 : i32 to index
    %c22_255 = arith.constant 22 : index
    %c0_256 = arith.constant 0 : index
    %390 = vector.load %arg5[%c0_254, %389, %c22_255, %c0_256] : memref<1x9x56x64xf32, #tpu.memory_space<vmem>>, vector<1x1x2x64xf32>
    %391 = vector.shape_cast %390 : vector<1x1x2x64xf32> to vector<2x64xf32>
    %392 = arith.truncf %391 : vector<2x64xf32> to vector<2x64xbf16>
    %c0_257 = arith.constant 0 : index
    %c4928 = arith.constant 4928 : index
    %393 = vector.load %arg9[%c0_257, %c4928] : memref<2x14080xbf16, #tpu.memory_space<vmem>>, vector<2x64xbf16>
    tpu.vector_store %arg9[%c0_257, %c4928], %392 {strides = array<i32>} : memref<2x14080xbf16, #tpu.memory_space<vmem>>, vector<2x64xbf16>,
    %c0_258 = arith.constant 0 : index
    %394 = arith.index_cast %278 : i32 to index
    %c23_259 = arith.constant 23 : index
    %c0_260 = arith.constant 0 : index
    %395 = vector.load %arg5[%c0_258, %394, %c23_259, %c0_260] : memref<1x9x56x64xf32, #tpu.memory_space<vmem>>, vector<1x1x2x64xf32>
    %396 = vector.shape_cast %395 : vector<1x1x2x64xf32> to vector<2x64xf32>
    %397 = arith.truncf %396 : vector<2x64xf32> to vector<2x64xbf16>
    %c0_261 = arith.constant 0 : index
    %c4992 = arith.constant 4992 : index
    %398 = vector.load %arg9[%c0_261, %c4992] : memref<2x14080xbf16, #tpu.memory_space<vmem>>, vector<2x64xbf16>
    tpu.vector_store %arg9[%c0_261, %c4992], %397 {strides = array<i32>} : memref<2x14080xbf16, #tpu.memory_space<vmem>>, vector<2x64xbf16>,
    %c0_262 = arith.constant 0 : index
    %399 = arith.index_cast %278 : i32 to index
    %c24_263 = arith.constant 24 : index
    %c0_264 = arith.constant 0 : index
    %400 = vector.load %arg5[%c0_262, %399, %c24_263, %c0_264] : memref<1x9x56x64xf32, #tpu.memory_space<vmem>>, vector<1x1x2x64xf32>
    %401 = vector.shape_cast %400 : vector<1x1x2x64xf32> to vector<2x64xf32>
    %402 = arith.truncf %401 : vector<2x64xf32> to vector<2x64xbf16>
    %c0_265 = arith.constant 0 : index
    %c5056 = arith.constant 5056 : index
    %403 = vector.load %arg9[%c0_265, %c5056] : memref<2x14080xbf16, #tpu.memory_space<vmem>>, vector<2x64xbf16>
    tpu.vector_store %arg9[%c0_265, %c5056], %402 {strides = array<i32>} : memref<2x14080xbf16, #tpu.memory_space<vmem>>, vector<2x64xbf16>,
    %c0_266 = arith.constant 0 : index
    %404 = arith.index_cast %278 : i32 to index
    %c25_267 = arith.constant 25 : index
    %c0_268 = arith.constant 0 : index
    %405 = vector.load %arg5[%c0_266, %404, %c25_267, %c0_268] : memref<1x9x56x64xf32, #tpu.memory_space<vmem>>, vector<1x1x2x64xf32>
    %406 = vector.shape_cast %405 : vector<1x1x2x64xf32> to vector<2x64xf32>
    %407 = arith.truncf %406 : vector<2x64xf32> to vector<2x64xbf16>
    %c0_269 = arith.constant 0 : index
    %c5120 = arith.constant 5120 : index
    %408 = vector.load %arg9[%c0_269, %c5120] : memref<2x14080xbf16, #tpu.memory_space<vmem>>, vector<2x64xbf16>
    tpu.vector_store %arg9[%c0_269, %c5120], %407 {strides = array<i32>} : memref<2x14080xbf16, #tpu.memory_space<vmem>>, vector<2x64xbf16>,
    %c0_270 = arith.constant 0 : index
    %409 = arith.index_cast %278 : i32 to index
    %c26_271 = arith.constant 26 : index
    %c0_272 = arith.constant 0 : index
    %410 = vector.load %arg5[%c0_270, %409, %c26_271, %c0_272] : memref<1x9x56x64xf32, #tpu.memory_space<vmem>>, vector<1x1x2x64xf32>
    %411 = vector.shape_cast %410 : vector<1x1x2x64xf32> to vector<2x64xf32>
    %412 = arith.truncf %411 : vector<2x64xf32> to vector<2x64xbf16>
    %c0_273 = arith.constant 0 : index
    %c5184 = arith.constant 5184 : index
    %413 = vector.load %arg9[%c0_273, %c5184] : memref<2x14080xbf16, #tpu.memory_space<vmem>>, vector<2x64xbf16>
    tpu.vector_store %arg9[%c0_273, %c5184], %412 {strides = array<i32>} : memref<2x14080xbf16, #tpu.memory_space<vmem>>, vector<2x64xbf16>,
    %c0_274 = arith.constant 0 : index
    %414 = arith.index_cast %278 : i32 to index
    %c27_275 = arith.constant 27 : index
    %c0_276 = arith.constant 0 : index
    %415 = vector.load %arg5[%c0_274, %414, %c27_275, %c0_276] : memref<1x9x56x64xf32, #tpu.memory_space<vmem>>, vector<1x1x2x64xf32>
    %416 = vector.shape_cast %415 : vector<1x1x2x64xf32> to vector<2x64xf32>
    %417 = arith.truncf %416 : vector<2x64xf32> to vector<2x64xbf16>
    %c0_277 = arith.constant 0 : index
    %c5248 = arith.constant 5248 : index
    %418 = vector.load %arg9[%c0_277, %c5248] : memref<2x14080xbf16, #tpu.memory_space<vmem>>, vector<2x64xbf16>
    tpu.vector_store %arg9[%c0_277, %c5248], %417 {strides = array<i32>} : memref<2x14080xbf16, #tpu.memory_space<vmem>>, vector<2x64xbf16>,
    %c0_278 = arith.constant 0 : index
    %419 = arith.index_cast %278 : i32 to index
    %c28_279 = arith.constant 28 : index
    %c0_280 = arith.constant 0 : index
    %420 = vector.load %arg5[%c0_278, %419, %c28_279, %c0_280] : memref<1x9x56x64xf32, #tpu.memory_space<vmem>>, vector<1x1x2x64xf32>
    %421 = vector.shape_cast %420 : vector<1x1x2x64xf32> to vector<2x64xf32>
    %422 = arith.truncf %421 : vector<2x64xf32> to vector<2x64xbf16>
    %c0_281 = arith.constant 0 : index
    %c5312 = arith.constant 5312 : index
    %423 = vector.load %arg9[%c0_281, %c5312] : memref<2x14080xbf16, #tpu.memory_space<vmem>>, vector<2x64xbf16>
    tpu.vector_store %arg9[%c0_281, %c5312], %422 {strides = array<i32>} : memref<2x14080xbf16, #tpu.memory_space<vmem>>, vector<2x64xbf16>,
    %c0_282 = arith.constant 0 : index
    %424 = arith.index_cast %278 : i32 to index
    %c29_283 = arith.constant 29 : index
    %c0_284 = arith.constant 0 : index
    %425 = vector.load %arg5[%c0_282, %424, %c29_283, %c0_284] : memref<1x9x56x64xf32, #tpu.memory_space<vmem>>, vector<1x1x2x64xf32>
    %426 = vector.shape_cast %425 : vector<1x1x2x64xf32> to vector<2x64xf32>
    %427 = arith.truncf %426 : vector<2x64xf32> to vector<2x64xbf16>
    %c0_285 = arith.constant 0 : index
    %c5376 = arith.constant 5376 : index
    %428 = vector.load %arg9[%c0_285, %c5376] : memref<2x14080xbf16, #tpu.memory_space<vmem>>, vector<2x64xbf16>
    tpu.vector_store %arg9[%c0_285, %c5376], %427 {strides = array<i32>} : memref<2x14080xbf16, #tpu.memory_space<vmem>>, vector<2x64xbf16>,
    %c0_286 = arith.constant 0 : index
    %429 = arith.index_cast %278 : i32 to index
    %c30_287 = arith.constant 30 : index
    %c0_288 = arith.constant 0 : index
    %430 = vector.load %arg5[%c0_286, %429, %c30_287, %c0_288] : memref<1x9x56x64xf32, #tpu.memory_space<vmem>>, vector<1x1x2x64xf32>
    %431 = vector.shape_cast %430 : vector<1x1x2x64xf32> to vector<2x64xf32>
    %432 = arith.truncf %431 : vector<2x64xf32> to vector<2x64xbf16>
    %c0_289 = arith.constant 0 : index
    %c5440 = arith.constant 5440 : index
    %433 = vector.load %arg9[%c0_289, %c5440] : memref<2x14080xbf16, #tpu.memory_space<vmem>>, vector<2x64xbf16>
    tpu.vector_store %arg9[%c0_289, %c5440], %432 {strides = array<i32>} : memref<2x14080xbf16, #tpu.memory_space<vmem>>, vector<2x64xbf16>,
    %c0_290 = arith.constant 0 : index
    %434 = arith.index_cast %278 : i32 to index
    %c31_291 = arith.constant 31 : index
    %c0_292 = arith.constant 0 : index
    %435 = vector.load %arg5[%c0_290, %434, %c31_291, %c0_292] : memref<1x9x56x64xf32, #tpu.memory_space<vmem>>, vector<1x1x2x64xf32>
    %436 = vector.shape_cast %435 : vector<1x1x2x64xf32> to vector<2x64xf32>
    %437 = arith.truncf %436 : vector<2x64xf32> to vector<2x64xbf16>
    %c0_293 = arith.constant 0 : index
    %c5504 = arith.constant 5504 : index
    %438 = vector.load %arg9[%c0_293, %c5504] : memref<2x14080xbf16, #tpu.memory_space<vmem>>, vector<2x64xbf16>
    tpu.vector_store %arg9[%c0_293, %c5504], %437 {strides = array<i32>} : memref<2x14080xbf16, #tpu.memory_space<vmem>>, vector<2x64xbf16>,
    %c0_294 = arith.constant 0 : index
    %439 = arith.index_cast %278 : i32 to index
    %c32_295 = arith.constant 32 : index
    %c0_296 = arith.constant 0 : index
    %440 = vector.load %arg5[%c0_294, %439, %c32_295, %c0_296] : memref<1x9x56x64xf32, #tpu.memory_space<vmem>>, vector<1x1x2x64xf32>
    %441 = vector.shape_cast %440 : vector<1x1x2x64xf32> to vector<2x64xf32>
    %442 = arith.truncf %441 : vector<2x64xf32> to vector<2x64xbf16>
    %c0_297 = arith.constant 0 : index
    %c5568 = arith.constant 5568 : index
    %443 = vector.load %arg9[%c0_297, %c5568] : memref<2x14080xbf16, #tpu.memory_space<vmem>>, vector<2x64xbf16>
    tpu.vector_store %arg9[%c0_297, %c5568], %442 {strides = array<i32>} : memref<2x14080xbf16, #tpu.memory_space<vmem>>, vector<2x64xbf16>,
    %c0_298 = arith.constant 0 : index
    %444 = arith.index_cast %278 : i32 to index
    %c33_299 = arith.constant 33 : index
    %c0_300 = arith.constant 0 : index
    %445 = vector.load %arg5[%c0_298, %444, %c33_299, %c0_300] : memref<1x9x56x64xf32, #tpu.memory_space<vmem>>, vector<1x1x2x64xf32>
    %446 = vector.shape_cast %445 : vector<1x1x2x64xf32> to vector<2x64xf32>
    %447 = arith.truncf %446 : vector<2x64xf32> to vector<2x64xbf16>
    %c0_301 = arith.constant 0 : index
    %c5632 = arith.constant 5632 : index
    %448 = vector.load %arg9[%c0_301, %c5632] : memref<2x14080xbf16, #tpu.memory_space<vmem>>, vector<2x64xbf16>
    tpu.vector_store %arg9[%c0_301, %c5632], %447 {strides = array<i32>} : memref<2x14080xbf16, #tpu.memory_space<vmem>>, vector<2x64xbf16>,
    %c0_302 = arith.constant 0 : index
    %449 = arith.index_cast %278 : i32 to index
    %c34_303 = arith.constant 34 : index
    %c0_304 = arith.constant 0 : index
    %450 = vector.load %arg5[%c0_302, %449, %c34_303, %c0_304] : memref<1x9x56x64xf32, #tpu.memory_space<vmem>>, vector<1x1x2x64xf32>
    %451 = vector.shape_cast %450 : vector<1x1x2x64xf32> to vector<2x64xf32>
    %452 = arith.truncf %451 : vector<2x64xf32> to vector<2x64xbf16>
    %c0_305 = arith.constant 0 : index
    %c5696 = arith.constant 5696 : index
    %453 = vector.load %arg9[%c0_305, %c5696] : memref<2x14080xbf16, #tpu.memory_space<vmem>>, vector<2x64xbf16>
    tpu.vector_store %arg9[%c0_305, %c5696], %452 {strides = array<i32>} : memref<2x14080xbf16, #tpu.memory_space<vmem>>, vector<2x64xbf16>,
    %c0_306 = arith.constant 0 : index
    %454 = arith.index_cast %278 : i32 to index
    %c35_307 = arith.constant 35 : index
    %c0_308 = arith.constant 0 : index
    %455 = vector.load %arg5[%c0_306, %454, %c35_307, %c0_308] : memref<1x9x56x64xf32, #tpu.memory_space<vmem>>, vector<1x1x2x64xf32>
    %456 = vector.shape_cast %455 : vector<1x1x2x64xf32> to vector<2x64xf32>
    %457 = arith.truncf %456 : vector<2x64xf32> to vector<2x64xbf16>
    %c0_309 = arith.constant 0 : index
    %c5760 = arith.constant 5760 : index
    %458 = vector.load %arg9[%c0_309, %c5760] : memref<2x14080xbf16, #tpu.memory_space<vmem>>, vector<2x64xbf16>
    tpu.vector_store %arg9[%c0_309, %c5760], %457 {strides = array<i32>} : memref<2x14080xbf16, #tpu.memory_space<vmem>>, vector<2x64xbf16>,
    %c0_310 = arith.constant 0 : index
    %459 = arith.index_cast %278 : i32 to index
    %c36_311 = arith.constant 36 : index
    %c0_312 = arith.constant 0 : index
    %460 = vector.load %arg5[%c0_310, %459, %c36_311, %c0_312] : memref<1x9x56x64xf32, #tpu.memory_space<vmem>>, vector<1x1x2x64xf32>
    %461 = vector.shape_cast %460 : vector<1x1x2x64xf32> to vector<2x64xf32>
    %462 = arith.truncf %461 : vector<2x64xf32> to vector<2x64xbf16>
    %c0_313 = arith.constant 0 : index
    %c5824 = arith.constant 5824 : index
    %463 = vector.load %arg9[%c0_313, %c5824] : memref<2x14080xbf16, #tpu.memory_space<vmem>>, vector<2x64xbf16>
    tpu.vector_store %arg9[%c0_313, %c5824], %462 {strides = array<i32>} : memref<2x14080xbf16, #tpu.memory_space<vmem>>, vector<2x64xbf16>,
    %c0_314 = arith.constant 0 : index
    %464 = arith.index_cast %278 : i32 to index
    %c37_315 = arith.constant 37 : index
    %c0_316 = arith.constant 0 : index
    %465 = vector.load %arg5[%c0_314, %464, %c37_315, %c0_316] : memref<1x9x56x64xf32, #tpu.memory_space<vmem>>, vector<1x1x2x64xf32>
    %466 = vector.shape_cast %465 : vector<1x1x2x64xf32> to vector<2x64xf32>
    %467 = arith.truncf %466 : vector<2x64xf32> to vector<2x64xbf16>
    %c0_317 = arith.constant 0 : index
    %c5888 = arith.constant 5888 : index
    %468 = vector.load %arg9[%c0_317, %c5888] : memref<2x14080xbf16, #tpu.memory_space<vmem>>, vector<2x64xbf16>
    tpu.vector_store %arg9[%c0_317, %c5888], %467 {strides = array<i32>} : memref<2x14080xbf16, #tpu.memory_space<vmem>>, vector<2x64xbf16>,
    %c0_318 = arith.constant 0 : index
    %469 = arith.index_cast %278 : i32 to index
    %c38_319 = arith.constant 38 : index
    %c0_320 = arith.constant 0 : index
    %470 = vector.load %arg5[%c0_318, %469, %c38_319, %c0_320] : memref<1x9x56x64xf32, #tpu.memory_space<vmem>>, vector<1x1x2x64xf32>
    %471 = vector.shape_cast %470 : vector<1x1x2x64xf32> to vector<2x64xf32>
    %472 = arith.truncf %471 : vector<2x64xf32> to vector<2x64xbf16>
    %c0_321 = arith.constant 0 : index
    %c5952 = arith.constant 5952 : index
    %473 = vector.load %arg9[%c0_321, %c5952] : memref<2x14080xbf16, #tpu.memory_space<vmem>>, vector<2x64xbf16>
    tpu.vector_store %arg9[%c0_321, %c5952], %472 {strides = array<i32>} : memref<2x14080xbf16, #tpu.memory_space<vmem>>, vector<2x64xbf16>,
    %c0_322 = arith.constant 0 : index
    %474 = arith.index_cast %278 : i32 to index
    %c39_323 = arith.constant 39 : index
    %c0_324 = arith.constant 0 : index
    %475 = vector.load %arg5[%c0_322, %474, %c39_323, %c0_324] : memref<1x9x56x64xf32, #tpu.memory_space<vmem>>, vector<1x1x2x64xf32>
    %476 = vector.shape_cast %475 : vector<1x1x2x64xf32> to vector<2x64xf32>
    %477 = arith.truncf %476 : vector<2x64xf32> to vector<2x64xbf16>
    %c0_325 = arith.constant 0 : index
    %c6016 = arith.constant 6016 : index
    %478 = vector.load %arg9[%c0_325, %c6016] : memref<2x14080xbf16, #tpu.memory_space<vmem>>, vector<2x64xbf16>
    tpu.vector_store %arg9[%c0_325, %c6016], %477 {strides = array<i32>} : memref<2x14080xbf16, #tpu.memory_space<vmem>>, vector<2x64xbf16>,
    %c0_326 = arith.constant 0 : index
    %479 = arith.index_cast %278 : i32 to index
    %c40_327 = arith.constant 40 : index
    %c0_328 = arith.constant 0 : index
    %480 = vector.load %arg5[%c0_326, %479, %c40_327, %c0_328] : memref<1x9x56x64xf32, #tpu.memory_space<vmem>>, vector<1x1x2x64xf32>
    %481 = vector.shape_cast %480 : vector<1x1x2x64xf32> to vector<2x64xf32>
    %482 = arith.truncf %481 : vector<2x64xf32> to vector<2x64xbf16>
    %c0_329 = arith.constant 0 : index
    %c6080 = arith.constant 6080 : index
    %483 = vector.load %arg9[%c0_329, %c6080] : memref<2x14080xbf16, #tpu.memory_space<vmem>>, vector<2x64xbf16>
    tpu.vector_store %arg9[%c0_329, %c6080], %482 {strides = array<i32>} : memref<2x14080xbf16, #tpu.memory_space<vmem>>, vector<2x64xbf16>,
    %c0_330 = arith.constant 0 : index
    %484 = arith.index_cast %278 : i32 to index
    %c41_331 = arith.constant 41 : index
    %c0_332 = arith.constant 0 : index
    %485 = vector.load %arg5[%c0_330, %484, %c41_331, %c0_332] : memref<1x9x56x64xf32, #tpu.memory_space<vmem>>, vector<1x1x2x64xf32>
    %486 = vector.shape_cast %485 : vector<1x1x2x64xf32> to vector<2x64xf32>
    %487 = arith.truncf %486 : vector<2x64xf32> to vector<2x64xbf16>
    %c0_333 = arith.constant 0 : index
    %c6144 = arith.constant 6144 : index
    %488 = vector.load %arg9[%c0_333, %c6144] : memref<2x14080xbf16, #tpu.memory_space<vmem>>, vector<2x64xbf16>
    tpu.vector_store %arg9[%c0_333, %c6144], %487 {strides = array<i32>} : memref<2x14080xbf16, #tpu.memory_space<vmem>>, vector<2x64xbf16>,
    %c0_334 = arith.constant 0 : index
    %489 = arith.index_cast %278 : i32 to index
    %c42_335 = arith.constant 42 : index
    %c0_336 = arith.constant 0 : index
    %490 = vector.load %arg5[%c0_334, %489, %c42_335, %c0_336] : memref<1x9x56x64xf32, #tpu.memory_space<vmem>>, vector<1x1x2x64xf32>
    %491 = vector.shape_cast %490 : vector<1x1x2x64xf32> to vector<2x64xf32>
    %492 = arith.truncf %491 : vector<2x64xf32> to vector<2x64xbf16>
    %c0_337 = arith.constant 0 : index
    %c6208 = arith.constant 6208 : index
    %493 = vector.load %arg9[%c0_337, %c6208] : memref<2x14080xbf16, #tpu.memory_space<vmem>>, vector<2x64xbf16>
    tpu.vector_store %arg9[%c0_337, %c6208], %492 {strides = array<i32>} : memref<2x14080xbf16, #tpu.memory_space<vmem>>, vector<2x64xbf16>,
    %c0_338 = arith.constant 0 : index
    %494 = arith.index_cast %278 : i32 to index
    %c43_339 = arith.constant 43 : index
    %c0_340 = arith.constant 0 : index
    %495 = vector.load %arg5[%c0_338, %494, %c43_339, %c0_340] : memref<1x9x56x64xf32, #tpu.memory_space<vmem>>, vector<1x1x2x64xf32>
    %496 = vector.shape_cast %495 : vector<1x1x2x64xf32> to vector<2x64xf32>
    %497 = arith.truncf %496 : vector<2x64xf32> to vector<2x64xbf16>
    %c0_341 = arith.constant 0 : index
    %c6272 = arith.constant 6272 : index
    %498 = vector.load %arg9[%c0_341, %c6272] : memref<2x14080xbf16, #tpu.memory_space<vmem>>, vector<2x64xbf16>
    tpu.vector_store %arg9[%c0_341, %c6272], %497 {strides = array<i32>} : memref<2x14080xbf16, #tpu.memory_space<vmem>>, vector<2x64xbf16>,
    %c0_342 = arith.constant 0 : index
    %499 = arith.index_cast %278 : i32 to index
    %c44_343 = arith.constant 44 : index
    %c0_344 = arith.constant 0 : index
    %500 = vector.load %arg5[%c0_342, %499, %c44_343, %c0_344] : memref<1x9x56x64xf32, #tpu.memory_space<vmem>>, vector<1x1x2x64xf32>
    %501 = vector.shape_cast %500 : vector<1x1x2x64xf32> to vector<2x64xf32>
    %502 = arith.truncf %501 : vector<2x64xf32> to vector<2x64xbf16>
    %c0_345 = arith.constant 0 : index
    %c6336 = arith.constant 6336 : index
    %503 = vector.load %arg9[%c0_345, %c6336] : memref<2x14080xbf16, #tpu.memory_space<vmem>>, vector<2x64xbf16>
    tpu.vector_store %arg9[%c0_345, %c6336], %502 {strides = array<i32>} : memref<2x14080xbf16, #tpu.memory_space<vmem>>, vector<2x64xbf16>,
    %c0_346 = arith.constant 0 : index
    %504 = arith.index_cast %278 : i32 to index
    %c45_347 = arith.constant 45 : index
    %c0_348 = arith.constant 0 : index
    %505 = vector.load %arg5[%c0_346, %504, %c45_347, %c0_348] : memref<1x9x56x64xf32, #tpu.memory_space<vmem>>, vector<1x1x2x64xf32>
    %506 = vector.shape_cast %505 : vector<1x1x2x64xf32> to vector<2x64xf32>
    %507 = arith.truncf %506 : vector<2x64xf32> to vector<2x64xbf16>
    %c0_349 = arith.constant 0 : index
    %c6400 = arith.constant 6400 : index
    %508 = vector.load %arg9[%c0_349, %c6400] : memref<2x14080xbf16, #tpu.memory_space<vmem>>, vector<2x64xbf16>
    tpu.vector_store %arg9[%c0_349, %c6400], %507 {strides = array<i32>} : memref<2x14080xbf16, #tpu.memory_space<vmem>>, vector<2x64xbf16>,
    %c0_350 = arith.constant 0 : index
    %509 = arith.index_cast %278 : i32 to index
    %c46_351 = arith.constant 46 : index
    %c0_352 = arith.constant 0 : index
    %510 = vector.load %arg5[%c0_350, %509, %c46_351, %c0_352] : memref<1x9x56x64xf32, #tpu.memory_space<vmem>>, vector<1x1x2x64xf32>
    %511 = vector.shape_cast %510 : vector<1x1x2x64xf32> to vector<2x64xf32>
    %512 = arith.truncf %511 : vector<2x64xf32> to vector<2x64xbf16>
    %c0_353 = arith.constant 0 : index
    %c6464 = arith.constant 6464 : index
    %513 = vector.load %arg9[%c0_353, %c6464] : memref<2x14080xbf16, #tpu.memory_space<vmem>>, vector<2x64xbf16>
    tpu.vector_store %arg9[%c0_353, %c6464], %512 {strides = array<i32>} : memref<2x14080xbf16, #tpu.memory_space<vmem>>, vector<2x64xbf16>,
    %c0_354 = arith.constant 0 : index
    %514 = arith.index_cast %278 : i32 to index
    %c47_355 = arith.constant 47 : index
    %c0_356 = arith.constant 0 : index
    %515 = vector.load %arg5[%c0_354, %514, %c47_355, %c0_356] : memref<1x9x56x64xf32, #tpu.memory_space<vmem>>, vector<1x1x2x64xf32>
    %516 = vector.shape_cast %515 : vector<1x1x2x64xf32> to vector<2x64xf32>
    %517 = arith.truncf %516 : vector<2x64xf32> to vector<2x64xbf16>
    %c0_357 = arith.constant 0 : index
    %c6528 = arith.constant 6528 : index
    %518 = vector.load %arg9[%c0_357, %c6528] : memref<2x14080xbf16, #tpu.memory_space<vmem>>, vector<2x64xbf16>
    tpu.vector_store %arg9[%c0_357, %c6528], %517 {strides = array<i32>} : memref<2x14080xbf16, #tpu.memory_space<vmem>>, vector<2x64xbf16>,
    %c0_358 = arith.constant 0 : index
    %519 = arith.index_cast %278 : i32 to index
    %c48_359 = arith.constant 48 : index
    %c0_360 = arith.constant 0 : index
    %520 = vector.load %arg5[%c0_358, %519, %c48_359, %c0_360] : memref<1x9x56x64xf32, #tpu.memory_space<vmem>>, vector<1x1x2x64xf32>
    %521 = vector.shape_cast %520 : vector<1x1x2x64xf32> to vector<2x64xf32>
    %522 = arith.truncf %521 : vector<2x64xf32> to vector<2x64xbf16>
    %c0_361 = arith.constant 0 : index
    %c6592 = arith.constant 6592 : index
    %523 = vector.load %arg9[%c0_361, %c6592] : memref<2x14080xbf16, #tpu.memory_space<vmem>>, vector<2x64xbf16>
    tpu.vector_store %arg9[%c0_361, %c6592], %522 {strides = array<i32>} : memref<2x14080xbf16, #tpu.memory_space<vmem>>, vector<2x64xbf16>,
    %c0_362 = arith.constant 0 : index
    %524 = arith.index_cast %278 : i32 to index
    %c49_363 = arith.constant 49 : index
    %c0_364 = arith.constant 0 : index
    %525 = vector.load %arg5[%c0_362, %524, %c49_363, %c0_364] : memref<1x9x56x64xf32, #tpu.memory_space<vmem>>, vector<1x1x2x64xf32>
    %526 = vector.shape_cast %525 : vector<1x1x2x64xf32> to vector<2x64xf32>
    %527 = arith.truncf %526 : vector<2x64xf32> to vector<2x64xbf16>
    %c0_365 = arith.constant 0 : index
    %c6656 = arith.constant 6656 : index
    %528 = vector.load %arg9[%c0_365, %c6656] : memref<2x14080xbf16, #tpu.memory_space<vmem>>, vector<2x64xbf16>
    tpu.vector_store %arg9[%c0_365, %c6656], %527 {strides = array<i32>} : memref<2x14080xbf16, #tpu.memory_space<vmem>>, vector<2x64xbf16>,
    %c0_366 = arith.constant 0 : index
    %529 = arith.index_cast %278 : i32 to index
    %c50_367 = arith.constant 50 : index
    %c0_368 = arith.constant 0 : index
    %530 = vector.load %arg5[%c0_366, %529, %c50_367, %c0_368] : memref<1x9x56x64xf32, #tpu.memory_space<vmem>>, vector<1x1x2x64xf32>
    %531 = vector.shape_cast %530 : vector<1x1x2x64xf32> to vector<2x64xf32>
    %532 = arith.truncf %531 : vector<2x64xf32> to vector<2x64xbf16>
    %c0_369 = arith.constant 0 : index
    %c6720 = arith.constant 6720 : index
    %533 = vector.load %arg9[%c0_369, %c6720] : memref<2x14080xbf16, #tpu.memory_space<vmem>>, vector<2x64xbf16>
    tpu.vector_store %arg9[%c0_369, %c6720], %532 {strides = array<i32>} : memref<2x14080xbf16, #tpu.memory_space<vmem>>, vector<2x64xbf16>,
    %c0_370 = arith.constant 0 : index
    %534 = arith.index_cast %278 : i32 to index
    %c51_371 = arith.constant 51 : index
    %c0_372 = arith.constant 0 : index
    %535 = vector.load %arg5[%c0_370, %534, %c51_371, %c0_372] : memref<1x9x56x64xf32, #tpu.memory_space<vmem>>, vector<1x1x2x64xf32>
    %536 = vector.shape_cast %535 : vector<1x1x2x64xf32> to vector<2x64xf32>
    %537 = arith.truncf %536 : vector<2x64xf32> to vector<2x64xbf16>
    %c0_373 = arith.constant 0 : index
    %c6784 = arith.constant 6784 : index
    %538 = vector.load %arg9[%c0_373, %c6784] : memref<2x14080xbf16, #tpu.memory_space<vmem>>, vector<2x64xbf16>
    tpu.vector_store %arg9[%c0_373, %c6784], %537 {strides = array<i32>} : memref<2x14080xbf16, #tpu.memory_space<vmem>>, vector<2x64xbf16>,
    %c0_374 = arith.constant 0 : index
    %539 = arith.index_cast %278 : i32 to index
    %c52_375 = arith.constant 52 : index
    %c0_376 = arith.constant 0 : index
    %540 = vector.load %arg5[%c0_374, %539, %c52_375, %c0_376] : memref<1x9x56x64xf32, #tpu.memory_space<vmem>>, vector<1x1x2x64xf32>
    %541 = vector.shape_cast %540 : vector<1x1x2x64xf32> to vector<2x64xf32>
    %542 = arith.truncf %541 : vector<2x64xf32> to vector<2x64xbf16>
    %c0_377 = arith.constant 0 : index
    %c6848 = arith.constant 6848 : index
    %543 = vector.load %arg9[%c0_377, %c6848] : memref<2x14080xbf16, #tpu.memory_space<vmem>>, vector<2x64xbf16>
    tpu.vector_store %arg9[%c0_377, %c6848], %542 {strides = array<i32>} : memref<2x14080xbf16, #tpu.memory_space<vmem>>, vector<2x64xbf16>,
    %c0_378 = arith.constant 0 : index
    %544 = arith.index_cast %278 : i32 to index
    %c53_379 = arith.constant 53 : index
    %c0_380 = arith.constant 0 : index
    %545 = vector.load %arg5[%c0_378, %544, %c53_379, %c0_380] : memref<1x9x56x64xf32, #tpu.memory_space<vmem>>, vector<1x1x2x64xf32>
    %546 = vector.shape_cast %545 : vector<1x1x2x64xf32> to vector<2x64xf32>
    %547 = arith.truncf %546 : vector<2x64xf32> to vector<2x64xbf16>
    %c0_381 = arith.constant 0 : index
    %c6912 = arith.constant 6912 : index
    %548 = vector.load %arg9[%c0_381, %c6912] : memref<2x14080xbf16, #tpu.memory_space<vmem>>, vector<2x64xbf16>
    tpu.vector_store %arg9[%c0_381, %c6912], %547 {strides = array<i32>} : memref<2x14080xbf16, #tpu.memory_space<vmem>>, vector<2x64xbf16>,
    %c0_382 = arith.constant 0 : index
    %549 = arith.index_cast %278 : i32 to index
    %c54_383 = arith.constant 54 : index
    %c0_384 = arith.constant 0 : index
    %550 = vector.load %arg5[%c0_382, %549, %c54_383, %c0_384] : memref<1x9x56x64xf32, #tpu.memory_space<vmem>>, vector<1x1x2x64xf32>
    %551 = vector.shape_cast %550 : vector<1x1x2x64xf32> to vector<2x64xf32>
    %552 = arith.truncf %551 : vector<2x64xf32> to vector<2x64xbf16>
    %c0_385 = arith.constant 0 : index
    %c6976 = arith.constant 6976 : index
    %553 = vector.load %arg9[%c0_385, %c6976] : memref<2x14080xbf16, #tpu.memory_space<vmem>>, vector<2x64xbf16>
    tpu.vector_store %arg9[%c0_385, %c6976], %552 {strides = array<i32>} : memref<2x14080xbf16, #tpu.memory_space<vmem>>, vector<2x64xbf16>,
    %c1_i32 = arith.constant 1 : i32
    %554 = arith.addi %1, %c1_i32 : i32
    %c0_386 = arith.constant 0 : index
    %555 = arith.index_cast %554 : i32 to index
    %c0_387 = arith.constant 0 : index
    %c0_388 = arith.constant 0 : index
    %556 = vector.load %arg5[%c0_386, %555, %c0_387, %c0_388] : memref<1x9x56x64xf32, #tpu.memory_space<vmem>>, vector<1x1x2x64xf32>
    %557 = vector.shape_cast %556 : vector<1x1x2x64xf32> to vector<2x64xf32>
    %558 = arith.truncf %557 : vector<2x64xf32> to vector<2x64xbf16>
    %c0_389 = arith.constant 0 : index
    %c7040 = arith.constant 7040 : index
    %559 = vector.load %arg9[%c0_389, %c7040] : memref<2x14080xbf16, #tpu.memory_space<vmem>>, vector<2x64xbf16>
    tpu.vector_store %arg9[%c0_389, %c7040], %558 {strides = array<i32>} : memref<2x14080xbf16, #tpu.memory_space<vmem>>, vector<2x64xbf16>,
    %c0_390 = arith.constant 0 : index
    %560 = arith.index_cast %554 : i32 to index
    %c1_391 = arith.constant 1 : index
    %c0_392 = arith.constant 0 : index
    %561 = vector.load %arg5[%c0_390, %560, %c1_391, %c0_392] : memref<1x9x56x64xf32, #tpu.memory_space<vmem>>, vector<1x1x2x64xf32>
    %562 = vector.shape_cast %561 : vector<1x1x2x64xf32> to vector<2x64xf32>
    %563 = arith.truncf %562 : vector<2x64xf32> to vector<2x64xbf16>
    %c0_393 = arith.constant 0 : index
    %c7104 = arith.constant 7104 : index
    %564 = vector.load %arg9[%c0_393, %c7104] : memref<2x14080xbf16, #tpu.memory_space<vmem>>, vector<2x64xbf16>
    tpu.vector_store %arg9[%c0_393, %c7104], %563 {strides = array<i32>} : memref<2x14080xbf16, #tpu.memory_space<vmem>>, vector<2x64xbf16>,
    %c0_394 = arith.constant 0 : index
    %565 = arith.index_cast %554 : i32 to index
    %c2_395 = arith.constant 2 : index
    %c0_396 = arith.constant 0 : index
    %566 = vector.load %arg5[%c0_394, %565, %c2_395, %c0_396] : memref<1x9x56x64xf32, #tpu.memory_space<vmem>>, vector<1x1x2x64xf32>
    %567 = vector.shape_cast %566 : vector<1x1x2x64xf32> to vector<2x64xf32>
    %568 = arith.truncf %567 : vector<2x64xf32> to vector<2x64xbf16>
    %c0_397 = arith.constant 0 : index
    %c7168 = arith.constant 7168 : index
    %569 = vector.load %arg9[%c0_397, %c7168] : memref<2x14080xbf16, #tpu.memory_space<vmem>>, vector<2x64xbf16>
    tpu.vector_store %arg9[%c0_397, %c7168], %568 {strides = array<i32>} : memref<2x14080xbf16, #tpu.memory_space<vmem>>, vector<2x64xbf16>,
    %c0_398 = arith.constant 0 : index
    %570 = arith.index_cast %554 : i32 to index
    %c3_399 = arith.constant 3 : index
    %c0_400 = arith.constant 0 : index
    %571 = vector.load %arg5[%c0_398, %570, %c3_399, %c0_400] : memref<1x9x56x64xf32, #tpu.memory_space<vmem>>, vector<1x1x2x64xf32>
    %572 = vector.shape_cast %571 : vector<1x1x2x64xf32> to vector<2x64xf32>
    %573 = arith.truncf %572 : vector<2x64xf32> to vector<2x64xbf16>
    %c0_401 = arith.constant 0 : index
    %c7232 = arith.constant 7232 : index
    %574 = vector.load %arg9[%c0_401, %c7232] : memref<2x14080xbf16, #tpu.memory_space<vmem>>, vector<2x64xbf16>
    tpu.vector_store %arg9[%c0_401, %c7232], %573 {strides = array<i32>} : memref<2x14080xbf16, #tpu.memory_space<vmem>>, vector<2x64xbf16>,
    %c0_402 = arith.constant 0 : index
    %575 = arith.index_cast %554 : i32 to index
    %c4_403 = arith.constant 4 : index
    %c0_404 = arith.constant 0 : index
    %576 = vector.load %arg5[%c0_402, %575, %c4_403, %c0_404] : memref<1x9x56x64xf32, #tpu.memory_space<vmem>>, vector<1x1x2x64xf32>
    %577 = vector.shape_cast %576 : vector<1x1x2x64xf32> to vector<2x64xf32>
    %578 = arith.truncf %577 : vector<2x64xf32> to vector<2x64xbf16>
    %c0_405 = arith.constant 0 : index
    %c7296 = arith.constant 7296 : index
    %579 = vector.load %arg9[%c0_405, %c7296] : memref<2x14080xbf16, #tpu.memory_space<vmem>>, vector<2x64xbf16>
    tpu.vector_store %arg9[%c0_405, %c7296], %578 {strides = array<i32>} : memref<2x14080xbf16, #tpu.memory_space<vmem>>, vector<2x64xbf16>,
    %c0_406 = arith.constant 0 : index
    %580 = arith.index_cast %554 : i32 to index
    %c5_407 = arith.constant 5 : index
    %c0_408 = arith.constant 0 : index
    %581 = vector.load %arg5[%c0_406, %580, %c5_407, %c0_408] : memref<1x9x56x64xf32, #tpu.memory_space<vmem>>, vector<1x1x2x64xf32>
    %582 = vector.shape_cast %581 : vector<1x1x2x64xf32> to vector<2x64xf32>
    %583 = arith.truncf %582 : vector<2x64xf32> to vector<2x64xbf16>
    %c0_409 = arith.constant 0 : index
    %c7360 = arith.constant 7360 : index
    %584 = vector.load %arg9[%c0_409, %c7360] : memref<2x14080xbf16, #tpu.memory_space<vmem>>, vector<2x64xbf16>
    tpu.vector_store %arg9[%c0_409, %c7360], %583 {strides = array<i32>} : memref<2x14080xbf16, #tpu.memory_space<vmem>>, vector<2x64xbf16>,
    %c0_410 = arith.constant 0 : index
    %585 = arith.index_cast %554 : i32 to index
    %c6_411 = arith.constant 6 : index
    %c0_412 = arith.constant 0 : index
    %586 = vector.load %arg5[%c0_410, %585, %c6_411, %c0_412] : memref<1x9x56x64xf32, #tpu.memory_space<vmem>>, vector<1x1x2x64xf32>
    %587 = vector.shape_cast %586 : vector<1x1x2x64xf32> to vector<2x64xf32>
    %588 = arith.truncf %587 : vector<2x64xf32> to vector<2x64xbf16>
    %c0_413 = arith.constant 0 : index
    %c7424 = arith.constant 7424 : index
    %589 = vector.load %arg9[%c0_413, %c7424] : memref<2x14080xbf16, #tpu.memory_space<vmem>>, vector<2x64xbf16>
    tpu.vector_store %arg9[%c0_413, %c7424], %588 {strides = array<i32>} : memref<2x14080xbf16, #tpu.memory_space<vmem>>, vector<2x64xbf16>,
    %c0_414 = arith.constant 0 : index
    %590 = arith.index_cast %554 : i32 to index
    %c7_415 = arith.constant 7 : index
    %c0_416 = arith.constant 0 : index
    %591 = vector.load %arg5[%c0_414, %590, %c7_415, %c0_416] : memref<1x9x56x64xf32, #tpu.memory_space<vmem>>, vector<1x1x2x64xf32>
    %592 = vector.shape_cast %591 : vector<1x1x2x64xf32> to vector<2x64xf32>
    %593 = arith.truncf %592 : vector<2x64xf32> to vector<2x64xbf16>
    %c0_417 = arith.constant 0 : index
    %c7488 = arith.constant 7488 : index
    %594 = vector.load %arg9[%c0_417, %c7488] : memref<2x14080xbf16, #tpu.memory_space<vmem>>, vector<2x64xbf16>
    tpu.vector_store %arg9[%c0_417, %c7488], %593 {strides = array<i32>} : memref<2x14080xbf16, #tpu.memory_space<vmem>>, vector<2x64xbf16>,
    %c0_418 = arith.constant 0 : index
    %595 = arith.index_cast %554 : i32 to index
    %c8_419 = arith.constant 8 : index
    %c0_420 = arith.constant 0 : index
    %596 = vector.load %arg5[%c0_418, %595, %c8_419, %c0_420] : memref<1x9x56x64xf32, #tpu.memory_space<vmem>>, vector<1x1x2x64xf32>
    %597 = vector.shape_cast %596 : vector<1x1x2x64xf32> to vector<2x64xf32>
    %598 = arith.truncf %597 : vector<2x64xf32> to vector<2x64xbf16>
    %c0_421 = arith.constant 0 : index
    %c7552 = arith.constant 7552 : index
    %599 = vector.load %arg9[%c0_421, %c7552] : memref<2x14080xbf16, #tpu.memory_space<vmem>>, vector<2x64xbf16>
    tpu.vector_store %arg9[%c0_421, %c7552], %598 {strides = array<i32>} : memref<2x14080xbf16, #tpu.memory_space<vmem>>, vector<2x64xbf16>,
    %c0_422 = arith.constant 0 : index
    %600 = arith.index_cast %554 : i32 to index
    %c9_423 = arith.constant 9 : index
    %c0_424 = arith.constant 0 : index
    %601 = vector.load %arg5[%c0_422, %600, %c9_423, %c0_424] : memref<1x9x56x64xf32, #tpu.memory_space<vmem>>, vector<1x1x2x64xf32>
    %602 = vector.shape_cast %601 : vector<1x1x2x64xf32> to vector<2x64xf32>
    %603 = arith.truncf %602 : vector<2x64xf32> to vector<2x64xbf16>
    %c0_425 = arith.constant 0 : index
    %c7616 = arith.constant 7616 : index
    %604 = vector.load %arg9[%c0_425, %c7616] : memref<2x14080xbf16, #tpu.memory_space<vmem>>, vector<2x64xbf16>
    tpu.vector_store %arg9[%c0_425, %c7616], %603 {strides = array<i32>} : memref<2x14080xbf16, #tpu.memory_space<vmem>>, vector<2x64xbf16>,
    %c0_426 = arith.constant 0 : index
    %605 = arith.index_cast %554 : i32 to index
    %c10_427 = arith.constant 10 : index
    %c0_428 = arith.constant 0 : index
    %606 = vector.load %arg5[%c0_426, %605, %c10_427, %c0_428] : memref<1x9x56x64xf32, #tpu.memory_space<vmem>>, vector<1x1x2x64xf32>
    %607 = vector.shape_cast %606 : vector<1x1x2x64xf32> to vector<2x64xf32>
    %608 = arith.truncf %607 : vector<2x64xf32> to vector<2x64xbf16>
    %c0_429 = arith.constant 0 : index
    %c7680 = arith.constant 7680 : index
    %609 = vector.load %arg9[%c0_429, %c7680] : memref<2x14080xbf16, #tpu.memory_space<vmem>>, vector<2x64xbf16>
    tpu.vector_store %arg9[%c0_429, %c7680], %608 {strides = array<i32>} : memref<2x14080xbf16, #tpu.memory_space<vmem>>, vector<2x64xbf16>,
    %c0_430 = arith.constant 0 : index
    %610 = arith.index_cast %554 : i32 to index
    %c11_431 = arith.constant 11 : index
    %c0_432 = arith.constant 0 : index
    %611 = vector.load %arg5[%c0_430, %610, %c11_431, %c0_432] : memref<1x9x56x64xf32, #tpu.memory_space<vmem>>, vector<1x1x2x64xf32>
    %612 = vector.shape_cast %611 : vector<1x1x2x64xf32> to vector<2x64xf32>
    %613 = arith.truncf %612 : vector<2x64xf32> to vector<2x64xbf16>
    %c0_433 = arith.constant 0 : index
    %c7744 = arith.constant 7744 : index
    %614 = vector.load %arg9[%c0_433, %c7744] : memref<2x14080xbf16, #tpu.memory_space<vmem>>, vector<2x64xbf16>
    tpu.vector_store %arg9[%c0_433, %c7744], %613 {strides = array<i32>} : memref<2x14080xbf16, #tpu.memory_space<vmem>>, vector<2x64xbf16>,
    %c0_434 = arith.constant 0 : index
    %615 = arith.index_cast %554 : i32 to index
    %c12_435 = arith.constant 12 : index
    %c0_436 = arith.constant 0 : index
    %616 = vector.load %arg5[%c0_434, %615, %c12_435, %c0_436] : memref<1x9x56x64xf32, #tpu.memory_space<vmem>>, vector<1x1x2x64xf32>
    %617 = vector.shape_cast %616 : vector<1x1x2x64xf32> to vector<2x64xf32>
    %618 = arith.truncf %617 : vector<2x64xf32> to vector<2x64xbf16>
    %c0_437 = arith.constant 0 : index
    %c7808 = arith.constant 7808 : index
    %619 = vector.load %arg9[%c0_437, %c7808] : memref<2x14080xbf16, #tpu.memory_space<vmem>>, vector<2x64xbf16>
    tpu.vector_store %arg9[%c0_437, %c7808], %618 {strides = array<i32>} : memref<2x14080xbf16, #tpu.memory_space<vmem>>, vector<2x64xbf16>,
    %c0_438 = arith.constant 0 : index
    %620 = arith.index_cast %554 : i32 to index
    %c13_439 = arith.constant 13 : index
    %c0_440 = arith.constant 0 : index
    %621 = vector.load %arg5[%c0_438, %620, %c13_439, %c0_440] : memref<1x9x56x64xf32, #tpu.memory_space<vmem>>, vector<1x1x2x64xf32>
    %622 = vector.shape_cast %621 : vector<1x1x2x64xf32> to vector<2x64xf32>
    %623 = arith.truncf %622 : vector<2x64xf32> to vector<2x64xbf16>
    %c0_441 = arith.constant 0 : index
    %c7872 = arith.constant 7872 : index
    %624 = vector.load %arg9[%c0_441, %c7872] : memref<2x14080xbf16, #tpu.memory_space<vmem>>, vector<2x64xbf16>
    tpu.vector_store %arg9[%c0_441, %c7872], %623 {strides = array<i32>} : memref<2x14080xbf16, #tpu.memory_space<vmem>>, vector<2x64xbf16>,
    %c0_442 = arith.constant 0 : index
    %625 = arith.index_cast %554 : i32 to index
    %c14_443 = arith.constant 14 : index
    %c0_444 = arith.constant 0 : index
    %626 = vector.load %arg5[%c0_442, %625, %c14_443, %c0_444] : memref<1x9x56x64xf32, #tpu.memory_space<vmem>>, vector<1x1x2x64xf32>
    %627 = vector.shape_cast %626 : vector<1x1x2x64xf32> to vector<2x64xf32>
    %628 = arith.truncf %627 : vector<2x64xf32> to vector<2x64xbf16>
    %c0_445 = arith.constant 0 : index
    %c7936 = arith.constant 7936 : index
    %629 = vector.load %arg9[%c0_445, %c7936] : memref<2x14080xbf16, #tpu.memory_space<vmem>>, vector<2x64xbf16>
    tpu.vector_store %arg9[%c0_445, %c7936], %628 {strides = array<i32>} : memref<2x14080xbf16, #tpu.memory_space<vmem>>, vector<2x64xbf16>,
    %c0_446 = arith.constant 0 : index
    %630 = arith.index_cast %554 : i32 to index
    %c15_447 = arith.constant 15 : index
    %c0_448 = arith.constant 0 : index
    %631 = vector.load %arg5[%c0_446, %630, %c15_447, %c0_448] : memref<1x9x56x64xf32, #tpu.memory_space<vmem>>, vector<1x1x2x64xf32>
    %632 = vector.shape_cast %631 : vector<1x1x2x64xf32> to vector<2x64xf32>
    %633 = arith.truncf %632 : vector<2x64xf32> to vector<2x64xbf16>
    %c0_449 = arith.constant 0 : index
    %c8000 = arith.constant 8000 : index
    %634 = vector.load %arg9[%c0_449, %c8000] : memref<2x14080xbf16, #tpu.memory_space<vmem>>, vector<2x64xbf16>
    tpu.vector_store %arg9[%c0_449, %c8000], %633 {strides = array<i32>} : memref<2x14080xbf16, #tpu.memory_space<vmem>>, vector<2x64xbf16>,
    %c0_450 = arith.constant 0 : index
    %635 = arith.index_cast %554 : i32 to index
    %c16_451 = arith.constant 16 : index
    %c0_452 = arith.constant 0 : index
    %636 = vector.load %arg5[%c0_450, %635, %c16_451, %c0_452] : memref<1x9x56x64xf32, #tpu.memory_space<vmem>>, vector<1x1x2x64xf32>
    %637 = vector.shape_cast %636 : vector<1x1x2x64xf32> to vector<2x64xf32>
    %638 = arith.truncf %637 : vector<2x64xf32> to vector<2x64xbf16>
    %c0_453 = arith.constant 0 : index
    %c8064 = arith.constant 8064 : index
    %639 = vector.load %arg9[%c0_453, %c8064] : memref<2x14080xbf16, #tpu.memory_space<vmem>>, vector<2x64xbf16>
    tpu.vector_store %arg9[%c0_453, %c8064], %638 {strides = array<i32>} : memref<2x14080xbf16, #tpu.memory_space<vmem>>, vector<2x64xbf16>,
    %c0_454 = arith.constant 0 : index
    %640 = arith.index_cast %554 : i32 to index
    %c17_455 = arith.constant 17 : index
    %c0_456 = arith.constant 0 : index
    %641 = vector.load %arg5[%c0_454, %640, %c17_455, %c0_456] : memref<1x9x56x64xf32, #tpu.memory_space<vmem>>, vector<1x1x2x64xf32>
    %642 = vector.shape_cast %641 : vector<1x1x2x64xf32> to vector<2x64xf32>
    %643 = arith.truncf %642 : vector<2x64xf32> to vector<2x64xbf16>
    %c0_457 = arith.constant 0 : index
    %c8128 = arith.constant 8128 : index
    %644 = vector.load %arg9[%c0_457, %c8128] : memref<2x14080xbf16, #tpu.memory_space<vmem>>, vector<2x64xbf16>
    tpu.vector_store %arg9[%c0_457, %c8128], %643 {strides = array<i32>} : memref<2x14080xbf16, #tpu.memory_space<vmem>>, vector<2x64xbf16>,
    %c0_458 = arith.constant 0 : index
    %645 = arith.index_cast %554 : i32 to index
    %c18_459 = arith.constant 18 : index
    %c0_460 = arith.constant 0 : index
    %646 = vector.load %arg5[%c0_458, %645, %c18_459, %c0_460] : memref<1x9x56x64xf32, #tpu.memory_space<vmem>>, vector<1x1x2x64xf32>
    %647 = vector.shape_cast %646 : vector<1x1x2x64xf32> to vector<2x64xf32>
    %648 = arith.truncf %647 : vector<2x64xf32> to vector<2x64xbf16>
    %c0_461 = arith.constant 0 : index
    %c8192 = arith.constant 8192 : index
    %649 = vector.load %arg9[%c0_461, %c8192] : memref<2x14080xbf16, #tpu.memory_space<vmem>>, vector<2x64xbf16>
    tpu.vector_store %arg9[%c0_461, %c8192], %648 {strides = array<i32>} : memref<2x14080xbf16, #tpu.memory_space<vmem>>, vector<2x64xbf16>,
    %c0_462 = arith.constant 0 : index
    %650 = arith.index_cast %554 : i32 to index
    %c19_463 = arith.constant 19 : index
    %c0_464 = arith.constant 0 : index
    %651 = vector.load %arg5[%c0_462, %650, %c19_463, %c0_464] : memref<1x9x56x64xf32, #tpu.memory_space<vmem>>, vector<1x1x2x64xf32>
    %652 = vector.shape_cast %651 : vector<1x1x2x64xf32> to vector<2x64xf32>
    %653 = arith.truncf %652 : vector<2x64xf32> to vector<2x64xbf16>
    %c0_465 = arith.constant 0 : index
    %c8256 = arith.constant 8256 : index
    %654 = vector.load %arg9[%c0_465, %c8256] : memref<2x14080xbf16, #tpu.memory_space<vmem>>, vector<2x64xbf16>
    tpu.vector_store %arg9[%c0_465, %c8256], %653 {strides = array<i32>} : memref<2x14080xbf16, #tpu.memory_space<vmem>>, vector<2x64xbf16>,
    %c0_466 = arith.constant 0 : index
    %655 = arith.index_cast %554 : i32 to index
    %c20_467 = arith.constant 20 : index
    %c0_468 = arith.constant 0 : index
    %656 = vector.load %arg5[%c0_466, %655, %c20_467, %c0_468] : memref<1x9x56x64xf32, #tpu.memory_space<vmem>>, vector<1x1x2x64xf32>
    %657 = vector.shape_cast %656 : vector<1x1x2x64xf32> to vector<2x64xf32>
    %658 = arith.truncf %657 : vector<2x64xf32> to vector<2x64xbf16>
    %c0_469 = arith.constant 0 : index
    %c8320 = arith.constant 8320 : index
    %659 = vector.load %arg9[%c0_469, %c8320] : memref<2x14080xbf16, #tpu.memory_space<vmem>>, vector<2x64xbf16>
    tpu.vector_store %arg9[%c0_469, %c8320], %658 {strides = array<i32>} : memref<2x14080xbf16, #tpu.memory_space<vmem>>, vector<2x64xbf16>,
    %c0_470 = arith.constant 0 : index
    %660 = arith.index_cast %554 : i32 to index
    %c21_471 = arith.constant 21 : index
    %c0_472 = arith.constant 0 : index
    %661 = vector.load %arg5[%c0_470, %660, %c21_471, %c0_472] : memref<1x9x56x64xf32, #tpu.memory_space<vmem>>, vector<1x1x2x64xf32>
    %662 = vector.shape_cast %661 : vector<1x1x2x64xf32> to vector<2x64xf32>
    %663 = arith.truncf %662 : vector<2x64xf32> to vector<2x64xbf16>
    %c0_473 = arith.constant 0 : index
    %c8384 = arith.constant 8384 : index
    %664 = vector.load %arg9[%c0_473, %c8384] : memref<2x14080xbf16, #tpu.memory_space<vmem>>, vector<2x64xbf16>
    tpu.vector_store %arg9[%c0_473, %c8384], %663 {strides = array<i32>} : memref<2x14080xbf16, #tpu.memory_space<vmem>>, vector<2x64xbf16>,
    %c0_474 = arith.constant 0 : index
    %665 = arith.index_cast %554 : i32 to index
    %c22_475 = arith.constant 22 : index
    %c0_476 = arith.constant 0 : index
    %666 = vector.load %arg5[%c0_474, %665, %c22_475, %c0_476] : memref<1x9x56x64xf32, #tpu.memory_space<vmem>>, vector<1x1x2x64xf32>
    %667 = vector.shape_cast %666 : vector<1x1x2x64xf32> to vector<2x64xf32>
    %668 = arith.truncf %667 : vector<2x64xf32> to vector<2x64xbf16>
    %c0_477 = arith.constant 0 : index
    %c8448 = arith.constant 8448 : index
    %669 = vector.load %arg9[%c0_477, %c8448] : memref<2x14080xbf16, #tpu.memory_space<vmem>>, vector<2x64xbf16>
    tpu.vector_store %arg9[%c0_477, %c8448], %668 {strides = array<i32>} : memref<2x14080xbf16, #tpu.memory_space<vmem>>, vector<2x64xbf16>,
    %c0_478 = arith.constant 0 : index
    %670 = arith.index_cast %554 : i32 to index
    %c23_479 = arith.constant 23 : index
    %c0_480 = arith.constant 0 : index
    %671 = vector.load %arg5[%c0_478, %670, %c23_479, %c0_480] : memref<1x9x56x64xf32, #tpu.memory_space<vmem>>, vector<1x1x2x64xf32>
    %672 = vector.shape_cast %671 : vector<1x1x2x64xf32> to vector<2x64xf32>
    %673 = arith.truncf %672 : vector<2x64xf32> to vector<2x64xbf16>
    %c0_481 = arith.constant 0 : index
    %c8512 = arith.constant 8512 : index
    %674 = vector.load %arg9[%c0_481, %c8512] : memref<2x14080xbf16, #tpu.memory_space<vmem>>, vector<2x64xbf16>
    tpu.vector_store %arg9[%c0_481, %c8512], %673 {strides = array<i32>} : memref<2x14080xbf16, #tpu.memory_space<vmem>>, vector<2x64xbf16>,
    %c0_482 = arith.constant 0 : index
    %675 = arith.index_cast %554 : i32 to index
    %c24_483 = arith.constant 24 : index
    %c0_484 = arith.constant 0 : index
    %676 = vector.load %arg5[%c0_482, %675, %c24_483, %c0_484] : memref<1x9x56x64xf32, #tpu.memory_space<vmem>>, vector<1x1x2x64xf32>
    %677 = vector.shape_cast %676 : vector<1x1x2x64xf32> to vector<2x64xf32>
    %678 = arith.truncf %677 : vector<2x64xf32> to vector<2x64xbf16>
    %c0_485 = arith.constant 0 : index
    %c8576 = arith.constant 8576 : index
    %679 = vector.load %arg9[%c0_485, %c8576] : memref<2x14080xbf16, #tpu.memory_space<vmem>>, vector<2x64xbf16>
    tpu.vector_store %arg9[%c0_485, %c8576], %678 {strides = array<i32>} : memref<2x14080xbf16, #tpu.memory_space<vmem>>, vector<2x64xbf16>,
    %c0_486 = arith.constant 0 : index
    %680 = arith.index_cast %554 : i32 to index
    %c25_487 = arith.constant 25 : index
    %c0_488 = arith.constant 0 : index
    %681 = vector.load %arg5[%c0_486, %680, %c25_487, %c0_488] : memref<1x9x56x64xf32, #tpu.memory_space<vmem>>, vector<1x1x2x64xf32>
    %682 = vector.shape_cast %681 : vector<1x1x2x64xf32> to vector<2x64xf32>
    %683 = arith.truncf %682 : vector<2x64xf32> to vector<2x64xbf16>
    %c0_489 = arith.constant 0 : index
    %c8640 = arith.constant 8640 : index
    %684 = vector.load %arg9[%c0_489, %c8640] : memref<2x14080xbf16, #tpu.memory_space<vmem>>, vector<2x64xbf16>
    tpu.vector_store %arg9[%c0_489, %c8640], %683 {strides = array<i32>} : memref<2x14080xbf16, #tpu.memory_space<vmem>>, vector<2x64xbf16>,
    %c0_490 = arith.constant 0 : index
    %685 = arith.index_cast %554 : i32 to index
    %c26_491 = arith.constant 26 : index
    %c0_492 = arith.constant 0 : index
    %686 = vector.load %arg5[%c0_490, %685, %c26_491, %c0_492] : memref<1x9x56x64xf32, #tpu.memory_space<vmem>>, vector<1x1x2x64xf32>
    %687 = vector.shape_cast %686 : vector<1x1x2x64xf32> to vector<2x64xf32>
    %688 = arith.truncf %687 : vector<2x64xf32> to vector<2x64xbf16>
    %c0_493 = arith.constant 0 : index
    %c8704 = arith.constant 8704 : index
    %689 = vector.load %arg9[%c0_493, %c8704] : memref<2x14080xbf16, #tpu.memory_space<vmem>>, vector<2x64xbf16>
    tpu.vector_store %arg9[%c0_493, %c8704], %688 {strides = array<i32>} : memref<2x14080xbf16, #tpu.memory_space<vmem>>, vector<2x64xbf16>,
    %c0_494 = arith.constant 0 : index
    %690 = arith.index_cast %554 : i32 to index
    %c27_495 = arith.constant 27 : index
    %c0_496 = arith.constant 0 : index
    %691 = vector.load %arg5[%c0_494, %690, %c27_495, %c0_496] : memref<1x9x56x64xf32, #tpu.memory_space<vmem>>, vector<1x1x2x64xf32>
    %692 = vector.shape_cast %691 : vector<1x1x2x64xf32> to vector<2x64xf32>
    %693 = arith.truncf %692 : vector<2x64xf32> to vector<2x64xbf16>
    %c0_497 = arith.constant 0 : index
    %c8768 = arith.constant 8768 : index
    %694 = vector.load %arg9[%c0_497, %c8768] : memref<2x14080xbf16, #tpu.memory_space<vmem>>, vector<2x64xbf16>
    tpu.vector_store %arg9[%c0_497, %c8768], %693 {strides = array<i32>} : memref<2x14080xbf16, #tpu.memory_space<vmem>>, vector<2x64xbf16>,
    %c0_498 = arith.constant 0 : index
    %695 = arith.index_cast %554 : i32 to index
    %c28_499 = arith.constant 28 : index
    %c0_500 = arith.constant 0 : index
    %696 = vector.load %arg5[%c0_498, %695, %c28_499, %c0_500] : memref<1x9x56x64xf32, #tpu.memory_space<vmem>>, vector<1x1x2x64xf32>
    %697 = vector.shape_cast %696 : vector<1x1x2x64xf32> to vector<2x64xf32>
    %698 = arith.truncf %697 : vector<2x64xf32> to vector<2x64xbf16>
    %c0_501 = arith.constant 0 : index
    %c8832 = arith.constant 8832 : index
    %699 = vector.load %arg9[%c0_501, %c8832] : memref<2x14080xbf16, #tpu.memory_space<vmem>>, vector<2x64xbf16>
    tpu.vector_store %arg9[%c0_501, %c8832], %698 {strides = array<i32>} : memref<2x14080xbf16, #tpu.memory_space<vmem>>, vector<2x64xbf16>,
    %c0_502 = arith.constant 0 : index
    %700 = arith.index_cast %554 : i32 to index
    %c29_503 = arith.constant 29 : index
    %c0_504 = arith.constant 0 : index
    %701 = vector.load %arg5[%c0_502, %700, %c29_503, %c0_504] : memref<1x9x56x64xf32, #tpu.memory_space<vmem>>, vector<1x1x2x64xf32>
    %702 = vector.shape_cast %701 : vector<1x1x2x64xf32> to vector<2x64xf32>
    %703 = arith.truncf %702 : vector<2x64xf32> to vector<2x64xbf16>
    %c0_505 = arith.constant 0 : index
    %c8896 = arith.constant 8896 : index
    %704 = vector.load %arg9[%c0_505, %c8896] : memref<2x14080xbf16, #tpu.memory_space<vmem>>, vector<2x64xbf16>
    tpu.vector_store %arg9[%c0_505, %c8896], %703 {strides = array<i32>} : memref<2x14080xbf16, #tpu.memory_space<vmem>>, vector<2x64xbf16>,
    %c0_506 = arith.constant 0 : index
    %705 = arith.index_cast %554 : i32 to index
    %c30_507 = arith.constant 30 : index
    %c0_508 = arith.constant 0 : index
    %706 = vector.load %arg5[%c0_506, %705, %c30_507, %c0_508] : memref<1x9x56x64xf32, #tpu.memory_space<vmem>>, vector<1x1x2x64xf32>
    %707 = vector.shape_cast %706 : vector<1x1x2x64xf32> to vector<2x64xf32>
    %708 = arith.truncf %707 : vector<2x64xf32> to vector<2x64xbf16>
    %c0_509 = arith.constant 0 : index
    %c8960 = arith.constant 8960 : index
    %709 = vector.load %arg9[%c0_509, %c8960] : memref<2x14080xbf16, #tpu.memory_space<vmem>>, vector<2x64xbf16>
    tpu.vector_store %arg9[%c0_509, %c8960], %708 {strides = array<i32>} : memref<2x14080xbf16, #tpu.memory_space<vmem>>, vector<2x64xbf16>,
    %c0_510 = arith.constant 0 : index
    %710 = arith.index_cast %554 : i32 to index
    %c31_511 = arith.constant 31 : index
    %c0_512 = arith.constant 0 : index
    %711 = vector.load %arg5[%c0_510, %710, %c31_511, %c0_512] : memref<1x9x56x64xf32, #tpu.memory_space<vmem>>, vector<1x1x2x64xf32>
    %712 = vector.shape_cast %711 : vector<1x1x2x64xf32> to vector<2x64xf32>
    %713 = arith.truncf %712 : vector<2x64xf32> to vector<2x64xbf16>
    %c0_513 = arith.constant 0 : index
    %c9024 = arith.constant 9024 : index
    %714 = vector.load %arg9[%c0_513, %c9024] : memref<2x14080xbf16, #tpu.memory_space<vmem>>, vector<2x64xbf16>
    tpu.vector_store %arg9[%c0_513, %c9024], %713 {strides = array<i32>} : memref<2x14080xbf16, #tpu.memory_space<vmem>>, vector<2x64xbf16>,
    %c0_514 = arith.constant 0 : index
    %715 = arith.index_cast %554 : i32 to index
    %c32_515 = arith.constant 32 : index
    %c0_516 = arith.constant 0 : index
    %716 = vector.load %arg5[%c0_514, %715, %c32_515, %c0_516] : memref<1x9x56x64xf32, #tpu.memory_space<vmem>>, vector<1x1x2x64xf32>
    %717 = vector.shape_cast %716 : vector<1x1x2x64xf32> to vector<2x64xf32>
    %718 = arith.truncf %717 : vector<2x64xf32> to vector<2x64xbf16>
    %c0_517 = arith.constant 0 : index
    %c9088 = arith.constant 9088 : index
    %719 = vector.load %arg9[%c0_517, %c9088] : memref<2x14080xbf16, #tpu.memory_space<vmem>>, vector<2x64xbf16>
    tpu.vector_store %arg9[%c0_517, %c9088], %718 {strides = array<i32>} : memref<2x14080xbf16, #tpu.memory_space<vmem>>, vector<2x64xbf16>,
    %c0_518 = arith.constant 0 : index
    %720 = arith.index_cast %554 : i32 to index
    %c33_519 = arith.constant 33 : index
    %c0_520 = arith.constant 0 : index
    %721 = vector.load %arg5[%c0_518, %720, %c33_519, %c0_520] : memref<1x9x56x64xf32, #tpu.memory_space<vmem>>, vector<1x1x2x64xf32>
    %722 = vector.shape_cast %721 : vector<1x1x2x64xf32> to vector<2x64xf32>
    %723 = arith.truncf %722 : vector<2x64xf32> to vector<2x64xbf16>
    %c0_521 = arith.constant 0 : index
    %c9152 = arith.constant 9152 : index
    %724 = vector.load %arg9[%c0_521, %c9152] : memref<2x14080xbf16, #tpu.memory_space<vmem>>, vector<2x64xbf16>
    tpu.vector_store %arg9[%c0_521, %c9152], %723 {strides = array<i32>} : memref<2x14080xbf16, #tpu.memory_space<vmem>>, vector<2x64xbf16>,
    %c0_522 = arith.constant 0 : index
    %725 = arith.index_cast %554 : i32 to index
    %c34_523 = arith.constant 34 : index
    %c0_524 = arith.constant 0 : index
    %726 = vector.load %arg5[%c0_522, %725, %c34_523, %c0_524] : memref<1x9x56x64xf32, #tpu.memory_space<vmem>>, vector<1x1x2x64xf32>
    %727 = vector.shape_cast %726 : vector<1x1x2x64xf32> to vector<2x64xf32>
    %728 = arith.truncf %727 : vector<2x64xf32> to vector<2x64xbf16>
    %c0_525 = arith.constant 0 : index
    %c9216 = arith.constant 9216 : index
    %729 = vector.load %arg9[%c0_525, %c9216] : memref<2x14080xbf16, #tpu.memory_space<vmem>>, vector<2x64xbf16>
    tpu.vector_store %arg9[%c0_525, %c9216], %728 {strides = array<i32>} : memref<2x14080xbf16, #tpu.memory_space<vmem>>, vector<2x64xbf16>,
    %c0_526 = arith.constant 0 : index
    %730 = arith.index_cast %554 : i32 to index
    %c35_527 = arith.constant 35 : index
    %c0_528 = arith.constant 0 : index
    %731 = vector.load %arg5[%c0_526, %730, %c35_527, %c0_528] : memref<1x9x56x64xf32, #tpu.memory_space<vmem>>, vector<1x1x2x64xf32>
    %732 = vector.shape_cast %731 : vector<1x1x2x64xf32> to vector<2x64xf32>
    %733 = arith.truncf %732 : vector<2x64xf32> to vector<2x64xbf16>
    %c0_529 = arith.constant 0 : index
    %c9280 = arith.constant 9280 : index
    %734 = vector.load %arg9[%c0_529, %c9280] : memref<2x14080xbf16, #tpu.memory_space<vmem>>, vector<2x64xbf16>
    tpu.vector_store %arg9[%c0_529, %c9280], %733 {strides = array<i32>} : memref<2x14080xbf16, #tpu.memory_space<vmem>>, vector<2x64xbf16>,
    %c0_530 = arith.constant 0 : index
    %735 = arith.index_cast %554 : i32 to index
    %c36_531 = arith.constant 36 : index
    %c0_532 = arith.constant 0 : index
    %736 = vector.load %arg5[%c0_530, %735, %c36_531, %c0_532] : memref<1x9x56x64xf32, #tpu.memory_space<vmem>>, vector<1x1x2x64xf32>
    %737 = vector.shape_cast %736 : vector<1x1x2x64xf32> to vector<2x64xf32>
    %738 = arith.truncf %737 : vector<2x64xf32> to vector<2x64xbf16>
    %c0_533 = arith.constant 0 : index
    %c9344 = arith.constant 9344 : index
    %739 = vector.load %arg9[%c0_533, %c9344] : memref<2x14080xbf16, #tpu.memory_space<vmem>>, vector<2x64xbf16>
    tpu.vector_store %arg9[%c0_533, %c9344], %738 {strides = array<i32>} : memref<2x14080xbf16, #tpu.memory_space<vmem>>, vector<2x64xbf16>,
    %c0_534 = arith.constant 0 : index
    %740 = arith.index_cast %554 : i32 to index
    %c37_535 = arith.constant 37 : index
    %c0_536 = arith.constant 0 : index
    %741 = vector.load %arg5[%c0_534, %740, %c37_535, %c0_536] : memref<1x9x56x64xf32, #tpu.memory_space<vmem>>, vector<1x1x2x64xf32>
    %742 = vector.shape_cast %741 : vector<1x1x2x64xf32> to vector<2x64xf32>
    %743 = arith.truncf %742 : vector<2x64xf32> to vector<2x64xbf16>
    %c0_537 = arith.constant 0 : index
    %c9408 = arith.constant 9408 : index
    %744 = vector.load %arg9[%c0_537, %c9408] : memref<2x14080xbf16, #tpu.memory_space<vmem>>, vector<2x64xbf16>
    tpu.vector_store %arg9[%c0_537, %c9408], %743 {strides = array<i32>} : memref<2x14080xbf16, #tpu.memory_space<vmem>>, vector<2x64xbf16>,
    %c0_538 = arith.constant 0 : index
    %745 = arith.index_cast %554 : i32 to index
    %c38_539 = arith.constant 38 : index
    %c0_540 = arith.constant 0 : index
    %746 = vector.load %arg5[%c0_538, %745, %c38_539, %c0_540] : memref<1x9x56x64xf32, #tpu.memory_space<vmem>>, vector<1x1x2x64xf32>
    %747 = vector.shape_cast %746 : vector<1x1x2x64xf32> to vector<2x64xf32>
    %748 = arith.truncf %747 : vector<2x64xf32> to vector<2x64xbf16>
    %c0_541 = arith.constant 0 : index
    %c9472 = arith.constant 9472 : index
    %749 = vector.load %arg9[%c0_541, %c9472] : memref<2x14080xbf16, #tpu.memory_space<vmem>>, vector<2x64xbf16>
    tpu.vector_store %arg9[%c0_541, %c9472], %748 {strides = array<i32>} : memref<2x14080xbf16, #tpu.memory_space<vmem>>, vector<2x64xbf16>,
    %c0_542 = arith.constant 0 : index
    %750 = arith.index_cast %554 : i32 to index
    %c39_543 = arith.constant 39 : index
    %c0_544 = arith.constant 0 : index
    %751 = vector.load %arg5[%c0_542, %750, %c39_543, %c0_544] : memref<1x9x56x64xf32, #tpu.memory_space<vmem>>, vector<1x1x2x64xf32>
    %752 = vector.shape_cast %751 : vector<1x1x2x64xf32> to vector<2x64xf32>
    %753 = arith.truncf %752 : vector<2x64xf32> to vector<2x64xbf16>
    %c0_545 = arith.constant 0 : index
    %c9536 = arith.constant 9536 : index
    %754 = vector.load %arg9[%c0_545, %c9536] : memref<2x14080xbf16, #tpu.memory_space<vmem>>, vector<2x64xbf16>
    tpu.vector_store %arg9[%c0_545, %c9536], %753 {strides = array<i32>} : memref<2x14080xbf16, #tpu.memory_space<vmem>>, vector<2x64xbf16>,
    %c0_546 = arith.constant 0 : index
    %755 = arith.index_cast %554 : i32 to index
    %c40_547 = arith.constant 40 : index
    %c0_548 = arith.constant 0 : index
    %756 = vector.load %arg5[%c0_546, %755, %c40_547, %c0_548] : memref<1x9x56x64xf32, #tpu.memory_space<vmem>>, vector<1x1x2x64xf32>
    %757 = vector.shape_cast %756 : vector<1x1x2x64xf32> to vector<2x64xf32>
    %758 = arith.truncf %757 : vector<2x64xf32> to vector<2x64xbf16>
    %c0_549 = arith.constant 0 : index
    %c9600 = arith.constant 9600 : index
    %759 = vector.load %arg9[%c0_549, %c9600] : memref<2x14080xbf16, #tpu.memory_space<vmem>>, vector<2x64xbf16>
    tpu.vector_store %arg9[%c0_549, %c9600], %758 {strides = array<i32>} : memref<2x14080xbf16, #tpu.memory_space<vmem>>, vector<2x64xbf16>,
    %c0_550 = arith.constant 0 : index
    %760 = arith.index_cast %554 : i32 to index
    %c41_551 = arith.constant 41 : index
    %c0_552 = arith.constant 0 : index
    %761 = vector.load %arg5[%c0_550, %760, %c41_551, %c0_552] : memref<1x9x56x64xf32, #tpu.memory_space<vmem>>, vector<1x1x2x64xf32>
    %762 = vector.shape_cast %761 : vector<1x1x2x64xf32> to vector<2x64xf32>
    %763 = arith.truncf %762 : vector<2x64xf32> to vector<2x64xbf16>
    %c0_553 = arith.constant 0 : index
    %c9664 = arith.constant 9664 : index
    %764 = vector.load %arg9[%c0_553, %c9664] : memref<2x14080xbf16, #tpu.memory_space<vmem>>, vector<2x64xbf16>
    tpu.vector_store %arg9[%c0_553, %c9664], %763 {strides = array<i32>} : memref<2x14080xbf16, #tpu.memory_space<vmem>>, vector<2x64xbf16>,
    %c0_554 = arith.constant 0 : index
    %765 = arith.index_cast %554 : i32 to index
    %c42_555 = arith.constant 42 : index
    %c0_556 = arith.constant 0 : index
    %766 = vector.load %arg5[%c0_554, %765, %c42_555, %c0_556] : memref<1x9x56x64xf32, #tpu.memory_space<vmem>>, vector<1x1x2x64xf32>
    %767 = vector.shape_cast %766 : vector<1x1x2x64xf32> to vector<2x64xf32>
    %768 = arith.truncf %767 : vector<2x64xf32> to vector<2x64xbf16>
    %c0_557 = arith.constant 0 : index
    %c9728 = arith.constant 9728 : index
    %769 = vector.load %arg9[%c0_557, %c9728] : memref<2x14080xbf16, #tpu.memory_space<vmem>>, vector<2x64xbf16>
    tpu.vector_store %arg9[%c0_557, %c9728], %768 {strides = array<i32>} : memref<2x14080xbf16, #tpu.memory_space<vmem>>, vector<2x64xbf16>,
    %c0_558 = arith.constant 0 : index
    %770 = arith.index_cast %554 : i32 to index
    %c43_559 = arith.constant 43 : index
    %c0_560 = arith.constant 0 : index
    %771 = vector.load %arg5[%c0_558, %770, %c43_559, %c0_560] : memref<1x9x56x64xf32, #tpu.memory_space<vmem>>, vector<1x1x2x64xf32>
    %772 = vector.shape_cast %771 : vector<1x1x2x64xf32> to vector<2x64xf32>
    %773 = arith.truncf %772 : vector<2x64xf32> to vector<2x64xbf16>
    %c0_561 = arith.constant 0 : index
    %c9792 = arith.constant 9792 : index
    %774 = vector.load %arg9[%c0_561, %c9792] : memref<2x14080xbf16, #tpu.memory_space<vmem>>, vector<2x64xbf16>
    tpu.vector_store %arg9[%c0_561, %c9792], %773 {strides = array<i32>} : memref<2x14080xbf16, #tpu.memory_space<vmem>>, vector<2x64xbf16>,
    %c0_562 = arith.constant 0 : index
    %775 = arith.index_cast %554 : i32 to index
    %c44_563 = arith.constant 44 : index
    %c0_564 = arith.constant 0 : index
    %776 = vector.load %arg5[%c0_562, %775, %c44_563, %c0_564] : memref<1x9x56x64xf32, #tpu.memory_space<vmem>>, vector<1x1x2x64xf32>
    %777 = vector.shape_cast %776 : vector<1x1x2x64xf32> to vector<2x64xf32>
    %778 = arith.truncf %777 : vector<2x64xf32> to vector<2x64xbf16>
    %c0_565 = arith.constant 0 : index
    %c9856 = arith.constant 9856 : index
    %779 = vector.load %arg9[%c0_565, %c9856] : memref<2x14080xbf16, #tpu.memory_space<vmem>>, vector<2x64xbf16>
    tpu.vector_store %arg9[%c0_565, %c9856], %778 {strides = array<i32>} : memref<2x14080xbf16, #tpu.memory_space<vmem>>, vector<2x64xbf16>,
    %c0_566 = arith.constant 0 : index
    %780 = arith.index_cast %554 : i32 to index
    %c45_567 = arith.constant 45 : index
    %c0_568 = arith.constant 0 : index
    %781 = vector.load %arg5[%c0_566, %780, %c45_567, %c0_568] : memref<1x9x56x64xf32, #tpu.memory_space<vmem>>, vector<1x1x2x64xf32>
    %782 = vector.shape_cast %781 : vector<1x1x2x64xf32> to vector<2x64xf32>
    %783 = arith.truncf %782 : vector<2x64xf32> to vector<2x64xbf16>
    %c0_569 = arith.constant 0 : index
    %c9920 = arith.constant 9920 : index
    %784 = vector.load %arg9[%c0_569, %c9920] : memref<2x14080xbf16, #tpu.memory_space<vmem>>, vector<2x64xbf16>
    tpu.vector_store %arg9[%c0_569, %c9920], %783 {strides = array<i32>} : memref<2x14080xbf16, #tpu.memory_space<vmem>>, vector<2x64xbf16>,
    %c0_570 = arith.constant 0 : index
    %785 = arith.index_cast %554 : i32 to index
    %c46_571 = arith.constant 46 : index
    %c0_572 = arith.constant 0 : index
    %786 = vector.load %arg5[%c0_570, %785, %c46_571, %c0_572] : memref<1x9x56x64xf32, #tpu.memory_space<vmem>>, vector<1x1x2x64xf32>
    %787 = vector.shape_cast %786 : vector<1x1x2x64xf32> to vector<2x64xf32>
    %788 = arith.truncf %787 : vector<2x64xf32> to vector<2x64xbf16>
    %c0_573 = arith.constant 0 : index
    %c9984 = arith.constant 9984 : index
    %789 = vector.load %arg9[%c0_573, %c9984] : memref<2x14080xbf16, #tpu.memory_space<vmem>>, vector<2x64xbf16>
    tpu.vector_store %arg9[%c0_573, %c9984], %788 {strides = array<i32>} : memref<2x14080xbf16, #tpu.memory_space<vmem>>, vector<2x64xbf16>,
    %c0_574 = arith.constant 0 : index
    %790 = arith.index_cast %554 : i32 to index
    %c47_575 = arith.constant 47 : index
    %c0_576 = arith.constant 0 : index
    %791 = vector.load %arg5[%c0_574, %790, %c47_575, %c0_576] : memref<1x9x56x64xf32, #tpu.memory_space<vmem>>, vector<1x1x2x64xf32>
    %792 = vector.shape_cast %791 : vector<1x1x2x64xf32> to vector<2x64xf32>
    %793 = arith.truncf %792 : vector<2x64xf32> to vector<2x64xbf16>
    %c0_577 = arith.constant 0 : index
    %c10048 = arith.constant 10048 : index
    %794 = vector.load %arg9[%c0_577, %c10048] : memref<2x14080xbf16, #tpu.memory_space<vmem>>, vector<2x64xbf16>
    tpu.vector_store %arg9[%c0_577, %c10048], %793 {strides = array<i32>} : memref<2x14080xbf16, #tpu.memory_space<vmem>>, vector<2x64xbf16>,
    %c0_578 = arith.constant 0 : index
    %795 = arith.index_cast %554 : i32 to index
    %c48_579 = arith.constant 48 : index
    %c0_580 = arith.constant 0 : index
    %796 = vector.load %arg5[%c0_578, %795, %c48_579, %c0_580] : memref<1x9x56x64xf32, #tpu.memory_space<vmem>>, vector<1x1x2x64xf32>
    %797 = vector.shape_cast %796 : vector<1x1x2x64xf32> to vector<2x64xf32>
    %798 = arith.truncf %797 : vector<2x64xf32> to vector<2x64xbf16>
    %c0_581 = arith.constant 0 : index
    %c10112 = arith.constant 10112 : index
    %799 = vector.load %arg9[%c0_581, %c10112] : memref<2x14080xbf16, #tpu.memory_space<vmem>>, vector<2x64xbf16>
    tpu.vector_store %arg9[%c0_581, %c10112], %798 {strides = array<i32>} : memref<2x14080xbf16, #tpu.memory_space<vmem>>, vector<2x64xbf16>,
    %c0_582 = arith.constant 0 : index
    %800 = arith.index_cast %554 : i32 to index
    %c49_583 = arith.constant 49 : index
    %c0_584 = arith.constant 0 : index
    %801 = vector.load %arg5[%c0_582, %800, %c49_583, %c0_584] : memref<1x9x56x64xf32, #tpu.memory_space<vmem>>, vector<1x1x2x64xf32>
    %802 = vector.shape_cast %801 : vector<1x1x2x64xf32> to vector<2x64xf32>
    %803 = arith.truncf %802 : vector<2x64xf32> to vector<2x64xbf16>
    %c0_585 = arith.constant 0 : index
    %c10176 = arith.constant 10176 : index
    %804 = vector.load %arg9[%c0_585, %c10176] : memref<2x14080xbf16, #tpu.memory_space<vmem>>, vector<2x64xbf16>
    tpu.vector_store %arg9[%c0_585, %c10176], %803 {strides = array<i32>} : memref<2x14080xbf16, #tpu.memory_space<vmem>>, vector<2x64xbf16>,
    %c0_586 = arith.constant 0 : index
    %805 = arith.index_cast %554 : i32 to index
    %c50_587 = arith.constant 50 : index
    %c0_588 = arith.constant 0 : index
    %806 = vector.load %arg5[%c0_586, %805, %c50_587, %c0_588] : memref<1x9x56x64xf32, #tpu.memory_space<vmem>>, vector<1x1x2x64xf32>
    %807 = vector.shape_cast %806 : vector<1x1x2x64xf32> to vector<2x64xf32>
    %808 = arith.truncf %807 : vector<2x64xf32> to vector<2x64xbf16>
    %c0_589 = arith.constant 0 : index
    %c10240 = arith.constant 10240 : index
    %809 = vector.load %arg9[%c0_589, %c10240] : memref<2x14080xbf16, #tpu.memory_space<vmem>>, vector<2x64xbf16>
    tpu.vector_store %arg9[%c0_589, %c10240], %808 {strides = array<i32>} : memref<2x14080xbf16, #tpu.memory_space<vmem>>, vector<2x64xbf16>,
    %c0_590 = arith.constant 0 : index
    %810 = arith.index_cast %554 : i32 to index
    %c51_591 = arith.constant 51 : index
    %c0_592 = arith.constant 0 : index
    %811 = vector.load %arg5[%c0_590, %810, %c51_591, %c0_592] : memref<1x9x56x64xf32, #tpu.memory_space<vmem>>, vector<1x1x2x64xf32>
    %812 = vector.shape_cast %811 : vector<1x1x2x64xf32> to vector<2x64xf32>
    %813 = arith.truncf %812 : vector<2x64xf32> to vector<2x64xbf16>
    %c0_593 = arith.constant 0 : index
    %c10304 = arith.constant 10304 : index
    %814 = vector.load %arg9[%c0_593, %c10304] : memref<2x14080xbf16, #tpu.memory_space<vmem>>, vector<2x64xbf16>
    tpu.vector_store %arg9[%c0_593, %c10304], %813 {strides = array<i32>} : memref<2x14080xbf16, #tpu.memory_space<vmem>>, vector<2x64xbf16>,
    %c0_594 = arith.constant 0 : index
    %815 = arith.index_cast %554 : i32 to index
    %c52_595 = arith.constant 52 : index
    %c0_596 = arith.constant 0 : index
    %816 = vector.load %arg5[%c0_594, %815, %c52_595, %c0_596] : memref<1x9x56x64xf32, #tpu.memory_space<vmem>>, vector<1x1x2x64xf32>
    %817 = vector.shape_cast %816 : vector<1x1x2x64xf32> to vector<2x64xf32>
    %818 = arith.truncf %817 : vector<2x64xf32> to vector<2x64xbf16>
    %c0_597 = arith.constant 0 : index
    %c10368 = arith.constant 10368 : index
    %819 = vector.load %arg9[%c0_597, %c10368] : memref<2x14080xbf16, #tpu.memory_space<vmem>>, vector<2x64xbf16>
    tpu.vector_store %arg9[%c0_597, %c10368], %818 {strides = array<i32>} : memref<2x14080xbf16, #tpu.memory_space<vmem>>, vector<2x64xbf16>,
    %c0_598 = arith.constant 0 : index
    %820 = arith.index_cast %554 : i32 to index
    %c53_599 = arith.constant 53 : index
    %c0_600 = arith.constant 0 : index
    %821 = vector.load %arg5[%c0_598, %820, %c53_599, %c0_600] : memref<1x9x56x64xf32, #tpu.memory_space<vmem>>, vector<1x1x2x64xf32>
    %822 = vector.shape_cast %821 : vector<1x1x2x64xf32> to vector<2x64xf32>
    %823 = arith.truncf %822 : vector<2x64xf32> to vector<2x64xbf16>
    %c0_601 = arith.constant 0 : index
    %c10432 = arith.constant 10432 : index
    %824 = vector.load %arg9[%c0_601, %c10432] : memref<2x14080xbf16, #tpu.memory_space<vmem>>, vector<2x64xbf16>
    tpu.vector_store %arg9[%c0_601, %c10432], %823 {strides = array<i32>} : memref<2x14080xbf16, #tpu.memory_space<vmem>>, vector<2x64xbf16>,
    %c0_602 = arith.constant 0 : index
    %825 = arith.index_cast %554 : i32 to index
    %c54_603 = arith.constant 54 : index
    %c0_604 = arith.constant 0 : index
    %826 = vector.load %arg5[%c0_602, %825, %c54_603, %c0_604] : memref<1x9x56x64xf32, #tpu.memory_space<vmem>>, vector<1x1x2x64xf32>
    %827 = vector.shape_cast %826 : vector<1x1x2x64xf32> to vector<2x64xf32>
    %828 = arith.truncf %827 : vector<2x64xf32> to vector<2x64xbf16>
    %c0_605 = arith.constant 0 : index
    %c10496 = arith.constant 10496 : index
    %829 = vector.load %arg9[%c0_605, %c10496] : memref<2x14080xbf16, #tpu.memory_space<vmem>>, vector<2x64xbf16>
    tpu.vector_store %arg9[%c0_605, %c10496], %828 {strides = array<i32>} : memref<2x14080xbf16, #tpu.memory_space<vmem>>, vector<2x64xbf16>,
    %c0_i32 = arith.constant 0 : i32
    %830 = arith.addi %1, %c0_i32 : i32
    %c0_606 = arith.constant 0 : index
    %831 = arith.index_cast %830 : i32 to index
    %c0_607 = arith.constant 0 : index
    %c0_608 = arith.constant 0 : index
    %832 = vector.load %arg5[%c0_606, %831, %c0_607, %c0_608] : memref<1x9x56x64xf32, #tpu.memory_space<vmem>>, vector<1x1x2x64xf32>
    %833 = vector.shape_cast %832 : vector<1x1x2x64xf32> to vector<2x64xf32>
    %834 = arith.truncf %833 : vector<2x64xf32> to vector<2x64xbf16>
    %c0_609 = arith.constant 0 : index
    %c10560 = arith.constant 10560 : index
    %835 = vector.load %arg9[%c0_609, %c10560] : memref<2x14080xbf16, #tpu.memory_space<vmem>>, vector<2x64xbf16>
    tpu.vector_store %arg9[%c0_609, %c10560], %834 {strides = array<i32>} : memref<2x14080xbf16, #tpu.memory_space<vmem>>, vector<2x64xbf16>,
    %c0_610 = arith.constant 0 : index
    %836 = arith.index_cast %830 : i32 to index
    %c1_611 = arith.constant 1 : index
    %c0_612 = arith.constant 0 : index
    %837 = vector.load %arg5[%c0_610, %836, %c1_611, %c0_612] : memref<1x9x56x64xf32, #tpu.memory_space<vmem>>, vector<1x1x2x64xf32>
    %838 = vector.shape_cast %837 : vector<1x1x2x64xf32> to vector<2x64xf32>
    %839 = arith.truncf %838 : vector<2x64xf32> to vector<2x64xbf16>
    %c0_613 = arith.constant 0 : index
    %c10624 = arith.constant 10624 : index
    %840 = vector.load %arg9[%c0_613, %c10624] : memref<2x14080xbf16, #tpu.memory_space<vmem>>, vector<2x64xbf16>
    tpu.vector_store %arg9[%c0_613, %c10624], %839 {strides = array<i32>} : memref<2x14080xbf16, #tpu.memory_space<vmem>>, vector<2x64xbf16>,
    %c0_614 = arith.constant 0 : index
    %841 = arith.index_cast %830 : i32 to index
    %c2_615 = arith.constant 2 : index
    %c0_616 = arith.constant 0 : index
    %842 = vector.load %arg5[%c0_614, %841, %c2_615, %c0_616] : memref<1x9x56x64xf32, #tpu.memory_space<vmem>>, vector<1x1x2x64xf32>
    %843 = vector.shape_cast %842 : vector<1x1x2x64xf32> to vector<2x64xf32>
    %844 = arith.truncf %843 : vector<2x64xf32> to vector<2x64xbf16>
    %c0_617 = arith.constant 0 : index
    %c10688 = arith.constant 10688 : index
    %845 = vector.load %arg9[%c0_617, %c10688] : memref<2x14080xbf16, #tpu.memory_space<vmem>>, vector<2x64xbf16>
    tpu.vector_store %arg9[%c0_617, %c10688], %844 {strides = array<i32>} : memref<2x14080xbf16, #tpu.memory_space<vmem>>, vector<2x64xbf16>,
    %c0_618 = arith.constant 0 : index
    %846 = arith.index_cast %830 : i32 to index
    %c3_619 = arith.constant 3 : index
    %c0_620 = arith.constant 0 : index
    %847 = vector.load %arg5[%c0_618, %846, %c3_619, %c0_620] : memref<1x9x56x64xf32, #tpu.memory_space<vmem>>, vector<1x1x2x64xf32>
    %848 = vector.shape_cast %847 : vector<1x1x2x64xf32> to vector<2x64xf32>
    %849 = arith.truncf %848 : vector<2x64xf32> to vector<2x64xbf16>
    %c0_621 = arith.constant 0 : index
    %c10752 = arith.constant 10752 : index
    %850 = vector.load %arg9[%c0_621, %c10752] : memref<2x14080xbf16, #tpu.memory_space<vmem>>, vector<2x64xbf16>
    tpu.vector_store %arg9[%c0_621, %c10752], %849 {strides = array<i32>} : memref<2x14080xbf16, #tpu.memory_space<vmem>>, vector<2x64xbf16>,
    %c0_622 = arith.constant 0 : index
    %851 = arith.index_cast %830 : i32 to index
    %c4_623 = arith.constant 4 : index
    %c0_624 = arith.constant 0 : index
    %852 = vector.load %arg5[%c0_622, %851, %c4_623, %c0_624] : memref<1x9x56x64xf32, #tpu.memory_space<vmem>>, vector<1x1x2x64xf32>
    %853 = vector.shape_cast %852 : vector<1x1x2x64xf32> to vector<2x64xf32>
    %854 = arith.truncf %853 : vector<2x64xf32> to vector<2x64xbf16>
    %c0_625 = arith.constant 0 : index
    %c10816 = arith.constant 10816 : index
    %855 = vector.load %arg9[%c0_625, %c10816] : memref<2x14080xbf16, #tpu.memory_space<vmem>>, vector<2x64xbf16>
    tpu.vector_store %arg9[%c0_625, %c10816], %854 {strides = array<i32>} : memref<2x14080xbf16, #tpu.memory_space<vmem>>, vector<2x64xbf16>,
    %c0_626 = arith.constant 0 : index
    %856 = arith.index_cast %830 : i32 to index
    %c5_627 = arith.constant 5 : index
    %c0_628 = arith.constant 0 : index
    %857 = vector.load %arg5[%c0_626, %856, %c5_627, %c0_628] : memref<1x9x56x64xf32, #tpu.memory_space<vmem>>, vector<1x1x2x64xf32>
    %858 = vector.shape_cast %857 : vector<1x1x2x64xf32> to vector<2x64xf32>
    %859 = arith.truncf %858 : vector<2x64xf32> to vector<2x64xbf16>
    %c0_629 = arith.constant 0 : index
    %c10880 = arith.constant 10880 : index
    %860 = vector.load %arg9[%c0_629, %c10880] : memref<2x14080xbf16, #tpu.memory_space<vmem>>, vector<2x64xbf16>
    tpu.vector_store %arg9[%c0_629, %c10880], %859 {strides = array<i32>} : memref<2x14080xbf16, #tpu.memory_space<vmem>>, vector<2x64xbf16>,
    %c0_630 = arith.constant 0 : index
    %861 = arith.index_cast %830 : i32 to index
    %c6_631 = arith.constant 6 : index
    %c0_632 = arith.constant 0 : index
    %862 = vector.load %arg5[%c0_630, %861, %c6_631, %c0_632] : memref<1x9x56x64xf32, #tpu.memory_space<vmem>>, vector<1x1x2x64xf32>
    %863 = vector.shape_cast %862 : vector<1x1x2x64xf32> to vector<2x64xf32>
    %864 = arith.truncf %863 : vector<2x64xf32> to vector<2x64xbf16>
    %c0_633 = arith.constant 0 : index
    %c10944 = arith.constant 10944 : index
    %865 = vector.load %arg9[%c0_633, %c10944] : memref<2x14080xbf16, #tpu.memory_space<vmem>>, vector<2x64xbf16>
    tpu.vector_store %arg9[%c0_633, %c10944], %864 {strides = array<i32>} : memref<2x14080xbf16, #tpu.memory_space<vmem>>, vector<2x64xbf16>,
    %c0_634 = arith.constant 0 : index
    %866 = arith.index_cast %830 : i32 to index
    %c7_635 = arith.constant 7 : index
    %c0_636 = arith.constant 0 : index
    %867 = vector.load %arg5[%c0_634, %866, %c7_635, %c0_636] : memref<1x9x56x64xf32, #tpu.memory_space<vmem>>, vector<1x1x2x64xf32>
    %868 = vector.shape_cast %867 : vector<1x1x2x64xf32> to vector<2x64xf32>
    %869 = arith.truncf %868 : vector<2x64xf32> to vector<2x64xbf16>
    %c0_637 = arith.constant 0 : index
    %c11008 = arith.constant 11008 : index
    %870 = vector.load %arg9[%c0_637, %c11008] : memref<2x14080xbf16, #tpu.memory_space<vmem>>, vector<2x64xbf16>
    tpu.vector_store %arg9[%c0_637, %c11008], %869 {strides = array<i32>} : memref<2x14080xbf16, #tpu.memory_space<vmem>>, vector<2x64xbf16>,
    %c0_638 = arith.constant 0 : index
    %871 = arith.index_cast %830 : i32 to index
    %c8_639 = arith.constant 8 : index
    %c0_640 = arith.constant 0 : index
    %872 = vector.load %arg5[%c0_638, %871, %c8_639, %c0_640] : memref<1x9x56x64xf32, #tpu.memory_space<vmem>>, vector<1x1x2x64xf32>
    %873 = vector.shape_cast %872 : vector<1x1x2x64xf32> to vector<2x64xf32>
    %874 = arith.truncf %873 : vector<2x64xf32> to vector<2x64xbf16>
    %c0_641 = arith.constant 0 : index
    %c11072 = arith.constant 11072 : index
    %875 = vector.load %arg9[%c0_641, %c11072] : memref<2x14080xbf16, #tpu.memory_space<vmem>>, vector<2x64xbf16>
    tpu.vector_store %arg9[%c0_641, %c11072], %874 {strides = array<i32>} : memref<2x14080xbf16, #tpu.memory_space<vmem>>, vector<2x64xbf16>,
    %c0_642 = arith.constant 0 : index
    %876 = arith.index_cast %830 : i32 to index
    %c9_643 = arith.constant 9 : index
    %c0_644 = arith.constant 0 : index
    %877 = vector.load %arg5[%c0_642, %876, %c9_643, %c0_644] : memref<1x9x56x64xf32, #tpu.memory_space<vmem>>, vector<1x1x2x64xf32>
    %878 = vector.shape_cast %877 : vector<1x1x2x64xf32> to vector<2x64xf32>
    %879 = arith.truncf %878 : vector<2x64xf32> to vector<2x64xbf16>
    %c0_645 = arith.constant 0 : index
    %c11136 = arith.constant 11136 : index
    %880 = vector.load %arg9[%c0_645, %c11136] : memref<2x14080xbf16, #tpu.memory_space<vmem>>, vector<2x64xbf16>
    tpu.vector_store %arg9[%c0_645, %c11136], %879 {strides = array<i32>} : memref<2x14080xbf16, #tpu.memory_space<vmem>>, vector<2x64xbf16>,
    %c0_646 = arith.constant 0 : index
    %881 = arith.index_cast %830 : i32 to index
    %c10_647 = arith.constant 10 : index
    %c0_648 = arith.constant 0 : index
    %882 = vector.load %arg5[%c0_646, %881, %c10_647, %c0_648] : memref<1x9x56x64xf32, #tpu.memory_space<vmem>>, vector<1x1x2x64xf32>
    %883 = vector.shape_cast %882 : vector<1x1x2x64xf32> to vector<2x64xf32>
    %884 = arith.truncf %883 : vector<2x64xf32> to vector<2x64xbf16>
    %c0_649 = arith.constant 0 : index
    %c11200 = arith.constant 11200 : index
    %885 = vector.load %arg9[%c0_649, %c11200] : memref<2x14080xbf16, #tpu.memory_space<vmem>>, vector<2x64xbf16>
    tpu.vector_store %arg9[%c0_649, %c11200], %884 {strides = array<i32>} : memref<2x14080xbf16, #tpu.memory_space<vmem>>, vector<2x64xbf16>,
    %c0_650 = arith.constant 0 : index
    %886 = arith.index_cast %830 : i32 to index
    %c11_651 = arith.constant 11 : index
    %c0_652 = arith.constant 0 : index
    %887 = vector.load %arg5[%c0_650, %886, %c11_651, %c0_652] : memref<1x9x56x64xf32, #tpu.memory_space<vmem>>, vector<1x1x2x64xf32>
    %888 = vector.shape_cast %887 : vector<1x1x2x64xf32> to vector<2x64xf32>
    %889 = arith.truncf %888 : vector<2x64xf32> to vector<2x64xbf16>
    %c0_653 = arith.constant 0 : index
    %c11264 = arith.constant 11264 : index
    %890 = vector.load %arg9[%c0_653, %c11264] : memref<2x14080xbf16, #tpu.memory_space<vmem>>, vector<2x64xbf16>
    tpu.vector_store %arg9[%c0_653, %c11264], %889 {strides = array<i32>} : memref<2x14080xbf16, #tpu.memory_space<vmem>>, vector<2x64xbf16>,
    %c0_654 = arith.constant 0 : index
    %891 = arith.index_cast %830 : i32 to index
    %c12_655 = arith.constant 12 : index
    %c0_656 = arith.constant 0 : index
    %892 = vector.load %arg5[%c0_654, %891, %c12_655, %c0_656] : memref<1x9x56x64xf32, #tpu.memory_space<vmem>>, vector<1x1x2x64xf32>
    %893 = vector.shape_cast %892 : vector<1x1x2x64xf32> to vector<2x64xf32>
    %894 = arith.truncf %893 : vector<2x64xf32> to vector<2x64xbf16>
    %c0_657 = arith.constant 0 : index
    %c11328 = arith.constant 11328 : index
    %895 = vector.load %arg9[%c0_657, %c11328] : memref<2x14080xbf16, #tpu.memory_space<vmem>>, vector<2x64xbf16>
    tpu.vector_store %arg9[%c0_657, %c11328], %894 {strides = array<i32>} : memref<2x14080xbf16, #tpu.memory_space<vmem>>, vector<2x64xbf16>,
    %c0_658 = arith.constant 0 : index
    %896 = arith.index_cast %830 : i32 to index
    %c13_659 = arith.constant 13 : index
    %c0_660 = arith.constant 0 : index
    %897 = vector.load %arg5[%c0_658, %896, %c13_659, %c0_660] : memref<1x9x56x64xf32, #tpu.memory_space<vmem>>, vector<1x1x2x64xf32>
    %898 = vector.shape_cast %897 : vector<1x1x2x64xf32> to vector<2x64xf32>
    %899 = arith.truncf %898 : vector<2x64xf32> to vector<2x64xbf16>
    %c0_661 = arith.constant 0 : index
    %c11392 = arith.constant 11392 : index
    %900 = vector.load %arg9[%c0_661, %c11392] : memref<2x14080xbf16, #tpu.memory_space<vmem>>, vector<2x64xbf16>
    tpu.vector_store %arg9[%c0_661, %c11392], %899 {strides = array<i32>} : memref<2x14080xbf16, #tpu.memory_space<vmem>>, vector<2x64xbf16>,
    %c0_662 = arith.constant 0 : index
    %901 = arith.index_cast %830 : i32 to index
    %c14_663 = arith.constant 14 : index
    %c0_664 = arith.constant 0 : index
    %902 = vector.load %arg5[%c0_662, %901, %c14_663, %c0_664] : memref<1x9x56x64xf32, #tpu.memory_space<vmem>>, vector<1x1x2x64xf32>
    %903 = vector.shape_cast %902 : vector<1x1x2x64xf32> to vector<2x64xf32>
    %904 = arith.truncf %903 : vector<2x64xf32> to vector<2x64xbf16>
    %c0_665 = arith.constant 0 : index
    %c11456 = arith.constant 11456 : index
    %905 = vector.load %arg9[%c0_665, %c11456] : memref<2x14080xbf16, #tpu.memory_space<vmem>>, vector<2x64xbf16>
    tpu.vector_store %arg9[%c0_665, %c11456], %904 {strides = array<i32>} : memref<2x14080xbf16, #tpu.memory_space<vmem>>, vector<2x64xbf16>,
    %c0_666 = arith.constant 0 : index
    %906 = arith.index_cast %830 : i32 to index
    %c15_667 = arith.constant 15 : index
    %c0_668 = arith.constant 0 : index
    %907 = vector.load %arg5[%c0_666, %906, %c15_667, %c0_668] : memref<1x9x56x64xf32, #tpu.memory_space<vmem>>, vector<1x1x2x64xf32>
    %908 = vector.shape_cast %907 : vector<1x1x2x64xf32> to vector<2x64xf32>
    %909 = arith.truncf %908 : vector<2x64xf32> to vector<2x64xbf16>
    %c0_669 = arith.constant 0 : index
    %c11520 = arith.constant 11520 : index
    %910 = vector.load %arg9[%c0_669, %c11520] : memref<2x14080xbf16, #tpu.memory_space<vmem>>, vector<2x64xbf16>
    tpu.vector_store %arg9[%c0_669, %c11520], %909 {strides = array<i32>} : memref<2x14080xbf16, #tpu.memory_space<vmem>>, vector<2x64xbf16>,
    %c0_670 = arith.constant 0 : index
    %911 = arith.index_cast %830 : i32 to index
    %c16_671 = arith.constant 16 : index
    %c0_672 = arith.constant 0 : index
    %912 = vector.load %arg5[%c0_670, %911, %c16_671, %c0_672] : memref<1x9x56x64xf32, #tpu.memory_space<vmem>>, vector<1x1x2x64xf32>
    %913 = vector.shape_cast %912 : vector<1x1x2x64xf32> to vector<2x64xf32>
    %914 = arith.truncf %913 : vector<2x64xf32> to vector<2x64xbf16>
    %c0_673 = arith.constant 0 : index
    %c11584 = arith.constant 11584 : index
    %915 = vector.load %arg9[%c0_673, %c11584] : memref<2x14080xbf16, #tpu.memory_space<vmem>>, vector<2x64xbf16>
    tpu.vector_store %arg9[%c0_673, %c11584], %914 {strides = array<i32>} : memref<2x14080xbf16, #tpu.memory_space<vmem>>, vector<2x64xbf16>,
    %c0_674 = arith.constant 0 : index
    %916 = arith.index_cast %830 : i32 to index
    %c17_675 = arith.constant 17 : index
    %c0_676 = arith.constant 0 : index
    %917 = vector.load %arg5[%c0_674, %916, %c17_675, %c0_676] : memref<1x9x56x64xf32, #tpu.memory_space<vmem>>, vector<1x1x2x64xf32>
    %918 = vector.shape_cast %917 : vector<1x1x2x64xf32> to vector<2x64xf32>
    %919 = arith.truncf %918 : vector<2x64xf32> to vector<2x64xbf16>
    %c0_677 = arith.constant 0 : index
    %c11648 = arith.constant 11648 : index
    %920 = vector.load %arg9[%c0_677, %c11648] : memref<2x14080xbf16, #tpu.memory_space<vmem>>, vector<2x64xbf16>
    tpu.vector_store %arg9[%c0_677, %c11648], %919 {strides = array<i32>} : memref<2x14080xbf16, #tpu.memory_space<vmem>>, vector<2x64xbf16>,
    %c0_678 = arith.constant 0 : index
    %921 = arith.index_cast %830 : i32 to index
    %c18_679 = arith.constant 18 : index
    %c0_680 = arith.constant 0 : index
    %922 = vector.load %arg5[%c0_678, %921, %c18_679, %c0_680] : memref<1x9x56x64xf32, #tpu.memory_space<vmem>>, vector<1x1x2x64xf32>
    %923 = vector.shape_cast %922 : vector<1x1x2x64xf32> to vector<2x64xf32>
    %924 = arith.truncf %923 : vector<2x64xf32> to vector<2x64xbf16>
    %c0_681 = arith.constant 0 : index
    %c11712 = arith.constant 11712 : index
    %925 = vector.load %arg9[%c0_681, %c11712] : memref<2x14080xbf16, #tpu.memory_space<vmem>>, vector<2x64xbf16>
    tpu.vector_store %arg9[%c0_681, %c11712], %924 {strides = array<i32>} : memref<2x14080xbf16, #tpu.memory_space<vmem>>, vector<2x64xbf16>,
    %c0_682 = arith.constant 0 : index
    %926 = arith.index_cast %830 : i32 to index
    %c19_683 = arith.constant 19 : index
    %c0_684 = arith.constant 0 : index
    %927 = vector.load %arg5[%c0_682, %926, %c19_683, %c0_684] : memref<1x9x56x64xf32, #tpu.memory_space<vmem>>, vector<1x1x2x64xf32>
    %928 = vector.shape_cast %927 : vector<1x1x2x64xf32> to vector<2x64xf32>
    %929 = arith.truncf %928 : vector<2x64xf32> to vector<2x64xbf16>
    %c0_685 = arith.constant 0 : index
    %c11776 = arith.constant 11776 : index
    %930 = vector.load %arg9[%c0_685, %c11776] : memref<2x14080xbf16, #tpu.memory_space<vmem>>, vector<2x64xbf16>
    tpu.vector_store %arg9[%c0_685, %c11776], %929 {strides = array<i32>} : memref<2x14080xbf16, #tpu.memory_space<vmem>>, vector<2x64xbf16>,
    %c0_686 = arith.constant 0 : index
    %931 = arith.index_cast %830 : i32 to index
    %c20_687 = arith.constant 20 : index
    %c0_688 = arith.constant 0 : index
    %932 = vector.load %arg5[%c0_686, %931, %c20_687, %c0_688] : memref<1x9x56x64xf32, #tpu.memory_space<vmem>>, vector<1x1x2x64xf32>
    %933 = vector.shape_cast %932 : vector<1x1x2x64xf32> to vector<2x64xf32>
    %934 = arith.truncf %933 : vector<2x64xf32> to vector<2x64xbf16>
    %c0_689 = arith.constant 0 : index
    %c11840 = arith.constant 11840 : index
    %935 = vector.load %arg9[%c0_689, %c11840] : memref<2x14080xbf16, #tpu.memory_space<vmem>>, vector<2x64xbf16>
    tpu.vector_store %arg9[%c0_689, %c11840], %934 {strides = array<i32>} : memref<2x14080xbf16, #tpu.memory_space<vmem>>, vector<2x64xbf16>,
    %c0_690 = arith.constant 0 : index
    %936 = arith.index_cast %830 : i32 to index
    %c21_691 = arith.constant 21 : index
    %c0_692 = arith.constant 0 : index
    %937 = vector.load %arg5[%c0_690, %936, %c21_691, %c0_692] : memref<1x9x56x64xf32, #tpu.memory_space<vmem>>, vector<1x1x2x64xf32>
    %938 = vector.shape_cast %937 : vector<1x1x2x64xf32> to vector<2x64xf32>
    %939 = arith.truncf %938 : vector<2x64xf32> to vector<2x64xbf16>
    %c0_693 = arith.constant 0 : index
    %c11904 = arith.constant 11904 : index
    %940 = vector.load %arg9[%c0_693, %c11904] : memref<2x14080xbf16, #tpu.memory_space<vmem>>, vector<2x64xbf16>
    tpu.vector_store %arg9[%c0_693, %c11904], %939 {strides = array<i32>} : memref<2x14080xbf16, #tpu.memory_space<vmem>>, vector<2x64xbf16>,
    %c0_694 = arith.constant 0 : index
    %941 = arith.index_cast %830 : i32 to index
    %c22_695 = arith.constant 22 : index
    %c0_696 = arith.constant 0 : index
    %942 = vector.load %arg5[%c0_694, %941, %c22_695, %c0_696] : memref<1x9x56x64xf32, #tpu.memory_space<vmem>>, vector<1x1x2x64xf32>
    %943 = vector.shape_cast %942 : vector<1x1x2x64xf32> to vector<2x64xf32>
    %944 = arith.truncf %943 : vector<2x64xf32> to vector<2x64xbf16>
    %c0_697 = arith.constant 0 : index
    %c11968 = arith.constant 11968 : index
    %945 = vector.load %arg9[%c0_697, %c11968] : memref<2x14080xbf16, #tpu.memory_space<vmem>>, vector<2x64xbf16>
    tpu.vector_store %arg9[%c0_697, %c11968], %944 {strides = array<i32>} : memref<2x14080xbf16, #tpu.memory_space<vmem>>, vector<2x64xbf16>,
    %c0_698 = arith.constant 0 : index
    %946 = arith.index_cast %830 : i32 to index
    %c23_699 = arith.constant 23 : index
    %c0_700 = arith.constant 0 : index
    %947 = vector.load %arg5[%c0_698, %946, %c23_699, %c0_700] : memref<1x9x56x64xf32, #tpu.memory_space<vmem>>, vector<1x1x2x64xf32>
    %948 = vector.shape_cast %947 : vector<1x1x2x64xf32> to vector<2x64xf32>
    %949 = arith.truncf %948 : vector<2x64xf32> to vector<2x64xbf16>
    %c0_701 = arith.constant 0 : index
    %c12032 = arith.constant 12032 : index
    %950 = vector.load %arg9[%c0_701, %c12032] : memref<2x14080xbf16, #tpu.memory_space<vmem>>, vector<2x64xbf16>
    tpu.vector_store %arg9[%c0_701, %c12032], %949 {strides = array<i32>} : memref<2x14080xbf16, #tpu.memory_space<vmem>>, vector<2x64xbf16>,
    %c0_702 = arith.constant 0 : index
    %951 = arith.index_cast %830 : i32 to index
    %c24_703 = arith.constant 24 : index
    %c0_704 = arith.constant 0 : index
    %952 = vector.load %arg5[%c0_702, %951, %c24_703, %c0_704] : memref<1x9x56x64xf32, #tpu.memory_space<vmem>>, vector<1x1x2x64xf32>
    %953 = vector.shape_cast %952 : vector<1x1x2x64xf32> to vector<2x64xf32>
    %954 = arith.truncf %953 : vector<2x64xf32> to vector<2x64xbf16>
    %c0_705 = arith.constant 0 : index
    %c12096 = arith.constant 12096 : index
    %955 = vector.load %arg9[%c0_705, %c12096] : memref<2x14080xbf16, #tpu.memory_space<vmem>>, vector<2x64xbf16>
    tpu.vector_store %arg9[%c0_705, %c12096], %954 {strides = array<i32>} : memref<2x14080xbf16, #tpu.memory_space<vmem>>, vector<2x64xbf16>,
    %c0_706 = arith.constant 0 : index
    %956 = arith.index_cast %830 : i32 to index
    %c25_707 = arith.constant 25 : index
    %c0_708 = arith.constant 0 : index
    %957 = vector.load %arg5[%c0_706, %956, %c25_707, %c0_708] : memref<1x9x56x64xf32, #tpu.memory_space<vmem>>, vector<1x1x2x64xf32>
    %958 = vector.shape_cast %957 : vector<1x1x2x64xf32> to vector<2x64xf32>
    %959 = arith.truncf %958 : vector<2x64xf32> to vector<2x64xbf16>
    %c0_709 = arith.constant 0 : index
    %c12160 = arith.constant 12160 : index
    %960 = vector.load %arg9[%c0_709, %c12160] : memref<2x14080xbf16, #tpu.memory_space<vmem>>, vector<2x64xbf16>
    tpu.vector_store %arg9[%c0_709, %c12160], %959 {strides = array<i32>} : memref<2x14080xbf16, #tpu.memory_space<vmem>>, vector<2x64xbf16>,
    %c0_710 = arith.constant 0 : index
    %961 = arith.index_cast %830 : i32 to index
    %c26_711 = arith.constant 26 : index
    %c0_712 = arith.constant 0 : index
    %962 = vector.load %arg5[%c0_710, %961, %c26_711, %c0_712] : memref<1x9x56x64xf32, #tpu.memory_space<vmem>>, vector<1x1x2x64xf32>
    %963 = vector.shape_cast %962 : vector<1x1x2x64xf32> to vector<2x64xf32>
    %964 = arith.truncf %963 : vector<2x64xf32> to vector<2x64xbf16>
    %c0_713 = arith.constant 0 : index
    %c12224 = arith.constant 12224 : index
    %965 = vector.load %arg9[%c0_713, %c12224] : memref<2x14080xbf16, #tpu.memory_space<vmem>>, vector<2x64xbf16>
    tpu.vector_store %arg9[%c0_713, %c12224], %964 {strides = array<i32>} : memref<2x14080xbf16, #tpu.memory_space<vmem>>, vector<2x64xbf16>,
    %c0_714 = arith.constant 0 : index
    %966 = arith.index_cast %830 : i32 to index
    %c27_715 = arith.constant 27 : index
    %c0_716 = arith.constant 0 : index
    %967 = vector.load %arg5[%c0_714, %966, %c27_715, %c0_716] : memref<1x9x56x64xf32, #tpu.memory_space<vmem>>, vector<1x1x2x64xf32>
    %968 = vector.shape_cast %967 : vector<1x1x2x64xf32> to vector<2x64xf32>
    %969 = arith.truncf %968 : vector<2x64xf32> to vector<2x64xbf16>
    %c0_717 = arith.constant 0 : index
    %c12288 = arith.constant 12288 : index
    %970 = vector.load %arg9[%c0_717, %c12288] : memref<2x14080xbf16, #tpu.memory_space<vmem>>, vector<2x64xbf16>
    tpu.vector_store %arg9[%c0_717, %c12288], %969 {strides = array<i32>} : memref<2x14080xbf16, #tpu.memory_space<vmem>>, vector<2x64xbf16>,
    %c0_718 = arith.constant 0 : index
    %971 = arith.index_cast %830 : i32 to index
    %c28_719 = arith.constant 28 : index
    %c0_720 = arith.constant 0 : index
    %972 = vector.load %arg5[%c0_718, %971, %c28_719, %c0_720] : memref<1x9x56x64xf32, #tpu.memory_space<vmem>>, vector<1x1x2x64xf32>
    %973 = vector.shape_cast %972 : vector<1x1x2x64xf32> to vector<2x64xf32>
    %974 = arith.truncf %973 : vector<2x64xf32> to vector<2x64xbf16>
    %c0_721 = arith.constant 0 : index
    %c12352 = arith.constant 12352 : index
    %975 = vector.load %arg9[%c0_721, %c12352] : memref<2x14080xbf16, #tpu.memory_space<vmem>>, vector<2x64xbf16>
    tpu.vector_store %arg9[%c0_721, %c12352], %974 {strides = array<i32>} : memref<2x14080xbf16, #tpu.memory_space<vmem>>, vector<2x64xbf16>,
    %c0_722 = arith.constant 0 : index
    %976 = arith.index_cast %830 : i32 to index
    %c29_723 = arith.constant 29 : index
    %c0_724 = arith.constant 0 : index
    %977 = vector.load %arg5[%c0_722, %976, %c29_723, %c0_724] : memref<1x9x56x64xf32, #tpu.memory_space<vmem>>, vector<1x1x2x64xf32>
    %978 = vector.shape_cast %977 : vector<1x1x2x64xf32> to vector<2x64xf32>
    %979 = arith.truncf %978 : vector<2x64xf32> to vector<2x64xbf16>
    %c0_725 = arith.constant 0 : index
    %c12416 = arith.constant 12416 : index
    %980 = vector.load %arg9[%c0_725, %c12416] : memref<2x14080xbf16, #tpu.memory_space<vmem>>, vector<2x64xbf16>
    tpu.vector_store %arg9[%c0_725, %c12416], %979 {strides = array<i32>} : memref<2x14080xbf16, #tpu.memory_space<vmem>>, vector<2x64xbf16>,
    %c0_726 = arith.constant 0 : index
    %981 = arith.index_cast %830 : i32 to index
    %c30_727 = arith.constant 30 : index
    %c0_728 = arith.constant 0 : index
    %982 = vector.load %arg5[%c0_726, %981, %c30_727, %c0_728] : memref<1x9x56x64xf32, #tpu.memory_space<vmem>>, vector<1x1x2x64xf32>
    %983 = vector.shape_cast %982 : vector<1x1x2x64xf32> to vector<2x64xf32>
    %984 = arith.truncf %983 : vector<2x64xf32> to vector<2x64xbf16>
    %c0_729 = arith.constant 0 : index
    %c12480 = arith.constant 12480 : index
    %985 = vector.load %arg9[%c0_729, %c12480] : memref<2x14080xbf16, #tpu.memory_space<vmem>>, vector<2x64xbf16>
    tpu.vector_store %arg9[%c0_729, %c12480], %984 {strides = array<i32>} : memref<2x14080xbf16, #tpu.memory_space<vmem>>, vector<2x64xbf16>,
    %c0_730 = arith.constant 0 : index
    %986 = arith.index_cast %830 : i32 to index
    %c31_731 = arith.constant 31 : index
    %c0_732 = arith.constant 0 : index
    %987 = vector.load %arg5[%c0_730, %986, %c31_731, %c0_732] : memref<1x9x56x64xf32, #tpu.memory_space<vmem>>, vector<1x1x2x64xf32>
    %988 = vector.shape_cast %987 : vector<1x1x2x64xf32> to vector<2x64xf32>
    %989 = arith.truncf %988 : vector<2x64xf32> to vector<2x64xbf16>
    %c0_733 = arith.constant 0 : index
    %c12544 = arith.constant 12544 : index
    %990 = vector.load %arg9[%c0_733, %c12544] : memref<2x14080xbf16, #tpu.memory_space<vmem>>, vector<2x64xbf16>
    tpu.vector_store %arg9[%c0_733, %c12544], %989 {strides = array<i32>} : memref<2x14080xbf16, #tpu.memory_space<vmem>>, vector<2x64xbf16>,
    %c0_734 = arith.constant 0 : index
    %991 = arith.index_cast %830 : i32 to index
    %c32_735 = arith.constant 32 : index
    %c0_736 = arith.constant 0 : index
    %992 = vector.load %arg5[%c0_734, %991, %c32_735, %c0_736] : memref<1x9x56x64xf32, #tpu.memory_space<vmem>>, vector<1x1x2x64xf32>
    %993 = vector.shape_cast %992 : vector<1x1x2x64xf32> to vector<2x64xf32>
    %994 = arith.truncf %993 : vector<2x64xf32> to vector<2x64xbf16>
    %c0_737 = arith.constant 0 : index
    %c12608 = arith.constant 12608 : index
    %995 = vector.load %arg9[%c0_737, %c12608] : memref<2x14080xbf16, #tpu.memory_space<vmem>>, vector<2x64xbf16>
    tpu.vector_store %arg9[%c0_737, %c12608], %994 {strides = array<i32>} : memref<2x14080xbf16, #tpu.memory_space<vmem>>, vector<2x64xbf16>,
    %c0_738 = arith.constant 0 : index
    %996 = arith.index_cast %830 : i32 to index
    %c33_739 = arith.constant 33 : index
    %c0_740 = arith.constant 0 : index
    %997 = vector.load %arg5[%c0_738, %996, %c33_739, %c0_740] : memref<1x9x56x64xf32, #tpu.memory_space<vmem>>, vector<1x1x2x64xf32>
    %998 = vector.shape_cast %997 : vector<1x1x2x64xf32> to vector<2x64xf32>
    %999 = arith.truncf %998 : vector<2x64xf32> to vector<2x64xbf16>
    %c0_741 = arith.constant 0 : index
    %c12672 = arith.constant 12672 : index
    %1000 = vector.load %arg9[%c0_741, %c12672] : memref<2x14080xbf16, #tpu.memory_space<vmem>>, vector<2x64xbf16>
    tpu.vector_store %arg9[%c0_741, %c12672], %999 {strides = array<i32>} : memref<2x14080xbf16, #tpu.memory_space<vmem>>, vector<2x64xbf16>,
    %c0_742 = arith.constant 0 : index
    %1001 = arith.index_cast %830 : i32 to index
    %c34_743 = arith.constant 34 : index
    %c0_744 = arith.constant 0 : index
    %1002 = vector.load %arg5[%c0_742, %1001, %c34_743, %c0_744] : memref<1x9x56x64xf32, #tpu.memory_space<vmem>>, vector<1x1x2x64xf32>
    %1003 = vector.shape_cast %1002 : vector<1x1x2x64xf32> to vector<2x64xf32>
    %1004 = arith.truncf %1003 : vector<2x64xf32> to vector<2x64xbf16>
    %c0_745 = arith.constant 0 : index
    %c12736 = arith.constant 12736 : index
    %1005 = vector.load %arg9[%c0_745, %c12736] : memref<2x14080xbf16, #tpu.memory_space<vmem>>, vector<2x64xbf16>
    tpu.vector_store %arg9[%c0_745, %c12736], %1004 {strides = array<i32>} : memref<2x14080xbf16, #tpu.memory_space<vmem>>, vector<2x64xbf16>,
    %c0_746 = arith.constant 0 : index
    %1006 = arith.index_cast %830 : i32 to index
    %c35_747 = arith.constant 35 : index
    %c0_748 = arith.constant 0 : index
    %1007 = vector.load %arg5[%c0_746, %1006, %c35_747, %c0_748] : memref<1x9x56x64xf32, #tpu.memory_space<vmem>>, vector<1x1x2x64xf32>
    %1008 = vector.shape_cast %1007 : vector<1x1x2x64xf32> to vector<2x64xf32>
    %1009 = arith.truncf %1008 : vector<2x64xf32> to vector<2x64xbf16>
    %c0_749 = arith.constant 0 : index
    %c12800 = arith.constant 12800 : index
    %1010 = vector.load %arg9[%c0_749, %c12800] : memref<2x14080xbf16, #tpu.memory_space<vmem>>, vector<2x64xbf16>
    tpu.vector_store %arg9[%c0_749, %c12800], %1009 {strides = array<i32>} : memref<2x14080xbf16, #tpu.memory_space<vmem>>, vector<2x64xbf16>,
    %c0_750 = arith.constant 0 : index
    %1011 = arith.index_cast %830 : i32 to index
    %c36_751 = arith.constant 36 : index
    %c0_752 = arith.constant 0 : index
    %1012 = vector.load %arg5[%c0_750, %1011, %c36_751, %c0_752] : memref<1x9x56x64xf32, #tpu.memory_space<vmem>>, vector<1x1x2x64xf32>
    %1013 = vector.shape_cast %1012 : vector<1x1x2x64xf32> to vector<2x64xf32>
    %1014 = arith.truncf %1013 : vector<2x64xf32> to vector<2x64xbf16>
    %c0_753 = arith.constant 0 : index
    %c12864 = arith.constant 12864 : index
    %1015 = vector.load %arg9[%c0_753, %c12864] : memref<2x14080xbf16, #tpu.memory_space<vmem>>, vector<2x64xbf16>
    tpu.vector_store %arg9[%c0_753, %c12864], %1014 {strides = array<i32>} : memref<2x14080xbf16, #tpu.memory_space<vmem>>, vector<2x64xbf16>,
    %c0_754 = arith.constant 0 : index
    %1016 = arith.index_cast %830 : i32 to index
    %c37_755 = arith.constant 37 : index
    %c0_756 = arith.constant 0 : index
    %1017 = vector.load %arg5[%c0_754, %1016, %c37_755, %c0_756] : memref<1x9x56x64xf32, #tpu.memory_space<vmem>>, vector<1x1x2x64xf32>
    %1018 = vector.shape_cast %1017 : vector<1x1x2x64xf32> to vector<2x64xf32>
    %1019 = arith.truncf %1018 : vector<2x64xf32> to vector<2x64xbf16>
    %c0_757 = arith.constant 0 : index
    %c12928 = arith.constant 12928 : index
    %1020 = vector.load %arg9[%c0_757, %c12928] : memref<2x14080xbf16, #tpu.memory_space<vmem>>, vector<2x64xbf16>
    tpu.vector_store %arg9[%c0_757, %c12928], %1019 {strides = array<i32>} : memref<2x14080xbf16, #tpu.memory_space<vmem>>, vector<2x64xbf16>,
    %c0_758 = arith.constant 0 : index
    %1021 = arith.index_cast %830 : i32 to index
    %c38_759 = arith.constant 38 : index
    %c0_760 = arith.constant 0 : index
    %1022 = vector.load %arg5[%c0_758, %1021, %c38_759, %c0_760] : memref<1x9x56x64xf32, #tpu.memory_space<vmem>>, vector<1x1x2x64xf32>
    %1023 = vector.shape_cast %1022 : vector<1x1x2x64xf32> to vector<2x64xf32>
    %1024 = arith.truncf %1023 : vector<2x64xf32> to vector<2x64xbf16>
    %c0_761 = arith.constant 0 : index
    %c12992 = arith.constant 12992 : index
    %1025 = vector.load %arg9[%c0_761, %c12992] : memref<2x14080xbf16, #tpu.memory_space<vmem>>, vector<2x64xbf16>
    tpu.vector_store %arg9[%c0_761, %c12992], %1024 {strides = array<i32>} : memref<2x14080xbf16, #tpu.memory_space<vmem>>, vector<2x64xbf16>,
    %c0_762 = arith.constant 0 : index
    %1026 = arith.index_cast %830 : i32 to index
    %c39_763 = arith.constant 39 : index
    %c0_764 = arith.constant 0 : index
    %1027 = vector.load %arg5[%c0_762, %1026, %c39_763, %c0_764] : memref<1x9x56x64xf32, #tpu.memory_space<vmem>>, vector<1x1x2x64xf32>
    %1028 = vector.shape_cast %1027 : vector<1x1x2x64xf32> to vector<2x64xf32>
    %1029 = arith.truncf %1028 : vector<2x64xf32> to vector<2x64xbf16>
    %c0_765 = arith.constant 0 : index
    %c13056 = arith.constant 13056 : index
    %1030 = vector.load %arg9[%c0_765, %c13056] : memref<2x14080xbf16, #tpu.memory_space<vmem>>, vector<2x64xbf16>
    tpu.vector_store %arg9[%c0_765, %c13056], %1029 {strides = array<i32>} : memref<2x14080xbf16, #tpu.memory_space<vmem>>, vector<2x64xbf16>,
    %c0_766 = arith.constant 0 : index
    %1031 = arith.index_cast %830 : i32 to index
    %c40_767 = arith.constant 40 : index
    %c0_768 = arith.constant 0 : index
    %1032 = vector.load %arg5[%c0_766, %1031, %c40_767, %c0_768] : memref<1x9x56x64xf32, #tpu.memory_space<vmem>>, vector<1x1x2x64xf32>
    %1033 = vector.shape_cast %1032 : vector<1x1x2x64xf32> to vector<2x64xf32>
    %1034 = arith.truncf %1033 : vector<2x64xf32> to vector<2x64xbf16>
    %c0_769 = arith.constant 0 : index
    %c13120 = arith.constant 13120 : index
    %1035 = vector.load %arg9[%c0_769, %c13120] : memref<2x14080xbf16, #tpu.memory_space<vmem>>, vector<2x64xbf16>
    tpu.vector_store %arg9[%c0_769, %c13120], %1034 {strides = array<i32>} : memref<2x14080xbf16, #tpu.memory_space<vmem>>, vector<2x64xbf16>,
    %c0_770 = arith.constant 0 : index
    %1036 = arith.index_cast %830 : i32 to index
    %c41_771 = arith.constant 41 : index
    %c0_772 = arith.constant 0 : index
    %1037 = vector.load %arg5[%c0_770, %1036, %c41_771, %c0_772] : memref<1x9x56x64xf32, #tpu.memory_space<vmem>>, vector<1x1x2x64xf32>
    %1038 = vector.shape_cast %1037 : vector<1x1x2x64xf32> to vector<2x64xf32>
    %1039 = arith.truncf %1038 : vector<2x64xf32> to vector<2x64xbf16>
    %c0_773 = arith.constant 0 : index
    %c13184 = arith.constant 13184 : index
    %1040 = vector.load %arg9[%c0_773, %c13184] : memref<2x14080xbf16, #tpu.memory_space<vmem>>, vector<2x64xbf16>
    tpu.vector_store %arg9[%c0_773, %c13184], %1039 {strides = array<i32>} : memref<2x14080xbf16, #tpu.memory_space<vmem>>, vector<2x64xbf16>,
    %c0_774 = arith.constant 0 : index
    %1041 = arith.index_cast %830 : i32 to index
    %c42_775 = arith.constant 42 : index
    %c0_776 = arith.constant 0 : index
    %1042 = vector.load %arg5[%c0_774, %1041, %c42_775, %c0_776] : memref<1x9x56x64xf32, #tpu.memory_space<vmem>>, vector<1x1x2x64xf32>
    %1043 = vector.shape_cast %1042 : vector<1x1x2x64xf32> to vector<2x64xf32>
    %1044 = arith.truncf %1043 : vector<2x64xf32> to vector<2x64xbf16>
    %c0_777 = arith.constant 0 : index
    %c13248 = arith.constant 13248 : index
    %1045 = vector.load %arg9[%c0_777, %c13248] : memref<2x14080xbf16, #tpu.memory_space<vmem>>, vector<2x64xbf16>
    tpu.vector_store %arg9[%c0_777, %c13248], %1044 {strides = array<i32>} : memref<2x14080xbf16, #tpu.memory_space<vmem>>, vector<2x64xbf16>,
    %c0_778 = arith.constant 0 : index
    %1046 = arith.index_cast %830 : i32 to index
    %c43_779 = arith.constant 43 : index
    %c0_780 = arith.constant 0 : index
    %1047 = vector.load %arg5[%c0_778, %1046, %c43_779, %c0_780] : memref<1x9x56x64xf32, #tpu.memory_space<vmem>>, vector<1x1x2x64xf32>
    %1048 = vector.shape_cast %1047 : vector<1x1x2x64xf32> to vector<2x64xf32>
    %1049 = arith.truncf %1048 : vector<2x64xf32> to vector<2x64xbf16>
    %c0_781 = arith.constant 0 : index
    %c13312 = arith.constant 13312 : index
    %1050 = vector.load %arg9[%c0_781, %c13312] : memref<2x14080xbf16, #tpu.memory_space<vmem>>, vector<2x64xbf16>
    tpu.vector_store %arg9[%c0_781, %c13312], %1049 {strides = array<i32>} : memref<2x14080xbf16, #tpu.memory_space<vmem>>, vector<2x64xbf16>,
    %c0_782 = arith.constant 0 : index
    %1051 = arith.index_cast %830 : i32 to index
    %c44_783 = arith.constant 44 : index
    %c0_784 = arith.constant 0 : index
    %1052 = vector.load %arg5[%c0_782, %1051, %c44_783, %c0_784] : memref<1x9x56x64xf32, #tpu.memory_space<vmem>>, vector<1x1x2x64xf32>
    %1053 = vector.shape_cast %1052 : vector<1x1x2x64xf32> to vector<2x64xf32>
    %1054 = arith.truncf %1053 : vector<2x64xf32> to vector<2x64xbf16>
    %c0_785 = arith.constant 0 : index
    %c13376 = arith.constant 13376 : index
    %1055 = vector.load %arg9[%c0_785, %c13376] : memref<2x14080xbf16, #tpu.memory_space<vmem>>, vector<2x64xbf16>
    tpu.vector_store %arg9[%c0_785, %c13376], %1054 {strides = array<i32>} : memref<2x14080xbf16, #tpu.memory_space<vmem>>, vector<2x64xbf16>,
    %c0_786 = arith.constant 0 : index
    %1056 = arith.index_cast %830 : i32 to index
    %c45_787 = arith.constant 45 : index
    %c0_788 = arith.constant 0 : index
    %1057 = vector.load %arg5[%c0_786, %1056, %c45_787, %c0_788] : memref<1x9x56x64xf32, #tpu.memory_space<vmem>>, vector<1x1x2x64xf32>
    %1058 = vector.shape_cast %1057 : vector<1x1x2x64xf32> to vector<2x64xf32>
    %1059 = arith.truncf %1058 : vector<2x64xf32> to vector<2x64xbf16>
    %c0_789 = arith.constant 0 : index
    %c13440 = arith.constant 13440 : index
    %1060 = vector.load %arg9[%c0_789, %c13440] : memref<2x14080xbf16, #tpu.memory_space<vmem>>, vector<2x64xbf16>
    tpu.vector_store %arg9[%c0_789, %c13440], %1059 {strides = array<i32>} : memref<2x14080xbf16, #tpu.memory_space<vmem>>, vector<2x64xbf16>,
    %c0_790 = arith.constant 0 : index
    %1061 = arith.index_cast %830 : i32 to index
    %c46_791 = arith.constant 46 : index
    %c0_792 = arith.constant 0 : index
    %1062 = vector.load %arg5[%c0_790, %1061, %c46_791, %c0_792] : memref<1x9x56x64xf32, #tpu.memory_space<vmem>>, vector<1x1x2x64xf32>
    %1063 = vector.shape_cast %1062 : vector<1x1x2x64xf32> to vector<2x64xf32>
    %1064 = arith.truncf %1063 : vector<2x64xf32> to vector<2x64xbf16>
    %c0_793 = arith.constant 0 : index
    %c13504 = arith.constant 13504 : index
    %1065 = vector.load %arg9[%c0_793, %c13504] : memref<2x14080xbf16, #tpu.memory_space<vmem>>, vector<2x64xbf16>
    tpu.vector_store %arg9[%c0_793, %c13504], %1064 {strides = array<i32>} : memref<2x14080xbf16, #tpu.memory_space<vmem>>, vector<2x64xbf16>,
    %c0_794 = arith.constant 0 : index
    %1066 = arith.index_cast %830 : i32 to index
    %c47_795 = arith.constant 47 : index
    %c0_796 = arith.constant 0 : index
    %1067 = vector.load %arg5[%c0_794, %1066, %c47_795, %c0_796] : memref<1x9x56x64xf32, #tpu.memory_space<vmem>>, vector<1x1x2x64xf32>
    %1068 = vector.shape_cast %1067 : vector<1x1x2x64xf32> to vector<2x64xf32>
    %1069 = arith.truncf %1068 : vector<2x64xf32> to vector<2x64xbf16>
    %c0_797 = arith.constant 0 : index
    %c13568 = arith.constant 13568 : index
    %1070 = vector.load %arg9[%c0_797, %c13568] : memref<2x14080xbf16, #tpu.memory_space<vmem>>, vector<2x64xbf16>
    tpu.vector_store %arg9[%c0_797, %c13568], %1069 {strides = array<i32>} : memref<2x14080xbf16, #tpu.memory_space<vmem>>, vector<2x64xbf16>,
    %c0_798 = arith.constant 0 : index
    %1071 = arith.index_cast %830 : i32 to index
    %c48_799 = arith.constant 48 : index
    %c0_800 = arith.constant 0 : index
    %1072 = vector.load %arg5[%c0_798, %1071, %c48_799, %c0_800] : memref<1x9x56x64xf32, #tpu.memory_space<vmem>>, vector<1x1x2x64xf32>
    %1073 = vector.shape_cast %1072 : vector<1x1x2x64xf32> to vector<2x64xf32>
    %1074 = arith.truncf %1073 : vector<2x64xf32> to vector<2x64xbf16>
    %c0_801 = arith.constant 0 : index
    %c13632 = arith.constant 13632 : index
    %1075 = vector.load %arg9[%c0_801, %c13632] : memref<2x14080xbf16, #tpu.memory_space<vmem>>, vector<2x64xbf16>
    tpu.vector_store %arg9[%c0_801, %c13632], %1074 {strides = array<i32>} : memref<2x14080xbf16, #tpu.memory_space<vmem>>, vector<2x64xbf16>,
    %c0_802 = arith.constant 0 : index
    %1076 = arith.index_cast %830 : i32 to index
    %c49_803 = arith.constant 49 : index
    %c0_804 = arith.constant 0 : index
    %1077 = vector.load %arg5[%c0_802, %1076, %c49_803, %c0_804] : memref<1x9x56x64xf32, #tpu.memory_space<vmem>>, vector<1x1x2x64xf32>
    %1078 = vector.shape_cast %1077 : vector<1x1x2x64xf32> to vector<2x64xf32>
    %1079 = arith.truncf %1078 : vector<2x64xf32> to vector<2x64xbf16>
    %c0_805 = arith.constant 0 : index
    %c13696 = arith.constant 13696 : index
    %1080 = vector.load %arg9[%c0_805, %c13696] : memref<2x14080xbf16, #tpu.memory_space<vmem>>, vector<2x64xbf16>
    tpu.vector_store %arg9[%c0_805, %c13696], %1079 {strides = array<i32>} : memref<2x14080xbf16, #tpu.memory_space<vmem>>, vector<2x64xbf16>,
    %c0_806 = arith.constant 0 : index
    %1081 = arith.index_cast %830 : i32 to index
    %c50_807 = arith.constant 50 : index
    %c0_808 = arith.constant 0 : index
    %1082 = vector.load %arg5[%c0_806, %1081, %c50_807, %c0_808] : memref<1x9x56x64xf32, #tpu.memory_space<vmem>>, vector<1x1x2x64xf32>
    %1083 = vector.shape_cast %1082 : vector<1x1x2x64xf32> to vector<2x64xf32>
    %1084 = arith.truncf %1083 : vector<2x64xf32> to vector<2x64xbf16>
    %c0_809 = arith.constant 0 : index
    %c13760 = arith.constant 13760 : index
    %1085 = vector.load %arg9[%c0_809, %c13760] : memref<2x14080xbf16, #tpu.memory_space<vmem>>, vector<2x64xbf16>
    tpu.vector_store %arg9[%c0_809, %c13760], %1084 {strides = array<i32>} : memref<2x14080xbf16, #tpu.memory_space<vmem>>, vector<2x64xbf16>,
    %c0_810 = arith.constant 0 : index
    %1086 = arith.index_cast %830 : i32 to index
    %c51_811 = arith.constant 51 : index
    %c0_812 = arith.constant 0 : index
    %1087 = vector.load %arg5[%c0_810, %1086, %c51_811, %c0_812] : memref<1x9x56x64xf32, #tpu.memory_space<vmem>>, vector<1x1x2x64xf32>
    %1088 = vector.shape_cast %1087 : vector<1x1x2x64xf32> to vector<2x64xf32>
    %1089 = arith.truncf %1088 : vector<2x64xf32> to vector<2x64xbf16>
    %c0_813 = arith.constant 0 : index
    %c13824 = arith.constant 13824 : index
    %1090 = vector.load %arg9[%c0_813, %c13824] : memref<2x14080xbf16, #tpu.memory_space<vmem>>, vector<2x64xbf16>
    tpu.vector_store %arg9[%c0_813, %c13824], %1089 {strides = array<i32>} : memref<2x14080xbf16, #tpu.memory_space<vmem>>, vector<2x64xbf16>,
    %c0_814 = arith.constant 0 : index
    %1091 = arith.index_cast %830 : i32 to index
    %c52_815 = arith.constant 52 : index
    %c0_816 = arith.constant 0 : index
    %1092 = vector.load %arg5[%c0_814, %1091, %c52_815, %c0_816] : memref<1x9x56x64xf32, #tpu.memory_space<vmem>>, vector<1x1x2x64xf32>
    %1093 = vector.shape_cast %1092 : vector<1x1x2x64xf32> to vector<2x64xf32>
    %1094 = arith.truncf %1093 : vector<2x64xf32> to vector<2x64xbf16>
    %c0_817 = arith.constant 0 : index
    %c13888 = arith.constant 13888 : index
    %1095 = vector.load %arg9[%c0_817, %c13888] : memref<2x14080xbf16, #tpu.memory_space<vmem>>, vector<2x64xbf16>
    tpu.vector_store %arg9[%c0_817, %c13888], %1094 {strides = array<i32>} : memref<2x14080xbf16, #tpu.memory_space<vmem>>, vector<2x64xbf16>,
    %c0_818 = arith.constant 0 : index
    %1096 = arith.index_cast %830 : i32 to index
    %c53_819 = arith.constant 53 : index
    %c0_820 = arith.constant 0 : index
    %1097 = vector.load %arg5[%c0_818, %1096, %c53_819, %c0_820] : memref<1x9x56x64xf32, #tpu.memory_space<vmem>>, vector<1x1x2x64xf32>
    %1098 = vector.shape_cast %1097 : vector<1x1x2x64xf32> to vector<2x64xf32>
    %1099 = arith.truncf %1098 : vector<2x64xf32> to vector<2x64xbf16>
    %c0_821 = arith.constant 0 : index
    %c13952 = arith.constant 13952 : index
    %1100 = vector.load %arg9[%c0_821, %c13952] : memref<2x14080xbf16, #tpu.memory_space<vmem>>, vector<2x64xbf16>
    tpu.vector_store %arg9[%c0_821, %c13952], %1099 {strides = array<i32>} : memref<2x14080xbf16, #tpu.memory_space<vmem>>, vector<2x64xbf16>,
    %c0_822 = arith.constant 0 : index
    %1101 = arith.index_cast %830 : i32 to index
    %c54_823 = arith.constant 54 : index
    %c0_824 = arith.constant 0 : index
    %1102 = vector.load %arg5[%c0_822, %1101, %c54_823, %c0_824] : memref<1x9x56x64xf32, #tpu.memory_space<vmem>>, vector<1x1x2x64xf32>
    %1103 = vector.shape_cast %1102 : vector<1x1x2x64xf32> to vector<2x64xf32>
    %1104 = arith.truncf %1103 : vector<2x64xf32> to vector<2x64xbf16>
    %c0_825 = arith.constant 0 : index
    %c14016 = arith.constant 14016 : index
    %1105 = vector.load %arg9[%c0_825, %c14016] : memref<2x14080xbf16, #tpu.memory_space<vmem>>, vector<2x64xbf16>
    tpu.vector_store %arg9[%c0_825, %c14016], %1104 {strides = array<i32>} : memref<2x14080xbf16, #tpu.memory_space<vmem>>, vector<2x64xbf16>,
    %c0_826 = arith.constant 0 : index
    %c0_827 = arith.constant 0 : index
    %1106 = vector.load %arg9[%c0_826, %c0_827] : memref<2x14080xbf16, #tpu.memory_space<vmem>>, vector<2x14080xbf16>
    %c0_828 = arith.constant 0 : index
    %c0_829 = arith.constant 0 : index
    %c0_830 = arith.constant 0 : index
    %1107 = vector.load %arg6[%c0_828, %c0_829, %c0_830] : memref<1x14080x128xbf16, #tpu.memory_space<vmem>>, vector<1x14080x128xbf16>
    %1108 = vector.shape_cast %1107 : vector<1x14080x128xbf16> to vector<14080x128xbf16>
    %cst = arith.constant dense<0.000000e+00> : vector<2x128xf32>
    %1109 = tpu.matmul %1106, %1108, %cst {dimension_numbers = #tpu.dot_dimension_numbers<[1], [0], [0], [1], [0, 0, 1, 1], [], []>} : vector<2x14080xbf16>, vector<14080x128xbf16>, vector<2x128xf32> -> vector<2x128xf32>
    %c0_831 = arith.constant 0 : index
    %c0_832 = arith.constant 0 : index
    %1110 = vector.load %arg7[%c0_831, %c0_832] : memref<1x128xf32, #tpu.memory_space<vmem>>, vector<1x128xf32>
    %1111 = vector.broadcast %1110 : vector<1x128xf32> to vector<2x128xf32>
    %1112 = arith.addf %1109, %1111 : vector<2x128xf32>
    %cst_833 = arith.constant 3.000000e+00 : f32
    %1113 = vector.broadcast %cst_833 : f32 to vector<2x128xf32>
    %1114 = arith.addf %1112, %1113 : vector<2x128xf32>
    %cst_834 = arith.constant 0.000000e+00 : f32
    %1115 = vector.broadcast %cst_834 : f32 to vector<2x128xf32>
    %1116 = arith.maximumf %1114, %1115 : vector<2x128xf32>
    %cst_835 = arith.constant 6.000000e+00 : f32
    %1117 = vector.broadcast %cst_835 : f32 to vector<2x128xf32>
    %1118 = arith.minimumf %1116, %1117 : vector<2x128xf32>
    %cst_836 = arith.constant 0.166666672 : f32
    %1119 = vector.broadcast %cst_836 : f32 to vector<2x128xf32>
    %1120 = arith.mulf %1118, %1119 : vector<2x128xf32>
    %c0_837 = arith.constant 0 : index
    %c0_838 = arith.constant 0 : index
    %c0_839 = arith.constant 0 : index
    %1121 = vector.load %arg8[%c0_837, %c0_838, %c0_839] : memref<1x2x128xf32, #tpu.memory_space<vmem>>, vector<1x2x128xf32>
    %1122 = vector.shape_cast %1121 : vector<1x2x128xf32> to vector<2x128xf32>
    %1123 = vector.shape_cast %1120 : vector<2x128xf32> to vector<1x2x128xf32>
    tpu.vector_store %arg8[%c0_837, %c0_838, %c0_839], %1123 {strides = array<i32>} : memref<1x2x128xf32, #tpu.memory_space<vmem>>, vector<1x2x128xf32>,
    return
  }
  func.func @transform_0(%arg0: i32, %arg1: memref<6xi32, #tpu.memory_space<smem>>, %arg2: memref<6xi32, #tpu.memory_space<smem>>, %arg3: memref<6xi32, #tpu.memory_space<smem>>, %arg4: memref<6xi32, #tpu.memory_space<smem>>) -> (i32, i32, i32, i32) {
    %0 = arith.index_cast %arg0 : i32 to index
    %1 = memref.load %arg2[%0] : memref<6xi32, #tpu.memory_space<smem>>
    %c0_i32 = arith.constant 0 : i32
    %c0_i32_0 = arith.constant 0 : i32
    %c0_i32_1 = arith.constant 0 : i32
    %c0_i32_2 = arith.constant 0 : i32
    return %1, %c0_i32, %c0_i32_0, %c0_i32_1 : i32, i32, i32, i32
  }
  func.func @transform_1(%arg0: i32, %arg1: memref<6xi32, #tpu.memory_space<smem>>, %arg2: memref<6xi32, #tpu.memory_space<smem>>, %arg3: memref<6xi32, #tpu.memory_space<smem>>, %arg4: memref<6xi32, #tpu.memory_space<smem>>) -> (i32, i32, i32) {
    %0 = arith.index_cast %arg0 : i32 to index
    %1 = memref.load %arg3[%0] : memref<6xi32, #tpu.memory_space<smem>>
    %c0_i32 = arith.constant 0 : i32
    %c0_i32_0 = arith.constant 0 : i32
    %c0_i32_1 = arith.constant 0 : i32
    return %1, %c0_i32, %c0_i32_0 : i32, i32, i32
  }
  func.func @transform_2(%arg0: i32, %arg1: memref<6xi32, #tpu.memory_space<smem>>, %arg2: memref<6xi32, #tpu.memory_space<smem>>, %arg3: memref<6xi32, #tpu.memory_space<smem>>, %arg4: memref<6xi32, #tpu.memory_space<smem>>) -> (i32, i32) {
    %c0_i32 = arith.constant 0 : i32
    %c0_i32_0 = arith.constant 0 : i32
    %c0_i32_1 = arith.constant 0 : i32
    return %c0_i32, %c0_i32_0 : i32, i32
  }
  func.func @transform_3(%arg0: i32, %arg1: memref<6xi32, #tpu.memory_space<smem>>, %arg2: memref<6xi32, #tpu.memory_space<smem>>, %arg3: memref<6xi32, #tpu.memory_space<smem>>, %arg4: memref<6xi32, #tpu.memory_space<smem>>) -> (i32, i32, i32) {
    %0 = arith.index_cast %arg0 : i32 to index
    %1 = memref.load %arg4[%0] : memref<6xi32, #tpu.memory_space<smem>>
    %c0_i32 = arith.constant 0 : i32
    %c0_i32_0 = arith.constant 0 : i32
    %c0_i32_1 = arith.constant 0 : i32
    return %1, %c0_i32, %c0_i32_0 : i32, i32, i32
  }
}

</mosaic_0001>

<bundles_post_ra>
// kernel: tpu_custom_call.1
= control target key start
LH: loop header
LB: loop body
LE: loop exit
PB: predicated region body
PF: predicated region fallthrough
CT: control target
= control target key end

     0   :  { %s19116_s0 = inlined_call_operand.hbm [shape: s32[6], index: 0, kind: input, shape index: {}]   ;;  %s19117_s4 = inlined_call_operand.hbm [shape: f32[2,9,56,64], index: 4, kind: input, shape index: {}]   ;;  %s19118_s5 = inlined_call_operand.hbm [shape: bf16[16,14080,128], index: 5, kind: input, shape index: {}]   ;;  %s19119_s6 = inlined_call_operand.hbm [shape: f32[1,128], index: 6, kind: input, shape index: {}]   ;;  %s19120_s7 = inlined_call_operand.hbm [shape: f32[6,2,128], index: 7, kind: output, shape index: {}]   ;;  %s19121_s1 = inlined_call_operand.hbm [shape: s32[6], index: 1, kind: input, shape index: {}]   ;;  %s19122_s2 = inlined_call_operand.hbm [shape: s32[6], index: 2, kind: input, shape index: {}]   ;;  %s19123_s3 = inlined_call_operand.hbm [shape: s32[6], index: 3, kind: input, shape index: {}]  }
   0x1   :  { %19139 = sst [smem:[#allocation32_spill]] %s19117_s4  ;;  %s16422_s26 = scalar_lea.hbm %s19116_s0, 16 }
   0x2   :  { %19140 = sst [smem:[#allocation33_spill]] %s19119_s6  ;;  %p16423_p0 = scmp.ne.s32.totalorder %s19116_s0, %s16422_s26 }
   0x3   :  { %p16426_p1 = scmp.lt.u32.totalorder %s16422_s26, %s19116_s0 }
   0x5   :  { %p16428_p2 = pnand %p16426_p1, %p16423_p0 }
   0x7   :  { %16431 = shalt.err (!%p16428_p2)  }
   0x8   :  { %s16676_s8 = smov [#allocation4]   ;;  %s16432_s13 = scalar_lea.hbm %s19121_s1, 16 }
   0x9   :  { %13 = dma.hbm_to_smem %s19116_s0, 16, %s16676_s8, [#allocation3] }
   0xa   :  { %p16433_p3 = scmp.ne.s32.totalorder %s19121_s1, %s16432_s13  ;;  %p16436_p4 = scmp.lt.u32.totalorder %s16432_s13, %s19121_s1 }
   0xc   :  { %p16438_p5 = pnand %p16436_p4, %p16433_p3 }
   0xe   :  { %16441 = shalt.err (!%p16438_p5)  }
   0xf   :  { %s16677_s18 = smov [#allocation5]   ;;  %s16442_s22 = scalar_lea.hbm %s19122_s2, 16 }
  0x10   :  { %15 = dma.hbm_to_smem %s19121_s1, 16, %s16677_s18, [#allocation3] }
  0x11   :  { %p16443_p6 = scmp.ne.s32.totalorder %s19122_s2, %s16442_s22  ;;  %p16446_p7 = scmp.lt.u32.totalorder %s16442_s22, %s19122_s2 }
  0x13   :  { %p16448_p8 = pnand %p16446_p7, %p16443_p6 }
  0x15   :  { %16451 = shalt.err (!%p16448_p8)  }
  0x16   :  { %s16678_s27 = smov [#allocation6]   ;;  %s16452_s8 = scalar_lea.hbm %s19123_s3, 16 }
  0x17   :  { %17 = dma.hbm_to_smem %s19122_s2, 16, %s16678_s27, [#allocation3] }
  0x18   :  { %p16453_p9 = scmp.ne.s32.totalorder %s19123_s3, %s16452_s8  ;;  %p16456_p10 = scmp.lt.u32.totalorder %s16452_s8, %s19123_s3 }
  0x1a   :  { %p16458_p11 = pnand %p16456_p10, %p16453_p9 }
  0x1c   :  { %16461 = shalt.err (!%p16458_p11)  }
  0x1d   :  { %s16679_s13 = smov [#allocation7]  }
  0x1e   :  { %19 = dma.hbm_to_smem %s19123_s3, 16, %s16679_s13, [#allocation3] }
  0x1f   :  { %16618 = dma.done.wait [#allocation3], 64 }
  0x20   :  { %16619 = vsyncadd [#allocation3], 4294967232 }
  0x21   :  { %21 = sfence }
  0x22   :  { %22 = vsyncpa [#allocation9], 0 }
  0x23   :  { %24 = vsyncpa [#allocation9 + $0x1], 0 }
  0x24   :  { %25 = vsyncpa [#allocation12], 0 }
  0x25   :  { %27 = vsyncpa [#allocation12 + $0x1], 0 }
  0x26   :  { %28 = vsyncpa [#allocation10], 0 }
  0x27   :  { %30 = vsyncpa [#allocation10 + $0x1], 0  ;;  %s16778_s2 = smov 0   ;;  %s16780_s16 = smov 0  }
  0x28   :  { %s16782_s17 = smov 0   ;;  %s16784_s18 = smov 0  }
  0x29   :  { %s16786_s19 = smov 0   ;;  %s16788_s3 = smov 0  }
  0x2a   :  { %s16790_s20 = smov 0   ;;  %s16792_s0 = smov 0  }
  0x2b   :  { %s16794_s21 = smov 0   ;;  %s16796_s22 = smov 0  }
  0x2c LB: > { %19141 = sst [smem:[#allocation25_spill]] %s16646_s17  ;;  %s16825_s23 = sadd.s32 4294967295, %s16674_s22   ;;  %s16674_s22 = sphi %s16796_s22, %s19175_s22   ;;  %s16670_s21 = sphi %s16794_s21, %s19180_s21   ;;  %s16666_s0 = sphi %s16792_s0, %s19187_s0   ;;  %s16662_s20 = sphi %s16790_s20, %s19186_s20   ;;  %s16658_s3 = sphi %s16788_s3, %s19185_s3   ;;  %s16654_s19 = sphi %s16786_s19, %s19184_s19   ;;  %s16650_s18 = sphi %s16784_s18, %s19183_s18   ;;  %s16646_s17 = sphi %s16782_s17, %s19177_s17   ;;  %s16642_s16 = sphi %s16780_s16, %s19182_s16   ;;  %s16638_s2 = sphi %s16778_s2, %s19181_s2  }
  0x2d   : > { %19142 = sst [smem:[#allocation26_spill]] %s16670_s21  ;;  %s13123_s24 = sadd.s32 4294967294, %s16674_s22  }
  0x2e   : > { %s16829_s25 = sadd.s32 1, %s16674_s22   ;;  %p19124_p12 = scmp.eq.s32.totalorder %s16674_s22, 0 }
  0x2f   : > { %19143 = sst [smem:[#allocation27_spill]] %s16829_s25  ;;  %p58_p13 = scmp.ne.s32.totalorder %s16666_s0, %s16662_s20 }
  0x30   : > { %p19126_p0 = scmp.eq.s32.totalorder %s16825_s23, 0  ;;  %s68_s26 = sld [smem:[#allocation6 + %s16674_s22]] }
  0x31   : > { %s69_s27 = sld [smem:[#allocation6 + %s16829_s25]]  ;;  %s73_s29 = sadd.s32 1, %s16658_s3 }
  0x32   : > { %p16838_p1 = por %p19126_p0, %p58_p13  ;;  %p80_p2 = scmp.ne.s32.totalorder %s16658_s3, %s16654_s19 }
  0x33   : > { %p86_p3 = scmp.ne.s32.totalorder %s16654_s19, %s16650_s18  ;;  %s117_s1 = sld [smem:[#allocation7 + %s16674_s22]] }
  0x34   : > { %s19144_s28 = scalar_select %p16838_p1, 1, 0 }
  0x35   : > { %s118_s30 = sld [smem:[#allocation7 + %s16829_s25]]  ;;  %p16850_p4 = por %p80_p2, %p19124_p12 }
  0x36   : > { %p16856_p5 = por %p86_p3, %p19126_p0  ;;  %s122_s10 = sadd.s32 1, %s16646_s17 }
  0x37   : > { %s19145_s8 = scalar_select %p16850_p4, 1, 0 }
  0x38   : > { %s19146_s9 = scalar_select %p16856_p5, 1, 0 }
  0x39   : > { %p132_p6 = scmp.ne.s32.totalorder %s16646_s17, %s16642_s16  ;;  %s70_s11 = ssub.s32 %s68_s26, %s69_s27 }
  0x3a   : > { %p133_p7 = scmp.eq.s32.totalorder %s16825_s23, 5  ;;  %p71_p8 = scmp.eq.s32.totalorder %s70_s11, 0 }
  0x3b   : > { %p138_p9 = scmp.ne.s32.totalorder %s16642_s16, %s16638_s2  ;;  %p139_p11 = scmp.eq.s32.totalorder %s13123_s24, 5 }
  0x3c   : > { %p16866_p10 = por %p133_p7, %p132_p6  ;;  %s119_s14 = ssub.s32 %s117_s1, %s118_s30 }
  0x3d   : > { %s16871_s13 = scalar_select %p71_p8, %s16658_s3, %s73_s29  }
  0x3e   : > { %s19147_s12 = scalar_select %p16866_p10, 1, 0 }
  0x3f   : > { %19148 = sst [smem:[#allocation28_spill]] %s16871_s13  ;;  %p16873_p13 = por %p139_p11, %p138_p9 }
  0x40   : > { %p120_p2 = scmp.eq.s32.totalorder %s119_s14, 0  ;;  %p13124_p3 = scmp.ge.s32.totalorder %s16674_s22, 1 }
  0x41   : > { %s19149_s15 = scalar_select %p16873_p13, 1, 0 }
  0x42   : > { %p146_p12 = scmp.lt.s32.totalorder %s16674_s22, 7  ;;  %s16680_s24 = smov [#allocation13]  }
  0x43   : > { %19150 = sst [smem:[#allocation29_spill]] %s19149_s15  ;;  %s159_s26 = sshll.u32 %s16680_s24, 4  ;;  %s160_s26 = int_to_ptr.vmem [resolvable:$true] %s159_s26 }
  0x44   : > { %s16880_s18 = scalar_select %p120_p2, %s16646_s17, %s122_s10  }
  0x45   : > { %p16882_p6 = pnand %p13124_p3, %p146_p12  ;;  %p19127_p8 = scmp.lt.s32.totalorder %s16674_s22, 6 }
  0x46   : > { %19151 = sst [smem:[#allocation30_spill]] %s16880_s18  ;;  %s19155_s6 = sld [smem:[#allocation33_spill]] }
  0x47   : > { %s19152_s20 = scalar_select %p16882_p6, 1, 0 }
  0x48   : > { %p15414_p7 = pneg %p16882_p6  ;;  %p16899_p11 = pnand %p19127_p8, %p16850_p4 }
  0x49   : > { %s40_s1 = sld [smem:[#allocation5 + %s16674_s22]] }
  0x4a   : > { %p16891_p9 = pnand %p15414_p7, %p19126_p0  ;;  %s41_s30 = sld [smem:[#allocation5 + %s16829_s25]] }
  0x4b   : > { %s19154_s29 = scalar_select %p16899_p11, 1, 0 }
  0x4c   : > { %s16462_s14 = scalar_lea.hbm %s19155_s6, 16  ;;  %p16464_p2 = pneg %p16891_p9 }
  0x4d   : > { %p16463_p12 = scmp.ne.s32.totalorder %s19155_s6, %s16462_s14  ;;  %p16469_p0 = scmp.lt.u32.totalorder %s16462_s14, %s19155_s6 }
  0x4f   : > { %p16465_p3 = pnand %p16464_p2, %p16463_p12 }
  0x51   : > { %p16466_p7 = pneg %p16465_p3 }
  0x53   : > { %p16471_p8 = pnand %p16469_p0, %p16466_p7 }
  0x55   : > { %16474 = shalt.err (!%p16471_p8)
}
  0x56   : > { %s16475_s15 = scalar_lea.vmem %s160_s26, 16  ;;  %s16482_s10 = scalar_lea.vmem %s160_s26, 32 }
  0x57   : > { %p16476_p13 = scmp.ne.s32.totalorder %s160_s26, %s16475_s15  ;;  %p16483_p1 = scmp.lt.s32.totalorder %s160_s26, %s160_s26 }
  0x58   : > { %p16484_p6 = scmp.lt.s32.totalorder %s16482_s10, %s16475_s15 }
  0x59   : > { %p16478_p10 = pnand %p16476_p13, %p16464_p2 }
  0x5a   : > { %p16485_p11 = por %p16484_p6, %p16483_p1 }
  0x5b   : > { %p16479_p5 = pneg %p16478_p10 }
  0x5d   : > { %p16486_p4 = pnand %p16485_p11, %p16479_p5 }
  0x5f   : > { %16489 = shalt.err (!%p16486_p4)
}
  0x60   : > { %15417 = dma.hbm_to_vmem [thread:$0]  (!%p16891_p9), %s19155_s6, 16, %s160_s26, [#allocation12]  }
  0x61   : > { %p52_p0 = scmp.ne.s32.totalorder %s16670_s21, %s16666_s0  ;;  %s170_s17 = sand.u32 1, %s16670_s21  }
  0x62   : > { %s15392_s15 = smul.u32 504, %s170_s17  ;;  %p19156_p1 = scmp.eq.s32.totalorder %s16674_s22, 0 }
  0x63   : > { %s42_s18 = ssub.s32 %s40_s1, %s41_s30  ;;  %s45_s27 = sadd.s32 1, %s16670_s21 }
  0x64   : > { %p54_p4 = por %p19156_p1, %p52_p0  ;;  %p43_p5 = scmp.eq.s32.totalorder %s42_s18, 0 }
  0x65   : > { %p19158_p10 = scmp.lt.s32.totalorder %s16674_s22, 6  ;;  %s174_s30 = scalar_lea.vmem [#allocation8], %s15392_s15 }
  0x66   : > { %s15400_s14 = scalar_select %p54_p4, [#allocation5], [#allocation15] }
  0x67   : > { %s16928_s24 = scalar_select %p43_p5, %s16670_s21, %s45_s27  }
  0x68   : > { %s15401_s10 = scalar_select %p54_p4, %s16674_s22, 0 }
  0x69   : > { %19157 = sst [smem:[#allocation31_spill]] %s16928_s24  ;;  %s19189_s14 = smov (!%p19158_p10, %s15400_s14), [#allocation18] }
  0x6a   : > { %p19159_p13 = pmov %p19158_p10  ;;  %p19160_p6 = pmov %p19158_p10 }
  0x6b   : > { %s182_s13 = sshll.u32 %s174_s30, 4  ;;  %s194_s11 = sand.u32 1, %s16658_s3   ;;  %s16941_s13 = int_to_ptr.vmem [resolvable:$true] %s182_s13 }
  0x6c   : > { %s19191_s10 = smov (!%p19159_p13, %s15401_s10), 0  ;;  %p16937_p8 = pnand %p19160_p6, %p54_p4 }
  0x6d   : > { %s175_s1 = sld [smem:[%s19189_s14 + %s19191_s10]]  ;;  %p19162_p9 = scmp.ne.s32.totalorder %s19145_s8, 0 }
  0x6e   : > { %s19163_s4 = sld [smem:[#allocation32_spill]]  ;;  %s16954_s14 = smul.u32 7040, %s194_s11 }
  0x6f   : > { %s15403_s18 = scalar_select %p19162_p9, [#allocation6], [#allocation16] }
  0x70   : > { %s15404_s6 = scalar_select %p19162_p9, %s16674_s22, 0 }
  0x71   : > { %s16956_s15 = scalar_lea.sflag [#allocation9], %s170_s17  ;;  %p16492_p12 = pneg %p16937_p8 }
  0x73   : > { %s15393_s27 = smul.u32 8064, %s175_s1 }
  0x74   : > { %s16495_s24 = scalar_lea.hbm %s19163_s4, 16128 }
  0x75   : > { %s16952_s25 = scalar_lea.hbm %s19163_s4, %s15393_s27 }
  0x76   : > { %s16490_s10 = scalar_lea.hbm %s16952_s25, 8064  ;;  %p16496_p7 = scmp.lt.u32.totalorder %s16952_s25, %s19163_s4 }
  0x77   : > { %p16491_p11 = scmp.ne.s32.totalorder %s16952_s25, %s16490_s10  ;;  %p16497_p0 = scmp.lt.u32.totalorder %s16495_s24, %s16490_s10 }
  0x78   : > { %p16499_p4 = scmp.lt.u32.totalorder %s16490_s10, %s16952_s25 }
  0x79   : > { %p16493_p2 = pnand %p16492_p12, %p16491_p11  ;;  %p16498_p1 = por %p16497_p0, %p16496_p7 }
  0x7b   : > { %p16494_p3 = pneg %p16493_p2  ;;  %p16500_p5 = por %p16499_p4, %p16498_p1 }
  0x7d   : > { %p16501_p10 = pnand %p16500_p5, %p16494_p3 }
  0x7f   : > { %16504 = shalt.err (!%p16501_p10)
}
  0x80   : > { %s16505_s17 = scalar_lea.vmem %s16941_s13, 8064  ;;  %s16681_s11 = smov [#allocation8]  }
  0x81   : > { %p16506_p13 = scmp.ne.s32.totalorder %s16941_s13, %s16505_s17  ;;  %s16510_s1 = sshll.u32 %s16681_s11, 4  ;;  %s16511_s1 = int_to_ptr.vmem [resolvable:$false] %s16510_s1 }
  0x82   : > { %s16512_s21 = scalar_lea.vmem %s16511_s1, 16128  ;;  %p16513_p2 = scmp.lt.s32.totalorder %s16941_s13, %s16511_s1 }
  0x83   : > { %p16508_p6 = pnand %p16506_p13, %p16492_p12  ;;  %p16514_p7 = scmp.lt.s32.totalorder %s16512_s21, %s16505_s17 }
  0x85   : > { %p16509_p11 = pneg %p16508_p6  ;;  %p16515_p0 = por %p16514_p7, %p16513_p2 }
  0x87   : > { %p16516_p1 = pnand %p16515_p0, %p16509_p11 }
  0x89   : > { %16519 = shalt.err (!%p16516_p1)
}
  0x8a   : > { %s16682_s10 = smov 128   ;;  %s16683_s24 = smov 8  }
  0x8b   : > { %15423 = dma.hbm_to_vmem [thread:$0]  (!%p16937_p8), %s16952_s25, 8064, %s16941_s13, %s16956_s15, %s16682_s10, %s16682_s10, %s16683_s24  }
  0x8c   : > { %p19164_p12 = scmp.lt.s32.totalorder %s16674_s22, 6  ;;  %s192_s27 = sand.u32 1, %s16674_s22  }
  0x8d   : > { %s196_s17 = scalar_lea.vmem [#allocation11], %s16954_s14  ;;  %s17004_s25 = scalar_lea.sflag [#allocation12], %s192_s27 }
  0x8e   : > { %s19193_s18 = smov (!%p19164_p12, %s15403_s18), [#allocation19]  ;;  %p19165_p3 = pmov %p19164_p12 }
  0x8f   : > { %s204_s11 = sshll.u32 %s196_s17, 4  ;;  %p19166_p9 = scmp.ne.s32.totalorder %s19154_s29, 0  ;;  %s16997_s11 = int_to_ptr.vmem [resolvable:$true] %s204_s11 }
  0x90   : > { %s19195_s6 = smov (!%p19165_p3, %s15404_s6), 0  ;;  %s16525_s4 = scalar_lea.hbm %s19118_s5, 1802240 }
  0x91   : > { %s197_s30 = sld [smem:[%s19193_s18 + %s19195_s6]]  ;;  %p16522_p4 = pneg %p19166_p9 }
  0x97   : > { %s15395_s1 = smul.u32 112640, %s197_s30 }
  0x99   : > { %s17002_s26 = scalar_lea.hbm %s19118_s5, %s15395_s1 }
  0x9a   : > { %s16520_s8 = scalar_lea.hbm %s17002_s26, 112640  ;;  %p16526_p13 = scmp.lt.u32.totalorder %s17002_s26, %s19118_s5 }
  0x9b   : > { %p16521_p8 = scmp.ne.s32.totalorder %s17002_s26, %s16520_s8  ;;  %p16527_p6 = scmp.lt.u32.totalorder %s16525_s4, %s16520_s8 }
  0x9c   : > { %p16529_p2 = scmp.lt.u32.totalorder %s16520_s8, %s17002_s26 }
  0x9d   : > { %p16523_p5 = pnand %p16522_p4, %p16521_p8  ;;  %p16528_p11 = por %p16527_p6, %p16526_p13 }
  0x9f   : > { %p16524_p10 = pneg %p16523_p5  ;;  %p16530_p7 = por %p16529_p2, %p16528_p11 }
  0xa1   : > { %p16531_p0 = pnand %p16530_p7, %p16524_p10 }
  0xa3   : > { %16534 = shalt.err (!%p16531_p0)
}
  0xa4   : > { %s16535_s15 = scalar_lea.vmem %s16997_s11, 112640  ;;  %s16684_s10 = smov [#allocation11]  }
  0xa5   : > { %p16536_p1 = scmp.ne.s32.totalorder %s16997_s11, %s16535_s15  ;;  %s16540_s24 = sshll.u32 %s16684_s10, 4  ;;  %s16541_s24 = int_to_ptr.vmem [resolvable:$false] %s16540_s24 }
  0xa6   : > { %s16542_s30 = scalar_lea.vmem %s16541_s24, 225280  ;;  %p16543_p8 = scmp.lt.s32.totalorder %s16997_s11, %s16541_s24 }
  0xa7   : > { %p16538_p12 = pnand %p16536_p1, %p16522_p4  ;;  %p16544_p5 = scmp.lt.s32.totalorder %s16542_s30, %s16535_s15 }
  0xa9   : > { %p16539_p3 = pneg %p16538_p12  ;;  %p16545_p13 = por %p16544_p5, %p16543_p8 }
  0xab   : > { %p16546_p6 = pnand %p16545_p13, %p16539_p3 }
  0xad   : > { %16549 = shalt.err (!%p16546_p6)
}
  0xae   : > { %s16685_s27 = smov 64   ;;  %s16686_s17 = smov 4  }
  0xaf   : > { %15428 = dma.hbm_to_vmem [thread:$0]  (!%p19166_p9), %s17002_s26, 112640, %s16997_s11, %s17004_s25, %s16685_s27, %s16685_s27, %s16686_s17  }
  0xb0   : > { %p19167_p4 = scmp.ne.s32.totalorder %s19152_s20, 0 }
  0xb1   : > { %s218_s1 = sand.u32 (!%p19167_p4), 1, %s16666_s0   ;;  %p19168_p10 = scmp.ne.s32.totalorder (!%p19167_p4), %s19144_s28, 0 }
  0xb2   : > { %216 = sbr.rel (%p19167_p4) target bundleno = 1455 (0x5af), region = 32  ;;  %s219_s8 = scalar_lea.sflag (!%p19167_p4), [#allocation9], %s218_s1 }
  0xb3   : > { %s15396_s21 = smul.u32 (!%p19167_p4), 504, %s218_s1 }
  0xb5   : > { %s222_s6 = scalar_lea.vmem (!%p19167_p4), [#allocation8], %s15396_s21 }
  0xb9   : > { %16621 = dma.done.wait (%p19168_p10), %s219_s8, 8064  }
  0xba   : > { %16623 = vsyncadd (%p19168_p10), %s219_s8, 4294959232  ;;  %s227_s13 = sand.u32 1, %s16825_s23   ;;  %s229_s29 = sand.u32 1, %s16654_s19  }
  0xbb   : > { %s15397_s11 = smul.u32 7040, %s229_s29  ;;  %s228_s26 = scalar_lea.sflag [#allocation12], %s227_s13 }
  0xbc   : > { %p19169_p9 = scmp.ne.s32.totalorder %s19146_s9, 0 }
  0xbd   : > { %s17041_s20 = scalar_lea.vmem [#allocation11], %s15397_s11 }
  0xbe   : > { %16625 = dma.done.wait (%p19169_p9), %s228_s26, 112640  }
  0xbf   : > { %16627 = vsyncadd (%p19169_p9), %s228_s26, 4294854656  ;;  %p19170_p11 = scmp.eq.s32.totalorder %s16825_s23, 0 }
  0xc1   : > { %16629 = dma.done.wait (%p19170_p11), [#allocation12], 16   ;;  %p19171_p2 = pmov %p19170_p11 }
  0xc2   : > { %s267_s28 = sld [smem:[#allocation4 + %s16825_s23]]  ;;  %v16687_v0 = vmov 1966171168   ;;  %v281_v2 = vlaneseq  ;;  %v15528_v5 = vld [vmem:[%s17041_s20 + $0x40] sm:$0xff]   ;;  %s16688_s4 = smov 64   ;;  %v15532_v38 = vld [vmem:[%s17041_s20 + $0x48] sm:$0xff]  }
  0xc3   : > { %16631 = vsyncadd (%p19171_p2), [#allocation12], 4294967280  ;;  %v279_v1 = vunpack.c.l.s4 %v16687_v0  ;;  %v15529_v6 = vld [vmem:[%s17041_s20] sm:$0xff]   ;;  %14182 = vmatprep.subr.bf16.mxu0 %v15528_v5  ;;  %v15533_v39 = vld [vmem:[%s17041_s20 + $0x8] sm:$0xff]   ;;  %vm273_vm0 = vcmask 516096   ;;  %vm295_vm1 = vcmask 1040896  }
  0xc4   : > { %v282_v4 = vshrl.u32 %v281_v2, 7  ;;  %v15530_v8 = vld [vmem:[%s17041_s20 + $0xc0] sm:$0xff]   ;;  %14183 = vmatpush3.bf16.msra.mxu0 %v15529_v6  ;;  %v15534_v46 = vld [vmem:[%s17041_s20 + $0xc8] sm:$0xff]   ;;  %v15536_v57 = vld [vmem:[%s17041_s20 + $0x50] sm:$0xff]   ;;  %p19172_p7 = scmp.ne.s32.totalorder %s19147_s12, 0  ;;  %s260_s14 = sand.u32 1, %s16642_s16  }
  0xc5   : > { %v280_v3 = vunpack.c.0.s8 %v279_v1  ;;  %14204 = vmatprep.subr.bf16.mxu1 %v15530_v8  ;;  %v15531_v34 = vld [vmem:[%s17041_s20 + $0x80] sm:$0xff]   ;;  %14184 = vmatprep.subr.bf16.mxu0 %v15532_v38  ;;  %v15535_v51 = vld [vmem:[%s17041_s20 + $0x88] sm:$0xff]   ;;  %v15537_v62 = vld [vmem:[%s17041_s20 + $0x10] sm:$0xff]   ;;  %s13131_s10 = sshll.u32 %s260_s14, 1 }
  0xc6   : > { %14205 = vmatpush3.bf16.msra.mxu1 %v15531_v34  ;;  %s15410_s18 = scalar_select %p19172_p7, [#allocation7], [#allocation17] }
  0xc7   : > { %v17056_v7 = vsub.s32 %v280_v3, %v282_v4  ;;  %14206 = vmatprep.subr.bf16.mxu1 %v15534_v46  ;;  %v15538_v4 = vld [vmem:[%s17041_s20 + $0xd0] sm:$0xff]   ;;  %v15547_v46 = vld [vmem:[%s17041_s20 + $0xa0] sm:$0xff]   ;;  %s19197_s23 = smov (!%p19172_p7, %s16825_s23), 0  ;;  %s262_s30 = scalar_lea.vmem [#allocation14], %s13131_s10 }
  0xc8   : > { %s13062_s25 = smul.u32 56, %s267_s28  ;;  %14185 = vmatpush3.bf16.msra.mxu0 %v15533_v39  ;;  %s13003_s15 = sld [smem:[%s15410_s18 + %s19197_s23]] }
  0xc9   : > { %14186 = vmatprep.subr.bf16.mxu0 %v15536_v57  ;;  %v15550_v57 = vld [vmem:[%s17041_s20 + $0xe8] sm:$0xff]   ;;  %s13010_s27 = sshll.u32 %s262_s30, 4  ;;  %s12996_s23 = scalar_lea.sflag [#allocation10], %s260_s14  ;;  %s19058_s27 = int_to_ptr.vmem [resolvable:$true] %s13010_s27 }
  0xca   : > { %s17054_s9 = scalar_lea.vmem %s222_s6, %s13062_s25 [#allocation8]  ;;  %14207 = vmatpush3.bf16.msra.mxu1 %v15535_v51  ;;  %s16550_s8 = scalar_lea.vmem %s19058_s27, 32 }
  0xcb   : > { %v13137_v9 = vld [vmem:[%s17054_s9 + $0xad] sm:$0x3]  ;;  %v13133_v10 = vld [vmem:[%s17054_s9 + $0xa9] sm:$0x3]  ;;  %v13139_v11 = vld [vmem:[%s17054_s9 + $0xaf] sm:$0x3]  ;;  %14208 = vmatprep.subr.bf16.mxu1 %v15538_v4  ;;  %p16551_p0 = scmp.ne.s32.totalorder %s19058_s27, %s16550_s8 }
  0xcc   : > { %v325_v12 = vpack.c.bf16 %v13137_v9, %v13137_v9  ;;  %v276_v13 = vpack.c.bf16 %v13133_v10, %v13133_v10  ;;  %v349_v14 = vpack.c.bf16 %v13139_v11, %v13139_v11  ;;  %v13135_v15 = vld [vmem:[%s17054_s9 + $0xab] sm:$0x3]  ;;  %v13143_v16 = vld [vmem:[%s17054_s9 + $0xb3] sm:$0x3]  ;;  %v13141_v17 = vld [vmem:[%s17054_s9 + $0xb1] sm:$0x3]  ;;  %14187 = vmatpush3.bf16.msra.mxu0 %v15537_v62 }
  0xcd   : > { %v301_v18 = vpack.c.bf16 %v13135_v15, %v13135_v15  ;;  %v397_v19 = vpack.c.bf16 %v13143_v16, %v13143_v16  ;;  %v13147_v20 = vld [vmem:[%s17054_s9 + $0xb7] sm:$0x3]  ;;  %v373_v24 = vpack.c.bf16 %v13141_v17, %v13141_v17  ;;  %v13145_v25 = vld [vmem:[%s17054_s9 + $0xb5] sm:$0x3]  ;;  %v13151_v30 = vld [vmem:[%s17054_s9 + $0xbb] sm:$0x3]  ;;  %p16552_p1 = pnand %p16551_p0, %p19172_p7 }
  0xce   : > { %v333_v21 = vrot.slane %v325_v12, %v17056_v7  ;;  %v284_v22 = vrot.slane %v276_v13, %v17056_v7  ;;  %v357_v23 = vrot.slane %v349_v14, %v17056_v7  ;;  %v445_v29 = vpack.c.bf16 %v13147_v20, %v13147_v20  ;;  %v13149_v33 = vld [vmem:[%s17054_s9 + $0xb9] sm:$0x3]  ;;  %v13136_v40 = vld [vmem:[%s17054_s9 + $0xac] sm:$0x3]  ;;  %v13155_v42 = vld [vmem:[%s17054_s9 + $0xbf] sm:$0x3] }
  0xcf   : > { %v309_v26 = vrot.slane %v301_v18, %v17056_v7  ;;  %v405_v31 = vrot.slane %v397_v19, %v17056_v7  ;;  %v421_v32 = vpack.c.bf16 %v13145_v25, %v13145_v25  ;;  %v381_v37 = vrot.slane %v373_v24, %v17056_v7  ;;  %v13132_v43 = vld [vmem:[%s17054_s9 + $0xa8] sm:$0x3]  ;;  %v13153_v50 = vld [vmem:[%s17054_s9 + $0xbd] sm:$0x3]  ;;  %v13159_v52 = vld [vmem:[%s17054_s9 + $0xc3] sm:$0x3]  ;;  %p16553_p12 = pneg %p16552_p1 }
  0xd0   : > { %v340_v27 = vrot.slane %v333_v21, %v17056_v7  ;;  %v291_v28 = vrot.slane %v284_v22, %v17056_v7  ;;  %v364_v35 = vrot.slane %v357_v23, %v17056_v7  ;;  %v453_v41 = vrot.slane %v445_v29, %v17056_v7  ;;  %v13157_v54 = vld [vmem:[%s17054_s9 + $0xc1] sm:$0x3]  ;;  %v13138_v63 = vld [vmem:[%s17054_s9 + $0xae] sm:$0x3]  ;;  %v13134_v0 = vld [vmem:[%s17054_s9 + $0xaa] sm:$0x3] }
  0xd1   : > { %v316_v36 = vrot.slane %v309_v26, %v17056_v7  ;;  %v429_v44 = vrot.slane %v421_v32, %v17056_v7  ;;  %v493_v45 = vpack.c.bf16 %v13151_v30, %v13151_v30  ;;  %v412_v47 = vrot.slane %v405_v31, %v17056_v7  ;;  %v13163_v6 = vld [vmem:[%s17054_s9 + $0xc7] sm:$0x3]  ;;  %v13161_v8 = vld [vmem:[%s17054_s9 + $0xc5] sm:$0x3]  ;;  %v15539_v9 = vld [vmem:[%s17041_s20 + $0x90] sm:$0xff]   ;;  %s14179_s24 = sshll.u32 %s13003_s15, 5 }
  0xd2   : > { %341 = vrot.lane.b32.xlu1 %v340_v27, %s16688_s4  ;;  %292 = vrot.lane.b32.xlu0 %v291_v28, %s16688_s4  ;;  %v388_v48 = vrot.slane %v381_v37, %v17056_v7  ;;  %v469_v49 = vpack.c.bf16 %v13149_v33, %v13149_v33  ;;  %v460_v53 = vrot.slane %v453_v41, %v17056_v7  ;;  %v15540_v12 = vld [vmem:[%s17041_s20 + $0x58] sm:$0xff]   ;;  %v13142_v17 = vld [vmem:[%s17054_s9 + $0xb2] sm:$0x3]  ;;  %s19056_s21 = scalar_lea.hbm %s19120_s7, %s14179_s24  ;;  %s16689_s6 = smov [#allocation14]  }
  0xd3   : > { %v322_v55 = vpack.c.bf16 %v13136_v40, %v13136_v40  ;;  %v272_v56 = vpack.c.bf16 %v13132_v43, %v13132_v43  ;;  %v436_v58 = vrot.slane %v429_v44, %v17056_v7  ;;  %v501_v59 = vrot.slane %v493_v45, %v17056_v7  ;;  %14209 = vmatpush3.bf16.msra.mxu1 %v15539_v9  ;;  %v15541_v16 = vld [vmem:[%s17041_s20 + $0x18] sm:$0xff]   ;;  %v13140_v18 = vld [vmem:[%s17054_s9 + $0xb0] sm:$0x3]  ;;  %v13167_v29 = vld [vmem:[%s17054_s9 + $0xcb] sm:$0x3]  ;;  %s16554_s13 = sshll.u32 %s16689_s6, 4  ;;  %s16555_s13 = int_to_ptr.vmem [resolvable:$false] %s16554_s13 }
  0xd4   : > { %v541_v60 = vpack.c.bf16 %v13155_v42, %v13155_v42  ;;  %v517_v61 = vpack.c.bf16 %v13153_v50, %v13153_v50  ;;  %v477_v1 = vrot.slane %v469_v49, %v17056_v7  ;;  %v346_v2 = vpack.c.bf16 %v13138_v63, %v13138_v63  ;;  %14188 = vmatprep.subr.bf16.mxu0 %v15540_v12  ;;  %v15542_v22 = vld [vmem:[%s17041_s20 + $0xd8] sm:$0xff]   ;;  %v13165_v30 = vld [vmem:[%s17054_s9 + $0xc9] sm:$0x3]  ;;  %v15544_v31 = vld [vmem:[%s17041_s20 + $0x60] sm:$0xff]   ;;  %s16556_s29 = scalar_lea.vmem %s16555_s13, 64  ;;  %p16557_p3 = scmp.lt.s32.totalorder %s19058_s27, %s16555_s13 }
  0xd5   : > { %323 = vst.msk [vmem:[#allocation2 + $0x2] sm:$0x1] %vm273_vm0, %v322_v55  ;;  %274 = vst.msk [vmem:[#allocation2] sm:$0x1] %vm273_vm0, %v272_v56  ;;  %v298_v3 = vpack.c.bf16 %v13134_v0, %v13134_v0  ;;  %v589_v5 = vpack.c.bf16 %v13159_v52, %v13159_v52  ;;  %v565_v11 = vpack.c.bf16 %v13157_v54, %v13157_v54  ;;  %14189 = vmatpush3.bf16.msra.mxu0 %v15541_v16  ;;  %v15543_v26 = vld [vmem:[%s17041_s20 + $0x98] sm:$0xff]   ;;  %v15546_v45 = vld [vmem:[%s17041_s20 + $0xe0] sm:$0xff]   ;;  %p16558_p8 = scmp.lt.s32.totalorder %s16556_s29, %s16550_s8 }
  0xd6   : > { %365 = vrot.lane.b32.xlu1 %v364_v35, %s16688_s4  ;;  %317 = vrot.lane.b32.xlu0 %v316_v36, %s16688_s4  ;;  %347 = vst.msk [vmem:[#allocation2 + $0x3] sm:$0x1] %vm273_vm0, %v346_v2  ;;  %v549_v10 = vrot.slane %v541_v60, %v17056_v7  ;;  %v508_v13 = vrot.slane %v501_v59, %v17056_v7  ;;  %v13171_v33 = vld [vmem:[%s17054_s9 + $0xcf] sm:$0x3]  ;;  %v13169_v34 = vld [vmem:[%s17054_s9 + $0xcd] sm:$0x3] }
  0xd7   : > { %299 = vst.msk [vmem:[#allocation2 + $0x1] sm:$0x1] %vm273_vm0, %v298_v3  ;;  %v484_v14 = vrot.slane %v477_v1, %v17056_v7  ;;  %v525_v15 = vrot.slane %v517_v61, %v17056_v7  ;;  %v597_v19 = vrot.slane %v589_v5, %v17056_v7  ;;  %v394_v20 = vpack.c.bf16 %v13142_v17, %v13142_v17  ;;  %v15545_v35 = vld [vmem:[%s17041_s20 + $0x20] sm:$0xff]   ;;  %v13146_v40 = vld [vmem:[%s17054_s9 + $0xb6] sm:$0x3]  ;;  %v15548_v52 = vld [vmem:[%s17041_s20 + $0x68] sm:$0xff]   ;;  %p16559_p5 = por %p16558_p8, %p16557_p3 }
  0xd8   : > { %v370_v21 = vpack.c.bf16 %v13140_v18, %v13140_v18  ;;  %v573_v23 = vrot.slane %v565_v11, %v17056_v7  ;;  %v637_v24 = vpack.c.bf16 %v13163_v6, %v13163_v6  ;;  %v613_v25 = vpack.c.bf16 %v13161_v8, %v13161_v8  ;;  %14210 = vmatprep.subr.bf16.mxu1 %v15542_v22  ;;  %v13144_v41 = vld [vmem:[%s17054_s9 + $0xb4] sm:$0x3]  ;;  %v13173_v51 = vld [vmem:[%s17054_s9 + $0xd1] sm:$0x3]  ;;  %v15549_v56 = vld [vmem:[%s17041_s20 + $0x28] sm:$0xff]  }
  0xd9   : > { %v556_v27 = vrot.slane %v549_v10, %v17056_v7  ;;  %v532_v28 = vrot.slane %v525_v15, %v17056_v7  ;;  %395 = vst.msk [vmem:[#allocation2 + $0x5] sm:$0x1] %vm273_vm0, %v394_v20  ;;  %v604_v32 = vrot.slane %v597_v19, %v17056_v7  ;;  %14211 = vmatpush3.bf16.msra.mxu1 %v15543_v26  ;;  %v13179_v62 = vld [vmem:[%s17054_s9 + $0xd7] sm:$0x3]  ;;  %v13177_v63 = vld [vmem:[%s17054_s9 + $0xd5] sm:$0x3]  ;;  %p16560_p13 = pnand %p16559_p5, %p16553_p12 }
  0xda   : > { %413 = vrot.lane.b32.xlu1 %v412_v47, %s16688_s4  ;;  %389 = vrot.lane.b32.xlu0 %v388_v48, %s16688_s4  ;;  %371 = vst.msk [vmem:[#allocation2 + $0x4] sm:$0x1] %vm273_vm0, %v370_v21  ;;  %v580_v36 = vrot.slane %v573_v23, %v17056_v7  ;;  %v645_v37 = vrot.slane %v637_v24, %v17056_v7  ;;  %v13175_v47 = vld [vmem:[%s17054_s9 + $0xd3] sm:$0x3]  ;;  %v15557_v15 = vld [vmem:[%s17041_s20 + $0x38] sm:$0xff]  }
  0xdb   : > { %v621_v38 = vrot.slane %v613_v25, %v17056_v7  ;;  %v685_v39 = vpack.c.bf16 %v13167_v29, %v13167_v29  ;;  %14190 = vmatprep.subr.bf16.mxu0 %v15544_v31  ;;  %v661_v42 = vpack.c.bf16 %v13165_v30, %v13165_v30  ;;  %v442_v43 = vpack.c.bf16 %v13146_v40, %v13146_v40  ;;  %v15552_v0 = vld [vmem:[%s17041_s20 + $0x70] sm:$0xff]   ;;  %v15558_v16 = vld [vmem:[%s17041_s20 + $0xf8] sm:$0xff]   ;;  %v15561_v22 = vld [vmem:[%s17041_s20 + $0x140] sm:$0xff]  }
  0xdc   : > { %v418_v44 = vpack.c.bf16 %v13144_v41, %v13144_v41  ;;  %14191 = vmatpush3.bf16.msra.mxu0 %v15545_v35  ;;  %14212 = vmatprep.subr.bf16.mxu1 %v15546_v45  ;;  %v652_v48 = vrot.slane %v645_v37, %v17056_v7  ;;  %v733_v49 = vpack.c.bf16 %v13171_v33, %v13171_v33  ;;  %v15553_v4 = vld [vmem:[%s17041_s20 + $0x30] sm:$0xff]   ;;  %v15559_v18 = vld [vmem:[%s17041_s20 + $0xb8] sm:$0xff]   ;;  %v15563_v23 = vld [vmem:[%s17041_s20 + $0x1c0] sm:$0xff]  }
  0xdd   : > { %443 = vst.msk [vmem:[#allocation2 + $0x7] sm:$0x1] %vm273_vm0, %v442_v43  ;;  %v709_v50 = vpack.c.bf16 %v13169_v34, %v13169_v34  ;;  %14213 = vmatpush3.bf16.msra.mxu1 %v15547_v46  ;;  %v693_v54 = vrot.slane %v685_v39, %v17056_v7  ;;  %v669_v55 = vrot.slane %v661_v42, %v17056_v7  ;;  %v15554_v5 = vld [vmem:[%s17041_s20 + $0xf0] sm:$0xff]   ;;  %v13150_v26 = vld [vmem:[%s17054_s9 + $0xba] sm:$0x3] }
  0xde   : > { %461 = vrot.lane.b32.xlu1 %v460_v53, %s16688_s4  ;;  %437 = vrot.lane.b32.xlu0 %v436_v58, %s16688_s4  ;;  %419 = vst.msk [vmem:[#allocation2 + $0x6] sm:$0x1] %vm273_vm0, %v418_v44  ;;  %v628_v53 = vrot.slane %v621_v38, %v17056_v7  ;;  %v15551_v58 = vld [vmem:[%s17041_s20 + $0xa8] sm:$0xff]   ;;  %v741_v59 = vrot.slane %v733_v49, %v17056_v7  ;;  %v15555_v10 = vld [vmem:[%s17041_s20 + $0xb0] sm:$0xff]  }
  0xdf   : > { %14192 = vmatprep.subr.bf16.mxu0 %v15548_v52  ;;  %v717_v60 = vrot.slane %v709_v50, %v17056_v7  ;;  %v781_v61 = vpack.c.bf16 %v13175_v47, %v13175_v47  ;;  %14214 = vmatprep.subr.bf16.mxu1 %v15550_v57  ;;  %v700_v1 = vrot.slane %v693_v54, %v17056_v7  ;;  %v13154_v30 = vld [vmem:[%s17054_s9 + $0xbe] sm:$0x3]  ;;  %v13152_v31 = vld [vmem:[%s17054_s9 + $0xbc] sm:$0x3]  ;;  %v13158_v34 = vld [vmem:[%s17054_s9 + $0xc2] sm:$0x3] }
  0xe0   : > { %14193 = vmatpush3.bf16.msra.mxu0 %v15549_v56  ;;  %v676_v2 = vrot.slane %v669_v55, %v17056_v7  ;;  %v757_v3 = vpack.c.bf16 %v13173_v51, %v13173_v51  ;;  %v748_v6 = vrot.slane %v741_v59, %v17056_v7  ;;  %v829_v12 = vpack.c.bf16 %v13179_v62, %v13179_v62  ;;  %v13156_v35 = vld [vmem:[%s17054_s9 + $0xc0] sm:$0x3]  ;;  %v13162_v38 = vld [vmem:[%s17054_s9 + $0xc6] sm:$0x3]  ;;  %v13160_v40 = vld [vmem:[%s17054_s9 + $0xc4] sm:$0x3] }
  0xe1   : > { %14215 = vmatpush3.bf16.msra.mxu1 %v15551_v58  ;;  %14194 = vmatprep.subr.bf16.mxu0 %v15552_v0  ;;  %v724_v8 = vrot.slane %v717_v60, %v17056_v7  ;;  %v789_v9 = vrot.slane %v781_v61, %v17056_v7  ;;  %v514_v33 = vpack.c.bf16 %v13152_v31, %v13152_v31  ;;  %v13183_v42 = vld [vmem:[%s17054_s9 + $0xdb] sm:$0x3]  ;;  %v13181_v43 = vld [vmem:[%s17054_s9 + $0xd9] sm:$0x3]  ;;  %v13187_v50 = vld [vmem:[%s17054_s9 + $0x70] sm:$0x3] }
  0xe2   : > { %509 = vrot.lane.b32.xlu1 %v508_v13, %s16688_s4  ;;  %485 = vrot.lane.b32.xlu0 %v484_v14, %s16688_s4  ;;  %v765_v11 = vrot.slane %v757_v3, %v17056_v7  ;;  %v805_v13 = vpack.c.bf16 %v13177_v63, %v13177_v63  ;;  %v15556_v14 = vld [vmem:[%s17041_s20 + $0x78] sm:$0xff]   ;;  %v837_v20 = vrot.slane %v829_v12, %v17056_v7  ;;  %v13191_v58 = vld [vmem:[%s17054_s9 + $0x74] sm:$0x3] }
  0xe3   : > { %14216 = vmatprep.subr.bf16.mxu1 %v15554_v5  ;;  %v796_v17 = vrot.slane %v789_v9, %v17056_v7  ;;  %515 = vst.msk [vmem:[#allocation2 + $0xa] sm:$0x1] %vm273_vm0, %v514_v33  ;;  %v562_v37 = vpack.c.bf16 %v13156_v35, %v13156_v35  ;;  %v634_v39 = vpack.c.bf16 %v13162_v38, %v13162_v38  ;;  %v13185_v51 = vld [vmem:[%s17054_s9 + $0xdd] sm:$0x3]  ;;  %v13189_v59 = vld [vmem:[%s17054_s9 + $0x72] sm:$0x3] }
  0xe4   : > { %14195 = vmatpush3.bf16.msra.mxu0 %v15553_v4  ;;  %v772_v19 = vrot.slane %v765_v11, %v17056_v7  ;;  %v813_v21 = vrot.slane %v805_v13, %v17056_v7  ;;  %v844_v24 = vrot.slane %v837_v20, %v17056_v7  ;;  %v610_v41 = vpack.c.bf16 %v13160_v40, %v13160_v40  ;;  %v13193_v3 = vld [vmem:[%s17054_s9 + $0x76] sm:$0x3]  ;;  %v13168_v33 = vld [vmem:[%s17054_s9 + $0xcc] sm:$0x3]  ;;  %v15562_v35 = vld [vmem:[%s17041_s20 + $0x100] sm:$0xff]  }
  0xe5   : > { %14217 = vmatpush3.bf16.msra.mxu1 %v15555_v10  ;;  %14196 = vmatprep.subr.bf16.mxu0 %v15556_v14  ;;  %563 = vst.msk [vmem:[#allocation2 + $0xc] sm:$0x1] %vm273_vm0, %v562_v37  ;;  %635 = vst.msk [vmem:[#allocation2 + $0xf] sm:$0x1] %vm273_vm0, %v634_v39  ;;  %v877_v44 = vpack.c.bf16 %v13183_v42, %v13183_v42  ;;  %v853_v45 = vpack.c.bf16 %v13181_v43, %v13181_v43  ;;  %v15564_v42 = vld [vmem:[%s17041_s20 + $0x180] sm:$0xff]   ;;  %v15565_v43 = vld [vmem:[%s17041_s20 + $0x148] sm:$0xff]  }
  0xe6   : > { %557 = vrot.lane.b32.xlu1 %v556_v27, %s16688_s4  ;;  %533 = vrot.lane.b32.xlu0 %v532_v28, %s16688_s4  ;;  %v820_v25 = vrot.slane %v813_v21, %v17056_v7  ;;  %v490_v27 = vpack.c.bf16 %v13150_v26, %v13150_v26  ;;  %v13148_v28 = vld [vmem:[%s17054_s9 + $0xb8] sm:$0x3]  ;;  %611 = vst.msk [vmem:[#allocation2 + $0xe] sm:$0x1] %vm273_vm0, %v610_v41  ;;  %v13166_v21 = vld [vmem:[%s17054_s9 + $0xca] sm:$0x3] }
  0xe7   : > { %14218 = vmatprep.subr.bf16.mxu1 %v15558_v16  ;;  %v466_v29 = vpack.c.bf16 %v13148_v28, %v13148_v28  ;;  %v885_v46 = vrot.slane %v877_v44, %v17056_v7  ;;  %v861_v47 = vrot.slane %v853_v45, %v17056_v7  ;;  %v928_v52 = vpack.c.bf16 %v13187_v50, %v13187_v50 }
  0xe8   : > { %14197 = vmatpush3.bf16.msra.mxu0 %v15557_v15  ;;  %491 = vst.msk [vmem:[#allocation2 + $0x9] sm:$0x1] %vm273_vm0, %v490_v27  ;;  %v976_v60 = vpack.c.bf16 %v13191_v58, %v13191_v58  ;;  %v952_v61 = vpack.c.bf16 %v13189_v59, %v13189_v59  ;;  %v1000_v5 = vpack.c.bf16 %v13193_v3, %v13193_v3  ;;  %v15570_v58 = vld [vmem:[%s17041_s20 + $0x110] sm:$0xff]  }
  0xe9   : > { %14219 = vmatpush3.bf16.msra.mxu1 %v15559_v18  ;;  %14226 = vmatprep.subr.bf16.mxu0 %v15561_v22  ;;  %467 = vst.msk [vmem:[#allocation2 + $0x8] sm:$0x1] %vm273_vm0, %v466_v29  ;;  %v868_v49 = vrot.slane %v861_v47, %v17056_v7  ;;  %v936_v54 = vrot.slane %v928_v52, %v17056_v7  ;;  %v13164_v22 = vld [vmem:[%s17054_s9 + $0xc8] sm:$0x3]  ;;  %v13172_v52 = vld [vmem:[%s17054_s9 + $0xd0] sm:$0x3] }
  0xea   : > { %605 = vrot.lane.b32.xlu1 %v604_v32, %s16688_s4  ;;  %581 = vrot.lane.b32.xlu0 %v580_v36, %s16688_s4  ;;  %v538_v32 = vpack.c.bf16 %v13154_v30, %v13154_v30  ;;  %v586_v36 = vpack.c.bf16 %v13158_v34, %v13158_v34  ;;  %v984_v62 = vrot.slane %v976_v60, %v17056_v7  ;;  %v15567_v47 = vld [vmem:[%s17041_s20 + $0x1c8] sm:$0xff]   ;;  %v15571_v59 = vld [vmem:[%s17041_s20 + $0x1d0] sm:$0xff]  }
  0xeb   : > { %14248 = vmatprep.subr.bf16.mxu1 %v15563_v23  ;;  %v943_v56 = vrot.slane %v936_v54, %v17056_v7  ;;  %v960_v63 = vrot.slane %v952_v61, %v17056_v7  ;;  %v682_v23 = vpack.c.bf16 %v13166_v21, %v13166_v21  ;;  %v706_v39 = vpack.c.bf16 %v13168_v33, %v13168_v33  ;;  %v15568_v54 = vld [vmem:[%s17041_s20 + $0x188] sm:$0xff]  }
  0xec   : > { %539 = vst.msk [vmem:[#allocation2 + $0xb] sm:$0x1] %vm273_vm0, %v538_v32  ;;  %587 = vst.msk [vmem:[#allocation2 + $0xd] sm:$0x1] %vm273_vm0, %v586_v36  ;;  %v991_v0 = vrot.slane %v984_v62, %v17056_v7  ;;  %v13170_v32 = vld [vmem:[%s17054_s9 + $0xce] sm:$0x3] }
  0xed   : > { %683 = vst.msk [vmem:[#allocation2 + $0x11] sm:$0x1] %vm273_vm0, %v682_v23  ;;  %v730_v38 = vpack.c.bf16 %v13170_v32, %v13170_v32  ;;  %707 = vst.msk [vmem:[#allocation2 + $0x12] sm:$0x1] %vm273_vm0, %v706_v39  ;;  %v13178_v62 = vld [vmem:[%s17054_s9 + $0xd6] sm:$0x3] }
  0xee   : > { %653 = vrot.lane.b32.xlu1 %v652_v48, %s16688_s4  ;;  %629 = vrot.lane.b32.xlu0 %v628_v53, %s16688_s4  ;;  %v892_v48 = vrot.slane %v885_v46, %v17056_v7  ;;  %v901_v53 = vpack.c.bf16 %v13185_v51, %v13185_v51  ;;  %v15566_v46 = vld [vmem:[%s17041_s20 + $0x108] sm:$0xff]   ;;  %v13174_v51 = vld [vmem:[%s17054_s9 + $0xd2] sm:$0x3] }
  0xef   : > { %731 = vst.msk [vmem:[#allocation2 + $0x13] sm:$0x1] %vm273_vm0, %v730_v38  ;;  %v13203_v23 = vld [vmem:[%s17054_s9 + $0x80] sm:$0x3]  ;;  %v13207_v38 = vld [vmem:[%s17054_s9 + $0x84] sm:$0x3] }
  0xf0   : > { %v909_v55 = vrot.slane %v901_v53, %v17056_v7  ;;  %v13205_v39 = vld [vmem:[%s17054_s9 + $0x82] sm:$0x3] }
  0xf2   : > { %701 = vrot.lane.b32.xlu1 %v700_v1, %s16688_s4  ;;  %677 = vrot.lane.b32.xlu0 %v676_v2, %s16688_s4  ;;  %v916_v57 = vrot.slane %v909_v55, %v17056_v7  ;;  %v967_v1 = vrot.slane %v960_v63, %v17056_v7  ;;  %v13195_v2 = vld [vmem:[%s17054_s9 + $0x78] sm:$0x3]  ;;  %v778_v55 = vpack.c.bf16 %v13174_v51, %v13174_v51  ;;  %v15572_v63 = vld [vmem:[%s17041_s20 + $0x190] sm:$0xff]  }
  0xf3   : > { %v1024_v4 = vpack.c.bf16 %v13195_v2, %v13195_v2  ;;  %v15573_v2 = vld [vmem:[%s17041_s20 + $0x158] sm:$0xff]   ;;  %v13211_v51 = vld [vmem:[%s17054_s9 + $0x88] sm:$0x3] }
  0xf4   : > { %779 = vst.msk [vmem:[#allocation2 + $0x15] sm:$0x1] %vm273_vm0, %v778_v55  ;;  %v13209_v55 = vld [vmem:[%s17054_s9 + $0x86] sm:$0x3] }
  0xf6   : > { %749 = vrot.lane.b32.xlu1 %v748_v6, %s16688_s4  ;;  %725 = vrot.lane.b32.xlu0 %v724_v8, %s16688_s4  ;;  %v1032_v6 = vrot.slane %v1024_v4, %v17056_v7  ;;  %v1008_v8 = vrot.slane %v1000_v5, %v17056_v7  ;;  %v15574_v4 = vld [vmem:[%s17041_s20 + $0x118] sm:$0xff]  }
  0xf7   : > { %v13199_v5 = vld [vmem:[%s17054_s9 + $0x7c] sm:$0x3] }
  0xf8   : > { %v1039_v9 = vrot.slane %v1032_v6, %v17056_v7  ;;  %v1015_v10 = vrot.slane %v1008_v8, %v17056_v7  ;;  %v13197_v6 = vld [vmem:[%s17054_s9 + $0x7a] sm:$0x3] }
  0xf9   : > { %v15575_v8 = vld [vmem:[%s17041_s20 + $0x1d8] sm:$0xff]  }
  0xfa   : > { %797 = vrot.lane.b32.xlu1 %v796_v17, %s16688_s4  ;;  %773 = vrot.lane.b32.xlu0 %v772_v19, %s16688_s4 }
  0xfe   : > { %845 = vrot.lane.b32.xlu1 %v844_v24, %s16688_s4  ;;  %821 = vrot.lane.b32.xlu0 %v820_v25, %s16688_s4  ;;  %v658_v24 = vpack.c.bf16 %v13164_v22, %v13164_v22 }
 0x100   : > { %659 = vst.msk [vmem:[#allocation2 + $0x10] sm:$0x1] %vm273_vm0, %v658_v24  ;;  %v13201_v24 = vld [vmem:[%s17054_s9 + $0x7e] sm:$0x3] }
 0x102   : > { %893 = vrot.lane.b32.xlu1 %v892_v48, %s16688_s4  ;;  %869 = vrot.lane.b32.xlu0 %v868_v49, %s16688_s4 }
 0x106   : > { %944 = vrot.lane.b32.xlu1 %v943_v56, %s16688_s4  ;;  %917 = vrot.lane.b32.xlu0 %v916_v57, %s16688_s4  ;;  %v754_v56 = vpack.c.bf16 %v13172_v52, %v13172_v52  ;;  %v15569_v57 = vld [vmem:[%s17041_s20 + $0x150] sm:$0xff]  }
 0x108   : > { %755 = vst.msk [vmem:[#allocation2 + $0x14] sm:$0x1] %vm273_vm0, %v754_v56  ;;  %v15588_v56 = vld [vmem:[%s17041_s20 + $0x1b0] sm:$0xff]  }
 0x10a   : > { %992 = vrot.lane.b32.xlu1 %v991_v0, %s16688_s4  ;;  %968 = vrot.lane.b32.xlu0 %v967_v1, %s16688_s4  ;;  %v826_v0 = vpack.c.bf16 %v13178_v62, %v13178_v62  ;;  %v13176_v1 = vld [vmem:[%s17054_s9 + $0xd4] sm:$0x3]  ;;  %v15592_v62 = vld [vmem:[%s17041_s20 + $0x1b8] sm:$0xff]  }
 0x10b   : > { %v802_v3 = vpack.c.bf16 %v13176_v1, %v13176_v1 }
 0x10c   : > { %827 = vst.msk [vmem:[#allocation2 + $0x17] sm:$0x1] %vm273_vm0, %v826_v0  ;;  %v15593_v0 = vld [vmem:[%s17041_s20 + $0x240] sm:$0xff]  }
 0x10d   : > { %803 = vst.msk [vmem:[#allocation2 + $0x16] sm:$0x1] %vm273_vm0, %v802_v3 }
 0x10e   : > { %1040 = vrot.lane.b32.xlu1 %v1039_v9, %s16688_s4  ;;  %1016 = vrot.lane.b32.xlu0 %v1015_v10, %s16688_s4 }
 0x144   : > { %v342_v11 = vpop.permute.xlu1 %341  ;;  %v293_v12 = vpop.permute.xlu0 %292 }
 0x145   : > { %344 = vst.msk [vmem:[#allocation2 + $0x2] sm:$0x1] %vm295_vm1, %v342_v11  ;;  %296 = vst.msk [vmem:[#allocation2] sm:$0x1] %vm295_vm1, %v293_v12  ;;  %v1072_v11 = vpack.c.bf16 %v13199_v5, %v13199_v5  ;;  %v1048_v12 = vpack.c.bf16 %v13197_v6, %v13197_v6  ;;  %v15595_v6 = vld [vmem:[%s17041_s20 + $0x2c0] sm:$0xff]  }
 0x148   : > { %v366_v13 = vpop.permute.xlu1 %365  ;;  %v318_v14 = vpop.permute.xlu0 %317 }
 0x149   : > { %368 = vst.msk [vmem:[#allocation2 + $0x3] sm:$0x1] %vm295_vm1, %v366_v13  ;;  %320 = vst.msk [vmem:[#allocation2 + $0x1] sm:$0x1] %vm295_vm1, %v318_v14  ;;  %v15576_v13 = vld [vmem:[%s17041_s20 + $0x198] sm:$0xff]   ;;  %v15577_v14 = vld [vmem:[%s17041_s20 + $0x160] sm:$0xff]  }
 0x14c   : > { %v414_v15 = vpop.permute.xlu1 %413  ;;  %v390_v16 = vpop.permute.xlu0 %389 }
 0x14d   : > { %416 = vst.msk [vmem:[#allocation2 + $0x5] sm:$0x1] %vm295_vm1, %v414_v15  ;;  %392 = vst.msk [vmem:[#allocation2 + $0x4] sm:$0x1] %vm295_vm1, %v390_v16  ;;  %v1080_v15 = vrot.slane %v1072_v11, %v17056_v7  ;;  %v1056_v16 = vrot.slane %v1048_v12, %v17056_v7 }
 0x14f   : > { %v1087_v21 = vrot.slane %v1080_v15, %v17056_v7  ;;  %v1063_v22 = vrot.slane %v1056_v16, %v17056_v7  ;;  %v15602_v15 = vld [vmem:[%s17041_s20 + $0x210] sm:$0xff]  }
 0x150   : > { %v462_v17 = vpop.permute.xlu1 %461  ;;  %v438_v18 = vpop.permute.xlu0 %437  ;;  %v15603_v16 = vld [vmem:[%s17041_s20 + $0x2d0] sm:$0xff]  }
 0x151   : > { %464 = vst.msk [vmem:[#allocation2 + $0x7] sm:$0x1] %vm295_vm1, %v462_v17  ;;  %440 = vst.msk [vmem:[#allocation2 + $0x6] sm:$0x1] %vm295_vm1, %v438_v18  ;;  %v15578_v17 = vld [vmem:[%s17041_s20 + $0x120] sm:$0xff]   ;;  %1088 = vrot.lane.b32.xlu1 %v1087_v21, %s16688_s4  ;;  %1064 = vrot.lane.b32.xlu0 %v1063_v22, %s16688_s4  ;;  %v15608_v21 = vld [vmem:[%s17041_s20 + $0x298] sm:$0xff]  }
 0x152   : > { %v15579_v18 = vld [vmem:[%s17041_s20 + $0x1e0] sm:$0xff]  }
 0x153   : > { %v15609_v22 = vld [vmem:[%s17041_s20 + $0x260] sm:$0xff]  }
 0x154   : > { %v510_v19 = vpop.permute.xlu1 %509  ;;  %v486_v20 = vpop.permute.xlu0 %485 }
 0x155   : > { %512 = vst.msk [vmem:[#allocation2 + $0x9] sm:$0x1] %vm295_vm1, %v510_v19  ;;  %488 = vst.msk [vmem:[#allocation2 + $0x8] sm:$0x1] %vm295_vm1, %v486_v20 }
 0x158   : > { %v2921_v25 = vld [vmem:[#allocation2] sm:$0xff]  ;;  %v558_v26 = vpop.permute.xlu1 %557  ;;  %v534_v27 = vpop.permute.xlu0 %533 }
 0x159   : > { %v4716_v28 = vcombine.high %v2921_v25, %v2921_v25  ;;  %v4723_v29 = vrot.slane %v2921_v25, %v17056_v7  ;;  %560 = vst.msk [vmem:[#allocation2 + $0xb] sm:$0x1] %vm295_vm1, %v558_v26  ;;  %536 = vst.msk [vmem:[#allocation2 + $0xa] sm:$0x1] %vm295_vm1, %v534_v27  ;;  %v15580_v25 = vld [vmem:[%s17041_s20 + $0x1a0] sm:$0xff]   ;;  %v15581_v26 = vld [vmem:[%s17041_s20 + $0x168] sm:$0xff]   ;;  %v1120_v27 = vpack.c.bf16 %v13203_v23, %v13203_v23 }
 0x15a   : > { %v15610_v23 = vld [vmem:[%s17041_s20 + $0x220] sm:$0xff]  }
 0x15b   : > { %v4731_v30 = vcombine.high %v4723_v29, %v4723_v29  ;;  %v17268_v31 = vrot.slane %v4716_v28, %v17056_v7  ;;  %v4739_v34 = vrot.slane %v4723_v29, %v17056_v7  ;;  %v1096_v28 = vpack.c.bf16 %v13201_v24, %v13201_v24  ;;  %v15582_v29 = vld [vmem:[%s17041_s20 + $0x128] sm:$0xff]   ;;  %v15611_v24 = vld [vmem:[%s17041_s20 + $0x2e0] sm:$0xff]  }
 0x15c   : > { %v606_v36 = vpop.permute.xlu1 %605  ;;  %v582_v37 = vpop.permute.xlu0 %581 }
 0x15d   : > { %v4753_v40 = vrot.slane %v4731_v30, %v17056_v7  ;;  %v4732_v41 = vcombine.high %v17268_v31, %v17268_v31  ;;  %608 = vst.msk [vmem:[#allocation2 + $0xd] sm:$0x1] %vm295_vm1, %v606_v36  ;;  %584 = vst.msk [vmem:[#allocation2 + $0xc] sm:$0x1] %vm295_vm1, %v582_v37  ;;  %v4761_v48 = vcombine.high %v4739_v34, %v4739_v34  ;;  %v15583_v30 = vld [vmem:[%s17041_s20 + $0x1e8] sm:$0xff]  }
 0x15e   : > { %v1104_v36 = vrot.slane %v1096_v28, %v17056_v7  ;;  %v15584_v37 = vld [vmem:[%s17041_s20 + $0x1a8] sm:$0xff]   ;;  %v4746_v5 = vrot.slane %v17268_v31, %v17056_v7 }
 0x15f   : > { %10822 = vmatprep.mubr.bf16.mxu0 %v4753_v40  ;;  %v4763_v44 = vcombine.high %v4753_v40, %v4753_v40  ;;  %v4760_v45 = vrot.slane %v4732_v41, %v17056_v7  ;;  %v15585_v40 = vld [vmem:[%s17041_s20 + $0x170] sm:$0xff]   ;;  %v15599_v31 = vld [vmem:[%s17041_s20 + $0x2c8] sm:$0xff]  }
 0x160   : > { %10823 = vmatmul.mubr.bf16.vlgmr.msra.gmra.mrb[0].mxu0 %v4739_v34  ;;  %v654_v49 = vpop.permute.xlu1 %653  ;;  %v630_v50 = vpop.permute.xlu0 %629  ;;  %v4762_v12 = vcombine.high %v4746_v5, %v4746_v5  ;;  %v15615_v28 = vld [vmem:[%s17041_s20 + $0x2e8] sm:$0xff]  }
 0x161   : > { %14227 = vmatpush3.bf16.msra.mxu0 %v15562_v35  ;;  %10862 = vmatprep.mubr.bf16.mxu1 %v4763_v44  ;;  %v4764_v53 = vcombine.high %v4760_v45, %v4760_v45  ;;  %656 = vst.msk [vmem:[#allocation2 + $0xf] sm:$0x1] %vm295_vm1, %v654_v49  ;;  %632 = vst.msk [vmem:[#allocation2 + $0xe] sm:$0x1] %vm295_vm1, %v630_v50  ;;  %v1128_v35 = vrot.slane %v1120_v27, %v17056_v7  ;;  %v15589_v50 = vld [vmem:[%s17041_s20 + $0x178] sm:$0xff]   ;;  %v15614_v27 = vld [vmem:[%s17041_s20 + $0x228] sm:$0xff]  }
 0x162   : > { %10902 = vmatprep.mubr.bf16.mxu0 %v4760_v45  ;;  %10863 = vmatmul.mubr.bf16.vlgmr.msra.gmra.mrb[0].mxu1 %v4761_v48  ;;  %v1144_v44 = vpack.c.bf16 %v13205_v39, %v13205_v39  ;;  %v15586_v45 = vld [vmem:[%s17041_s20 + $0x130] sm:$0xff]   ;;  %v15623_v39 = vld [vmem:[%s17041_s20 + $0x2f8] sm:$0xff]  }
 0x163   : > { %14249 = vmatpush3.bf16.msra.mxu1 %v15564_v42  ;;  %14228 = vmatprep.subr.bf16.mxu0 %v15565_v43  ;;  %v1135_v41 = vrot.slane %v1128_v35, %v17056_v7  ;;  %v1111_v42 = vrot.slane %v1104_v36, %v17056_v7  ;;  %v1168_v43 = vpack.c.bf16 %v13207_v38, %v13207_v38  ;;  %v15619_v35 = vld [vmem:[%s17041_s20 + $0x2f0] sm:$0xff]   ;;  %v15621_v38 = vld [vmem:[%s17041_s20 + $0x278] sm:$0xff]  }
 0x164   : > { %10942 = vmatprep.mubr.bf16.mxu1 %v4764_v53  ;;  %14250 = vmatprep.subr.bf16.mxu1 %v15567_v47  ;;  %v702_v60 = vpop.permute.xlu1 %701  ;;  %v678_v61 = vpop.permute.xlu0 %677  ;;  %v15587_v47 = vld [vmem:[%s17041_s20 + $0x1f0] sm:$0xff]   ;;  %v1152_v49 = vrot.slane %v1144_v44, %v17056_v7 }
 0x165   : > { %14229 = vmatpush3.bf16.msra.mxu0 %v15566_v46  ;;  %704 = vst.msk [vmem:[#allocation2 + $0x11] sm:$0x1] %vm295_vm1, %v702_v60  ;;  %680 = vst.msk [vmem:[#allocation2 + $0x10] sm:$0x1] %vm295_vm1, %v678_v61  ;;  %1136 = vrot.lane.b32.xlu1 %v1135_v41, %s16688_s4  ;;  %v1176_v48 = vrot.slane %v1168_v43, %v17056_v7  ;;  %v15591_v60 = vld [vmem:[%s17041_s20 + $0x1f8] sm:$0xff]   ;;  %v15620_v36 = vld [vmem:[%s17041_s20 + $0x2b0] sm:$0xff]  }
 0x166   : > { %14230 = vmatprep.subr.bf16.mxu0 %v15569_v57  ;;  %1112 = vrot.lane.b32.xlu0 %v1111_v42, %s16688_s4  ;;  %v1159_v53 = vrot.slane %v1152_v49, %v17056_v7  ;;  %v15625_v43 = vld [vmem:[%s17041_s20 + $0x340] sm:$0xff]   ;;  %v13182_v49 = vld [vmem:[%s17054_s9 + $0xda] sm:$0x3] }
 0x167   : > { %14251 = vmatpush3.bf16.msra.mxu1 %v15568_v54  ;;  %v1183_v52 = vrot.slane %v1176_v48, %v17056_v7  ;;  %v1216_v54 = vpack.c.bf16 %v13211_v51, %v13211_v51  ;;  %v15628_v48 = vld [vmem:[%s17041_s20 + $0x3c0] sm:$0xff]  }
 0x168   : > { %14252 = vmatprep.subr.bf16.mxu1 %v15571_v59  ;;  %v750_v9 = vpop.permute.xlu1 %749  ;;  %v726_v10 = vpop.permute.xlu0 %725  ;;  %v17328_v32 = vld [vmem:[#allocation2 + $0x8] sm:$0xff]  ;;  %v15590_v59 = vld [vmem:[%s17041_s20 + $0x138] sm:$0xff]   ;;  %v15629_v51 = vld [vmem:[%s17041_s20 + $0x380] sm:$0xff]  }
 0x169   : > { %14231 = vmatpush3.bf16.msra.mxu0 %v15570_v58  ;;  %752 = vst.msk [vmem:[#allocation2 + $0x13] sm:$0x1] %vm295_vm1, %v750_v9  ;;  %728 = vst.msk [vmem:[#allocation2 + $0x12] sm:$0x1] %vm295_vm1, %v726_v10  ;;  %v17343_v46 = vrot.slane %v17328_v32, %v17056_v7  ;;  %v1192_v58 = vpack.c.bf16 %v13209_v55, %v13209_v55  ;;  %1184 = vrot.lane.b32.xlu1 %v1183_v52, %s16688_s4  ;;  %v15597_v9 = vld [vmem:[%s17041_s20 + $0x248] sm:$0xff]  }
 0x16a   : > { %14232 = vmatprep.subr.bf16.mxu0 %v15573_v2  ;;  %v1224_v61 = vrot.slane %v1216_v54, %v17056_v7  ;;  %1160 = vrot.lane.b32.xlu0 %v1159_v53, %s16688_s4  ;;  %v15594_v2 = vld [vmem:[%s17041_s20 + $0x200] sm:$0xff]   ;;  %v15598_v10 = vld [vmem:[%s17041_s20 + $0x208] sm:$0xff]   ;;  %v874_v52 = vpack.c.bf16 %v13182_v49, %v13182_v49  ;;  %v13180_v53 = vld [vmem:[%s17054_s9 + $0xd8] sm:$0x3] }
 0x16b   : > { %14253 = vmatpush3.bf16.msra.mxu1 %v15572_v63  ;;  %v4780_v57 = vcombine.high %v17343_v46, %v17343_v46  ;;  %v1200_v63 = vrot.slane %v1192_v58, %v17056_v7  ;;  %v15630_v54 = vld [vmem:[%s17041_s20 + $0x348] sm:$0xff]   ;;  %v850_v55 = vpack.c.bf16 %v13180_v53, %v13180_v53  ;;  %v15652_v49 = vld [vmem:[%s17041_s20 + $0x3f0] sm:$0xff]   ;;  %v15654_v53 = vld [vmem:[%s17041_s20 + $0x378] sm:$0xff]  }
 0x16c   : > { %14254 = vmatprep.subr.bf16.mxu1 %v15575_v8  ;;  %v798_v19 = vpop.permute.xlu1 %797  ;;  %v774_v20 = vpop.permute.xlu0 %773  ;;  %v1231_v1 = vrot.slane %v1224_v61, %v17056_v7  ;;  %v15596_v8 = vld [vmem:[%s17041_s20 + $0x280] sm:$0xff]   ;;  %875 = vst.msk [vmem:[#allocation2 + $0x19] sm:$0x1] %vm273_vm0, %v874_v52  ;;  %v15632_v58 = vld [vmem:[%s17041_s20 + $0x3c8] sm:$0xff]  }
 0x16d   : > { %14233 = vmatpush3.bf16.msra.mxu0 %v15574_v4  ;;  %800 = vst.msk [vmem:[#allocation2 + $0x15] sm:$0x1] %vm295_vm1, %v798_v19  ;;  %776 = vst.msk [vmem:[#allocation2 + $0x14] sm:$0x1] %vm295_vm1, %v774_v20  ;;  %v4802_v3 = vrot.slane %v4780_v57, %v17056_v7  ;;  %v1207_v4 = vrot.slane %v1200_v63, %v17056_v7  ;;  %v15606_v19 = vld [vmem:[%s17041_s20 + $0x218] sm:$0xff]   ;;  %v15633_v61 = vld [vmem:[%s17041_s20 + $0x388] sm:$0xff]  }
 0x16e   : > { %14234 = vmatprep.subr.bf16.mxu0 %v15577_v14  ;;  %1232 = vrot.lane.b32.xlu1 %v1231_v1, %s16688_s4  ;;  %v15601_v14 = vld [vmem:[%s17041_s20 + $0x250] sm:$0xff]   ;;  %v15607_v20 = vld [vmem:[%s17041_s20 + $0x2d8] sm:$0xff]   ;;  %851 = vst.msk [vmem:[#allocation2 + $0x18] sm:$0x1] %vm273_vm0, %v850_v55 }
 0x16f   : > { %14255 = vmatpush3.bf16.msra.mxu1 %v15576_v13  ;;  %1208 = vrot.lane.b32.xlu0 %v1207_v4, %s16688_s4  ;;  %v4812_v11 = vcombine.high %v4802_v3, %v4802_v3  ;;  %v15600_v13 = vld [vmem:[%s17041_s20 + $0x288] sm:$0xff]   ;;  %v13184_v63 = vld [vmem:[%s17054_s9 + $0xdc] sm:$0x3]  ;;  %v15636_v4 = vld [vmem:[%s17041_s20 + $0x3d0] sm:$0xff]  }
 0x170   : > { %14256 = vmatprep.subr.bf16.mxu1 %v15579_v18  ;;  %v846_v33 = vpop.permute.xlu1 %845  ;;  %v822_v34 = vpop.permute.xlu0 %821  ;;  %v15605_v18 = vld [vmem:[%s17041_s20 + $0x258] sm:$0xff]  }
 0x171   : > { %14235 = vmatpush3.bf16.msra.mxu0 %v15578_v17  ;;  %848 = vst.msk [vmem:[#allocation2 + $0x17] sm:$0x1] %vm295_vm1, %v846_v33  ;;  %824 = vst.msk [vmem:[#allocation2 + $0x16] sm:$0x1] %vm295_vm1, %v822_v34  ;;  %v15604_v17 = vld [vmem:[%s17041_s20 + $0x290] sm:$0xff]  }
 0x172   : > { %14236 = vmatprep.subr.bf16.mxu0 %v15581_v26  ;;  %v15613_v26 = vld [vmem:[%s17041_s20 + $0x268] sm:$0xff]   ;;  %v15617_v33 = vld [vmem:[%s17041_s20 + $0x270] sm:$0xff]  }
 0x173   : > { %14257 = vmatpush3.bf16.msra.mxu1 %v15580_v25  ;;  %v15612_v25 = vld [vmem:[%s17041_s20 + $0x2a0] sm:$0xff]   ;;  %v15618_v34 = vld [vmem:[%s17041_s20 + $0x230] sm:$0xff]  }
 0x174   : > { %14258 = vmatprep.subr.bf16.mxu1 %v15583_v30  ;;  %v4765_v30 = vcombine.high %v17328_v32, %v17328_v32  ;;  %v15622_v32 = vld [vmem:[%s17041_s20 + $0x238] sm:$0xff]   ;;  %v894_v42 = vpop.permute.xlu1 %893  ;;  %v870_v44 = vpop.permute.xlu0 %869 }
 0x175   : > { %14237 = vmatpush3.bf16.msra.mxu0 %v15582_v29  ;;  %v15616_v29 = vld [vmem:[%s17041_s20 + $0x2a8] sm:$0xff]   ;;  %896 = vst.msk [vmem:[#allocation2 + $0x19] sm:$0x1] %vm295_vm1, %v894_v42  ;;  %872 = vst.msk [vmem:[#allocation2 + $0x18] sm:$0x1] %vm295_vm1, %v870_v44  ;;  %v15651_v44 = vld [vmem:[%s17041_s20 + $0x330] sm:$0xff]  }
 0x176   : > { %14238 = vmatprep.subr.bf16.mxu0 %v15585_v40  ;;  %v15624_v40 = vld [vmem:[%s17041_s20 + $0x2b8] sm:$0xff]   ;;  %v13219_v42 = vld [vmem:[%s17054_s9 + $0x90] sm:$0x3] }
 0x177   : > { %14259 = vmatpush3.bf16.msra.mxu1 %v15584_v37  ;;  %v17403_v37 = vrot.slane %v4765_v30, %v17056_v7 }
 0x178   : > { %14260 = vmatprep.subr.bf16.mxu1 %v15587_v47  ;;  %v4788_v47 = vrot.slane %v17343_v46, %v17056_v7  ;;  %v945_v46 = vpop.permute.xlu1 %944 }
 0x179   : > { %14239 = vmatpush3.bf16.msra.mxu0 %v15586_v45  ;;  %v4781_v41 = vcombine.high %v17403_v37, %v17403_v37  ;;  %v15626_v45 = vld [vmem:[%s17041_s20 + $0x300] sm:$0xff]  }
 0x17a   : > { %14240 = vmatprep.subr.bf16.mxu0 %v15589_v50  ;;  %v4810_v57 = vcombine.high %v4788_v47, %v4788_v47 }
 0x17b   : > { %14261 = vmatpush3.bf16.msra.mxu1 %v15588_v56  ;;  %v4809_v50 = vrot.slane %v4781_v41, %v17056_v7  ;;  %v15631_v56 = vld [vmem:[%s17041_s20 + $0x308] sm:$0xff]  }
 0x17c   : > { %14262 = vmatprep.subr.bf16.mxu1 %v15591_v60 }
 0x17d   : > { %14241 = vmatpush3.bf16.msra.mxu0 %v15590_v59  ;;  %v918_v59 = vpop.permute.xlu0 %917  ;;  %v4813_v60 = vcombine.high %v4809_v50, %v4809_v50 }
 0x17e   : > { %14270 = vmatprep.subr.bf16.mxu0 %v15593_v0  ;;  %v15634_v0 = vld [vmem:[%s17041_s20 + $0x350] sm:$0xff]  }
 0x17f   : > { %14263 = vmatpush3.bf16.msra.mxu1 %v15592_v62  ;;  %v13186_v62 = vld [vmem:[%s17054_s9 + $0xde] sm:$0x3] }
 0x180   : > { %10903 = vmatmul.mubr.bf16.vlgmr.msra.gmra.mrb[4].mxu0 %v4746_v5  ;;  %14292 = vmatprep.subr.bf16.mxu1 %v15595_v6  ;;  %v922_v1 = vpack.c.bf16 %v13186_v62, %v13186_v62  ;;  %v15637_v5 = vld [vmem:[%s17041_s20 + $0x390] sm:$0xff]   ;;  %v15638_v6 = vld [vmem:[%s17041_s20 + $0x358] sm:$0xff]  }
 0x181   : > { %14271 = vmatpush3.bf16.msra.mxu0 %v15594_v2  ;;  %10982 = vmatprep.mubr.bf16.mxu0 %v4802_v3  ;;  %v898_v2 = vpack.c.bf16 %v13184_v63, %v13184_v63  ;;  %v15635_v3 = vld [vmem:[%s17041_s20 + $0x310] sm:$0xff]   ;;  %v15658_v63 = vld [vmem:[%s17041_s20 + $0x440] sm:$0xff]  }
 0x182   : > { %10943 = vmatmul.mubr.bf16.vlgmr.msra.gmra.mrb[4].mxu1 %v4762_v12  ;;  %14272 = vmatprep.subr.bf16.mxu0 %v15597_v9  ;;  %923 = vst.msk [vmem:[#allocation2 + $0x1b] sm:$0x1] %vm273_vm0, %v922_v1  ;;  %v13190_v9 = vld [vmem:[%s17054_s9 + $0x73] sm:$0x3]  ;;  %v15639_v12 = vld [vmem:[%s17041_s20 + $0x318] sm:$0xff]  }
 0x183   : > { %14293 = vmatpush3.bf16.msra.mxu1 %v15596_v8  ;;  %11022 = vmatprep.mubr.bf16.mxu1 %v4812_v11  ;;  %899 = vst.msk [vmem:[#allocation2 + $0x1a] sm:$0x1] %vm273_vm0, %v898_v2  ;;  %v993_v8 = vpop.permute.xlu1 %992  ;;  %v969_v11 = vpop.permute.xlu0 %968  ;;  %v15657_v1 = vld [vmem:[%s17041_s20 + $0x3b8] sm:$0xff]  }
 0x184   : > { %14294 = vmatprep.subr.bf16.mxu1 %v15599_v31  ;;  %947 = vst.msk [vmem:[#allocation2 + $0x1b] sm:$0x1] %vm295_vm1, %v945_v46  ;;  %920 = vst.msk [vmem:[#allocation2 + $0x1a] sm:$0x1] %vm295_vm1, %v918_v59  ;;  %v973_v31 = vpack.c.bf16 %v13190_v9, %v13190_v9  ;;  %v15656_v59 = vld [vmem:[%s17041_s20 + $0x3f8] sm:$0xff]  }
 0x185   : > { %14273 = vmatpush3.bf16.msra.mxu0 %v15598_v10  ;;  %v13188_v10 = vld [vmem:[%s17054_s9 + $0x71] sm:$0x3] }
 0x186   : > { %14274 = vmatprep.subr.bf16.mxu0 %v15601_v14  ;;  %v15640_v14 = vld [vmem:[%s17041_s20 + $0x3d8] sm:$0xff]   ;;  %974 = vst.msk [vmem:[#allocation2 + $0x1d] sm:$0x1] %vm273_vm0, %v973_v31  ;;  %v15662_v31 = vld [vmem:[%s17041_s20 + $0x448] sm:$0xff]  }
 0x187   : > { %14295 = vmatpush3.bf16.msra.mxu1 %v15600_v13  ;;  %v949_v13 = vpack.c.bf16 %v13188_v10, %v13188_v10  ;;  %995 = vst.msk [vmem:[#allocation2 + $0x1d] sm:$0x1] %vm295_vm1, %v993_v8  ;;  %v15660_v8 = vld [vmem:[%s17041_s20 + $0x4c0] sm:$0xff]  }
 0x188   : > { %14296 = vmatprep.subr.bf16.mxu1 %v15603_v16  ;;  %v15642_v16 = vld [vmem:[%s17041_s20 + $0x360] sm:$0xff]  }
 0x189   : > { %14275 = vmatpush3.bf16.msra.mxu0 %v15602_v15  ;;  %v15641_v15 = vld [vmem:[%s17041_s20 + $0x398] sm:$0xff]   ;;  %950 = vst.msk [vmem:[#allocation2 + $0x1c] sm:$0x1] %vm273_vm0, %v949_v13 }
 0x18a   : > { %14276 = vmatprep.subr.bf16.mxu0 %v15605_v18  ;;  %971 = vst.msk [vmem:[#allocation2 + $0x1c] sm:$0x1] %vm295_vm1, %v969_v11  ;;  %v15643_v18 = vld [vmem:[%s17041_s20 + $0x320] sm:$0xff]  }
 0x18b   : > { %14297 = vmatpush3.bf16.msra.mxu1 %v15604_v17  ;;  %v13194_v17 = vld [vmem:[%s17054_s9 + $0x77] sm:$0x3] }
 0x18c   : > { %14298 = vmatprep.subr.bf16.mxu1 %v15607_v20  ;;  %v1041_v20 = vpop.permute.xlu1 %1040 }
 0x18d   : > { %14277 = vmatpush3.bf16.msra.mxu0 %v15606_v19  ;;  %v1021_v19 = vpack.c.bf16 %v13194_v17, %v13194_v17  ;;  %v15664_v17 = vld [vmem:[%s17041_s20 + $0x4c8] sm:$0xff]  }
 0x18e   : > { %14278 = vmatprep.subr.bf16.mxu0 %v15609_v22  ;;  %v15644_v22 = vld [vmem:[%s17041_s20 + $0x3e0] sm:$0xff]  }
 0x18f   : > { %14299 = vmatpush3.bf16.msra.mxu1 %v15608_v21  ;;  %v13192_v21 = vld [vmem:[%s17054_s9 + $0x75] sm:$0x3]  ;;  %1022 = vst.msk [vmem:[#allocation2 + $0x1f] sm:$0x1] %vm273_vm0, %v1021_v19  ;;  %v15663_v19 = vld [vmem:[%s17041_s20 + $0x408] sm:$0xff]  }
 0x190   : > { %14300 = vmatprep.subr.bf16.mxu1 %v15611_v24  ;;  %v1017_v24 = vpop.permute.xlu0 %1016  ;;  %1043 = vst.msk [vmem:[#allocation2 + $0x1f] sm:$0x1] %vm295_vm1, %v1041_v20 }
 0x191   : > { %14279 = vmatpush3.bf16.msra.mxu0 %v15610_v23  ;;  %v997_v23 = vpack.c.bf16 %v13192_v21, %v13192_v21  ;;  %v15666_v21 = vld [vmem:[%s17041_s20 + $0x450] sm:$0xff]  }
 0x192   : > { %14280 = vmatprep.subr.bf16.mxu0 %v15613_v26  ;;  %v13215_v26 = vld [vmem:[%s17054_s9 + $0x8c] sm:$0x3] }
 0x193   : > { %14301 = vmatpush3.bf16.msra.mxu1 %v15612_v25  ;;  %v15645_v25 = vld [vmem:[%s17041_s20 + $0x3a0] sm:$0xff]   ;;  %998 = vst.msk [vmem:[#allocation2 + $0x1e] sm:$0x1] %vm273_vm0, %v997_v23  ;;  %v15668_v23 = vld [vmem:[%s17041_s20 + $0x4d0] sm:$0xff]  }
 0x194   : > { %14302 = vmatprep.subr.bf16.mxu1 %v15615_v28  ;;  %v15646_v28 = vld [vmem:[%s17041_s20 + $0x368] sm:$0xff]   ;;  %1019 = vst.msk [vmem:[#allocation2 + $0x1e] sm:$0x1] %vm295_vm1, %v1017_v24  ;;  %v15667_v24 = vld [vmem:[%s17041_s20 + $0x410] sm:$0xff]  }
 0x195   : > { %14281 = vmatpush3.bf16.msra.mxu0 %v15614_v27  ;;  %v13213_v27 = vld [vmem:[%s17054_s9 + $0x8a] sm:$0x3] }
 0x196   : > { %14282 = vmatprep.subr.bf16.mxu0 %v15617_v33  ;;  %v1240_v30 = vpack.c.bf16 %v13213_v27, %v13213_v27  ;;  %v15647_v33 = vld [vmem:[%s17041_s20 + $0x328] sm:$0xff]   ;;  %v15672_v27 = vld [vmem:[%s17041_s20 + $0x4d8] sm:$0xff]  }
 0x197   : > { %14303 = vmatpush3.bf16.msra.mxu1 %v15616_v29  ;;  %v1264_v29 = vpack.c.bf16 %v13215_v26, %v13215_v26  ;;  %v15669_v26 = vld [vmem:[%s17041_s20 + $0x490] sm:$0xff]  }
 0x198   : > { %14304 = vmatprep.subr.bf16.mxu1 %v15619_v35  ;;  %v17463_v35 = vld [vmem:[#allocation2 + $0x10] sm:$0xff] }
 0x199   : > { %14283 = vmatpush3.bf16.msra.mxu0 %v15618_v34  ;;  %v15648_v34 = vld [vmem:[%s17041_s20 + $0x3e8] sm:$0xff]  }
 0x19a   : > { %14284 = vmatprep.subr.bf16.mxu0 %v15621_v38  ;;  %v1248_v38 = vrot.slane %v1240_v30, %v17056_v7  ;;  %v15673_v30 = vld [vmem:[%s17041_s20 + $0x498] sm:$0xff]  }
 0x19b   : > { %14305 = vmatpush3.bf16.msra.mxu1 %v15620_v36  ;;  %v1272_v36 = vrot.slane %v1264_v29, %v17056_v7  ;;  %v15674_v29 = vld [vmem:[%s17041_s20 + $0x460] sm:$0xff]  }
 0x19c   : > { %14306 = vmatprep.subr.bf16.mxu1 %v15623_v39  ;;  %v15650_v39 = vld [vmem:[%s17041_s20 + $0x370] sm:$0xff]   ;;  %v1255_v41 = vrot.slane %v1248_v38, %v17056_v7  ;;  %v15677_v38 = vld [vmem:[%s17041_s20 + $0x4a0] sm:$0xff]  }
 0x19d   : > { %14285 = vmatpush3.bf16.msra.mxu0 %v15622_v32  ;;  %v15649_v32 = vld [vmem:[%s17041_s20 + $0x3a8] sm:$0xff]  }
 0x19e   : > { %14314 = vmatprep.subr.bf16.mxu0 %v15625_v43  ;;  %v13217_v43 = vld [vmem:[%s17054_s9 + $0x8e] sm:$0x3]  ;;  %1256 = vrot.lane.b32.xlu0 %v1255_v41, %s16688_s4 }
 0x19f   : > { %14307 = vmatpush3.bf16.msra.mxu1 %v15624_v40  ;;  %v1279_v40 = vrot.slane %v1272_v36, %v17056_v7  ;;  %v15678_v36 = vld [vmem:[%s17041_s20 + $0x468] sm:$0xff]   ;;  %v15682_v41 = vld [vmem:[%s17041_s20 + $0x470] sm:$0xff]  }
 0x1a0   : > { %10983 = vmatmul.mubr.bf16.vlgmr.msra.gmra.mrb[8].mxu0 %v4788_v47  ;;  %14336 = vmatprep.subr.bf16.mxu1 %v15628_v48  ;;  %v1312_v47 = vpack.c.bf16 %v13219_v42, %v13219_v42  ;;  %v1288_v48 = vpack.c.bf16 %v13217_v43, %v13217_v43  ;;  %v15681_v42 = vld [vmem:[%s17041_s20 + $0x4a8] sm:$0xff]   ;;  %v15684_v43 = vld [vmem:[%s17041_s20 + $0x4f0] sm:$0xff]  }
 0x1a1   : > { %14315 = vmatpush3.bf16.msra.mxu0 %v15626_v45  ;;  %11062 = vmatprep.mubr.bf16.mxu0 %v4809_v50  ;;  %v17476_v45 = vrot.slane %v17463_v35, %v17056_v7  ;;  %v15653_v50 = vld [vmem:[%s17041_s20 + $0x3b0] sm:$0xff]  }
 0x1a2   : > { %11023 = vmatmul.mubr.bf16.vlgmr.msra.gmra.mrb[8].mxu1 %v4810_v57  ;;  %14316 = vmatprep.subr.bf16.mxu0 %v15630_v54  ;;  %v1296_v52 = vrot.slane %v1288_v48, %v17056_v7  ;;  %v13223_v54 = vld [vmem:[%s17054_s9 + $0x94] sm:$0x3]  ;;  %v15686_v48 = vld [vmem:[%s17041_s20 + $0x478] sm:$0xff]  }
 0x1a3   : > { %14337 = vmatpush3.bf16.msra.mxu1 %v15629_v51  ;;  %11102 = vmatprep.mubr.bf16.mxu1 %v4813_v60  ;;  %v1320_v51 = vrot.slane %v1312_v47, %v17056_v7  ;;  %v4829_v55 = vcombine.high %v17476_v45, %v17476_v45  ;;  %v1360_v57 = vpack.c.bf16 %v13223_v54, %v13223_v54 }
 0x1a4   : > { %14338 = vmatprep.subr.bf16.mxu1 %v15632_v58  ;;  %1280 = vrot.lane.b32.xlu1 %v1279_v40, %s16688_s4  ;;  %v1303_v46 = vrot.slane %v1296_v52, %v17056_v7  ;;  %v13221_v58 = vld [vmem:[%s17054_s9 + $0x92] sm:$0x3]  ;;  %v4814_v40 = vcombine.high %v17463_v35, %v17463_v35  ;;  %v15690_v52 = vld [vmem:[%s17041_s20 + $0x540] sm:$0xff]   ;;  %v4837_v54 = vrot.slane %v17476_v45, %v17056_v7 }
 0x1a5   : > { %14317 = vmatpush3.bf16.msra.mxu0 %v15631_v56  ;;  %v1327_v56 = vrot.slane %v1320_v51, %v17056_v7  ;;  %v1336_v60 = vpack.c.bf16 %v13221_v58, %v13221_v58  ;;  %v1368_v62 = vrot.slane %v1360_v57, %v17056_v7  ;;  %v4851_v2 = vrot.slane %v4829_v55, %v17056_v7  ;;  %v15685_v35 = vld [vmem:[%s17041_s20 + $0x4b0] sm:$0xff]   ;;  %v15693_v55 = vld [vmem:[%s17041_s20 + $0x5c0] sm:$0xff]   ;;  %v15695_v58 = vld [vmem:[%s17041_s20 + $0x548] sm:$0xff]  }
 0x1a6   : > { %14318 = vmatprep.subr.bf16.mxu0 %v15634_v0  ;;  %1304 = vrot.lane.b32.xlu0 %v1303_v46, %s16688_s4  ;;  %v17543_v47 = vrot.slane %v4814_v40, %v17056_v7  ;;  %v15694_v57 = vld [vmem:[%s17041_s20 + $0x580] sm:$0xff]   ;;  %v15715_v40 = vld [vmem:[%s17041_s20 + $0x570] sm:$0xff]  }
 0x1a7   : > { %14339 = vmatpush3.bf16.msra.mxu1 %v15633_v61  ;;  %v15655_v61 = vld [vmem:[%s17041_s20 + $0x338] sm:$0xff]   ;;  %v1344_v0 = vrot.slane %v1336_v60, %v17056_v7  ;;  %v4859_v60 = vcombine.high %v4837_v54, %v4837_v54 }
 0x1a8   : > { %14340 = vmatprep.subr.bf16.mxu1 %v15636_v4  ;;  %1328 = vrot.lane.b32.xlu1 %v1327_v56, %s16688_s4  ;;  %v13227_v4 = vld [vmem:[%s17054_s9 + $0x98] sm:$0x3]  ;;  %v4830_v51 = vcombine.high %v17543_v47, %v17543_v47  ;;  %v15691_v56 = vld [vmem:[%s17041_s20 + $0x500] sm:$0xff]  }
 0x1a9   : > { %14319 = vmatpush3.bf16.msra.mxu0 %v15635_v3  ;;  %v1375_v3 = vrot.slane %v1368_v62, %v17056_v7  ;;  %v1351_v9 = vrot.slane %v1344_v0, %v17056_v7  ;;  %v1408_v10 = vpack.c.bf16 %v13227_v4, %v13227_v4 }
 0x1aa   : > { %14320 = vmatprep.subr.bf16.mxu0 %v15638_v6  ;;  %v4795_v6 = vrot.slane %v17403_v37, %v17056_v7  ;;  %v4858_v46 = vrot.slane %v4830_v51, %v17056_v7 }
 0x1ab   : > { %14341 = vmatpush3.bf16.msra.mxu1 %v15637_v5  ;;  %v13225_v5 = vld [vmem:[%s17054_s9 + $0x96] sm:$0x3]  ;;  %1352 = vrot.lane.b32.xlu0 %v1351_v9, %s16688_s4  ;;  %v1416_v13 = vrot.slane %v1408_v10, %v17056_v7  ;;  %v15702_v9 = vld [vmem:[%s17041_s20 + $0x590] sm:$0xff]  }
 0x1ac   : > { %14342 = vmatprep.subr.bf16.mxu1 %v15640_v14  ;;  %v1384_v11 = vpack.c.bf16 %v13225_v5, %v13225_v5  ;;  %1376 = vrot.lane.b32.xlu1 %v1375_v3, %s16688_s4  ;;  %v15661_v14 = vld [vmem:[%s17041_s20 + $0x480] sm:$0xff]   ;;  %v4862_v62 = vcombine.high %v4858_v46, %v4858_v46  ;;  %v15700_v3 = vld [vmem:[%s17041_s20 + $0x510] sm:$0xff]   ;;  %v13196_v5 = vld [vmem:[%s17054_s9 + $0x79] sm:$0x3] }
 0x1ad   : > { %14321 = vmatpush3.bf16.msra.mxu0 %v15639_v12  ;;  %v15659_v12 = vld [vmem:[%s17041_s20 + $0x400] sm:$0xff]   ;;  %v15703_v10 = vld [vmem:[%s17041_s20 + $0x558] sm:$0xff]  }
 0x1ae   : > { %14322 = vmatprep.subr.bf16.mxu0 %v15642_v16  ;;  %v1392_v37 = vrot.slane %v1384_v11, %v17056_v7  ;;  %v4811_v16 = vcombine.high %v4795_v6, %v4795_v6 }
 0x1af   : > { %14343 = vmatpush3.bf16.msra.mxu1 %v15641_v15  ;;  %v4861_v15 = vcombine.high %v4851_v2, %v4851_v2 }
 0x1b0   : > { %14344 = vmatprep.subr.bf16.mxu1 %v15644_v22  ;;  %v1399_v20 = vrot.slane %v1392_v37, %v17056_v7  ;;  %v15665_v22 = vld [vmem:[%s17041_s20 + $0x488] sm:$0xff]  }
 0x1b1   : > { %14323 = vmatpush3.bf16.msra.mxu0 %v15643_v18  ;;  %v1423_v18 = vrot.slane %v1416_v13, %v17056_v7  ;;  %v13200_v13 = vld [vmem:[%s17054_s9 + $0x7d] sm:$0x3] }
 0x1b2   : > { %14324 = vmatprep.subr.bf16.mxu0 %v15646_v28  ;;  %1400 = vrot.lane.b32.xlu0 %v1399_v20, %s16688_s4  ;;  %v15671_v28 = vld [vmem:[%s17041_s20 + $0x418] sm:$0xff]   ;;  %v15709_v20 = vld [vmem:[%s17041_s20 + $0x5e0] sm:$0xff]  }
 0x1b3   : > { %14345 = vmatpush3.bf16.msra.mxu1 %v15645_v25  ;;  %1424 = vrot.lane.b32.xlu1 %v1423_v18, %s16688_s4  ;;  %v15670_v25 = vld [vmem:[%s17041_s20 + $0x458] sm:$0xff]   ;;  %v15707_v18 = vld [vmem:[%s17041_s20 + $0x560] sm:$0xff]  }
 0x1b4   : > { %14346 = vmatprep.subr.bf16.mxu1 %v15648_v34  ;;  %v15675_v34 = vld [vmem:[%s17041_s20 + $0x420] sm:$0xff]  }
 0x1b5   : > { %14325 = vmatpush3.bf16.msra.mxu0 %v15647_v33  ;;  %v15676_v33 = vld [vmem:[%s17041_s20 + $0x4e0] sm:$0xff]  }
 0x1b6   : > { %14326 = vmatprep.subr.bf16.mxu0 %v15650_v39  ;;  %v15679_v39 = vld [vmem:[%s17041_s20 + $0x428] sm:$0xff]  }
 0x1b7   : > { %14347 = vmatpush3.bf16.msra.mxu1 %v15649_v32  ;;  %v15680_v32 = vld [vmem:[%s17041_s20 + $0x4e8] sm:$0xff]  }
 0x1b8   : > { %14348 = vmatprep.subr.bf16.mxu1 %v15652_v49  ;;  %v15688_v49 = vld [vmem:[%s17041_s20 + $0x4f8] sm:$0xff]  }
 0x1b9   : > { %14327 = vmatpush3.bf16.msra.mxu0 %v15651_v44  ;;  %v15683_v44 = vld [vmem:[%s17041_s20 + $0x430] sm:$0xff]  }
 0x1ba   : > { %14328 = vmatprep.subr.bf16.mxu0 %v15654_v53  ;;  %v15689_v53 = vld [vmem:[%s17041_s20 + $0x4b8] sm:$0xff]  }
 0x1bb   : > { %14349 = vmatpush3.bf16.msra.mxu1 %v15653_v50  ;;  %v15687_v50 = vld [vmem:[%s17041_s20 + $0x438] sm:$0xff]  }
 0x1bc   : > { %14350 = vmatprep.subr.bf16.mxu1 %v15656_v59  ;;  %v15696_v59 = vld [vmem:[%s17041_s20 + $0x508] sm:$0xff]  }
 0x1bd   : > { %14329 = vmatpush3.bf16.msra.mxu0 %v15655_v61  ;;  %v15697_v61 = vld [vmem:[%s17041_s20 + $0x5c8] sm:$0xff]  }
 0x1be   : > { %14358 = vmatprep.subr.bf16.mxu0 %v15658_v63  ;;  %v15698_v63 = vld [vmem:[%s17041_s20 + $0x588] sm:$0xff]  }
 0x1bf   : > { %14351 = vmatpush3.bf16.msra.mxu1 %v15657_v1  ;;  %v15699_v1 = vld [vmem:[%s17041_s20 + $0x550] sm:$0xff]  }
 0x1c0   : > { %11063 = vmatmul.mubr.bf16.vlgmr.msra.gmra.mrb[12].mxu0 %v4795_v6  ;;  %14380 = vmatprep.subr.bf16.mxu1 %v15660_v8  ;;  %v15701_v6 = vld [vmem:[%s17041_s20 + $0x5d0] sm:$0xff]   ;;  %v1045_v8 = vpack.c.bf16 %v13196_v5, %v13196_v5  ;;  %v15725_v5 = vld [vmem:[%s17041_s20 + $0x6c0] sm:$0xff]  }
 0x1c1   : > { %14359 = vmatpush3.bf16.msra.mxu0 %v15659_v12  ;;  %11142 = vmatprep.mubr.bf16.mxu0 %v4851_v2  ;;  %v13198_v2 = vld [vmem:[%s17054_s9 + $0x7b] sm:$0x3] }
 0x1c2   : > { %11103 = vmatmul.mubr.bf16.vlgmr.msra.gmra.mrb[12].mxu1 %v4811_v16  ;;  %14360 = vmatprep.subr.bf16.mxu0 %v15662_v31  ;;  %v1069_v4 = vpack.c.bf16 %v13198_v2, %v13198_v2  ;;  %1046 = vst.msk [vmem:[#allocation2 + $0x20] sm:$0x1] %vm273_vm0, %v1045_v8  ;;  %v15704_v12 = vld [vmem:[%s17041_s20 + $0x518] sm:$0xff]   ;;  %v13202_v31 = vld [vmem:[%s17054_s9 + $0x7f] sm:$0x3]  ;;  %v1093_v16 = vpack.c.bf16 %v13200_v13, %v13200_v13 }
 0x1c3   : > { %14381 = vmatpush3.bf16.msra.mxu1 %v15661_v14  ;;  %11182 = vmatprep.mubr.bf16.mxu1 %v4861_v15  ;;  %v1089_v45 = vpop.permute.xlu1 %1088  ;;  %v1065_v0 = vpop.permute.xlu0 %1064  ;;  %v15705_v14 = vld [vmem:[%s17041_s20 + $0x5d8] sm:$0xff]   ;;  %v1117_v15 = vpack.c.bf16 %v13202_v31, %v13202_v31  ;;  %v13239_v8 = vld [vmem:[%s17054_s9 + $0xa4] sm:$0x3]  ;;  %v15727_v31 = vld [vmem:[%s17041_s20 + $0x648] sm:$0xff]  }
 0x1c4   : > { %14382 = vmatprep.subr.bf16.mxu1 %v15664_v17  ;;  %1070 = vst.msk [vmem:[#allocation2 + $0x21] sm:$0x1] %vm273_vm0, %v1069_v4  ;;  %v15706_v17 = vld [vmem:[%s17041_s20 + $0x598] sm:$0xff]   ;;  %1094 = vst.msk [vmem:[#allocation2 + $0x22] sm:$0x1] %vm273_vm0, %v1093_v16  ;;  %v4844_v4 = vrot.slane %v17543_v47, %v17056_v7  ;;  %v15729_v16 = vld [vmem:[%s17041_s20 + $0x6c8] sm:$0xff]  }
 0x1c5   : > { %14361 = vmatpush3.bf16.msra.mxu0 %v15663_v19  ;;  %1091 = vst.msk [vmem:[#allocation2 + $0x21] sm:$0x1] %vm295_vm1, %v1089_v45  ;;  %1067 = vst.msk [vmem:[#allocation2 + $0x20] sm:$0x1] %vm295_vm1, %v1065_v0  ;;  %v15708_v19 = vld [vmem:[%s17041_s20 + $0x520] sm:$0xff]   ;;  %v15722_v45 = vld [vmem:[%s17041_s20 + $0x5b8] sm:$0xff]  }
 0x1c6   : > { %14362 = vmatprep.subr.bf16.mxu0 %v15666_v21  ;;  %1118 = vst.msk [vmem:[#allocation2 + $0x23] sm:$0x1] %vm273_vm0, %v1117_v15  ;;  %v15723_v0 = vld [vmem:[%s17041_s20 + $0x640] sm:$0xff]   ;;  %v4860_v15 = vcombine.high %v4844_v4, %v4844_v4 }
 0x1c7   : > { %14383 = vmatpush3.bf16.msra.mxu1 %v15665_v22  ;;  %v13206_v22 = vld [vmem:[%s17054_s9 + $0x83] sm:$0x3] }
 0x1c8   : > { %14384 = vmatprep.subr.bf16.mxu1 %v15668_v23  ;;  %v13204_v23 = vld [vmem:[%s17054_s9 + $0x81] sm:$0x3] }
 0x1c9   : > { %14363 = vmatpush3.bf16.msra.mxu0 %v15667_v24 }
 0x1ca   : > { %14364 = vmatprep.subr.bf16.mxu0 %v15670_v25  ;;  %v15710_v25 = vld [vmem:[%s17041_s20 + $0x5a0] sm:$0xff]  }
 0x1cb   : > { %14385 = vmatpush3.bf16.msra.mxu1 %v15669_v26  ;;  %v1165_v26 = vpack.c.bf16 %v13206_v22, %v13206_v22  ;;  %v13241_v22 = vld [vmem:[%s17054_s9 + $0xa6] sm:$0x3] }
 0x1cc   : > { %14386 = vmatprep.subr.bf16.mxu1 %v15672_v27  ;;  %v1141_v27 = vpack.c.bf16 %v13204_v23, %v13204_v23  ;;  %v15731_v23 = vld [vmem:[%s17041_s20 + $0x650] sm:$0xff]  }
 0x1cd   : > { %14365 = vmatpush3.bf16.msra.mxu0 %v15671_v28  ;;  %v15711_v28 = vld [vmem:[%s17041_s20 + $0x568] sm:$0xff]   ;;  %1166 = vst.msk [vmem:[#allocation2 + $0x25] sm:$0x1] %vm273_vm0, %v1165_v26  ;;  %v15732_v26 = vld [vmem:[%s17041_s20 + $0x610] sm:$0xff]  }
 0x1ce   : > { %14366 = vmatprep.subr.bf16.mxu0 %v15674_v29  ;;  %v15712_v29 = vld [vmem:[%s17041_s20 + $0x528] sm:$0xff]   ;;  %1142 = vst.msk [vmem:[#allocation2 + $0x24] sm:$0x1] %vm273_vm0, %v1141_v27  ;;  %v15733_v27 = vld [vmem:[%s17041_s20 + $0x6d0] sm:$0xff]  }
 0x1cf   : > { %14387 = vmatpush3.bf16.msra.mxu1 %v15673_v30  ;;  %v15713_v30 = vld [vmem:[%s17041_s20 + $0x5e8] sm:$0xff]  }
 0x1d0   : > { %14388 = vmatprep.subr.bf16.mxu1 %v15676_v33  ;;  %v17594_v33 = vld [vmem:[#allocation2 + $0x18] sm:$0xff] }
 0x1d1   : > { %14367 = vmatpush3.bf16.msra.mxu0 %v15675_v34  ;;  %v13210_v34 = vld [vmem:[%s17054_s9 + $0x87] sm:$0x3] }
 0x1d2   : > { %14368 = vmatprep.subr.bf16.mxu0 %v15678_v36  ;;  %v15714_v36 = vld [vmem:[%s17041_s20 + $0x5a8] sm:$0xff]  }
 0x1d3   : > { %14389 = vmatpush3.bf16.msra.mxu1 %v15677_v38  ;;  %v1213_v38 = vpack.c.bf16 %v13210_v34, %v13210_v34  ;;  %v15734_v34 = vld [vmem:[%s17041_s20 + $0x690] sm:$0xff]  }
 0x1d4   : > { %14390 = vmatprep.subr.bf16.mxu1 %v15680_v32 }
 0x1d5   : > { %14369 = vmatpush3.bf16.msra.mxu0 %v15679_v39  ;;  %v13208_v39 = vld [vmem:[%s17054_s9 + $0x85] sm:$0x3]  ;;  %1214 = vst.msk [vmem:[#allocation2 + $0x27] sm:$0x1] %vm273_vm0, %v1213_v38 }
 0x1d6   : > { %14370 = vmatprep.subr.bf16.mxu0 %v15682_v41  ;;  %v1189_v41 = vpack.c.bf16 %v13208_v39, %v13208_v39  ;;  %v15737_v39 = vld [vmem:[%s17041_s20 + $0x6d8] sm:$0xff]  }
 0x1d7   : > { %14391 = vmatpush3.bf16.msra.mxu1 %v15681_v42  ;;  %v1137_v11 = vpop.permute.xlu1 %1136 }
 0x1d8   : > { %14392 = vmatprep.subr.bf16.mxu1 %v15684_v43  ;;  %v1113_v37 = vpop.permute.xlu0 %1112  ;;  %1139 = vst.msk [vmem:[#allocation2 + $0x23] sm:$0x1] %vm295_vm1, %v1137_v11  ;;  %v15716_v43 = vld [vmem:[%s17041_s20 + $0x530] sm:$0xff]   ;;  %v1552_v11 = vpack.c.bf16 %v13239_v8, %v13239_v8  ;;  %v15763_v8 = vld [vmem:[%s17041_s20 + $0x788] sm:$0xff]  }
 0x1d9   : > { %14371 = vmatpush3.bf16.msra.mxu0 %v15683_v44  ;;  %1115 = vst.msk [vmem:[#allocation2 + $0x22] sm:$0x1] %vm295_vm1, %v1113_v37  ;;  %v17605_v44 = vrot.slane %v17594_v33, %v17056_v7  ;;  %v15728_v37 = vld [vmem:[%s17041_s20 + $0x608] sm:$0xff]  }
 0x1da   : > { %14372 = vmatprep.subr.bf16.mxu0 %v15686_v48  ;;  %v13231_v48 = vld [vmem:[%s17054_s9 + $0x9c] sm:$0x3]  ;;  %1190 = vst.msk [vmem:[#allocation2 + $0x26] sm:$0x1] %vm273_vm0, %v1189_v41 }
 0x1db   : > { %14393 = vmatpush3.bf16.msra.mxu1 %v15685_v35  ;;  %v1185_v21 = vpop.permute.xlu1 %1184  ;;  %v13229_v35 = vld [vmem:[%s17054_s9 + $0x9a] sm:$0x3] }
 0x1dc   : > { %14394 = vmatprep.subr.bf16.mxu1 %v15688_v49  ;;  %v1161_v24 = vpop.permute.xlu0 %1160  ;;  %1187 = vst.msk [vmem:[#allocation2 + $0x25] sm:$0x1] %vm295_vm1, %v1185_v21  ;;  %v15717_v49 = vld [vmem:[%s17041_s20 + $0x5f0] sm:$0xff]   ;;  %v1432_v51 = vpack.c.bf16 %v13229_v35, %v13229_v35  ;;  %v13243_v21 = vld [vmem:[%s17054_s9 + $0x39] sm:$0x3]  ;;  %v15742_v35 = vld [vmem:[%s17041_s20 + $0x6a0] sm:$0xff]  }
 0x1dd   : > { %14373 = vmatpush3.bf16.msra.mxu0 %v15687_v50  ;;  %1163 = vst.msk [vmem:[#allocation2 + $0x24] sm:$0x1] %vm295_vm1, %v1161_v24  ;;  %v1456_v50 = vpack.c.bf16 %v13231_v48, %v13231_v48  ;;  %v1603_v24 = vpack.c.bf16 %v13243_v21, %v13243_v21  ;;  %v15738_v41 = vld [vmem:[%s17041_s20 + $0x698] sm:$0xff]   ;;  %v15741_v48 = vld [vmem:[%s17041_s20 + $0x6e0] sm:$0xff]  }
 0x1de   : > { %14402 = vmatprep.subr.bf16.mxu0 %v15690_v52  ;;  %v15718_v52 = vld [vmem:[%s17041_s20 + $0x5b0] sm:$0xff]   ;;  %v15773_v21 = vld [vmem:[%s17041_s20 + $0x720] sm:$0xff]  }
 0x1df   : > { %14395 = vmatpush3.bf16.msra.mxu1 %v15689_v53  ;;  %v15719_v53 = vld [vmem:[%s17041_s20 + $0x578] sm:$0xff]  }
 0x1e0   : > { %11143 = vmatmul.mubr.bf16.vlgmr.msra.gmra.mrb[16].mxu0 %v4837_v54  ;;  %14424 = vmatprep.subr.bf16.mxu1 %v15693_v55  ;;  %v1233_v32 = vpop.permute.xlu1 %1232  ;;  %v1464_v54 = vrot.slane %v1456_v50, %v17056_v7  ;;  %v1440_v55 = vrot.slane %v1432_v51, %v17056_v7  ;;  %v15744_v50 = vld [vmem:[%s17041_s20 + $0x628] sm:$0xff]  }
 0x1e1   : > { %14403 = vmatpush3.bf16.msra.mxu0 %v15691_v56  ;;  %11222 = vmatprep.mubr.bf16.mxu0 %v4858_v46  ;;  %v1209_v42 = vpop.permute.xlu0 %1208  ;;  %1235 = vst.msk [vmem:[#allocation2 + $0x27] sm:$0x1] %vm295_vm1, %v1233_v32  ;;  %v15720_v56 = vld [vmem:[%s17041_s20 + $0x538] sm:$0xff]   ;;  %v15745_v51 = vld [vmem:[%s17041_s20 + $0x6e8] sm:$0xff]  }
 0x1e2   : > { %11183 = vmatmul.mubr.bf16.vlgmr.msra.gmra.mrb[16].mxu1 %v4859_v60  ;;  %14404 = vmatprep.subr.bf16.mxu0 %v15695_v58  ;;  %1211 = vst.msk [vmem:[#allocation2 + $0x26] sm:$0x1] %vm295_vm1, %v1209_v42  ;;  %v15721_v46 = vld [vmem:[%s17041_s20 + $0x5f8] sm:$0xff]   ;;  %v1471_v58 = vrot.slane %v1464_v54, %v17056_v7  ;;  %v13235_v60 = vld [vmem:[%s17054_s9 + $0xa0] sm:$0x3]  ;;  %v15747_v54 = vld [vmem:[%s17041_s20 + $0x670] sm:$0xff]  }
 0x1e3   : > { %14425 = vmatpush3.bf16.msra.mxu1 %v15694_v57  ;;  %11262 = vmatprep.mubr.bf16.mxu1 %v4862_v62  ;;  %v4878_v57 = vcombine.high %v17605_v44, %v17605_v44  ;;  %v1504_v62 = vpack.c.bf16 %v13235_v60, %v13235_v60  ;;  %v15736_v32 = vld [vmem:[%s17041_s20 + $0x618] sm:$0xff]   ;;  %v15739_v42 = vld [vmem:[%s17041_s20 + $0x660] sm:$0xff]  }
 0x1e4   : > { %14426 = vmatprep.subr.bf16.mxu1 %v15697_v61  ;;  %v13233_v61 = vld [vmem:[%s17054_s9 + $0x9e] sm:$0x3]  ;;  %1472 = vrot.lane.b32.xlu1 %v1471_v58, %s16688_s4  ;;  %v15751_v58 = vld [vmem:[%s17041_s20 + $0x678] sm:$0xff]  }
 0x1e5   : > { %14405 = vmatpush3.bf16.msra.mxu0 %v15696_v59  ;;  %v1447_v59 = vrot.slane %v1440_v55, %v17056_v7  ;;  %v4900_v2 = vrot.slane %v4878_v57, %v17056_v7  ;;  %v15748_v55 = vld [vmem:[%s17041_s20 + $0x630] sm:$0xff]   ;;  %v15754_v60 = vld [vmem:[%s17041_s20 + $0x6b8] sm:$0xff]  }
 0x1e6   : > { %14406 = vmatprep.subr.bf16.mxu0 %v15699_v1  ;;  %v15724_v1 = vld [vmem:[%s17041_s20 + $0x600] sm:$0xff]  }
 0x1e7   : > { %14427 = vmatpush3.bf16.msra.mxu1 %v15698_v63  ;;  %v1480_v63 = vpack.c.bf16 %v13233_v61, %v13233_v61  ;;  %1448 = vrot.lane.b32.xlu0 %v1447_v59, %s16688_s4  ;;  %v4910_v47 = vcombine.high %v4900_v2, %v4900_v2  ;;  %v15753_v59 = vld [vmem:[%s17041_s20 + $0x6f8] sm:$0xff]  }
 0x1e8   : > { %14428 = vmatprep.subr.bf16.mxu1 %v15701_v6 }
 0x1e9   : > { %14407 = vmatpush3.bf16.msra.mxu0 %v15700_v3  ;;  %v1512_v3 = vrot.slane %v1504_v62, %v17056_v7  ;;  %v1488_v6 = vrot.slane %v1480_v63, %v17056_v7  ;;  %v15756_v62 = vld [vmem:[%s17041_s20 + $0x700] sm:$0xff]   ;;  %v4886_v63 = vrot.slane %v17605_v44, %v17056_v7 }
 0x1ea   : > { %14408 = vmatprep.subr.bf16.mxu0 %v15703_v10 }
 0x1eb   : > { %14429 = vmatpush3.bf16.msra.mxu1 %v15702_v9  ;;  %v15726_v9 = vld [vmem:[%s17041_s20 + $0x680] sm:$0xff]   ;;  %v1519_v10 = vrot.slane %v1512_v3, %v17056_v7  ;;  %v15760_v3 = vld [vmem:[%s17041_s20 + $0x748] sm:$0xff]  }
 0x1ec   : > { %14430 = vmatprep.subr.bf16.mxu1 %v15705_v14  ;;  %v1560_v14 = vrot.slane %v1552_v11, %v17056_v7  ;;  %v15766_v11 = vld [vmem:[%s17041_s20 + $0x7d0] sm:$0xff]  }
 0x1ed   : > { %14409 = vmatpush3.bf16.msra.mxu0 %v15704_v12  ;;  %v13237_v12 = vld [vmem:[%s17054_s9 + $0xa2] sm:$0x3]  ;;  %1520 = vrot.lane.b32.xlu1 %v1519_v10, %s16688_s4  ;;  %v15765_v10 = vld [vmem:[%s17041_s20 + $0x710] sm:$0xff]  }
 0x1ee   : > { %14410 = vmatprep.subr.bf16.mxu0 %v15707_v18  ;;  %v1528_v13 = vpack.c.bf16 %v13237_v12, %v13237_v12  ;;  %v15767_v12 = vld [vmem:[%s17041_s20 + $0x790] sm:$0xff]  }
 0x1ef   : > { %14431 = vmatpush3.bf16.msra.mxu1 %v15706_v17  ;;  %v1495_v17 = vrot.slane %v1488_v6, %v17056_v7  ;;  %v15762_v6 = vld [vmem:[%s17041_s20 + $0x7c8] sm:$0xff]  }
 0x1f0   : > { %14432 = vmatprep.subr.bf16.mxu1 %v15709_v20  ;;  %v1536_v18 = vrot.slane %v1528_v13, %v17056_v7  ;;  %v1567_v20 = vrot.slane %v1560_v14, %v17056_v7  ;;  %v15770_v14 = vld [vmem:[%s17041_s20 + $0x7d8] sm:$0xff]  }
 0x1f1   : > { %14411 = vmatpush3.bf16.msra.mxu0 %v15708_v19  ;;  %v15730_v19 = vld [vmem:[%s17041_s20 + $0x688] sm:$0xff]   ;;  %1496 = vrot.lane.b32.xlu0 %v1495_v17, %s16688_s4  ;;  %v15771_v17 = vld [vmem:[%s17041_s20 + $0x798] sm:$0xff]  }
 0x1f2   : > { %14412 = vmatprep.subr.bf16.mxu0 %v15711_v28  ;;  %v1543_v28 = vrot.slane %v1536_v18, %v17056_v7  ;;  %1568 = vrot.lane.b32.xlu1 %v1567_v20, %s16688_s4  ;;  %v15772_v20 = vld [vmem:[%s17041_s20 + $0x760] sm:$0xff]  }
 0x1f3   : > { %14433 = vmatpush3.bf16.msra.mxu1 %v15710_v25  ;;  %v1576_v25 = vpack.c.bf16 %v13241_v22, %v13241_v22 }
 0x1f4   : > { %14434 = vmatprep.subr.bf16.mxu1 %v15713_v30 }
 0x1f5   : > { %14413 = vmatpush3.bf16.msra.mxu0 %v15712_v29  ;;  %v1611_v29 = vrot.slane %v1603_v24, %v17056_v7  ;;  %v1584_v30 = vrot.slane %v1576_v25, %v17056_v7  ;;  %1544 = vrot.lane.b32.xlu0 %v1543_v28, %s16688_s4  ;;  %v15775_v25 = vld [vmem:[%s17041_s20 + $0x7a0] sm:$0xff]   ;;  %v15776_v28 = vld [vmem:[%s17041_s20 + $0x768] sm:$0xff]  }
 0x1f6   : > { %14414 = vmatprep.subr.bf16.mxu0 %v15715_v40 }
 0x1f7   : > { %14435 = vmatpush3.bf16.msra.mxu1 %v15714_v36  ;;  %v15735_v36 = vld [vmem:[%s17041_s20 + $0x658] sm:$0xff]   ;;  %v1618_v38 = vrot.slane %v1611_v29, %v17056_v7  ;;  %v1591_v40 = vrot.slane %v1584_v30, %v17056_v7 }
 0x1f8   : > { %14436 = vmatprep.subr.bf16.mxu1 %v15717_v49  ;;  %v15743_v49 = vld [vmem:[%s17041_s20 + $0x668] sm:$0xff]  }
 0x1f9   : > { %14415 = vmatpush3.bf16.msra.mxu0 %v15716_v43  ;;  %1619 = vrot.lane.b32.xlu1 %v1618_v38, %s16688_s4  ;;  %v15740_v43 = vld [vmem:[%s17041_s20 + $0x620] sm:$0xff]  }
 0x1fa   : > { %14416 = vmatprep.subr.bf16.mxu0 %v15719_v53  ;;  %1592 = vrot.lane.b32.xlu0 %v1591_v40, %s16688_s4  ;;  %v4863_v53 = vcombine.high %v17594_v33, %v17594_v33  ;;  %v15752_v33 = vld [vmem:[%s17041_s20 + $0x638] sm:$0xff]   ;;  %v17727_v38 = vld [vmem:[#allocation2 + $0x20] sm:$0xff]  ;;  %v13222_v40 = vld [vmem:[%s17054_s9 + $0x93] sm:$0x3] }
 0x1fb   : > { %14437 = vmatpush3.bf16.msra.mxu1 %v15718_v52  ;;  %v15746_v52 = vld [vmem:[%s17041_s20 + $0x6a8] sm:$0xff]  }
 0x1fc   : > { %14438 = vmatprep.subr.bf16.mxu1 %v15721_v46  ;;  %v15750_v46 = vld [vmem:[%s17041_s20 + $0x6b0] sm:$0xff]   ;;  %v17685_v57 = vrot.slane %v4863_v53, %v17056_v7 }
 0x1fd   : > { %14417 = vmatpush3.bf16.msra.mxu0 %v15720_v56  ;;  %v15749_v56 = vld [vmem:[%s17041_s20 + $0x6f0] sm:$0xff]  }
 0x1fe   : > { %14446 = vmatprep.subr.bf16.mxu0 %v15723_v0  ;;  %v4879_v61 = vcombine.high %v17685_v57, %v17685_v57  ;;  %v15758_v0 = vld [vmem:[%s17041_s20 + $0x7c0] sm:$0xff]  }
 0x1ff   : > { %14439 = vmatpush3.bf16.msra.mxu1 %v15722_v45  ;;  %v15755_v45 = vld [vmem:[%s17041_s20 + $0x740] sm:$0xff]  }
 0x200   : > { %11223 = vmatmul.mubr.bf16.vlgmr.msra.gmra.mrb[20].mxu0 %v4844_v4  ;;  %14468 = vmatprep.subr.bf16.mxu1 %v15725_v5  ;;  %v15761_v4 = vld [vmem:[%s17041_s20 + $0x708] sm:$0xff]   ;;  %v4908_v5 = vcombine.high %v4886_v63, %v4886_v63 }
 0x201   : > { %14447 = vmatpush3.bf16.msra.mxu0 %v15724_v1  ;;  %11302 = vmatprep.mubr.bf16.mxu0 %v4900_v2  ;;  %v4907_v1 = vrot.slane %v4879_v61, %v17056_v7  ;;  %v15759_v2 = vld [vmem:[%s17041_s20 + $0x780] sm:$0xff]   ;;  %v13226_v61 = vld [vmem:[%s17054_s9 + $0x97] sm:$0x3] }
 0x202   : > { %11263 = vmatmul.mubr.bf16.vlgmr.msra.gmra.mrb[20].mxu1 %v4860_v15  ;;  %14448 = vmatprep.subr.bf16.mxu0 %v15727_v31  ;;  %v15768_v31 = vld [vmem:[%s17041_s20 + $0x758] sm:$0xff]   ;;  %v13214_v15 = vld [vmem:[%s17054_s9 + $0x8b] sm:$0x3] }
 0x203   : > { %14469 = vmatpush3.bf16.msra.mxu1 %v15726_v9  ;;  %11342 = vmatprep.mubr.bf16.mxu1 %v4910_v47  ;;  %v4911_v44 = vcombine.high %v4907_v1, %v4907_v1  ;;  %v15764_v9 = vld [vmem:[%s17041_s20 + $0x750] sm:$0xff]   ;;  %v1261_v18 = vpack.c.bf16 %v13214_v15, %v13214_v15  ;;  %v4893_v15 = vrot.slane %v17685_v57, %v17056_v7 }
 0x204   : > { %14470 = vmatprep.subr.bf16.mxu1 %v15729_v16  ;;  %v13212_v16 = vld [vmem:[%s17054_s9 + $0x89] sm:$0x3] }
 0x205   : > { %14449 = vmatpush3.bf16.msra.mxu0 %v15728_v37  ;;  %v15769_v37 = vld [vmem:[%s17041_s20 + $0x718] sm:$0xff]   ;;  %1262 = vst.msk [vmem:[#allocation2 + $0x29] sm:$0x1] %vm273_vm0, %v1261_v18  ;;  %v15791_v18 = vld [vmem:[%s17041_s20 + $0x880] sm:$0xff]  }
 0x206   : > { %14450 = vmatprep.subr.bf16.mxu0 %v15731_v23  ;;  %v15774_v23 = vld [vmem:[%s17041_s20 + $0x7e0] sm:$0xff]  }
 0x207   : > { %14471 = vmatpush3.bf16.msra.mxu1 %v15730_v19  ;;  %v1237_v19 = vpack.c.bf16 %v13212_v16, %v13212_v16  ;;  %v15790_v16 = vld [vmem:[%s17041_s20 + $0x8c0] sm:$0xff]  }
 0x208   : > { %14472 = vmatprep.subr.bf16.mxu1 %v15733_v27  ;;  %v13216_v27 = vld [vmem:[%s17054_s9 + $0x8d] sm:$0x3] }
 0x209   : > { %14451 = vmatpush3.bf16.msra.mxu0 %v15732_v26  ;;  %1238 = vst.msk [vmem:[#allocation2 + $0x28] sm:$0x1] %vm273_vm0, %v1237_v19  ;;  %v13218_v26 = vld [vmem:[%s17054_s9 + $0x8f] sm:$0x3]  ;;  %v1285_v30 = vpack.c.bf16 %v13216_v27, %v13216_v27  ;;  %v15792_v19 = vld [vmem:[%s17041_s20 + $0x848] sm:$0xff]  }
 0x20a   : > { %14452 = vmatprep.subr.bf16.mxu0 %v15735_v36  ;;  %v1309_v29 = vpack.c.bf16 %v13218_v26, %v13218_v26  ;;  %v15778_v36 = vld [vmem:[%s17041_s20 + $0x7e8] sm:$0xff]   ;;  %v4909_v26 = vcombine.high %v4893_v15, %v4893_v15 }
 0x20b   : > { %14473 = vmatpush3.bf16.msra.mxu1 %v15734_v34  ;;  %v15777_v34 = vld [vmem:[%s17041_s20 + $0x728] sm:$0xff]   ;;  %1286 = vst.msk [vmem:[#allocation2 + $0x2a] sm:$0x1] %vm273_vm0, %v1285_v30 }
 0x20c   : > { %14474 = vmatprep.subr.bf16.mxu1 %v15737_v39  ;;  %1310 = vst.msk [vmem:[#allocation2 + $0x2b] sm:$0x1] %vm273_vm0, %v1309_v29  ;;  %v15780_v39 = vld [vmem:[%s17041_s20 + $0x770] sm:$0xff]   ;;  %v15794_v27 = vld [vmem:[%s17041_s20 + $0x8c8] sm:$0xff]  }
 0x20d   : > { %14453 = vmatpush3.bf16.msra.mxu0 %v15736_v32  ;;  %v15779_v32 = vld [vmem:[%s17041_s20 + $0x7a8] sm:$0xff]  }
 0x20e   : > { %14454 = vmatprep.subr.bf16.mxu0 %v15739_v42  ;;  %v13297_v42 = vld [vmem:[#allocation13] ss:$0 sm:$0xff]  ;;  %v15795_v29 = vld [vmem:[%s17041_s20 + $0x888] sm:$0xff]  }
 0x20f   : > { %14475 = vmatpush3.bf16.msra.mxu1 %v15738_v41 }
 0x210   : > { %14476 = vmatprep.subr.bf16.mxu1 %v15741_v48  ;;  %v1257_v47 = vpop.permute.xlu0 %1256  ;;  %v13220_v48 = vld [vmem:[%s17054_s9 + $0x91] sm:$0x3] }
 0x211   : > { %14455 = vmatpush3.bf16.msra.mxu0 %v15740_v43  ;;  %1259 = vst.msk [vmem:[#allocation2 + $0x28] sm:$0x1] %vm295_vm1, %v1257_v47  ;;  %v1357_v43 = vpack.c.bf16 %v13222_v40, %v13222_v40  ;;  %v15789_v47 = vld [vmem:[%s17041_s20 + $0x800] sm:$0xff]   ;;  %v15797_v40 = vld [vmem:[%s17041_s20 + $0x810] sm:$0xff]  }
 0x212   : > { %14456 = vmatprep.subr.bf16.mxu0 %v15743_v49 }
 0x213   : > { %14477 = vmatpush3.bf16.msra.mxu1 %v15742_v35  ;;  %1358 = vst.msk [vmem:[#allocation2 + $0x2d] sm:$0x1] %vm273_vm0, %v1357_v43  ;;  %v15798_v43 = vld [vmem:[%s17041_s20 + $0x8d0] sm:$0xff]  }
 0x214   : > { %14478 = vmatprep.subr.bf16.mxu1 %v15745_v51  ;;  %v17740_v51 = vrot.slane %v17727_v38, %v17056_v7 }
 0x215   : > { %14457 = vmatpush3.bf16.msra.mxu0 %v15744_v50  ;;  %v15781_v50 = vld [vmem:[%s17041_s20 + $0x730] sm:$0xff]  }
 0x216   : > { %14458 = vmatprep.subr.bf16.mxu0 %v15747_v54  ;;  %v1281_v13 = vpop.permute.xlu1 %1280  ;;  %v15782_v54 = vld [vmem:[%s17041_s20 + $0x7f0] sm:$0xff]  }
 0x217   : > { %14479 = vmatpush3.bf16.msra.mxu1 %v15746_v52  ;;  %1283 = vst.msk [vmem:[#allocation2 + $0x29] sm:$0x1] %vm295_vm1, %v1281_v13  ;;  %v1333_v52 = vpack.c.bf16 %v13220_v48, %v13220_v48 }
 0x218   : > { %14480 = vmatprep.subr.bf16.mxu1 %v15749_v56  ;;  %v1305_v24 = vpop.permute.xlu0 %1304 }
 0x219   : > { %14459 = vmatpush3.bf16.msra.mxu0 %v15748_v55  ;;  %1307 = vst.msk [vmem:[#allocation2 + $0x2a] sm:$0x1] %vm295_vm1, %v1305_v24 }
 0x21a   : > { %14460 = vmatprep.subr.bf16.mxu0 %v15751_v58  ;;  %v1329_v22 = vpop.permute.xlu1 %1328  ;;  %v15783_v58 = vld [vmem:[%s17041_s20 + $0x7b0] sm:$0xff]   ;;  %1334 = vst.msk [vmem:[#allocation2 + $0x2c] sm:$0x1] %vm273_vm0, %v1333_v52 }
 0x21b   : > { %14481 = vmatpush3.bf16.msra.mxu1 %v15750_v46  ;;  %1331 = vst.msk [vmem:[#allocation2 + $0x2b] sm:$0x1] %vm295_vm1, %v1329_v22  ;;  %v13249_v22 = vld [vmem:[%s17054_s9 + $0x3f] sm:$0x3] }
 0x21c   : > { %14482 = vmatprep.subr.bf16.mxu1 %v15753_v59  ;;  %v1675_v57 = vpack.c.bf16 %v13249_v22, %v13249_v22 }
 0x21d   : > { %14461 = vmatpush3.bf16.msra.mxu0 %v15752_v33  ;;  %v1353_v35 = vpop.permute.xlu0 %1352  ;;  %v15784_v33 = vld [vmem:[%s17041_s20 + $0x778] sm:$0xff]  }
 0x21e   : > { %14490 = vmatprep.subr.bf16.mxu0 %v15755_v45  ;;  %v1377_v41 = vpop.permute.xlu1 %1376  ;;  %1355 = vst.msk [vmem:[#allocation2 + $0x2c] sm:$0x1] %vm295_vm1, %v1353_v35 }
 0x21f   : > { %14483 = vmatpush3.bf16.msra.mxu1 %v15754_v60  ;;  %1379 = vst.msk [vmem:[#allocation2 + $0x2d] sm:$0x1] %vm295_vm1, %v1377_v41 }
 0x220   : > { %11303 = vmatmul.mubr.bf16.vlgmr.msra.gmra.mrb[24].mxu0 %v4886_v63  ;;  %14512 = vmatprep.subr.bf16.mxu1 %v15758_v0  ;;  %v15785_v0 = vld [vmem:[%s17041_s20 + $0x738] sm:$0xff]  }
 0x221   : > { %14491 = vmatpush3.bf16.msra.mxu0 %v15756_v62  ;;  %11382 = vmatprep.mubr.bf16.mxu0 %v4907_v1  ;;  %v4927_v1 = vcombine.high %v17740_v51, %v17740_v51 }
 0x222   : > { %11343 = vmatmul.mubr.bf16.vlgmr.msra.gmra.mrb[24].mxu1 %v4908_v5  ;;  %14492 = vmatprep.subr.bf16.mxu0 %v15760_v3 }
 0x223   : > { %14513 = vmatpush3.bf16.msra.mxu1 %v15759_v2  ;;  %11422 = vmatprep.mubr.bf16.mxu1 %v4911_v44  ;;  %v1405_v2 = vpack.c.bf16 %v13226_v61, %v13226_v61  ;;  %v15803_v61 = vld [vmem:[%s17041_s20 + $0x898] sm:$0xff]  }
 0x224   : > { %14514 = vmatprep.subr.bf16.mxu1 %v15762_v6  ;;  %v15786_v6 = vld [vmem:[%s17041_s20 + $0x7f8] sm:$0xff]  }
 0x225   : > { %14493 = vmatpush3.bf16.msra.mxu0 %v15761_v4  ;;  %v1425_v3 = vpop.permute.xlu1 %1424  ;;  %v13224_v4 = vld [vmem:[%s17054_s9 + $0x95] sm:$0x3]  ;;  %1406 = vst.msk [vmem:[#allocation2 + $0x2f] sm:$0x1] %vm273_vm0, %v1405_v2  ;;  %v15806_v2 = vld [vmem:[%s17041_s20 + $0x8e0] sm:$0xff]  }
 0x226   : > { %14494 = vmatprep.subr.bf16.mxu0 %v15764_v9  ;;  %v1381_v44 = vpack.c.bf16 %v13224_v4, %v13224_v4  ;;  %1427 = vst.msk [vmem:[#allocation2 + $0x2f] sm:$0x1] %vm295_vm1, %v1425_v3  ;;  %v15807_v4 = vld [vmem:[%s17041_s20 + $0x8a0] sm:$0xff]  }
 0x227   : > { %14515 = vmatpush3.bf16.msra.mxu1 %v15763_v8  ;;  %v1401_v8 = vpop.permute.xlu0 %1400 }
 0x228   : > { %14516 = vmatprep.subr.bf16.mxu1 %v15766_v11  ;;  %v13247_v11 = vld [vmem:[%s17054_s9 + $0x3d] sm:$0x3]  ;;  %1382 = vst.msk [vmem:[#allocation2 + $0x2e] sm:$0x1] %vm273_vm0, %v1381_v44  ;;  %v15809_v44 = vld [vmem:[%s17041_s20 + $0x828] sm:$0xff]  }
 0x229   : > { %14495 = vmatpush3.bf16.msra.mxu0 %v15765_v10  ;;  %v15787_v10 = vld [vmem:[%s17041_s20 + $0x7b8] sm:$0xff]   ;;  %v1651_v13 = vpack.c.bf16 %v13247_v11, %v13247_v11  ;;  %1403 = vst.msk [vmem:[#allocation2 + $0x2e] sm:$0x1] %vm295_vm1, %v1401_v8  ;;  %v15810_v8 = vld [vmem:[%s17041_s20 + $0x8e8] sm:$0xff]   ;;  %v4912_v11 = vcombine.high %v17727_v38, %v17727_v38 }
 0x22a   : > { %14496 = vmatprep.subr.bf16.mxu0 %v15768_v31  ;;  %v15788_v31 = vld [vmem:[%s17041_s20 + $0x840] sm:$0xff]  }
 0x22b   : > { %14517 = vmatpush3.bf16.msra.mxu1 %v15767_v12  ;;  %v13245_v12 = vld [vmem:[%s17054_s9 + $0x3b] sm:$0x3]  ;;  %v17829_v38 = vrot.slane %v4912_v11, %v17056_v7  ;;  %v13234_v11 = vld [vmem:[%s17054_s9 + $0x9f] sm:$0x3] }
 0x22c   : > { %14518 = vmatprep.subr.bf16.mxu1 %v15770_v14  ;;  %v4949_v14 = vrot.slane %v4927_v1, %v17056_v7  ;;  %v15805_v1 = vld [vmem:[%s17041_s20 + $0x820] sm:$0xff]  }
 0x22d   : > { %14497 = vmatpush3.bf16.msra.mxu0 %v15769_v37  ;;  %v1627_v37 = vpack.c.bf16 %v13245_v12, %v13245_v12  ;;  %v15812_v12 = vld [vmem:[%s17041_s20 + $0x870] sm:$0xff]  }
 0x22e   : > { %14498 = vmatprep.subr.bf16.mxu0 %v15772_v20  ;;  %v4959_v24 = vcombine.high %v4949_v14, %v4949_v14 }
 0x22f   : > { %14519 = vmatpush3.bf16.msra.mxu1 %v15771_v17  ;;  %v1659_v17 = vrot.slane %v1651_v13, %v17056_v7  ;;  %v1635_v20 = vrot.slane %v1627_v37, %v17056_v7  ;;  %v15813_v13 = vld [vmem:[%s17041_s20 + $0x830] sm:$0xff]  }
 0x230   : > { %14520 = vmatprep.subr.bf16.mxu1 %v15774_v23  ;;  %v15793_v23 = vld [vmem:[%s17041_s20 + $0x808] sm:$0xff]  }
 0x231   : > { %14499 = vmatpush3.bf16.msra.mxu0 %v15773_v21  ;;  %v13251_v21 = vld [vmem:[%s17054_s9 + $0x41] sm:$0x3]  ;;  %v1642_v30 = vrot.slane %v1635_v20, %v17056_v7 }
 0x232   : > { %14500 = vmatprep.subr.bf16.mxu0 %v15776_v28  ;;  %v1666_v28 = vrot.slane %v1659_v17, %v17056_v7  ;;  %v15815_v17 = vld [vmem:[%s17041_s20 + $0x8b0] sm:$0xff]  }
 0x233   : > { %14521 = vmatpush3.bf16.msra.mxu1 %v15775_v25  ;;  %v14198_v49 = vpop.f32.mrb[0].mxu0  ;;  %v1699_v25 = vpack.c.bf16 %v13251_v21, %v13251_v21  ;;  %1643 = vrot.lane.b32.xlu0 %v1642_v30, %s16688_s4  ;;  %v4935_v30 = vrot.slane %v17740_v51, %v17056_v7 }
 0x234   : > { %v14199_v53 = vpop.f32.mrb[1].mxu0  ;;  %14522 = vmatprep.subr.bf16.mxu1 %v15778_v36  ;;  %v1683_v36 = vrot.slane %v1675_v57, %v17056_v7  ;;  %1667 = vrot.lane.b32.xlu1 %v1666_v28, %s16688_s4  ;;  %v15818_v57 = vld [vmem:[%s17041_s20 + $0x8f8] sm:$0xff]   ;;  %v4928_v28 = vcombine.high %v17829_v38, %v17829_v38 }
 0x235   : > { %v14200_v55 = vadd.f32 %v14199_v53, %v14198_v49  ;;  %14501 = vmatpush3.bf16.msra.mxu0 %v15777_v34  ;;  %v14201_v56 = vpop.f32.mrb[2].mxu0  ;;  %v14220_v46 = vpop.f32.mrb[0].mxu1  ;;  %v1707_v34 = vrot.slane %v1699_v25, %v17056_v7  ;;  %v15799_v49 = vld [vmem:[%s17041_s20 + $0x890] sm:$0xff]   ;;  %v15800_v53 = vld [vmem:[%s17041_s20 + $0x858] sm:$0xff]  }
 0x236   : > { %v14202_v59 = vpop.f32.mrb[3].mxu0  ;;  %v14221_v60 = vpop.f32.mrb[1].mxu1  ;;  %14502 = vmatprep.subr.bf16.mxu0 %v15780_v39  ;;  %v13255_v39 = vld [vmem:[%s17054_s9 + $0x45] sm:$0x3]  ;;  %v13259_v56 = vld [vmem:[%s17054_s9 + $0x49] sm:$0x3] }
 0x237   : > { %v10825_v45 = vadd.f32 %v14200_v55, %v13297_v42  ;;  %v14222_v62 = vadd.f32 %v14221_v60, %v14220_v46  ;;  %14523 = vmatpush3.bf16.msra.mxu1 %v15779_v32  ;;  %v14223_v63 = vpop.f32.mrb[2].mxu1  ;;  %v15796_v32 = vld [vmem:[%s17041_s20 + $0x850] sm:$0xff]   ;;  %v1747_v41 = vpack.c.bf16 %v13255_v39, %v13255_v39  ;;  %v13253_v42 = vld [vmem:[%s17054_s9 + $0x43] sm:$0x3]  ;;  %v1714_v48 = vrot.slane %v1707_v34, %v17056_v7  ;;  %v15801_v55 = vld [vmem:[%s17041_s20 + $0x818] sm:$0xff]  }
 0x238   : > { %v14224_v5 = vpop.f32.mrb[3].mxu1  ;;  %14524 = vmatprep.subr.bf16.mxu1 %v15782_v54  ;;  %v1723_v35 = vpack.c.bf16 %v13253_v42, %v13253_v42  ;;  %v13257_v46 = vld [vmem:[%s17054_s9 + $0x47] sm:$0x3]  ;;  %v1795_v59 = vpack.c.bf16 %v13259_v56, %v13259_v56  ;;  %v15823_v34 = vld [vmem:[%s17041_s20 + $0x9c0] sm:$0xff]  }
 0x239   : > { %v17755_v9 = vadd.f32 %v14222_v62, %v10825_v45  ;;  %14503 = vmatpush3.bf16.msra.mxu0 %v15781_v50  ;;  %v1690_v50 = vrot.slane %v1683_v36, %v17056_v7  ;;  %v1755_v52 = vrot.slane %v1747_v41, %v17056_v7  ;;  %1715 = vrot.lane.b32.xlu1 %v1714_v48, %s16688_s4  ;;  %v15804_v62 = vld [vmem:[%s17041_s20 + $0x860] sm:$0xff]   ;;  %v15825_v39 = vld [vmem:[%s17041_s20 + $0x948] sm:$0xff]   ;;  %v15829_v48 = vld [vmem:[%s17041_s20 + $0x950] sm:$0xff]  }
 0x23a   : > { %14504 = vmatprep.subr.bf16.mxu0 %v15784_v33  ;;  %v1731_v54 = vrot.slane %v1723_v35, %v17056_v7  ;;  %v1771_v60 = vpack.c.bf16 %v13257_v46, %v13257_v46  ;;  %v1803_v63 = vrot.slane %v1795_v59, %v17056_v7  ;;  %v4956_v36 = vrot.slane %v4928_v28, %v17056_v7  ;;  %v15827_v42 = vld [vmem:[%s17041_s20 + $0x9c8] sm:$0xff]   ;;  %v15830_v35 = vld [vmem:[%s17041_s20 + $0x910] sm:$0xff]   ;;  %v15837_v56 = vld [vmem:[%s17041_s20 + $0x960] sm:$0xff]  }
 0x23b   : > { %14525 = vmatpush3.bf16.msra.mxu1 %v15783_v58  ;;  %v15802_v58 = vld [vmem:[%s17041_s20 + $0x8d8] sm:$0xff]   ;;  %v1762_v33 = vrot.slane %v1755_v52, %v17056_v7  ;;  %1691 = vrot.lane.b32.xlu0 %v1690_v50, %s16688_s4  ;;  %v4957_v41 = vcombine.high %v4935_v30, %v4935_v30  ;;  %v15832_v50 = vld [vmem:[%s17041_s20 + $0x990] sm:$0xff]   ;;  %v15838_v46 = vld [vmem:[%s17041_s20 + $0x920] sm:$0xff]  }
 0x23c   : > { %14526 = vmatprep.subr.bf16.mxu1 %v15786_v6  ;;  %v1738_v45 = vrot.slane %v1731_v54, %v17056_v7  ;;  %v1810_v3 = vrot.slane %v1803_v63, %v17056_v7  ;;  %v15808_v6 = vld [vmem:[%s17041_s20 + $0x868] sm:$0xff]   ;;  %v4960_v51 = vcombine.high %v4956_v36, %v4956_v36  ;;  %v15833_v52 = vld [vmem:[%s17041_s20 + $0x958] sm:$0xff]   ;;  %v15840_v59 = vld [vmem:[%s17041_s20 + $0x9a0] sm:$0xff]  }
 0x23d   : > { %14505 = vmatpush3.bf16.msra.mxu0 %v15785_v0  ;;  %v1779_v0 = vrot.slane %v1771_v60, %v17056_v7  ;;  %1763 = vrot.lane.b32.xlu1 %v1762_v33, %s16688_s4  ;;  %v15835_v54 = vld [vmem:[%s17041_s20 + $0x9d8] sm:$0xff]   ;;  %v15841_v60 = vld [vmem:[%s17041_s20 + $0x968] sm:$0xff]  }
 0x23e   : > { %14534 = vmatprep.subr.bf16.mxu0 %v15788_v31  ;;  %v15851_v28 = vld [vmem:[%s17041_s20 + $0x9f8] sm:$0xff]  }
 0x23f   : > { %14527 = vmatpush3.bf16.msra.mxu1 %v15787_v10  ;;  %1739 = vrot.lane.b32.xlu0 %v1738_v45, %s16688_s4  ;;  %v1786_v5 = vrot.slane %v1779_v0, %v17056_v7  ;;  %v15811_v10 = vld [vmem:[%s17041_s20 + $0x8a8] sm:$0xff]   ;;  %v13230_v45 = vld [vmem:[%s17054_s9 + $0x9b] sm:$0x3]  ;;  %v13228_v0 = vld [vmem:[%s17054_s9 + $0x99] sm:$0x3] }
 0x240   : > { %11383 = vmatmul.mubr.bf16.vlgmr.msra.gmra.mrb[28].mxu0 %v4893_v15  ;;  %14556 = vmatprep.subr.bf16.mxu1 %v15790_v16  ;;  %v1453_v63 = vpack.c.bf16 %v13230_v45, %v13230_v45 }
 0x241   : > { %14535 = vmatpush3.bf16.msra.mxu0 %v15789_v47  ;;  %11462 = vmatprep.mubr.bf16.mxu0 %v4949_v14  ;;  %v15814_v47 = vld [vmem:[%s17041_s20 + $0x8f0] sm:$0xff]  }
 0x242   : > { %11423 = vmatmul.mubr.bf16.vlgmr.msra.gmra.mrb[28].mxu1 %v4909_v26  ;;  %14536 = vmatprep.subr.bf16.mxu0 %v15792_v19  ;;  %1454 = vst.msk [vmem:[#allocation2 + $0x31] sm:$0x1] %vm273_vm0, %v1453_v63 }
 0x243   : > { %14557 = vmatpush3.bf16.msra.mxu1 %v15791_v18  ;;  %11502 = vmatprep.mubr.bf16.mxu1 %v4959_v24  ;;  %v15816_v18 = vld [vmem:[%s17041_s20 + $0x878] sm:$0xff]  }
 0x244   : > { %14558 = vmatprep.subr.bf16.mxu1 %v15794_v27  ;;  %1811 = vrot.lane.b32.xlu1 %v1810_v3, %s16688_s4  ;;  %v15817_v24 = vld [vmem:[%s17041_s20 + $0x838] sm:$0xff]   ;;  %v15844_v3 = vld [vmem:[%s17041_s20 + $0x9a8] sm:$0xff]  }
 0x245   : > { %14537 = vmatpush3.bf16.msra.mxu0 %v15793_v23  ;;  %1787 = vrot.lane.b32.xlu0 %v1786_v5, %s16688_s4  ;;  %v15819_v27 = vld [vmem:[%s17041_s20 + $0x8b8] sm:$0xff]   ;;  %v15845_v5 = vld [vmem:[%s17041_s20 + $0x970] sm:$0xff]  }
 0x246   : > { %14538 = vmatprep.subr.bf16.mxu0 %v15796_v32  ;;  %v15824_v32 = vld [vmem:[%s17041_s20 + $0x980] sm:$0xff]  }
 0x247   : > { %14559 = vmatpush3.bf16.msra.mxu1 %v15795_v29  ;;  %v15821_v29 = vld [vmem:[%s17041_s20 + $0x900] sm:$0xff]  }
 0x248   : > { %14560 = vmatprep.subr.bf16.mxu1 %v15798_v43  ;;  %v15828_v43 = vld [vmem:[%s17041_s20 + $0x988] sm:$0xff]  }
 0x249   : > { %14539 = vmatpush3.bf16.msra.mxu0 %v15797_v40  ;;  %v15826_v40 = vld [vmem:[%s17041_s20 + $0x908] sm:$0xff]  }
 0x24a   : > { %14540 = vmatprep.subr.bf16.mxu0 %v15800_v53  ;;  %v15834_v53 = vld [vmem:[%s17041_s20 + $0x918] sm:$0xff]  }
 0x24b   : > { %14561 = vmatpush3.bf16.msra.mxu1 %v15799_v49  ;;  %v15831_v49 = vld [vmem:[%s17041_s20 + $0x9d0] sm:$0xff]  }
 0x24c   : > { %14562 = vmatprep.subr.bf16.mxu1 %v15802_v58  ;;  %v15839_v58 = vld [vmem:[%s17041_s20 + $0x9e0] sm:$0xff]  }
 0x24d   : > { %14541 = vmatpush3.bf16.msra.mxu0 %v15801_v55  ;;  %v15836_v55 = vld [vmem:[%s17041_s20 + $0x998] sm:$0xff]  }
 0x24e   : > { %14542 = vmatprep.subr.bf16.mxu0 %v15804_v62  ;;  %v15842_v62 = vld [vmem:[%s17041_s20 + $0x928] sm:$0xff]  }
 0x24f   : > { %14563 = vmatpush3.bf16.msra.mxu1 %v15803_v61  ;;  %v15843_v61 = vld [vmem:[%s17041_s20 + $0x9e8] sm:$0xff]  }
 0x250   : > { %14564 = vmatprep.subr.bf16.mxu1 %v15806_v2  ;;  %v1429_v2 = vpack.c.bf16 %v13228_v0, %v13228_v0  ;;  %v15862_v0 = vld [vmem:[%s17041_s20 + $0xa10] sm:$0xff]  }
 0x251   : > { %14543 = vmatpush3.bf16.msra.mxu0 %v15805_v1  ;;  %v17867_v1 = vld [vmem:[#allocation2 + $0x28] sm:$0xff] }
 0x252   : > { %14544 = vmatprep.subr.bf16.mxu0 %v15808_v6  ;;  %1430 = vst.msk [vmem:[#allocation2 + $0x30] sm:$0x1] %vm273_vm0, %v1429_v2 }
 0x253   : > { %v14242_v31 = vpop.f32.mrb[4].mxu0  ;;  %14565 = vmatpush3.bf16.msra.mxu1 %v15807_v4 }
 0x254   : > { %v14243_v37 = vpop.f32.mrb[5].mxu0  ;;  %14566 = vmatprep.subr.bf16.mxu1 %v15810_v8  ;;  %v15846_v8 = vld [vmem:[%s17041_s20 + $0x930] sm:$0xff]  }
 0x255   : > { %v14244_v14 = vadd.f32 %v14243_v37, %v14242_v31  ;;  %v14245_v15 = vpop.f32.mrb[6].mxu0  ;;  %v14264_v16 = vpop.f32.mrb[4].mxu1  ;;  %14545 = vmatpush3.bf16.msra.mxu0 %v15809_v44  ;;  %v1501_v37 = vpack.c.bf16 %v13234_v11, %v13234_v11 }
 0x256   : > { %v14246_v19 = vpop.f32.mrb[7].mxu0  ;;  %v14265_v20 = vpop.f32.mrb[5].mxu1  ;;  %14546 = vmatprep.subr.bf16.mxu0 %v15812_v12  ;;  %v13232_v12 = vld [vmem:[%s17054_s9 + $0x9d] sm:$0x3] }
 0x257   : > { %v10905_v21 = vadd.f32 %v14244_v14, %v17755_v9  ;;  %v14266_v22 = vadd.f32 %v14265_v20, %v14264_v16  ;;  %v14267_v23 = vpop.f32.mrb[6].mxu1  ;;  %14567 = vmatpush3.bf16.msra.mxu1 %v15811_v10  ;;  %v15820_v9 = vld [vmem:[%s17041_s20 + $0x940] sm:$0xff]   ;;  %v1473_v33 = vpop.permute.xlu1 %1472  ;;  %v17877_v10 = vrot.slane %v17867_v1, %v17056_v7  ;;  %v15848_v19 = vld [vmem:[%s17041_s20 + $0x9b0] sm:$0xff]   ;;  %v15849_v20 = vld [vmem:[%s17041_s20 + $0x978] sm:$0xff]   ;;  %1502 = vst.msk [vmem:[#allocation2 + $0x33] sm:$0x1] %vm273_vm0, %v1501_v37 }
 0x258   : > { %v14268_v25 = vpop.f32.mrb[7].mxu1  ;;  %14568 = vmatprep.subr.bf16.mxu1 %v15814_v47  ;;  %1475 = vst.msk [vmem:[#allocation2 + $0x31] sm:$0x1] %vm295_vm1, %v1473_v33  ;;  %v1477_v47 = vpack.c.bf16 %v13232_v12, %v13232_v12 }
 0x259   : > { %v17834_v26 = vadd.f32 %v14266_v22, %v10905_v21  ;;  %14547 = vmatpush3.bf16.msra.mxu0 %v15813_v13  ;;  %v1449_v4 = vpop.permute.xlu0 %1448  ;;  %v15847_v13 = vld [vmem:[%s17041_s20 + $0x9f0] sm:$0xff]   ;;  %v4976_v25 = vcombine.high %v17877_v10, %v17877_v10 }
 0x25a   : > { %14548 = vmatprep.subr.bf16.mxu0 %v15816_v18  ;;  %1451 = vst.msk [vmem:[#allocation2 + $0x30] sm:$0x1] %vm295_vm1, %v1449_v4 }
 0x25b   : > { %14569 = vmatpush3.bf16.msra.mxu1 %v15815_v17  ;;  %1478 = vst.msk [vmem:[#allocation2 + $0x32] sm:$0x1] %vm273_vm0, %v1477_v47 }
 0x25c   : > { %14570 = vmatprep.subr.bf16.mxu1 %v15818_v57 }
 0x25d   : > { %14549 = vmatpush3.bf16.msra.mxu0 %v15817_v24  ;;  %v15850_v24 = vld [vmem:[%s17041_s20 + $0x938] sm:$0xff]  }
 0x25e   : > { %14578 = vmatprep.subr.bf16.mxu0 %v15820_v9 }
 0x25f   : > { %14571 = vmatpush3.bf16.msra.mxu1 %v15819_v27  ;;  %v1521_v6 = vpop.permute.xlu1 %1520 }
 0x260   : > { %11463 = vmatmul.mubr.bf16.vlgmr.msra.gmra.mrb[32].mxu0 %v4935_v30  ;;  %14600 = vmatprep.subr.bf16.mxu1 %v15823_v34  ;;  %1523 = vst.msk [vmem:[#allocation2 + $0x33] sm:$0x1] %vm295_vm1, %v1521_v6  ;;  %v15852_v30 = vld [vmem:[%s17041_s20 + $0x9b8] sm:$0xff]   ;;  %v13265_v6 = vld [vmem:[%s17054_s9 + $0x4f] sm:$0x3] }
 0x261   : > { %14579 = vmatpush3.bf16.msra.mxu0 %v15821_v29  ;;  %11542 = vmatprep.mubr.bf16.mxu0 %v4956_v36  ;;  %v13236_v36 = vld [vmem:[%s17054_s9 + $0xa1] sm:$0x3]  ;;  %v1867_v12 = vpack.c.bf16 %v13265_v6, %v13265_v6  ;;  %v4984_v6 = vrot.slane %v17877_v10, %v17056_v7 }
 0x262   : > { %11503 = vmatmul.mubr.bf16.vlgmr.msra.gmra.mrb[32].mxu1 %v4957_v41  ;;  %14580 = vmatprep.subr.bf16.mxu0 %v15825_v39  ;;  %v1525_v39 = vpack.c.bf16 %v13236_v36, %v13236_v36  ;;  %v4998_v41 = vrot.slane %v4976_v25, %v17056_v7  ;;  %v15872_v36 = vld [vmem:[%s17041_s20 + $0xaa0] sm:$0xff]  }
 0x263   : > { %14601 = vmatpush3.bf16.msra.mxu1 %v15824_v32  ;;  %11582 = vmatprep.mubr.bf16.mxu1 %v4960_v51  ;;  %v1497_v57 = vpop.permute.xlu0 %1496  ;;  %v15853_v32 = vld [vmem:[%s17041_s20 + $0xa40] sm:$0xff]   ;;  %v4942_v51 = vrot.slane %v17829_v38, %v17056_v7  ;;  %v1875_v47 = vrot.slane %v1867_v12, %v17056_v7  ;;  %v15890_v12 = vld [vmem:[%s17041_s20 + $0xb48] sm:$0xff]  }
 0x264   : > { %14602 = vmatprep.subr.bf16.mxu1 %v15827_v42  ;;  %1499 = vst.msk [vmem:[#allocation2 + $0x32] sm:$0x1] %vm295_vm1, %v1497_v57  ;;  %v1569_v9 = vpop.permute.xlu1 %1568 }
 0x265   : > { %14581 = vmatpush3.bf16.msra.mxu0 %v15826_v40  ;;  %v15854_v40 = vld [vmem:[%s17041_s20 + $0xa00] sm:$0xff]   ;;  %1526 = vst.msk [vmem:[#allocation2 + $0x34] sm:$0x1] %vm273_vm0, %v1525_v39  ;;  %v4958_v33 = vcombine.high %v4942_v51, %v4942_v51  ;;  %v15874_v39 = vld [vmem:[%s17041_s20 + $0xa28] sm:$0xff]  }
 0x266   : > { %14582 = vmatprep.subr.bf16.mxu0 %v15829_v48  ;;  %v15856_v48 = vld [vmem:[%s17041_s20 + $0xa80] sm:$0xff]  }
 0x267   : > { %14603 = vmatpush3.bf16.msra.mxu1 %v15828_v43  ;;  %v1545_v42 = vpop.permute.xlu0 %1544  ;;  %v15855_v43 = vld [vmem:[%s17041_s20 + $0xac0] sm:$0xff]  }
 0x268   : > { %14604 = vmatprep.subr.bf16.mxu1 %v15831_v49  ;;  %1547 = vst.msk [vmem:[#allocation2 + $0x34] sm:$0x1] %vm295_vm1, %v1545_v42  ;;  %v13240_v49 = vld [vmem:[%s17054_s9 + $0xa5] sm:$0x3] }
 0x269   : > { %14583 = vmatpush3.bf16.msra.mxu0 %v15830_v35  ;;  %v13242_v35 = vld [vmem:[%s17054_s9 + $0x38] sm:$0x3]  ;;  %v1573_v38 = vpack.c.bf16 %v13240_v49, %v13240_v49  ;;  %v15876_v42 = vld [vmem:[%s17041_s20 + $0xaa8] sm:$0xff]  }
 0x26a   : > { %14584 = vmatprep.subr.bf16.mxu0 %v15833_v52  ;;  %v1600_v52 = vpack.c.bf16 %v13242_v35, %v13242_v35 }
 0x26b   : > { %14605 = vmatpush3.bf16.msra.mxu1 %v15832_v50  ;;  %v15857_v50 = vld [vmem:[%s17041_s20 + $0xa48] sm:$0xff]   ;;  %1574 = vst.msk [vmem:[#allocation2 + $0x36] sm:$0x1] %vm273_vm0, %v1573_v38  ;;  %v15879_v38 = vld [vmem:[%s17041_s20 + $0xaf0] sm:$0xff]  }
 0x26c   : > { %14606 = vmatprep.subr.bf16.mxu1 %v15835_v54  ;;  %v15858_v54 = vld [vmem:[%s17041_s20 + $0xa08] sm:$0xff]   ;;  %1601 = vst.msk [vmem:[#allocation2 + $0x37] sm:$0x1] %vm273_vm0, %v1600_v52 }
 0x26d   : > { %14585 = vmatpush3.bf16.msra.mxu0 %v15834_v53  ;;  %v1620_v53 = vpop.permute.xlu1 %1619 }
 0x26e   : > { %14586 = vmatprep.subr.bf16.mxu0 %v15837_v56  ;;  %v5008_v56 = vcombine.high %v4998_v41, %v4998_v41  ;;  %1622 = vst.msk [vmem:[#allocation2 + $0x37] sm:$0x1] %vm295_vm1, %v1620_v53 }
 0x26f   : > { %14607 = vmatpush3.bf16.msra.mxu1 %v15836_v55  ;;  %v15859_v55 = vld [vmem:[%s17041_s20 + $0xac8] sm:$0xff]  }
 0x270   : > { %14608 = vmatprep.subr.bf16.mxu1 %v15839_v58  ;;  %v13263_v58 = vld [vmem:[%s17054_s9 + $0x4d] sm:$0x3] }
 0x271   : > { %14587 = vmatpush3.bf16.msra.mxu0 %v15838_v46  ;;  %v1593_v46 = vpop.permute.xlu0 %1592 }
 0x272   : > { %14588 = vmatprep.subr.bf16.mxu0 %v15841_v60  ;;  %v13261_v60 = vld [vmem:[%s17054_s9 + $0x4b] sm:$0x3]  ;;  %1595 = vst.msk [vmem:[#allocation2 + $0x36] sm:$0x1] %vm295_vm1, %v1593_v46  ;;  %v15881_v46 = vld [vmem:[%s17041_s20 + $0xa78] sm:$0xff]  }
 0x273   : > { %v14286_v44 = vpop.f32.mrb[8].mxu0  ;;  %14609 = vmatpush3.bf16.msra.mxu1 %v15840_v59  ;;  %v1843_v59 = vpack.c.bf16 %v13263_v58, %v13263_v58  ;;  %v1819_v45 = vpack.c.bf16 %v13261_v60, %v13261_v60 }
 0x274   : > { %v14287_v31 = vpop.f32.mrb[9].mxu0  ;;  %14610 = vmatprep.subr.bf16.mxu1 %v15843_v61  ;;  %v15860_v61 = vld [vmem:[%s17041_s20 + $0xa88] sm:$0xff]  }
 0x275   : > { %v14288_v14 = vadd.f32 %v14287_v31, %v14286_v44  ;;  %v14289_v15 = vpop.f32.mrb[10].mxu0  ;;  %v14308_v16 = vpop.f32.mrb[8].mxu1  ;;  %14589 = vmatpush3.bf16.msra.mxu0 %v15842_v62  ;;  %v15861_v62 = vld [vmem:[%s17041_s20 + $0xa50] sm:$0xff]   ;;  %v1851_v63 = vrot.slane %v1843_v59, %v17056_v7  ;;  %v1827_v2 = vrot.slane %v1819_v45, %v17056_v7  ;;  %v15865_v31 = vld [vmem:[%s17041_s20 + $0xa58] sm:$0xff]  }
 0x276   : > { %v14290_v17 = vpop.f32.mrb[11].mxu0  ;;  %v14309_v18 = vpop.f32.mrb[9].mxu1  ;;  %14590 = vmatprep.subr.bf16.mxu0 %v15845_v5  ;;  %v13267_v5 = vld [vmem:[%s17054_s9 + $0x51] sm:$0x3]  ;;  %v15868_v15 = vld [vmem:[%s17041_s20 + $0xa98] sm:$0xff]  }
 0x277   : > { %v10985_v21 = vadd.f32 %v14288_v14, %v17834_v26  ;;  %v14310_v22 = vadd.f32 %v14309_v18, %v14308_v16  ;;  %v14311_v23 = vpop.f32.mrb[10].mxu1  ;;  %14611 = vmatpush3.bf16.msra.mxu1 %v15844_v3  ;;  %v13238_v26 = vld [vmem:[%s17054_s9 + $0xa3] sm:$0x3]  ;;  %v15863_v3 = vld [vmem:[%s17041_s20 + $0xad0] sm:$0xff]   ;;  %v1858_v4 = vrot.slane %v1851_v63, %v17056_v7  ;;  %v1891_v11 = vpack.c.bf16 %v13267_v5, %v13267_v5  ;;  %v15867_v14 = vld [vmem:[%s17041_s20 + $0xad8] sm:$0xff]  }
 0x278   : > { %v14312_v27 = vpop.f32.mrb[11].mxu1  ;;  %14612 = vmatprep.subr.bf16.mxu1 %v15847_v13  ;;  %v1549_v34 = vpack.c.bf16 %v13238_v26, %v13238_v26  ;;  %v15864_v44 = vld [vmem:[%s17041_s20 + $0xa90] sm:$0xff]   ;;  %v15866_v13 = vld [vmem:[%s17041_s20 + $0xa18] sm:$0xff]   ;;  %v1882_v17 = vrot.slane %v1875_v47, %v17056_v7  ;;  %v15870_v23 = vld [vmem:[%s17041_s20 + $0xa20] sm:$0xff]  }
 0x279   : > { %v17895_v29 = vadd.f32 %v14310_v22, %v10985_v21  ;;  %14591 = vmatpush3.bf16.msra.mxu0 %v15846_v8  ;;  %v1834_v8 = vrot.slane %v1827_v2, %v17056_v7  ;;  %1859 = vrot.lane.b32.xlu1 %v1858_v4, %s16688_s4  ;;  %v1899_v37 = vrot.slane %v1891_v11, %v17056_v7  ;;  %v13271_v18 = vld [vmem:[%s17054_s9 + $0x55] sm:$0x3]  ;;  %v15873_v27 = vld [vmem:[%s17041_s20 + $0xa68] sm:$0xff]   ;;  %v15886_v5 = vld [vmem:[%s17041_s20 + $0xb00] sm:$0xff]  }
 0x27a   : > { %14592 = vmatprep.subr.bf16.mxu0 %v15849_v20  ;;  %1550 = vst.msk [vmem:[#allocation2 + $0x35] sm:$0x1] %vm273_vm0, %v1549_v34  ;;  %v15869_v20 = vld [vmem:[%s17041_s20 + $0xa60] sm:$0xff]   ;;  %v1939_v21 = vpack.c.bf16 %v13271_v18, %v13271_v18  ;;  %v13273_v34 = vld [vmem:[%s17054_s9 + $0x57] sm:$0x3]  ;;  %v15893_v47 = vld [vmem:[%s17041_s20 + $0xb88] sm:$0xff]  }
 0x27b   : > { %14613 = vmatpush3.bf16.msra.mxu1 %v15848_v19  ;;  %1571 = vst.msk [vmem:[#allocation2 + $0x35] sm:$0x1] %vm295_vm1, %v1569_v9  ;;  %1835 = vrot.lane.b32.xlu0 %v1834_v8, %s16688_s4  ;;  %v1906_v16 = vrot.slane %v1899_v37, %v17056_v7  ;;  %v13269_v19 = vld [vmem:[%s17054_s9 + $0x53] sm:$0x3]  ;;  %v15889_v11 = vld [vmem:[%s17041_s20 + $0xb80] sm:$0xff]   ;;  %v15892_v37 = vld [vmem:[%s17041_s20 + $0xbc8] sm:$0xff]  }
 0x27c   : > { %14614 = vmatprep.subr.bf16.mxu1 %v15851_v28  ;;  %v1915_v22 = vpack.c.bf16 %v13269_v19, %v13269_v19  ;;  %v1947_v25 = vrot.slane %v1939_v21, %v17056_v7  ;;  %v13275_v28 = vld [vmem:[%s17054_s9 + $0x59] sm:$0x3] }
 0x27d   : > { %14593 = vmatpush3.bf16.msra.mxu0 %v15850_v24  ;;  %1907 = vrot.lane.b32.xlu1 %v1906_v16, %s16688_s4  ;;  %v15871_v24 = vld [vmem:[%s17041_s20 + $0xae0] sm:$0xff]   ;;  %v15896_v16 = vld [vmem:[%s17041_s20 + $0xbd0] sm:$0xff]   ;;  %v15898_v18 = vld [vmem:[%s17041_s20 + $0xb58] sm:$0xff]  }
 0x27e   : > { %14622 = vmatprep.subr.bf16.mxu0 %v15853_v32  ;;  %v1923_v57 = vrot.slane %v1915_v22, %v17056_v7  ;;  %v1954_v26 = vrot.slane %v1947_v25, %v17056_v7  ;;  %v1963_v32 = vpack.c.bf16 %v13273_v34, %v13273_v34  ;;  %v15899_v19 = vld [vmem:[%s17041_s20 + $0xb18] sm:$0xff]   ;;  %v15902_v22 = vld [vmem:[%s17041_s20 + $0xb60] sm:$0xff]  }
 0x27f   : > { %14615 = vmatpush3.bf16.msra.mxu1 %v15852_v30  ;;  %1883 = vrot.lane.b32.xlu0 %v1882_v17, %s16688_s4  ;;  %v1987_v30 = vpack.c.bf16 %v13275_v28, %v13275_v28  ;;  %v15897_v17 = vld [vmem:[%s17041_s20 + $0xb90] sm:$0xff]   ;;  %v15901_v21 = vld [vmem:[%s17041_s20 + $0xb98] sm:$0xff]   ;;  %v15905_v25 = vld [vmem:[%s17041_s20 + $0xba0] sm:$0xff]  }
 0x280   : > { %11543 = vmatmul.mubr.bf16.vlgmr.msra.gmra.mrb[36].mxu0 %v4942_v51  ;;  %14644 = vmatprep.subr.bf16.mxu1 %v15855_v43  ;;  %v1930_v9 = vrot.slane %v1923_v57, %v17056_v7  ;;  %v4961_v51 = vcombine.high %v17867_v1, %v17867_v1  ;;  %v1971_v43 = vrot.slane %v1963_v32, %v17056_v7  ;;  %v15906_v57 = vld [vmem:[%s17041_s20 + $0xb68] sm:$0xff]   ;;  %v15912_v32 = vld [vmem:[%s17041_s20 + $0xbf0] sm:$0xff]  }
 0x281   : > { %14623 = vmatpush3.bf16.msra.mxu0 %v15854_v40  ;;  %11622 = vmatprep.mubr.bf16.mxu0 %v4998_v41  ;;  %v15875_v40 = vld [vmem:[%s17041_s20 + $0xae8] sm:$0xff]   ;;  %v1995_v41 = vrot.slane %v1987_v30, %v17056_v7  ;;  %v15910_v30 = vld [vmem:[%s17041_s20 + $0xb70] sm:$0xff]  }
 0x282   : > { %11583 = vmatmul.mubr.bf16.vlgmr.msra.gmra.mrb[36].mxu1 %v4958_v33  ;;  %14624 = vmatprep.subr.bf16.mxu0 %v15857_v50  ;;  %v15878_v50 = vld [vmem:[%s17041_s20 + $0xa30] sm:$0xff]   ;;  %v1978_v52 = vrot.slane %v1971_v43, %v17056_v7  ;;  %v17975_v58 = vrot.slane %v4961_v51, %v17056_v7  ;;  %v15908_v28 = vld [vmem:[%s17041_s20 + $0xbe8] sm:$0xff]  }
 0x283   : > { %14645 = vmatpush3.bf16.msra.mxu1 %v15856_v48  ;;  %11662 = vmatprep.mubr.bf16.mxu1 %v5008_v56  ;;  %v15877_v48 = vld [vmem:[%s17041_s20 + $0xa70] sm:$0xff]   ;;  %v2002_v35 = vrot.slane %v1995_v41, %v17056_v7  ;;  %v15914_v41 = vld [vmem:[%s17041_s20 + $0xb78] sm:$0xff]  }
 0x284   : > { %14646 = vmatprep.subr.bf16.mxu1 %v15859_v55  ;;  %1955 = vrot.lane.b32.xlu1 %v1954_v26, %s16688_s4  ;;  %v15880_v56 = vld [vmem:[%s17041_s20 + $0xab0] sm:$0xff]   ;;  %v4977_v4 = vcombine.high %v17975_v58, %v17975_v58 }
 0x285   : > { %14625 = vmatpush3.bf16.msra.mxu0 %v15858_v54  ;;  %1931 = vrot.lane.b32.xlu0 %v1930_v9, %s16688_s4  ;;  %v18012_v26 = vld [vmem:[#allocation2 + $0x30] sm:$0xff]  ;;  %v15909_v9 = vld [vmem:[%s17041_s20 + $0xba8] sm:$0xff]  }
 0x286   : > { %14626 = vmatprep.subr.bf16.mxu0 %v15861_v62  ;;  %v15882_v62 = vld [vmem:[%s17041_s20 + $0xa38] sm:$0xff]   ;;  %v5005_v8 = vrot.slane %v4977_v4, %v17056_v7 }
 0x287   : > { %14647 = vmatpush3.bf16.msra.mxu1 %v15860_v61 }
 0x288   : > { %14648 = vmatprep.subr.bf16.mxu1 %v15863_v3  ;;  %2003 = vrot.lane.b32.xlu1 %v2002_v35, %s16688_s4  ;;  %v15884_v3 = vld [vmem:[%s17041_s20 + $0xab8] sm:$0xff]   ;;  %v5009_v10 = vcombine.high %v5005_v8, %v5005_v8 }
 0x289   : > { %14627 = vmatpush3.bf16.msra.mxu0 %v15862_v0  ;;  %1979 = vrot.lane.b32.xlu0 %v1978_v52, %s16688_s4  ;;  %v15883_v0 = vld [vmem:[%s17041_s20 + $0xaf8] sm:$0xff]  }
 0x28a   : > { %14628 = vmatprep.subr.bf16.mxu0 %v15865_v31  ;;  %v15891_v31 = vld [vmem:[%s17041_s20 + $0xb08] sm:$0xff]   ;;  %v13246_v35 = vld [vmem:[%s17054_s9 + $0x3c] sm:$0x3] }
 0x28b   : > { %14649 = vmatpush3.bf16.msra.mxu1 %v15864_v44  ;;  %v15888_v44 = vld [vmem:[%s17041_s20 + $0xbc0] sm:$0xff]  }
 0x28c   : > { %14650 = vmatprep.subr.bf16.mxu1 %v15867_v14  ;;  %v15894_v14 = vld [vmem:[%s17041_s20 + $0xb50] sm:$0xff]  }
 0x28d   : > { %14629 = vmatpush3.bf16.msra.mxu0 %v15866_v13  ;;  %v5006_v13 = vcombine.high %v4984_v6, %v4984_v6 }
 0x28e   : > { %14630 = vmatprep.subr.bf16.mxu0 %v15869_v20  ;;  %v15900_v20 = vld [vmem:[%s17041_s20 + $0xbd8] sm:$0xff]  }
 0x28f   : > { %14651 = vmatpush3.bf16.msra.mxu1 %v15868_v15  ;;  %v15895_v15 = vld [vmem:[%s17041_s20 + $0xb10] sm:$0xff]  }
 0x290   : > { %14652 = vmatprep.subr.bf16.mxu1 %v15871_v24  ;;  %v15904_v24 = vld [vmem:[%s17041_s20 + $0xbe0] sm:$0xff]  }
 0x291   : > { %14631 = vmatpush3.bf16.msra.mxu0 %v15870_v23  ;;  %v15903_v23 = vld [vmem:[%s17041_s20 + $0xb20] sm:$0xff]  }
 0x292   : > { %14632 = vmatprep.subr.bf16.mxu0 %v15873_v27  ;;  %v15907_v27 = vld [vmem:[%s17041_s20 + $0xb28] sm:$0xff]  }
 0x293   : > { %v14330_v49 = vpop.f32.mrb[12].mxu0  ;;  %14653 = vmatpush3.bf16.msra.mxu1 %v15872_v36  ;;  %v15911_v36 = vld [vmem:[%s17041_s20 + $0xb30] sm:$0xff]  }
 0x294   : > { %v14331_v53 = vpop.f32.mrb[13].mxu0  ;;  %14654 = vmatprep.subr.bf16.mxu1 %v15875_v40 }
 0x295   : > { %v14332_v1 = vadd.f32 %v14331_v53, %v14330_v49  ;;  %v14333_v54 = vpop.f32.mrb[14].mxu0  ;;  %v14352_v55 = vpop.f32.mrb[12].mxu1  ;;  %14633 = vmatpush3.bf16.msra.mxu0 %v15874_v39  ;;  %v18020_v39 = vrot.slane %v18012_v26, %v17056_v7  ;;  %v13244_v49 = vld [vmem:[%s17054_s9 + $0x3a] sm:$0x3]  ;;  %v1648_v53 = vpack.c.bf16 %v13246_v35, %v13246_v35  ;;  %v15934_v35 = vld [vmem:[%s17041_s20 + $0xc60] sm:$0xff]  }
 0x296   : > { %v14334_v33 = vpop.f32.mrb[15].mxu0  ;;  %v14353_v59 = vpop.f32.mrb[13].mxu1  ;;  %14634 = vmatprep.subr.bf16.mxu0 %v15877_v48  ;;  %v15913_v48 = vld [vmem:[%s17041_s20 + $0xbb0] sm:$0xff]  }
 0x297   : > { %v11065_v60 = vadd.f32 %v14332_v1, %v17895_v29  ;;  %v14354_v61 = vadd.f32 %v14353_v59, %v14352_v55  ;;  %v14355_v45 = vpop.f32.mrb[14].mxu1  ;;  %14655 = vmatpush3.bf16.msra.mxu1 %v15876_v42  ;;  %v15885_v29 = vld [vmem:[%s17041_s20 + $0xb40] sm:$0xff]   ;;  %1649 = vst.msk [vmem:[#allocation2 + $0x39] sm:$0x1] %vm273_vm0, %v1648_v53 }
 0x298   : > { %v14356_v63 = vpop.f32.mrb[15].mxu1  ;;  %14656 = vmatprep.subr.bf16.mxu1 %v15879_v38  ;;  %v1624_v38 = vpack.c.bf16 %v13244_v49, %v13244_v49  ;;  %v15935_v49 = vld [vmem:[%s17041_s20 + $0xc20] sm:$0xff]  }
 0x299   : > { %v17981_v2 = vadd.f32 %v14354_v61, %v11065_v60  ;;  %14635 = vmatpush3.bf16.msra.mxu0 %v15878_v50  ;;  %v15916_v60 = vld [vmem:[%s17041_s20 + $0xbf8] sm:$0xff]   ;;  %v15918_v63 = vld [vmem:[%s17041_s20 + $0xc40] sm:$0xff]  }
 0x29a   : > { %14636 = vmatprep.subr.bf16.mxu0 %v15881_v46  ;;  %v5025_v46 = vcombine.high %v18020_v39, %v18020_v39  ;;  %1625 = vst.msk [vmem:[#allocation2 + $0x38] sm:$0x1] %vm273_vm0, %v1624_v38  ;;  %v13283_v53 = vld [vmem:[%s17054_s9 + $0x61] sm:$0x3]  ;;  %v13281_v38 = vld [vmem:[%s17054_s9 + $0x5f] sm:$0x3] }
 0x29b   : > { %14657 = vmatpush3.bf16.msra.mxu1 %v15880_v56  ;;  %v15915_v56 = vld [vmem:[%s17041_s20 + $0xb38] sm:$0xff]  }
 0x29c   : > { %14658 = vmatprep.subr.bf16.mxu1 %v15883_v0  ;;  %v13250_v0 = vld [vmem:[%s17054_s9 + $0x40] sm:$0x3]  ;;  %v5047_v4 = vrot.slane %v5025_v46, %v17056_v7  ;;  %v15938_v46 = vld [vmem:[%s17041_s20 + $0xc68] sm:$0xff]  }
 0x29d   : > { %14637 = vmatpush3.bf16.msra.mxu0 %v15882_v62  ;;  %v15917_v62 = vld [vmem:[%s17041_s20 + $0xbb8] sm:$0xff]  }
 0x29e   : > { %14666 = vmatprep.subr.bf16.mxu0 %v15885_v29  ;;  %v1696_v29 = vpack.c.bf16 %v13250_v0, %v13250_v0 }
 0x29f   : > { %14659 = vmatpush3.bf16.msra.mxu1 %v15884_v3  ;;  %v15919_v3 = vld [vmem:[%s17041_s20 + $0xc00] sm:$0xff]  }
 0x2a0   : > { %11623 = vmatmul.mubr.bf16.vlgmr.msra.gmra.mrb[40].mxu0 %v4984_v6  ;;  %14688 = vmatprep.subr.bf16.mxu1 %v15888_v44  ;;  %v4991_v44 = vrot.slane %v17975_v58, %v17056_v7  ;;  %1697 = vst.msk [vmem:[#allocation2 + $0x3b] sm:$0x1] %vm273_vm0, %v1696_v29  ;;  %v5057_v58 = vcombine.high %v5047_v4, %v5047_v4  ;;  %v15941_v29 = vld [vmem:[%s17041_s20 + $0xca8] sm:$0xff]  }
 0x2a1   : > { %14667 = vmatpush3.bf16.msra.mxu0 %v15886_v5  ;;  %11702 = vmatprep.mubr.bf16.mxu0 %v5005_v8  ;;  %v15920_v8 = vld [vmem:[%s17041_s20 + $0xcc0] sm:$0xff]  }
 0x2a2   : > { %11663 = vmatmul.mubr.bf16.vlgmr.msra.gmra.mrb[40].mxu1 %v5006_v13  ;;  %14668 = vmatprep.subr.bf16.mxu0 %v15890_v12  ;;  %v15921_v12 = vld [vmem:[%s17041_s20 + $0xc80] sm:$0xff]   ;;  %v15923_v13 = vld [vmem:[%s17041_s20 + $0xc08] sm:$0xff]  }
 0x2a3   : > { %14689 = vmatpush3.bf16.msra.mxu1 %v15889_v11  ;;  %11742 = vmatprep.mubr.bf16.mxu1 %v5009_v10 }
 0x2a4   : > { %14690 = vmatprep.subr.bf16.mxu1 %v15892_v37  ;;  %v13254_v37 = vld [vmem:[%s17054_s9 + $0x44] sm:$0x3] }
 0x2a5   : > { %14669 = vmatpush3.bf16.msra.mxu0 %v15891_v31  ;;  %v1644_v61 = vpop.permute.xlu0 %1643  ;;  %v15922_v31 = vld [vmem:[%s17041_s20 + $0xc48] sm:$0xff]  }
 0x2a6   : > { %14670 = vmatprep.subr.bf16.mxu0 %v15894_v14  ;;  %v1668_v33 = vpop.permute.xlu1 %1667  ;;  %1646 = vst.msk [vmem:[#allocation2 + $0x38] sm:$0x1] %vm295_vm1, %v1644_v61  ;;  %v5007_v14 = vcombine.high %v4991_v44, %v4991_v44  ;;  %v15940_v61 = vld [vmem:[%s17041_s20 + $0xce8] sm:$0xff]  }
 0x2a7   : > { %14691 = vmatpush3.bf16.msra.mxu1 %v15893_v47  ;;  %1670 = vst.msk [vmem:[#allocation2 + $0x39] sm:$0x1] %vm295_vm1, %v1668_v33  ;;  %v13252_v47 = vld [vmem:[%s17054_s9 + $0x42] sm:$0x3] }
 0x2a8   : > { %14692 = vmatprep.subr.bf16.mxu1 %v15896_v16  ;;  %v1744_v16 = vpack.c.bf16 %v13254_v37, %v13254_v37  ;;  %v13291_v37 = vld [vmem:[%s17054_s9 + $0x69] sm:$0x3] }
 0x2a9   : > { %14671 = vmatpush3.bf16.msra.mxu0 %v15895_v15  ;;  %v15924_v15 = vld [vmem:[%s17041_s20 + $0xcc8] sm:$0xff]  }
 0x2aa   : > { %14672 = vmatprep.subr.bf16.mxu0 %v15898_v18  ;;  %1745 = vst.msk [vmem:[#allocation2 + $0x3d] sm:$0x1] %vm273_vm0, %v1744_v16 }
 0x2ab   : > { %14693 = vmatpush3.bf16.msra.mxu1 %v15897_v17  ;;  %v1716_v5 = vpop.permute.xlu1 %1715  ;;  %v1720_v17 = vpack.c.bf16 %v13252_v47, %v13252_v47 }
 0x2ac   : > { %14694 = vmatprep.subr.bf16.mxu1 %v15900_v20  ;;  %1718 = vst.msk [vmem:[#allocation2 + $0x3b] sm:$0x1] %vm295_vm1, %v1716_v5  ;;  %v15926_v20 = vld [vmem:[%s17041_s20 + $0xc50] sm:$0xff]  }
 0x2ad   : > { %14673 = vmatpush3.bf16.msra.mxu0 %v15899_v19  ;;  %v1692_v11 = vpop.permute.xlu0 %1691  ;;  %v15925_v19 = vld [vmem:[%s17041_s20 + $0xc88] sm:$0xff]   ;;  %1721 = vst.msk [vmem:[#allocation2 + $0x3c] sm:$0x1] %vm273_vm0, %v1720_v17  ;;  %v2179_v17 = vpack.c.bf16 %v13291_v37, %v13291_v37 }
 0x2ae   : > { %14674 = vmatprep.subr.bf16.mxu0 %v15902_v22  ;;  %v15928_v22 = vld [vmem:[%s17041_s20 + $0xcd0] sm:$0xff]  }
 0x2af   : > { %14695 = vmatpush3.bf16.msra.mxu1 %v15901_v21  ;;  %v1764_v10 = vpop.permute.xlu1 %1763  ;;  %v15927_v21 = vld [vmem:[%s17041_s20 + $0xc10] sm:$0xff]  }
 0x2b0   : > { %14696 = vmatprep.subr.bf16.mxu1 %v15904_v24  ;;  %1766 = vst.msk [vmem:[#allocation2 + $0x3d] sm:$0x1] %vm295_vm1, %v1764_v10  ;;  %v13289_v10 = vld [vmem:[%s17054_s9 + $0x67] sm:$0x3] }
 0x2b1   : > { %14675 = vmatpush3.bf16.msra.mxu0 %v15903_v23  ;;  %v1740_v18 = vpop.permute.xlu0 %1739  ;;  %v13258_v23 = vld [vmem:[%s17054_s9 + $0x48] sm:$0x3] }
 0x2b2   : > { %14676 = vmatprep.subr.bf16.mxu0 %v15906_v57  ;;  %1742 = vst.msk [vmem:[#allocation2 + $0x3c] sm:$0x1] %vm295_vm1, %v1740_v18  ;;  %v1792_v24 = vpack.c.bf16 %v13258_v23, %v13258_v23  ;;  %v13256_v57 = vld [vmem:[%s17054_s9 + $0x46] sm:$0x3]  ;;  %v2155_v18 = vpack.c.bf16 %v13289_v10, %v13289_v10  ;;  %v15978_v10 = vld [vmem:[%s17041_s20 + $0xdb0] sm:$0xff]  }
 0x2b3   : > { %v14374_v34 = vpop.f32.mrb[16].mxu0  ;;  %14697 = vmatpush3.bf16.msra.mxu1 %v15905_v25 }
 0x2b4   : > { %v14375_v40 = vpop.f32.mrb[17].mxu0  ;;  %14698 = vmatprep.subr.bf16.mxu1 %v15908_v28  ;;  %v1768_v28 = vpack.c.bf16 %v13256_v57, %v13256_v57  ;;  %1793 = vst.msk [vmem:[#allocation2 + $0x3f] sm:$0x1] %vm273_vm0, %v1792_v24  ;;  %v15947_v57 = vld [vmem:[%s17041_s20 + $0xc38] sm:$0xff]  }
 0x2b5   : > { %v14376_v42 = vadd.f32 %v14375_v40, %v14374_v34  ;;  %v14377_v51 = vpop.f32.mrb[18].mxu0  ;;  %v14396_v43 = vpop.f32.mrb[16].mxu1  ;;  %14677 = vmatpush3.bf16.msra.mxu0 %v15907_v27  ;;  %v15929_v27 = vld [vmem:[%s17041_s20 + $0xc90] sm:$0xff]   ;;  %v13279_v34 = vld [vmem:[%s17054_s9 + $0x5d] sm:$0x3] }
 0x2b6   : > { %v14378_v50 = vpop.f32.mrb[19].mxu0  ;;  %v14397_v52 = vpop.f32.mrb[17].mxu1  ;;  %14678 = vmatprep.subr.bf16.mxu0 %v15910_v30  ;;  %v15930_v30 = vld [vmem:[%s17041_s20 + $0xc58] sm:$0xff]   ;;  %1769 = vst.msk [vmem:[#allocation2 + $0x3e] sm:$0x1] %vm273_vm0, %v1768_v28  ;;  %v2035_v40 = vpack.c.bf16 %v13279_v34, %v13279_v34 }
 0x2b7   : > { %v11145_v1 = vadd.f32 %v14376_v42, %v17981_v2  ;;  %v14398_v54 = vadd.f32 %v14397_v52, %v14396_v43  ;;  %v14399_v55 = vpop.f32.mrb[18].mxu1  ;;  %14699 = vmatpush3.bf16.msra.mxu1 %v15909_v9  ;;  %v13248_v2 = vld [vmem:[%s17054_s9 + $0x3e] sm:$0x3]  ;;  %v1812_v25 = vpop.permute.xlu1 %1811  ;;  %v15932_v42 = vld [vmem:[%s17041_s20 + $0xcd8] sm:$0xff]  }
 0x2b8   : > { %v14400_v59 = vpop.f32.mrb[19].mxu1  ;;  %14700 = vmatprep.subr.bf16.mxu1 %v15912_v32  ;;  %v1672_v6 = vpack.c.bf16 %v13248_v2, %v13248_v2  ;;  %v1788_v9 = vpop.permute.xlu0 %1787  ;;  %v15931_v32 = vld [vmem:[%s17041_s20 + $0xc18] sm:$0xff]   ;;  %1814 = vst.msk [vmem:[#allocation2 + $0x3f] sm:$0x1] %vm295_vm1, %v1812_v25  ;;  %v2043_v43 = vrot.slane %v2035_v40, %v17056_v7  ;;  %v2059_v55 = vpack.c.bf16 %v13281_v38, %v13281_v38  ;;  %v15950_v40 = vld [vmem:[%s17041_s20 + $0xd40] sm:$0xff]   ;;  %v15958_v38 = vld [vmem:[%s17041_s20 + $0xd88] sm:$0xff]  }
 0x2b9   : > { %v18033_v45 = vadd.f32 %v14398_v54, %v11145_v1  ;;  %14679 = vmatpush3.bf16.msra.mxu0 %v15911_v36  ;;  %v13277_v36 = vld [vmem:[%s17054_s9 + $0x5b] sm:$0x3]  ;;  %1790 = vst.msk [vmem:[#allocation2 + $0x3e] sm:$0x1] %vm295_vm1, %v1788_v9  ;;  %v15936_v1 = vld [vmem:[%s17041_s20 + $0xce0] sm:$0xff]   ;;  %v2083_v54 = vpack.c.bf16 %v13283_v53, %v13283_v53 }
 0x2ba   : > { %14680 = vmatprep.subr.bf16.mxu0 %v15914_v41  ;;  %1673 = vst.msk [vmem:[#allocation2 + $0x3a] sm:$0x1] %vm273_vm0, %v1672_v6  ;;  %v2011_v41 = vpack.c.bf16 %v13277_v36, %v13277_v36  ;;  %v15933_v51 = vld [vmem:[%s17041_s20 + $0xc98] sm:$0xff]   ;;  %v2050_v50 = vrot.slane %v2043_v43, %v17056_v7  ;;  %v2067_v59 = vrot.slane %v2059_v55, %v17056_v7  ;;  %v15942_v6 = vld [vmem:[%s17041_s20 + $0xc70] sm:$0xff]   ;;  %v15953_v43 = vld [vmem:[%s17041_s20 + $0xdc0] sm:$0xff]  }
 0x2bb   : > { %14701 = vmatpush3.bf16.msra.mxu1 %v15913_v48  ;;  %1694 = vst.msk [vmem:[#allocation2 + $0x3a] sm:$0x1] %vm295_vm1, %v1692_v11  ;;  %v2091_v33 = vrot.slane %v2083_v54, %v17056_v7  ;;  %v15948_v9 = vld [vmem:[%s17041_s20 + $0xcf8] sm:$0xff]   ;;  %v15960_v54 = vld [vmem:[%s17041_s20 + $0xd10] sm:$0xff]  }
 0x2bc   : > { %14702 = vmatprep.subr.bf16.mxu1 %v15916_v60  ;;  %v2019_v48 = vrot.slane %v2011_v41, %v17056_v7  ;;  %2051 = vrot.lane.b32.xlu1 %v2050_v50, %s16688_s4  ;;  %v15939_v60 = vld [vmem:[%s17041_s20 + $0xc28] sm:$0xff]   ;;  %v2074_v2 = vrot.slane %v2067_v59, %v17056_v7  ;;  %v15961_v55 = vld [vmem:[%s17041_s20 + $0xdd0] sm:$0xff]   ;;  %v15965_v59 = vld [vmem:[%s17041_s20 + $0xdd8] sm:$0xff]  }
 0x2bd   : > { %14681 = vmatpush3.bf16.msra.mxu0 %v15915_v56  ;;  %v15937_v56 = vld [vmem:[%s17041_s20 + $0xca0] sm:$0xff]   ;;  %v2098_v0 = vrot.slane %v2091_v33, %v17056_v7  ;;  %v15956_v50 = vld [vmem:[%s17041_s20 + $0xd08] sm:$0xff]   ;;  %v15964_v33 = vld [vmem:[%s17041_s20 + $0xd18] sm:$0xff]  }
 0x2be   : > { %14710 = vmatprep.subr.bf16.mxu0 %v15918_v63  ;;  %v2026_v52 = vrot.slane %v2019_v48, %v17056_v7  ;;  %v5010_v63 = vcombine.high %v18012_v26, %v18012_v26  ;;  %v15943_v26 = vld [vmem:[%s17041_s20 + $0xc30] sm:$0xff]  }
 0x2bf   : > { %14703 = vmatpush3.bf16.msra.mxu1 %v15917_v62  ;;  %v13287_v62 = vld [vmem:[%s17054_s9 + $0x65] sm:$0x3] }
 0x2c0   : > { %11703 = vmatmul.mubr.bf16.vlgmr.msra.gmra.mrb[44].mxu0 %v4991_v44  ;;  %14732 = vmatprep.subr.bf16.mxu1 %v15920_v8 }
 0x2c1   : > { %14711 = vmatpush3.bf16.msra.mxu0 %v15919_v3  ;;  %11782 = vmatprep.mubr.bf16.mxu0 %v5047_v4  ;;  %v2131_v3 = vpack.c.bf16 %v13287_v62, %v13287_v62  ;;  %v13285_v4 = vld [vmem:[%s17054_s9 + $0x63] sm:$0x3] }
 0x2c2   : > { %11743 = vmatmul.mubr.bf16.vlgmr.msra.gmra.mrb[44].mxu1 %v5007_v14  ;;  %14712 = vmatprep.subr.bf16.mxu0 %v15922_v31  ;;  %v2107_v5 = vpack.c.bf16 %v13285_v4, %v13285_v4  ;;  %v15944_v31 = vld [vmem:[%s17041_s20 + $0xcf0] sm:$0xff]   ;;  %v15968_v62 = vld [vmem:[%s17041_s20 + $0xd20] sm:$0xff]   ;;  %v15973_v4 = vld [vmem:[%s17041_s20 + $0xde8] sm:$0xff]  }
 0x2c3   : > { %14733 = vmatpush3.bf16.msra.mxu1 %v15921_v12  ;;  %11822 = vmatprep.mubr.bf16.mxu1 %v5057_v58  ;;  %v2139_v44 = vrot.slane %v2131_v3, %v17056_v7  ;;  %v15972_v3 = vld [vmem:[%s17041_s20 + $0xd28] sm:$0xff]  }
 0x2c4   : > { %14734 = vmatprep.subr.bf16.mxu1 %v15924_v15  ;;  %2027 = vrot.lane.b32.xlu0 %v2026_v52, %s16688_s4  ;;  %v2115_v11 = vrot.slane %v2107_v5, %v17056_v7  ;;  %v15974_v5 = vld [vmem:[%s17041_s20 + $0xda8] sm:$0xff]  }
 0x2c5   : > { %14713 = vmatpush3.bf16.msra.mxu0 %v15923_v13  ;;  %2099 = vrot.lane.b32.xlu1 %v2098_v0, %s16688_s4  ;;  %v18109_v13 = vrot.slane %v5010_v63, %v17056_v7  ;;  %v2146_v58 = vrot.slane %v2139_v44, %v17056_v7  ;;  %v15969_v63 = vld [vmem:[%s17041_s20 + $0xde0] sm:$0xff]  }
 0x2c6   : > { %14714 = vmatprep.subr.bf16.mxu0 %v15926_v20  ;;  %v2122_v16 = vrot.slane %v2115_v11, %v17056_v7  ;;  %v15970_v0 = vld [vmem:[%s17041_s20 + $0xda0] sm:$0xff]  }
 0x2c7   : > { %14735 = vmatpush3.bf16.msra.mxu1 %v15925_v19  ;;  %v5026_v36 = vcombine.high %v18109_v13, %v18109_v13 }
 0x2c8   : > { %14736 = vmatprep.subr.bf16.mxu1 %v15928_v22  ;;  %2075 = vrot.lane.b32.xlu0 %v2074_v2, %s16688_s4  ;;  %v15946_v22 = vld [vmem:[%s17041_s20 + $0xc78] sm:$0xff]   ;;  %v15971_v2 = vld [vmem:[%s17041_s20 + $0xd68] sm:$0xff]  }
 0x2c9   : > { %14715 = vmatpush3.bf16.msra.mxu0 %v15927_v21  ;;  %v15945_v21 = vld [vmem:[%s17041_s20 + $0xcb0] sm:$0xff]   ;;  %2147 = vrot.lane.b32.xlu1 %v2146_v58, %s16688_s4  ;;  %v5054_v48 = vrot.slane %v5026_v36, %v17056_v7  ;;  %v13260_v36 = vld [vmem:[%s17054_s9 + $0x4a] sm:$0x3] }
 0x2ca   : > { %14716 = vmatprep.subr.bf16.mxu0 %v15930_v30  ;;  %v2163_v30 = vrot.slane %v2155_v18, %v17056_v7 }
 0x2cb   : > { %14737 = vmatpush3.bf16.msra.mxu1 %v15929_v27  ;;  %v2187_v27 = vrot.slane %v2179_v17, %v17056_v7  ;;  %v5058_v53 = vcombine.high %v5054_v48, %v5054_v48 }
 0x2cc   : > { %14738 = vmatprep.subr.bf16.mxu1 %v15932_v42  ;;  %2123 = vrot.lane.b32.xlu0 %v2122_v16, %s16688_s4  ;;  %v2170_v41 = vrot.slane %v2163_v30, %v17056_v7  ;;  %v15951_v42 = vld [vmem:[%s17041_s20 + $0xd00] sm:$0xff]  }
 0x2cd   : > { %14717 = vmatpush3.bf16.msra.mxu0 %v15931_v32  ;;  %v2194_v32 = vrot.slane %v2187_v27, %v17056_v7  ;;  %v15983_v27 = vld [vmem:[%s17041_s20 + $0xe40] sm:$0xff]  }
 0x2ce   : > { %14718 = vmatprep.subr.bf16.mxu0 %v15934_v35  ;;  %v15954_v35 = vld [vmem:[%s17041_s20 + $0xd80] sm:$0xff]  }
 0x2cf   : > { %14739 = vmatpush3.bf16.msra.mxu1 %v15933_v51  ;;  %2195 = vrot.lane.b32.xlu1 %v2194_v32, %s16688_s4  ;;  %v5033_v51 = vrot.slane %v18020_v39, %v17056_v7  ;;  %v15957_v39 = vld [vmem:[%s17041_s20 + $0xdc8] sm:$0xff]   ;;  %v15986_v32 = vld [vmem:[%s17041_s20 + $0xe80] sm:$0xff]  }
 0x2d0   : > { %14740 = vmatprep.subr.bf16.mxu1 %v15936_v1  ;;  %2171 = vrot.lane.b32.xlu0 %v2170_v41, %s16688_s4  ;;  %v15959_v1 = vld [vmem:[%s17041_s20 + $0xd50] sm:$0xff]   ;;  %v1816_v41 = vpack.c.bf16 %v13260_v36, %v13260_v36 }
 0x2d1   : > { %14719 = vmatpush3.bf16.msra.mxu0 %v15935_v49  ;;  %v15955_v49 = vld [vmem:[%s17041_s20 + $0xd48] sm:$0xff]   ;;  %v5055_v52 = vcombine.high %v5033_v51, %v5033_v51 }
 0x2d2   : > { %14720 = vmatprep.subr.bf16.mxu0 %v15938_v46  ;;  %v15963_v46 = vld [vmem:[%s17041_s20 + $0xd58] sm:$0xff]   ;;  %1817 = vst.msk [vmem:[#allocation2 + $0x40] sm:$0x1] %vm273_vm0, %v1816_v41 }
 0x2d3   : > { %v14418_v8 = vpop.f32.mrb[20].mxu0  ;;  %14741 = vmatpush3.bf16.msra.mxu1 %v15937_v56  ;;  %v15962_v56 = vld [vmem:[%s17041_s20 + $0xd90] sm:$0xff]  }
 0x2d4   : > { %v14419_v12 = vpop.f32.mrb[21].mxu0  ;;  %14742 = vmatprep.subr.bf16.mxu1 %v15940_v61  ;;  %v15967_v61 = vld [vmem:[%s17041_s20 + $0xd60] sm:$0xff]  }
 0x2d5   : > { %v14420_v47 = vadd.f32 %v14419_v12, %v14418_v8  ;;  %v14421_v14 = vpop.f32.mrb[22].mxu0  ;;  %v14440_v15 = vpop.f32.mrb[20].mxu1  ;;  %14721 = vmatpush3.bf16.msra.mxu0 %v15939_v60  ;;  %v15966_v60 = vld [vmem:[%s17041_s20 + $0xd98] sm:$0xff]   ;;  %v15976_v8 = vld [vmem:[%s17041_s20 + $0xd30] sm:$0xff]  }
 0x2d6   : > { %v14422_v19 = vpop.f32.mrb[23].mxu0  ;;  %v14441_v20 = vpop.f32.mrb[21].mxu1  ;;  %14722 = vmatprep.subr.bf16.mxu0 %v15942_v6  ;;  %v15975_v6 = vld [vmem:[%s17041_s20 + $0xd70] sm:$0xff]  }
 0x2d7   : > { %v11225_v23 = vadd.f32 %v14420_v47, %v18033_v45  ;;  %v14442_v24 = vadd.f32 %v14441_v20, %v14440_v15  ;;  %v14443_v25 = vpop.f32.mrb[22].mxu1  ;;  %14743 = vmatpush3.bf16.msra.mxu1 %v15941_v29  ;;  %v15949_v45 = vld [vmem:[%s17041_s20 + $0xcb8] sm:$0xff]   ;;  %v15977_v12 = vld [vmem:[%s17041_s20 + $0xdf0] sm:$0xff]  }
 0x2d8   : > { %v14444_v28 = vpop.f32.mrb[23].mxu1  ;;  %14744 = vmatprep.subr.bf16.mxu1 %v15944_v31  ;;  %v18159_v29 = vld [vmem:[#allocation2 + $0x38] sm:$0xff] }
 0x2d9   : > { %v18124_v34 = vadd.f32 %v14442_v24, %v11225_v23  ;;  %14723 = vmatpush3.bf16.msra.mxu0 %v15943_v26  ;;  %v18166_v26 = vrot.slane %v18159_v29, %v17056_v7  ;;  %v15979_v47 = vld [vmem:[%s17041_s20 + $0xd78] sm:$0xff]   ;;  %v15984_v28 = vld [vmem:[%s17041_s20 + $0xe00] sm:$0xff]  }
 0x2da   : > { %14724 = vmatprep.subr.bf16.mxu0 %v15946_v22  ;;  %v15980_v19 = vld [vmem:[%s17041_s20 + $0xd38] sm:$0xff]  }
 0x2db   : > { %14745 = vmatpush3.bf16.msra.mxu1 %v15945_v21  ;;  %v5074_v20 = vcombine.high %v18166_v26, %v18166_v26  ;;  %v15981_v22 = vld [vmem:[%s17041_s20 + $0xdf8] sm:$0xff]  }
 0x2dc   : > { %14746 = vmatprep.subr.bf16.mxu1 %v15948_v9  ;;  %v15982_v24 = vld [vmem:[%s17041_s20 + $0xdb8] sm:$0xff]   ;;  %v15985_v9 = vld [vmem:[%s17041_s20 + $0xec0] sm:$0xff]  }
 0x2dd   : > { %14725 = vmatpush3.bf16.msra.mxu0 %v15947_v57  ;;  %v5096_v30 = vrot.slane %v5074_v20, %v17056_v7 }
 0x2de   : > { %14754 = vmatprep.subr.bf16.mxu0 %v15950_v40 }
 0x2df   : > { %14747 = vmatpush3.bf16.msra.mxu1 %v15949_v45  ;;  %v13262_v45 = vld [vmem:[%s17054_s9 + $0x4c] sm:$0x3] }
 0x2e0   : > { %11783 = vmatmul.mubr.bf16.vlgmr.msra.gmra.mrb[48].mxu0 %v5033_v51  ;;  %14776 = vmatprep.subr.bf16.mxu1 %v15953_v43  ;;  %v1840_v40 = vpack.c.bf16 %v13262_v45, %v13262_v45  ;;  %v15988_v51 = vld [vmem:[%s17041_s20 + $0xe08] sm:$0xff]   ;;  %v5106_v43 = vcombine.high %v5096_v30, %v5096_v30  ;;  %v16008_v45 = vld [vmem:[%s17041_s20 + $0xe30] sm:$0xff]  }
 0x2e1   : > { %14755 = vmatpush3.bf16.msra.mxu0 %v15951_v42  ;;  %11862 = vmatprep.mubr.bf16.mxu0 %v5054_v48  ;;  %v15987_v42 = vld [vmem:[%s17041_s20 + $0xe48] sm:$0xff]  }
 0x2e2   : > { %11823 = vmatmul.mubr.bf16.vlgmr.msra.gmra.mrb[48].mxu1 %v5055_v52  ;;  %14756 = vmatprep.subr.bf16.mxu0 %v15955_v49  ;;  %1841 = vst.msk [vmem:[#allocation2 + $0x41] sm:$0x1] %vm273_vm0, %v1840_v40  ;;  %v15989_v49 = vld [vmem:[%s17041_s20 + $0xec8] sm:$0xff]  }
 0x2e3   : > { %14777 = vmatpush3.bf16.msra.mxu1 %v15954_v35  ;;  %11902 = vmatprep.mubr.bf16.mxu1 %v5058_v53  ;;  %v15990_v52 = vld [vmem:[%s17041_s20 + $0xe88] sm:$0xff]   ;;  %v13264_v53 = vld [vmem:[%s17054_s9 + $0x4e] sm:$0x3] }
 0x2e4   : > { %14778 = vmatprep.subr.bf16.mxu1 %v15957_v39 }
 0x2e5   : > { %14757 = vmatpush3.bf16.msra.mxu0 %v15956_v50  ;;  %v13266_v50 = vld [vmem:[%s17054_s9 + $0x50] sm:$0x3] }
 0x2e6   : > { %14758 = vmatprep.subr.bf16.mxu0 %v15959_v1  ;;  %v1888_v39 = vpack.c.bf16 %v13266_v50, %v13266_v50  ;;  %v1864_v1 = vpack.c.bf16 %v13264_v53, %v13264_v53 }
 0x2e7   : > { %14779 = vmatpush3.bf16.msra.mxu1 %v15958_v38  ;;  %v15991_v38 = vld [vmem:[%s17041_s20 + $0xe50] sm:$0xff]  }
 0x2e8   : > { %14780 = vmatprep.subr.bf16.mxu1 %v15961_v55  ;;  %1889 = vst.msk [vmem:[#allocation2 + $0x43] sm:$0x1] %vm273_vm0, %v1888_v39  ;;  %v15993_v55 = vld [vmem:[%s17041_s20 + $0xed0] sm:$0xff]   ;;  %1865 = vst.msk [vmem:[#allocation2 + $0x42] sm:$0x1] %vm273_vm0, %v1864_v1 }
 0x2e9   : > { %14759 = vmatpush3.bf16.msra.mxu0 %v15960_v54  ;;  %v15992_v54 = vld [vmem:[%s17041_s20 + $0xe10] sm:$0xff]   ;;  %v2324_v39 = vld [vmem:[%s17054_s9 + $0x6] sm:$0x3] }
 0x2ea   : > { %14760 = vmatprep.subr.bf16.mxu0 %v15963_v46  ;;  %v13270_v46 = vld [vmem:[%s17054_s9 + $0x54] sm:$0x3] }
 0x2eb   : > { %14781 = vmatpush3.bf16.msra.mxu1 %v15962_v56  ;;  %v1860_v25 = vpop.permute.xlu1 %1859  ;;  %v15994_v56 = vld [vmem:[%s17041_s20 + $0xe90] sm:$0xff]  }
 0x2ec   : > { %14782 = vmatprep.subr.bf16.mxu1 %v15965_v59  ;;  %1862 = vst.msk [vmem:[#allocation2 + $0x41] sm:$0x1] %vm295_vm1, %v1860_v25  ;;  %v13268_v59 = vld [vmem:[%s17054_s9 + $0x52] sm:$0x3]  ;;  %v2276_v25 = vld [vmem:[%s17054_s9 + $0x2] sm:$0x3] }
 0x2ed   : > { %14761 = vmatpush3.bf16.msra.mxu0 %v15964_v33  ;;  %v1836_v57 = vpop.permute.xlu0 %1835 }
 0x2ee   : > { %14762 = vmatprep.subr.bf16.mxu0 %v15967_v61  ;;  %1838 = vst.msk [vmem:[#allocation2 + $0x40] sm:$0x1] %vm295_vm1, %v1836_v57  ;;  %v15995_v61 = vld [vmem:[%s17041_s20 + $0xe58] sm:$0xff]   ;;  %v2252_v57 = vld [vmem:[%s17054_s9] sm:$0x3] }
 0x2ef   : > { %14783 = vmatpush3.bf16.msra.mxu1 %v15966_v60 }
 0x2f0   : > { %14784 = vmatprep.subr.bf16.mxu1 %v15969_v63  ;;  %v1912_v63 = vpack.c.bf16 %v13268_v59, %v13268_v59 }
 0x2f1   : > { %14763 = vmatpush3.bf16.msra.mxu0 %v15968_v62  ;;  %v1884_v48 = vpop.permute.xlu0 %1883  ;;  %v1936_v62 = vpack.c.bf16 %v13270_v46, %v13270_v46 }
 0x2f2   : > { %14764 = vmatprep.subr.bf16.mxu0 %v15971_v2  ;;  %1886 = vst.msk [vmem:[#allocation2 + $0x42] sm:$0x1] %vm295_vm1, %v1884_v48  ;;  %v15997_v2 = vld [vmem:[%s17041_s20 + $0xed8] sm:$0xff]  }
 0x2f3   : > { %v14462_v44 = vpop.f32.mrb[24].mxu0  ;;  %14785 = vmatpush3.bf16.msra.mxu1 %v15970_v0  ;;  %v15996_v0 = vld [vmem:[%s17041_s20 + $0xe18] sm:$0xff]   ;;  %1937 = vst.msk [vmem:[#allocation2 + $0x45] sm:$0x1] %vm273_vm0, %v1936_v62  ;;  %1913 = vst.msk [vmem:[#allocation2 + $0x44] sm:$0x1] %vm273_vm0, %v1912_v63 }
 0x2f4   : > { %v14463_v11 = vpop.f32.mrb[25].mxu0  ;;  %14786 = vmatprep.subr.bf16.mxu1 %v15973_v4  ;;  %v15999_v4 = vld [vmem:[%s17041_s20 + $0xe60] sm:$0xff]  }
 0x2f5   : > { %v14464_v31 = vadd.f32 %v14463_v11, %v14462_v44  ;;  %v14465_v58 = vpop.f32.mrb[26].mxu0  ;;  %v14484_v37 = vpop.f32.mrb[24].mxu1  ;;  %14765 = vmatpush3.bf16.msra.mxu0 %v15972_v3  ;;  %v15998_v3 = vld [vmem:[%s17041_s20 + $0xe98] sm:$0xff]   ;;  %v16000_v44 = vld [vmem:[%s17041_s20 + $0xe20] sm:$0xff]  }
 0x2f6   : > { %v14466_v14 = vpop.f32.mrb[27].mxu0  ;;  %v14485_v15 = vpop.f32.mrb[25].mxu1  ;;  %14766 = vmatprep.subr.bf16.mxu0 %v15975_v6  ;;  %v13272_v6 = vld [vmem:[%s17054_s9 + $0x56] sm:$0x3]  ;;  %v16001_v58 = vld [vmem:[%s17041_s20 + $0xee0] sm:$0xff]  }
 0x2f7   : > { %v11305_v16 = vadd.f32 %v14464_v31, %v18124_v34  ;;  %v14486_v17 = vadd.f32 %v14485_v15, %v14484_v37  ;;  %v14487_v18 = vpop.f32.mrb[26].mxu1  ;;  %14787 = vmatpush3.bf16.msra.mxu1 %v15974_v5  ;;  %v5040_v34 = vrot.slane %v18109_v13, %v17056_v7  ;;  %v1908_v13 = vpop.permute.xlu1 %1907  ;;  %v13274_v5 = vld [vmem:[%s17054_s9 + $0x58] sm:$0x3]  ;;  %v13295_v37 = vld [vmem:[%s17054_s9 + $0x6d] sm:$0x3]  ;;  %v16015_v63 = vld [vmem:[%s17041_s20 + $0xf40] sm:$0xff]  }
 0x2f8   : > { %v14488_v21 = vpop.f32.mrb[27].mxu1  ;;  %14788 = vmatprep.subr.bf16.mxu1 %v15977_v12  ;;  %1910 = vst.msk [vmem:[#allocation2 + $0x43] sm:$0x1] %vm295_vm1, %v1908_v13  ;;  %v1932_v60 = vpop.permute.xlu0 %1931  ;;  %v1960_v12 = vpack.c.bf16 %v13272_v6, %v13272_v6  ;;  %v13293_v14 = vld [vmem:[%s17054_s9 + $0x6b] sm:$0x3]  ;;  %v16018_v6 = vld [vmem:[%s17041_s20 + $0xfc0] sm:$0xff]  }
 0x2f9   : > { %v18176_v23 = vadd.f32 %v14486_v17, %v11305_v16  ;;  %14767 = vmatpush3.bf16.msra.mxu0 %v15976_v8  ;;  %v5056_v35 = vcombine.high %v5040_v34, %v5040_v34  ;;  %1934 = vst.msk [vmem:[#allocation2 + $0x44] sm:$0x1] %vm295_vm1, %v1932_v60  ;;  %v1984_v8 = vpack.c.bf16 %v13274_v5, %v13274_v5  ;;  %v16003_v15 = vld [vmem:[%s17041_s20 + $0xe68] sm:$0xff]  }
 0x2fa   : > { %14768 = vmatprep.subr.bf16.mxu0 %v15979_v47  ;;  %1961 = vst.msk [vmem:[#allocation2 + $0x46] sm:$0x1] %vm273_vm0, %v1960_v12  ;;  %v2227_v47 = vpack.c.bf16 %v13295_v37, %v13295_v37  ;;  %v2203_v16 = vpack.c.bf16 %v13293_v14, %v13293_v14  ;;  %v16004_v17 = vld [vmem:[%s17041_s20 + $0xe28] sm:$0xff]   ;;  %v5082_v5 = vrot.slane %v18166_v26, %v17056_v7  ;;  %v16016_v12 = vld [vmem:[%s17041_s20 + $0xf00] sm:$0xff]  }
 0x2fb   : > { %14789 = vmatpush3.bf16.msra.mxu1 %v15978_v10  ;;  %v1956_v33 = vpop.permute.xlu1 %1955  ;;  %v16002_v10 = vld [vmem:[%s17041_s20 + $0xea0] sm:$0xff]   ;;  %1985 = vst.msk [vmem:[#allocation2 + $0x47] sm:$0x1] %vm273_vm0, %v1984_v8  ;;  %v16006_v21 = vld [vmem:[%s17041_s20 + $0xea8] sm:$0xff]  }
 0x2fc   : > { %14790 = vmatprep.subr.bf16.mxu1 %v15981_v22  ;;  %1958 = vst.msk [vmem:[#allocation2 + $0x45] sm:$0x1] %vm295_vm1, %v1956_v33  ;;  %v1980_v31 = vpop.permute.xlu0 %1979  ;;  %v2235_v18 = vrot.slane %v2227_v47, %v17056_v7  ;;  %v2211_v20 = vrot.slane %v2203_v16, %v17056_v7  ;;  %v5059_v22 = vcombine.high %v18159_v29, %v18159_v29  ;;  %v16009_v29 = vld [vmem:[%s17041_s20 + $0xef0] sm:$0xff]   ;;  %v16013_v33 = vld [vmem:[%s17041_s20 + $0xef8] sm:$0xff]   ;;  %v16020_v37 = vld [vmem:[%s17041_s20 + $0xf48] sm:$0xff]  }
 0x2fd   : > { %14769 = vmatpush3.bf16.msra.mxu0 %v15980_v19  ;;  %1982 = vst.msk [vmem:[#allocation2 + $0x46] sm:$0x1] %vm295_vm1, %v1980_v31  ;;  %v16005_v19 = vld [vmem:[%s17041_s20 + $0xee8] sm:$0xff]   ;;  %v5104_v14 = vcombine.high %v5082_v5, %v5082_v5 }
 0x2fe   : > { %14798 = vmatprep.subr.bf16.mxu0 %v15983_v27  ;;  %v16007_v27 = vld [vmem:[%s17041_s20 + $0xe70] sm:$0xff]   ;;  %v16021_v47 = vld [vmem:[%s17041_s20 + $0xf08] sm:$0xff]  }
 0x2ff   : > { %14791 = vmatpush3.bf16.msra.mxu1 %v15982_v24  ;;  %v2004_v11 = vpop.permute.xlu1 %2003  ;;  %v2242_v24 = vrot.slane %v2235_v18, %v17056_v7  ;;  %v16023_v18 = vld [vmem:[%s17041_s20 + $0xf88] sm:$0xff]  }
 0x300   : > { %11863 = vmatmul.mubr.bf16.vlgmr.msra.gmra.mrb[52].mxu0 %v5040_v34  ;;  %14820 = vmatprep.subr.bf16.mxu1 %v15985_v9  ;;  %2006 = vst.msk [vmem:[#allocation2 + $0x47] sm:$0x1] %vm295_vm1, %v2004_v11  ;;  %v2277_v9 = vpack.c.bf16 %v2276_v25, %v2276_v25  ;;  %v16028_v25 = vld [vmem:[%s17041_s20 + $0xf58] sm:$0xff]  }
 0x301   : > { %14799 = vmatpush3.bf16.msra.mxu0 %v15984_v28  ;;  %11942 = vmatprep.mubr.bf16.mxu0 %v5096_v30  ;;  %v2218_v28 = vrot.slane %v2211_v20, %v17056_v7  ;;  %v2253_v30 = vpack.c.bf16 %v2252_v57, %v2252_v57  ;;  %v16024_v20 = vld [vmem:[%s17041_s20 + $0xf50] sm:$0xff]   ;;  %v16029_v57 = vld [vmem:[%s17041_s20 + $0xf18] sm:$0xff]  }
 0x302   : > { %11903 = vmatmul.mubr.bf16.vlgmr.msra.gmra.mrb[52].mxu1 %v5056_v35  ;;  %14800 = vmatprep.subr.bf16.mxu0 %v15987_v42  ;;  %v16010_v35 = vld [vmem:[%s17041_s20 + $0xeb0] sm:$0xff]  }
 0x303   : > { %14821 = vmatpush3.bf16.msra.mxu1 %v15986_v32  ;;  %11982 = vmatprep.mubr.bf16.mxu1 %v5106_v43  ;;  %v2285_v32 = vrot.slane %v2277_v9, %v17056_v7  ;;  %v2261_v40 = vrot.slane %v2253_v30, %v17056_v7  ;;  %v18248_v43 = vrot.slane %v5059_v22, %v17056_v7  ;;  %v16026_v22 = vld [vmem:[%s17041_s20 + $0xfd0] sm:$0xff]   ;;  %v16032_v9 = vld [vmem:[%s17041_s20 + $0xf60] sm:$0xff]  }
 0x304   : > { %14822 = vmatprep.subr.bf16.mxu1 %v15989_v49  ;;  %2243 = vrot.lane.b32.xlu1 %v2242_v24, %s16688_s4  ;;  %v16011_v49 = vld [vmem:[%s17041_s20 + $0xe78] sm:$0xff]   ;;  %v16027_v24 = vld [vmem:[%s17041_s20 + $0xf90] sm:$0xff]   ;;  %v16033_v30 = vld [vmem:[%s17041_s20 + $0xf20] sm:$0xff]  }
 0x305   : > { %14801 = vmatpush3.bf16.msra.mxu0 %v15988_v51  ;;  %2219 = vrot.lane.b32.xlu0 %v2218_v28, %s16688_s4  ;;  %v2292_v50 = vrot.slane %v2285_v32, %v17056_v7  ;;  %v16031_v28 = vld [vmem:[%s17041_s20 + $0xf98] sm:$0xff]   ;;  %v16038_v32 = vld [vmem:[%s17041_s20 + $0xfe8] sm:$0xff]  }
 0x306   : > { %14802 = vmatprep.subr.bf16.mxu0 %v15991_v38 }
 0x307   : > { %14823 = vmatpush3.bf16.msra.mxu1 %v15990_v52  ;;  %v2268_v52 = vrot.slane %v2261_v40, %v17056_v7  ;;  %v18306_v40 = vld [vmem:[#allocation2 + $0x40] sm:$0xff] }
 0x308   : > { %14824 = vmatprep.subr.bf16.mxu1 %v15993_v55  ;;  %v2325_v55 = vpack.c.bf16 %v2324_v39, %v2324_v39  ;;  %2293 = vrot.lane.b32.xlu1 %v2292_v50, %s16688_s4 }
 0x309   : > { %14803 = vmatpush3.bf16.msra.mxu0 %v15992_v54  ;;  %v16012_v54 = vld [vmem:[%s17041_s20 + $0xe38] sm:$0xff]   ;;  %2269 = vrot.lane.b32.xlu0 %v2268_v52, %s16688_s4 }
 0x30a   : > { %14804 = vmatprep.subr.bf16.mxu0 %v15995_v61  ;;  %v5075_v61 = vcombine.high %v18248_v43, %v18248_v43  ;;  %v2333_v62 = vrot.slane %v2325_v55, %v17056_v7 }
 0x30b   : > { %14825 = vmatpush3.bf16.msra.mxu1 %v15994_v56  ;;  %v2300_v56 = vld [vmem:[%s17054_s9 + $0x4] sm:$0x3] }
 0x30c   : > { %14826 = vmatprep.subr.bf16.mxu1 %v15997_v2  ;;  %v2301_v59 = vpack.c.bf16 %v2300_v56, %v2300_v56  ;;  %v2340_v2 = vrot.slane %v2333_v62, %v17056_v7  ;;  %v5103_v31 = vrot.slane %v5075_v61, %v17056_v7  ;;  %v16046_v61 = vld [vmem:[%s17041_s20 + $0xff8] sm:$0xff]  }
 0x30d   : > { %14805 = vmatpush3.bf16.msra.mxu0 %v15996_v0 }
 0x30e   : > { %14806 = vmatprep.subr.bf16.mxu0 %v15999_v4  ;;  %v2309_v0 = vrot.slane %v2301_v59, %v17056_v7  ;;  %v2348_v4 = vld [vmem:[%s17054_s9 + $0x8] sm:$0x3]  ;;  %2341 = vrot.lane.b32.xlu1 %v2340_v2, %s16688_s4 }
 0x30f   : > { %14827 = vmatpush3.bf16.msra.mxu1 %v15998_v3  ;;  %v2372_v3 = vld [vmem:[%s17054_s9 + $0xa] sm:$0x3]  ;;  %v2349_v11 = vpack.c.bf16 %v2348_v4, %v2348_v4  ;;  %v16050_v4 = vld [vmem:[%s17041_s20 + $0x10c0] sm:$0xff]  }
 0x310   : > { %14828 = vmatprep.subr.bf16.mxu1 %v16001_v58  ;;  %v2373_v8 = vpack.c.bf16 %v2372_v3, %v2372_v3  ;;  %v16019_v58 = vld [vmem:[%s17041_s20 + $0xf80] sm:$0xff]   ;;  %v5089_v3 = vrot.slane %v18248_v43, %v17056_v7 }
 0x311   : > { %14807 = vmatpush3.bf16.msra.mxu0 %v16000_v44  ;;  %v2316_v44 = vrot.slane %v2309_v0, %v17056_v7  ;;  %v16049_v0 = vld [vmem:[%s17041_s20 + $0x1000] sm:$0xff]  }
 0x312   : > { %14808 = vmatprep.subr.bf16.mxu0 %v16003_v15  ;;  %v2381_v26 = vrot.slane %v2373_v8, %v17056_v7  ;;  %v16022_v15 = vld [vmem:[%s17041_s20 + $0xfc8] sm:$0xff]  }
 0x313   : > { %v14506_v34 = vpop.f32.mrb[28].mxu0  ;;  %14829 = vmatpush3.bf16.msra.mxu1 %v16002_v10  ;;  %2317 = vrot.lane.b32.xlu0 %v2316_v44, %s16688_s4  ;;  %v2357_v10 = vrot.slane %v2349_v11, %v17056_v7  ;;  %v16053_v44 = vld [vmem:[%s17041_s20 + $0x1008] sm:$0xff]  }
 0x314   : > { %v14507_v36 = vpop.f32.mrb[29].mxu0  ;;  %14830 = vmatprep.subr.bf16.mxu1 %v16005_v19  ;;  %v2388_v16 = vrot.slane %v2381_v26, %v17056_v7  ;;  %v13278_v26 = vld [vmem:[%s17054_s9 + $0x5c] sm:$0x3] }
 0x315   : > { %v14508_v41 = vadd.f32 %v14507_v36, %v14506_v34  ;;  %v14509_v42 = vpop.f32.mrb[30].mxu0  ;;  %v14528_v51 = vpop.f32.mrb[28].mxu1  ;;  %14809 = vmatpush3.bf16.msra.mxu0 %v16004_v17  ;;  %v5107_v17 = vcombine.high %v5103_v31, %v5103_v31  ;;  %v2364_v19 = vrot.slane %v2357_v10, %v17056_v7  ;;  %v16034_v34 = vld [vmem:[%s17041_s20 + $0xfe0] sm:$0xff]   ;;  %v16036_v36 = vld [vmem:[%s17041_s20 + $0xf68] sm:$0xff]   ;;  %v13276_v10 = vld [vmem:[%s17054_s9 + $0x5a] sm:$0x3] }
 0x316   : > { %v14510_v13 = vpop.f32.mrb[31].mxu0  ;;  %v14529_v48 = vpop.f32.mrb[29].mxu1  ;;  %14810 = vmatprep.subr.bf16.mxu0 %v16007_v27  ;;  %2389 = vrot.lane.b32.xlu1 %v2388_v16, %s16688_s4  ;;  %v16030_v27 = vld [vmem:[%s17041_s20 + $0xfd8] sm:$0xff]   ;;  %v16040_v42 = vld [vmem:[%s17041_s20 + $0xf70] sm:$0xff]  }
 0x317   : > { %v11385_v53 = vadd.f32 %v14508_v41, %v18176_v23  ;;  %v14530_v38 = vadd.f32 %v14529_v48, %v14528_v51  ;;  %v14531_v1 = vpop.f32.mrb[30].mxu1  ;;  %14831 = vmatpush3.bf16.msra.mxu1 %v16006_v21  ;;  %v16014_v23 = vld [vmem:[%s17041_s20 + $0xeb8] sm:$0xff]   ;;  %v16025_v21 = vld [vmem:[%s17041_s20 + $0xf10] sm:$0xff]   ;;  %2365 = vrot.lane.b32.xlu0 %v2364_v19, %s16688_s4  ;;  %v16039_v41 = vld [vmem:[%s17041_s20 + $0xfa8] sm:$0xff]   ;;  %v18313_v48 = vrot.slane %v18306_v40, %v17056_v7 }
 0x318   : > { %v14532_v46 = vpop.f32.mrb[31].mxu1  ;;  %14832 = vmatprep.subr.bf16.mxu1 %v16009_v29  ;;  %v16037_v29 = vld [vmem:[%s17041_s20 + $0xf28] sm:$0xff]   ;;  %v16041_v13 = vld [vmem:[%s17041_s20 + $0xf30] sm:$0xff]  }
 0x319   : > { %v18260_v60 = vadd.f32 %v14530_v38, %v11385_v53  ;;  %14811 = vmatpush3.bf16.msra.mxu0 %v16008_v45  ;;  %v16035_v45 = vld [vmem:[%s17041_s20 + $0xfa0] sm:$0xff]   ;;  %v16043_v1 = vld [vmem:[%s17041_s20 + $0xfb0] sm:$0xff]   ;;  %v5123_v59 = vcombine.high %v18313_v48, %v18313_v48 }
 0x31a   : > { %14812 = vmatprep.subr.bf16.mxu0 %v16011_v49  ;;  %v16042_v49 = vld [vmem:[%s17041_s20 + $0xff0] sm:$0xff]  }
 0x31b   : > { %14833 = vmatpush3.bf16.msra.mxu1 %v16010_v35  ;;  %v5145_v2 = vrot.slane %v5123_v59, %v17056_v7  ;;  %v16058_v16 = vld [vmem:[%s17041_s20 + $0x10d0] sm:$0xff]  }
 0x31c   : > { %14834 = vmatprep.subr.bf16.mxu1 %v16013_v33  ;;  %v16045_v33 = vld [vmem:[%s17041_s20 + $0xf38] sm:$0xff]   ;;  %v16074_v59 = vld [vmem:[%s17041_s20 + $0x10f0] sm:$0xff]  }
 0x31d   : > { %14813 = vmatpush3.bf16.msra.mxu0 %v16012_v54  ;;  %v16044_v54 = vld [vmem:[%s17041_s20 + $0xf78] sm:$0xff]   ;;  %v5155_v8 = vcombine.high %v5145_v2, %v5145_v2 }
 0x31e   : > { %14842 = vmatprep.subr.bf16.mxu0 %v16015_v63  ;;  %v16047_v63 = vld [vmem:[%s17041_s20 + $0xfb8] sm:$0xff]  }
 0x31f   : > { %14835 = vmatpush3.bf16.msra.mxu1 %v16014_v23 }
 0x320   : > { %11943 = vmatmul.mubr.bf16.vlgmr.msra.gmra.mrb[56].mxu0 %v5082_v5  ;;  %14864 = vmatprep.subr.bf16.mxu1 %v16018_v6  ;;  %v16051_v5 = vld [vmem:[%s17041_s20 + $0x1080] sm:$0xff]   ;;  %v16052_v6 = vld [vmem:[%s17041_s20 + $0x1048] sm:$0xff]  }
 0x321   : > { %14843 = vmatpush3.bf16.msra.mxu0 %v16016_v12  ;;  %12022 = vmatprep.mubr.bf16.mxu0 %v5103_v31  ;;  %v5105_v12 = vcombine.high %v5089_v3, %v5089_v3  ;;  %v16054_v31 = vld [vmem:[%s17041_s20 + $0x10c8] sm:$0xff]  }
 0x322   : > { %11983 = vmatmul.mubr.bf16.vlgmr.msra.gmra.mrb[56].mxu1 %v5104_v14  ;;  %14844 = vmatprep.subr.bf16.mxu0 %v16020_v37  ;;  %v16056_v37 = vld [vmem:[%s17041_s20 + $0x1050] sm:$0xff]   ;;  %v2032_v14 = vpack.c.bf16 %v13278_v26, %v13278_v26 }
 0x323   : > { %14865 = vmatpush3.bf16.msra.mxu1 %v16019_v58  ;;  %12062 = vmatprep.mubr.bf16.mxu1 %v5107_v17  ;;  %v16055_v58 = vld [vmem:[%s17041_s20 + $0x1088] sm:$0xff]   ;;  %v16059_v17 = vld [vmem:[%s17041_s20 + $0x1090] sm:$0xff]  }
 0x324   : > { %14866 = vmatprep.subr.bf16.mxu1 %v16022_v15  ;;  %v2008_v15 = vpack.c.bf16 %v13276_v10, %v13276_v10  ;;  %2033 = vst.msk [vmem:[#allocation2 + $0x49] sm:$0x1] %vm273_vm0, %v2032_v14  ;;  %v16078_v10 = vld [vmem:[%s17041_s20 + $0x10f8] sm:$0xff]  }
 0x325   : > { %14845 = vmatpush3.bf16.msra.mxu0 %v16021_v47  ;;  %v16057_v47 = vld [vmem:[%s17041_s20 + $0x1010] sm:$0xff]  }
 0x326   : > { %14846 = vmatprep.subr.bf16.mxu0 %v16024_v20  ;;  %2009 = vst.msk [vmem:[#allocation2 + $0x48] sm:$0x1] %vm273_vm0, %v2008_v15  ;;  %v16060_v20 = vld [vmem:[%s17041_s20 + $0x1058] sm:$0xff]   ;;  %v2468_v15 = vld [vmem:[%s17054_s9 + $0x12] sm:$0x3] }
 0x327   : > { %14867 = vmatpush3.bf16.msra.mxu1 %v16023_v18 }
 0x328   : > { %14868 = vmatprep.subr.bf16.mxu1 %v16026_v22  ;;  %v13282_v22 = vld [vmem:[%s17054_s9 + $0x60] sm:$0x3] }
 0x329   : > { %14847 = vmatpush3.bf16.msra.mxu0 %v16025_v21  ;;  %v16061_v21 = vld [vmem:[%s17041_s20 + $0x1018] sm:$0xff]  }
 0x32a   : > { %14848 = vmatprep.subr.bf16.mxu0 %v16028_v25  ;;  %v16062_v25 = vld [vmem:[%s17041_s20 + $0x10d8] sm:$0xff]  }
 0x32b   : > { %14869 = vmatpush3.bf16.msra.mxu1 %v16027_v24  ;;  %v13280_v24 = vld [vmem:[%s17054_s9 + $0x5e] sm:$0x3] }
 0x32c   : > { %14870 = vmatprep.subr.bf16.mxu1 %v16030_v27  ;;  %v2056_v27 = vpack.c.bf16 %v13280_v24, %v13280_v24  ;;  %v16081_v24 = vld [vmem:[%s17041_s20 + $0x1100] sm:$0xff]  }
 0x32d   : > { %14849 = vmatpush3.bf16.msra.mxu0 %v16029_v57  ;;  %v2080_v57 = vpack.c.bf16 %v13282_v22, %v13282_v22  ;;  %v5131_v22 = vrot.slane %v18313_v48, %v17056_v7  ;;  %v16085_v48 = vld [vmem:[%s17041_s20 + $0x1148] sm:$0xff]  }
 0x32e   : > { %14850 = vmatprep.subr.bf16.mxu0 %v16032_v9  ;;  %v2052_v11 = vpop.permute.xlu1 %2051  ;;  %v16064_v9 = vld [vmem:[%s17041_s20 + $0x1060] sm:$0xff]   ;;  %2057 = vst.msk [vmem:[#allocation2 + $0x4a] sm:$0x1] %vm273_vm0, %v2056_v27 }
 0x32f   : > { %14871 = vmatpush3.bf16.msra.mxu1 %v16031_v28  ;;  %2054 = vst.msk [vmem:[#allocation2 + $0x49] sm:$0x1] %vm295_vm1, %v2052_v11  ;;  %v16063_v28 = vld [vmem:[%s17041_s20 + $0x1098] sm:$0xff]  }
 0x330   : > { %14872 = vmatprep.subr.bf16.mxu1 %v16034_v34  ;;  %2081 = vst.msk [vmem:[#allocation2 + $0x4b] sm:$0x1] %vm273_vm0, %v2080_v57  ;;  %v16066_v34 = vld [vmem:[%s17041_s20 + $0x10e0] sm:$0xff]  }
 0x331   : > { %14851 = vmatpush3.bf16.msra.mxu0 %v16033_v30  ;;  %v16065_v30 = vld [vmem:[%s17041_s20 + $0x1020] sm:$0xff]  }
 0x332   : > { %14852 = vmatprep.subr.bf16.mxu0 %v16036_v36  ;;  %v16083_v57 = vld [vmem:[%s17041_s20 + $0x11c0] sm:$0xff]  }
 0x333   : > { %v14550_v51 = vpop.f32.mrb[32].mxu0  ;;  %14873 = vmatpush3.bf16.msra.mxu1 %v16035_v45  ;;  %v13286_v45 = vld [vmem:[%s17054_s9 + $0x64] sm:$0x3] }
 0x334   : > { %v14551_v35 = vpop.f32.mrb[33].mxu0  ;;  %14874 = vmatprep.subr.bf16.mxu1 %v16038_v32  ;;  %v2128_v32 = vpack.c.bf16 %v13286_v45, %v13286_v45  ;;  %v2492_v45 = vld [vmem:[%s17054_s9 + $0x14] sm:$0x3] }
 0x335   : > { %v14552_v50 = vadd.f32 %v14551_v35, %v14550_v51  ;;  %v14553_v52 = vpop.f32.mrb[34].mxu0  ;;  %v14572_v39 = vpop.f32.mrb[32].mxu1  ;;  %14853 = vmatpush3.bf16.msra.mxu0 %v16037_v29  ;;  %v16069_v35 = vld [vmem:[%s17041_s20 + $0x1028] sm:$0xff]  }
 0x336   : > { %v14554_v53 = vpop.f32.mrb[35].mxu0  ;;  %v14573_v38 = vpop.f32.mrb[33].mxu1  ;;  %14854 = vmatprep.subr.bf16.mxu0 %v16040_v42  ;;  %v16067_v42 = vld [vmem:[%s17041_s20 + $0x10a0] sm:$0xff]   ;;  %2129 = vst.msk [vmem:[#allocation2 + $0x4d] sm:$0x1] %vm273_vm0, %v2128_v32  ;;  %v5153_v32 = vcombine.high %v5131_v22, %v5131_v22 }
 0x337   : > { %v11465_v55 = vadd.f32 %v14552_v50, %v18260_v60  ;;  %v14574_v56 = vadd.f32 %v14573_v38, %v14572_v39  ;;  %v14575_v46 = vpop.f32.mrb[34].mxu1  ;;  %14875 = vmatpush3.bf16.msra.mxu1 %v16039_v41  ;;  %v16048_v60 = vld [vmem:[%s17041_s20 + $0x1040] sm:$0xff]   ;;  %v2028_v43 = vpop.permute.xlu0 %2027  ;;  %v13290_v50 = vld [vmem:[%s17054_s9 + $0x68] sm:$0x3]  ;;  %v13288_v52 = vld [vmem:[%s17054_s9 + $0x66] sm:$0x3]  ;;  %v5108_v53 = vcombine.high %v18306_v40, %v18306_v40 }
 0x338   : > { %v14576_v23 = vpop.f32.mrb[35].mxu1  ;;  %14876 = vmatprep.subr.bf16.mxu1 %v16042_v49  ;;  %v2100_v18 = vpop.permute.xlu1 %2099  ;;  %2030 = vst.msk [vmem:[#allocation2 + $0x48] sm:$0x1] %vm295_vm1, %v2028_v43  ;;  %v13284_v41 = vld [vmem:[%s17054_s9 + $0x62] sm:$0x3]  ;;  %v16070_v49 = vld [vmem:[%s17041_s20 + $0x10e8] sm:$0xff]   ;;  %v2176_v38 = vpack.c.bf16 %v13290_v50, %v13290_v50 }
 0x339   : > { %v18323_v62 = vadd.f32 %v14574_v56, %v11465_v55  ;;  %14855 = vmatpush3.bf16.msra.mxu0 %v16041_v13  ;;  %2102 = vst.msk [vmem:[#allocation2 + $0x4b] sm:$0x1] %vm295_vm1, %v2100_v18  ;;  %v2104_v51 = vpack.c.bf16 %v13284_v41, %v13284_v41  ;;  %v16068_v13 = vld [vmem:[%s17041_s20 + $0x1068] sm:$0xff]   ;;  %v16072_v56 = vld [vmem:[%s17041_s20 + $0x1070] sm:$0xff]   ;;  %v16076_v40 = vld [vmem:[%s17041_s20 + $0x1078] sm:$0xff]  }
 0x33a   : > { %14856 = vmatprep.subr.bf16.mxu0 %v16044_v54  ;;  %v16071_v39 = vld [vmem:[%s17041_s20 + $0x10a8] sm:$0xff]   ;;  %v2152_v54 = vpack.c.bf16 %v13288_v52, %v13288_v52  ;;  %2177 = vst.msk [vmem:[#allocation2 + $0x4f] sm:$0x1] %vm273_vm0, %v2176_v38  ;;  %v2420_v23 = vld [vmem:[%s17054_s9 + $0xe] sm:$0x3] }
 0x33b   : > { %14877 = vmatpush3.bf16.msra.mxu1 %v16043_v1  ;;  %v2076_v19 = vpop.permute.xlu0 %2075  ;;  %2105 = vst.msk [vmem:[#allocation2 + $0x4c] sm:$0x1] %vm273_vm0, %v2104_v51  ;;  %v16086_v41 = vld [vmem:[%s17041_s20 + $0x1108] sm:$0xff]   ;;  %v16089_v50 = vld [vmem:[%s17041_s20 + $0x1150] sm:$0xff]   ;;  %v2564_v52 = vld [vmem:[%s17054_s9 + $0x1a] sm:$0x3] }
 0x33c   : > { %14878 = vmatprep.subr.bf16.mxu1 %v16046_v61  ;;  %2078 = vst.msk [vmem:[#allocation2 + $0x4a] sm:$0x1] %vm295_vm1, %v2076_v19  ;;  %v2148_v36 = vpop.permute.xlu1 %2147  ;;  %v2396_v61 = vld [vmem:[%s17054_s9 + $0xc] sm:$0x3]  ;;  %v2469_v19 = vpack.c.bf16 %v2468_v15, %v2468_v15  ;;  %v2540_v38 = vld [vmem:[%s17054_s9 + $0x18] sm:$0x3] }
 0x33d   : > { %14857 = vmatpush3.bf16.msra.mxu0 %v16045_v33  ;;  %2150 = vst.msk [vmem:[#allocation2 + $0x4d] sm:$0x1] %vm295_vm1, %v2148_v36  ;;  %v16073_v33 = vld [vmem:[%s17041_s20 + $0x1030] sm:$0xff]  }
 0x33e   : > { %14886 = vmatprep.subr.bf16.mxu0 %v16048_v60  ;;  %2153 = vst.msk [vmem:[#allocation2 + $0x4e] sm:$0x1] %vm273_vm0, %v2152_v54  ;;  %v2421_v60 = vpack.c.bf16 %v2420_v23, %v2420_v23  ;;  %v2541_v54 = vpack.c.bf16 %v2540_v38, %v2540_v38 }
 0x33f   : > { %14879 = vmatpush3.bf16.msra.mxu1 %v16047_v63  ;;  %v2124_v29 = vpop.permute.xlu0 %2123 }
 0x340   : > { %12023 = vmatmul.mubr.bf16.vlgmr.msra.gmra.mrb[60].mxu0 %v5089_v3  ;;  %14908 = vmatprep.subr.bf16.mxu1 %v16050_v4  ;;  %2126 = vst.msk [vmem:[#allocation2 + $0x4c] sm:$0x1] %vm295_vm1, %v2124_v29  ;;  %v2429_v11 = vrot.slane %v2421_v60, %v17056_v7  ;;  %v2493_v29 = vpack.c.bf16 %v2492_v45, %v2492_v45  ;;  %v16095_v60 = vld [vmem:[%s17041_s20 + $0x11d8] sm:$0xff]   ;;  %v16114_v45 = vld [vmem:[%s17041_s20 + $0x1200] sm:$0xff]  }
 0x341   : > { %14887 = vmatpush3.bf16.msra.mxu0 %v16049_v0  ;;  %12102 = vmatprep.mubr.bf16.mxu0 %v5145_v2  ;;  %v2196_v1 = vpop.permute.xlu1 %2195  ;;  %v2397_v0 = vpack.c.bf16 %v2396_v61, %v2396_v61  ;;  %v2549_v23 = vrot.slane %v2541_v54, %v17056_v7  ;;  %v16093_v61 = vld [vmem:[%s17041_s20 + $0x1158] sm:$0xff]  }
 0x342   : > { %12063 = vmatmul.mubr.bf16.vlgmr.msra.gmra.mrb[60].mxu1 %v5105_v12  ;;  %14888 = vmatprep.subr.bf16.mxu0 %v16052_v6  ;;  %2198 = vst.msk [vmem:[#allocation2 + $0x4f] sm:$0x1] %vm295_vm1, %v2196_v1  ;;  %v18387_v6 = vrot.slane %v5108_v53, %v17056_v7  ;;  %v2565_v53 = vpack.c.bf16 %v2564_v52, %v2564_v52  ;;  %v16088_v1 = vld [vmem:[%s17041_s20 + $0x1188] sm:$0xff]   ;;  %v16123_v52 = vld [vmem:[%s17041_s20 + $0x12d0] sm:$0xff]  }
 0x343   : > { %14909 = vmatpush3.bf16.msra.mxu1 %v16051_v5  ;;  %12142 = vmatprep.mubr.bf16.mxu1 %v5155_v8  ;;  %v2172_v55 = vpop.permute.xlu0 %2171  ;;  %v16075_v5 = vld [vmem:[%s17041_s20 + $0x10b0] sm:$0xff]   ;;  %v2405_v12 = vrot.slane %v2397_v0, %v17056_v7  ;;  %v2556_v0 = vrot.slane %v2549_v23, %v17056_v7 }
 0x344   : > { %14910 = vmatprep.subr.bf16.mxu1 %v16054_v31  ;;  %2174 = vst.msk [vmem:[#allocation2 + $0x4e] sm:$0x1] %vm295_vm1, %v2172_v55  ;;  %v5124_v18 = vcombine.high %v18387_v6, %v18387_v6  ;;  %v16090_v55 = vld [vmem:[%s17041_s20 + $0x1110] sm:$0xff]  }
 0x345   : > { %14889 = vmatpush3.bf16.msra.mxu0 %v16053_v44  ;;  %v2412_v14 = vrot.slane %v2405_v12, %v17056_v7  ;;  %v16103_v12 = vld [vmem:[%s17041_s20 + $0x11e8] sm:$0xff]  }
 0x346   : > { %14890 = vmatprep.subr.bf16.mxu0 %v16056_v37  ;;  %v16077_v37 = vld [vmem:[%s17041_s20 + $0x1038] sm:$0xff]  }
 0x347   : > { %14911 = vmatpush3.bf16.msra.mxu1 %v16055_v58  ;;  %2413 = vrot.lane.b32.xlu0 %v2412_v14, %s16688_s4  ;;  %v16107_v14 = vld [vmem:[%s17041_s20 + $0x11f0] sm:$0xff]  }
 0x348   : > { %14912 = vmatprep.subr.bf16.mxu1 %v16058_v16  ;;  %v2444_v16 = vld [vmem:[%s17054_s9 + $0x10] sm:$0x3] }
 0x349   : > { %14891 = vmatpush3.bf16.msra.mxu0 %v16057_v47  ;;  %v2436_v47 = vrot.slane %v2429_v11, %v17056_v7  ;;  %v16102_v11 = vld [vmem:[%s17041_s20 + $0x1128] sm:$0xff]  }
 0x34a   : > { %14892 = vmatprep.subr.bf16.mxu0 %v16060_v20  ;;  %v2445_v20 = vpack.c.bf16 %v2444_v16, %v2444_v16 }
 0x34b   : > { %14913 = vmatpush3.bf16.msra.mxu1 %v16059_v17  ;;  %2437 = vrot.lane.b32.xlu1 %v2436_v47, %s16688_s4 }
 0x34c   : > { %14914 = vmatprep.subr.bf16.mxu1 %v16062_v25  ;;  %v2477_v25 = vrot.slane %v2469_v19, %v17056_v7  ;;  %v2453_v27 = vrot.slane %v2445_v20, %v17056_v7  ;;  %v16109_v19 = vld [vmem:[%s17041_s20 + $0x1178] sm:$0xff]  }
 0x34d   : > { %14893 = vmatpush3.bf16.msra.mxu0 %v16061_v21  ;;  %v16080_v21 = vld [vmem:[%s17041_s20 + $0x1140] sm:$0xff]  }
 0x34e   : > { %14894 = vmatprep.subr.bf16.mxu0 %v16064_v9  ;;  %v16084_v9 = vld [vmem:[%s17041_s20 + $0x1180] sm:$0xff]   ;;  %v2460_v51 = vrot.slane %v2453_v27, %v17056_v7 }
 0x34f   : > { %14915 = vmatpush3.bf16.msra.mxu1 %v16063_v28  ;;  %v5152_v28 = vrot.slane %v5124_v18, %v17056_v7  ;;  %v16108_v18 = vld [vmem:[%s17041_s20 + $0x11b0] sm:$0xff]  }
 0x350   : > { %14916 = vmatprep.subr.bf16.mxu1 %v16066_v34  ;;  %v2516_v34 = vld [vmem:[%s17054_s9 + $0x16] sm:$0x3]  ;;  %2461 = vrot.lane.b32.xlu0 %v2460_v51, %s16688_s4 }
 0x351   : > { %14895 = vmatpush3.bf16.msra.mxu0 %v16065_v30  ;;  %v2484_v30 = vrot.slane %v2477_v25, %v17056_v7  ;;  %v2517_v36 = vpack.c.bf16 %v2516_v34, %v2516_v34  ;;  %v16112_v34 = vld [vmem:[%s17041_s20 + $0x11b8] sm:$0xff]  }
 0x352   : > { %14896 = vmatprep.subr.bf16.mxu0 %v16068_v13 }
 0x353   : > { %v14594_v46 = vpop.f32.mrb[36].mxu0  ;;  %14917 = vmatpush3.bf16.msra.mxu1 %v16067_v42  ;;  %2485 = vrot.lane.b32.xlu1 %v2484_v30, %s16688_s4  ;;  %v16087_v42 = vld [vmem:[%s17041_s20 + $0x11c8] sm:$0xff]   ;;  %v2525_v13 = vrot.slane %v2517_v36, %v17056_v7  ;;  %v5138_v36 = vrot.slane %v18387_v6, %v17056_v7  ;;  %v16121_v6 = vld [vmem:[%s17041_s20 + $0x1250] sm:$0xff]  }
 0x354   : > { %v14595_v63 = vpop.f32.mrb[37].mxu0  ;;  %14918 = vmatprep.subr.bf16.mxu1 %v16070_v49  ;;  %v5156_v49 = vcombine.high %v5152_v28, %v5152_v28 }
 0x355   : > { %v14596_v2 = vadd.f32 %v14595_v63, %v14594_v46  ;;  %v14597_v3 = vpop.f32.mrb[38].mxu0  ;;  %v14616_v4 = vpop.f32.mrb[36].mxu1  ;;  %14897 = vmatpush3.bf16.msra.mxu0 %v16069_v35  ;;  %v2501_v35 = vrot.slane %v2493_v29, %v17056_v7  ;;  %v16115_v29 = vld [vmem:[%s17041_s20 + $0x12c0] sm:$0xff]  }
 0x356   : > { %v14598_v44 = vpop.f32.mrb[39].mxu0  ;;  %v14617_v8 = vpop.f32.mrb[37].mxu1  ;;  %14898 = vmatprep.subr.bf16.mxu0 %v16072_v56  ;;  %v16091_v56 = vld [vmem:[%s17041_s20 + $0x11d0] sm:$0xff]   ;;  %v16097_v3 = vld [vmem:[%s17041_s20 + $0x1160] sm:$0xff]  }
 0x357   : > { %v11545_v31 = vadd.f32 %v14596_v2, %v18323_v62  ;;  %v14618_v43 = vadd.f32 %v14617_v8, %v14616_v4  ;;  %v14619_v58 = vpop.f32.mrb[38].mxu1  ;;  %14919 = vmatpush3.bf16.msra.mxu1 %v16071_v39  ;;  %v16079_v62 = vld [vmem:[%s17041_s20 + $0x10b8] sm:$0xff]   ;;  %v2532_v39 = vrot.slane %v2525_v13, %v17056_v7  ;;  %v2508_v46 = vrot.slane %v2501_v35, %v17056_v7  ;;  %v16098_v4 = vld [vmem:[%s17041_s20 + $0x1120] sm:$0xff]   ;;  %v16101_v8 = vld [vmem:[%s17041_s20 + $0x1168] sm:$0xff]  }
 0x358   : > { %v14620_v26 = vpop.f32.mrb[39].mxu1  ;;  %14920 = vmatprep.subr.bf16.mxu1 %v16074_v59  ;;  %v16092_v59 = vld [vmem:[%s17041_s20 + $0x1190] sm:$0xff]   ;;  %v16096_v2 = vld [vmem:[%s17041_s20 + $0x1198] sm:$0xff]   ;;  %v16100_v44 = vld [vmem:[%s17041_s20 + $0x11a0] sm:$0xff]   ;;  %v5154_v13 = vcombine.high %v5138_v36, %v5138_v36 }
 0x359   : > { %v18398_v17 = vadd.f32 %v14618_v43, %v11545_v31  ;;  %14899 = vmatpush3.bf16.msra.mxu0 %v16073_v33  ;;  %v2573_v33 = vrot.slane %v2565_v53, %v17056_v7  ;;  %2533 = vrot.lane.b32.xlu1 %v2532_v39, %s16688_s4  ;;  %v18453_v31 = vld [vmem:[#allocation2 + $0x48] sm:$0xff]  ;;  %v16125_v53 = vld [vmem:[%s17041_s20 + $0x1258] sm:$0xff]  }
 0x35a   : > { %14900 = vmatprep.subr.bf16.mxu0 %v16076_v40  ;;  %v16094_v40 = vld [vmem:[%s17041_s20 + $0x1118] sm:$0xff]   ;;  %2509 = vrot.lane.b32.xlu0 %v2508_v46, %s16688_s4  ;;  %v16104_v43 = vld [vmem:[%s17041_s20 + $0x11a8] sm:$0xff]   ;;  %v16105_v58 = vld [vmem:[%s17041_s20 + $0x1170] sm:$0xff]  }
 0x35b   : > { %14921 = vmatpush3.bf16.msra.mxu1 %v16075_v5  ;;  %v2580_v63 = vrot.slane %v2573_v33, %v17056_v7  ;;  %v16099_v5 = vld [vmem:[%s17041_s20 + $0x11e0] sm:$0xff]   ;;  %v16106_v26 = vld [vmem:[%s17041_s20 + $0x1130] sm:$0xff]   ;;  %v16119_v35 = vld [vmem:[%s17041_s20 + $0x12c8] sm:$0xff]  }
 0x35c   : > { %14922 = vmatprep.subr.bf16.mxu1 %v16078_v10  ;;  %v18460_v10 = vrot.slane %v18453_v31, %v17056_v7  ;;  %v16124_v39 = vld [vmem:[%s17041_s20 + $0x1290] sm:$0xff]   ;;  %v13294_v46 = vld [vmem:[%s17054_s9 + $0x6c] sm:$0x3]  ;;  %v13292_v33 = vld [vmem:[%s17054_s9 + $0x6a] sm:$0x3] }
 0x35d   : > { %14901 = vmatpush3.bf16.msra.mxu0 %v16077_v37  ;;  %2581 = vrot.lane.b32.xlu1 %v2580_v63, %s16688_s4  ;;  %v2224_v23 = vpack.c.bf16 %v13294_v46, %v13294_v46  ;;  %v16130_v63 = vld [vmem:[%s17041_s20 + $0x1220] sm:$0xff]  }
 0x35e   : > { %14930 = vmatprep.subr.bf16.mxu0 %v16080_v21  ;;  %2557 = vrot.lane.b32.xlu0 %v2556_v0, %s16688_s4  ;;  %v5172_v27 = vcombine.high %v18460_v10, %v18460_v10  ;;  %v16132_v0 = vld [vmem:[%s17041_s20 + $0x12a0] sm:$0xff]  }
 0x35f   : > { %14923 = vmatpush3.bf16.msra.mxu1 %v16079_v62  ;;  %2225 = vst.msk [vmem:[#allocation2 + $0x51] sm:$0x1] %vm273_vm0, %v2224_v23  ;;  %v16149_v46 = vld [vmem:[%s17041_s20 + $0x1380] sm:$0xff]   ;;  %v16150_v23 = vld [vmem:[%s17041_s20 + $0x1348] sm:$0xff]  }
 0x360   : > { %12103 = vmatmul.mubr.bf16.vlgmr.msra.gmra.mrb[64].mxu0 %v5131_v22  ;;  %14952 = vmatprep.subr.bf16.mxu1 %v16083_v57  ;;  %v16110_v57 = vld [vmem:[%s17041_s20 + $0x1138] sm:$0xff]  }
 0x361   : > { %14931 = vmatpush3.bf16.msra.mxu0 %v16081_v24  ;;  %12182 = vmatprep.mubr.bf16.mxu0 %v5152_v28 }
 0x362   : > { %12143 = vmatmul.mubr.bf16.vlgmr.msra.gmra.mrb[64].mxu1 %v5153_v32  ;;  %14932 = vmatprep.subr.bf16.mxu0 %v16085_v48  ;;  %v5194_v48 = vrot.slane %v5172_v27, %v17056_v7  ;;  %v16116_v32 = vld [vmem:[%s17041_s20 + $0x1280] sm:$0xff]  }
 0x363   : > { %14953 = vmatpush3.bf16.msra.mxu1 %v16084_v9  ;;  %12222 = vmatprep.mubr.bf16.mxu1 %v5156_v49  ;;  %v16111_v9 = vld [vmem:[%s17041_s20 + $0x11f8] sm:$0xff]   ;;  %v16120_v49 = vld [vmem:[%s17041_s20 + $0x1288] sm:$0xff]  }
 0x364   : > { %14954 = vmatprep.subr.bf16.mxu1 %v16087_v42  ;;  %v16118_v42 = vld [vmem:[%s17041_s20 + $0x1208] sm:$0xff]   ;;  %v5204_v51 = vcombine.high %v5194_v48, %v5194_v48 }
 0x365   : > { %14933 = vmatpush3.bf16.msra.mxu0 %v16086_v41  ;;  %v16117_v41 = vld [vmem:[%s17041_s20 + $0x1248] sm:$0xff]  }
 0x366   : > { %14934 = vmatprep.subr.bf16.mxu0 %v16089_v50  ;;  %v16122_v50 = vld [vmem:[%s17041_s20 + $0x1210] sm:$0xff]  }
 0x367   : > { %14955 = vmatpush3.bf16.msra.mxu1 %v16088_v1  ;;  %v16126_v1 = vld [vmem:[%s17041_s20 + $0x1218] sm:$0xff]  }
 0x368   : > { %14956 = vmatprep.subr.bf16.mxu1 %v16091_v56  ;;  %v16128_v56 = vld [vmem:[%s17041_s20 + $0x1298] sm:$0xff]  }
 0x369   : > { %14935 = vmatpush3.bf16.msra.mxu0 %v16090_v55  ;;  %v16127_v55 = vld [vmem:[%s17041_s20 + $0x12d8] sm:$0xff]  }
 0x36a   : > { %14936 = vmatprep.subr.bf16.mxu0 %v16093_v61  ;;  %v2200_v61 = vpack.c.bf16 %v13292_v33, %v13292_v33 }
 0x36b   : > { %14957 = vmatpush3.bf16.msra.mxu1 %v16092_v59  ;;  %v16129_v59 = vld [vmem:[%s17041_s20 + $0x1260] sm:$0xff]  }
 0x36c   : > { %14958 = vmatprep.subr.bf16.mxu1 %v16095_v60  ;;  %2201 = vst.msk [vmem:[#allocation2 + $0x50] sm:$0x1] %vm273_vm0, %v2200_v61  ;;  %v2660_v61 = vld [vmem:[%s17054_s9 + $0x22] sm:$0x3] }
 0x36d   : > { %14937 = vmatpush3.bf16.msra.mxu0 %v16094_v40  ;;  %v16131_v40 = vld [vmem:[%s17041_s20 + $0x12e0] sm:$0xff]  }
 0x36e   : > { %14938 = vmatprep.subr.bf16.mxu0 %v16097_v3  ;;  %v2273_v3 = vld [vmem:[%s17054_s9 + $0x1] sm:$0x3] }
 0x36f   : > { %14959 = vmatpush3.bf16.msra.mxu1 %v16096_v2  ;;  %v16133_v2 = vld [vmem:[%s17041_s20 + $0x1268] sm:$0xff]  }
 0x370   : > { %14960 = vmatprep.subr.bf16.mxu1 %v16099_v5  ;;  %v2274_v5 = vpack.c.bf16 %v2273_v3, %v2273_v3 }
 0x371   : > { %14939 = vmatpush3.bf16.msra.mxu0 %v16098_v4 }
 0x372   : > { %14940 = vmatprep.subr.bf16.mxu0 %v16101_v8  ;;  %v16134_v8 = vld [vmem:[%s17041_s20 + $0x1228] sm:$0xff]   ;;  %2275 = vst.msk [vmem:[#allocation2 + $0x53] sm:$0x1] %vm273_vm0, %v2274_v5 }
 0x373   : > { %v14638_v37 = vpop.f32.mrb[40].mxu0  ;;  %14961 = vmatpush3.bf16.msra.mxu1 %v16100_v44  ;;  %v13296_v44 = vld [vmem:[%s17054_s9 + $0x6e] sm:$0x3]  ;;  %v16153_v5 = vld [vmem:[%s17041_s20 + $0x1388] sm:$0xff]  }
 0x374   : > { %v14639_v47 = vpop.f32.mrb[41].mxu0  ;;  %14962 = vmatprep.subr.bf16.mxu1 %v16103_v12  ;;  %v16135_v12 = vld [vmem:[%s17041_s20 + $0x12e8] sm:$0xff]  }
 0x375   : > { %v14640_v15 = vadd.f32 %v14639_v47, %v14638_v37  ;;  %v14641_v16 = vpop.f32.mrb[42].mxu0  ;;  %v14660_v62 = vpop.f32.mrb[40].mxu1  ;;  %14941 = vmatpush3.bf16.msra.mxu0 %v16102_v11  ;;  %v2248_v11 = vpack.c.bf16 %v13296_v44, %v13296_v44  ;;  %v16137_v37 = vld [vmem:[%s17041_s20 + $0x1270] sm:$0xff]  }
 0x376   : > { %v14642_v20 = vpop.f32.mrb[43].mxu0  ;;  %v14661_v21 = vpop.f32.mrb[41].mxu1  ;;  %14942 = vmatprep.subr.bf16.mxu0 %v16105_v58  ;;  %v5157_v58 = vcombine.high %v18453_v31, %v18453_v31  ;;  %v16138_v16 = vld [vmem:[%s17041_s20 + $0x1230] sm:$0xff]  }
 0x377   : > { %v11625_v22 = vadd.f32 %v14640_v15, %v18398_v17  ;;  %v14662_v24 = vadd.f32 %v14661_v21, %v14660_v62  ;;  %v14663_v25 = vpop.f32.mrb[42].mxu1  ;;  %14963 = vmatpush3.bf16.msra.mxu1 %v16104_v43  ;;  %v16113_v17 = vld [vmem:[%s17041_s20 + $0x1240] sm:$0xff]   ;;  %v2244_v38 = vpop.permute.xlu1 %2243  ;;  %v16136_v43 = vld [vmem:[%s17041_s20 + $0x12a8] sm:$0xff]   ;;  %2249 = vst.msk [vmem:[#allocation2 + $0x52] sm:$0x1] %vm273_vm0, %v2248_v11  ;;  %v16139_v20 = vld [vmem:[%s17041_s20 + $0x12f0] sm:$0xff]  }
 0x378   : > { %v14664_v28 = vpop.f32.mrb[43].mxu1  ;;  %14964 = vmatprep.subr.bf16.mxu1 %v16107_v14  ;;  %v2220_v54 = vpop.permute.xlu0 %2219  ;;  %2246 = vst.msk [vmem:[#allocation2 + $0x51] sm:$0x1] %vm295_vm1, %v2244_v38  ;;  %v2297_v14 = vld [vmem:[%s17054_s9 + $0x3] sm:$0x3]  ;;  %v18520_v25 = vrot.slane %v5157_v58, %v17056_v7  ;;  %v16154_v11 = vld [vmem:[%s17041_s20 + $0x1350] sm:$0xff]  }
 0x379   : > { %v18470_v30 = vadd.f32 %v14662_v24, %v11625_v22  ;;  %14943 = vmatpush3.bf16.msra.mxu0 %v16106_v26  ;;  %2222 = vst.msk [vmem:[#allocation2 + $0x50] sm:$0x1] %vm295_vm1, %v2220_v54  ;;  %v2321_v26 = vld [vmem:[%s17054_s9 + $0x5] sm:$0x3]  ;;  %v16140_v28 = vld [vmem:[%s17041_s20 + $0x12b0] sm:$0xff]   ;;  %v5180_v54 = vrot.slane %v18460_v10, %v17056_v7 }
 0x37a   : > { %14944 = vmatprep.subr.bf16.mxu0 %v16109_v19  ;;  %v2322_v62 = vpack.c.bf16 %v2321_v26, %v2321_v26  ;;  %v2636_v10 = vld [vmem:[%s17054_s9 + $0x20] sm:$0x3]  ;;  %v2708_v58 = vld [vmem:[%s17054_s9 + $0x26] sm:$0x3]  ;;  %v16156_v26 = vld [vmem:[%s17041_s20 + $0x13d0] sm:$0xff]  }
 0x37b   : > { %14965 = vmatpush3.bf16.msra.mxu1 %v16108_v18  ;;  %v2294_v60 = vpop.permute.xlu1 %2293  ;;  %v2298_v18 = vpack.c.bf16 %v2297_v14, %v2297_v14  ;;  %v2637_v3 = vpack.c.bf16 %v2636_v10, %v2636_v10  ;;  %v2709_v14 = vpack.c.bf16 %v2708_v58, %v2708_v58  ;;  %v16175_v10 = vld [vmem:[%s17041_s20 + $0x1338] sm:$0xff]   ;;  %v16183_v58 = vld [vmem:[%s17041_s20 + $0x1408] sm:$0xff]  }
 0x37c   : > { %14966 = vmatprep.subr.bf16.mxu1 %v16111_v9  ;;  %v2270_v4 = vpop.permute.xlu0 %2269  ;;  %2296 = vst.msk [vmem:[#allocation2 + $0x53] sm:$0x1] %vm295_vm1, %v2294_v60  ;;  %v16141_v9 = vld [vmem:[%s17041_s20 + $0x1278] sm:$0xff]   ;;  %v5202_v60 = vcombine.high %v5180_v54, %v5180_v54 }
 0x37d   : > { %14945 = vmatpush3.bf16.msra.mxu0 %v16110_v57  ;;  %2272 = vst.msk [vmem:[#allocation2 + $0x52] sm:$0x1] %vm295_vm1, %v2270_v4 }
 0x37e   : > { %14974 = vmatprep.subr.bf16.mxu0 %v16113_v17  ;;  %2323 = vst.msk [vmem:[#allocation2 + $0x55] sm:$0x1] %vm273_vm0, %v2322_v62  ;;  %2299 = vst.msk [vmem:[#allocation2 + $0x54] sm:$0x1] %vm273_vm0, %v2298_v18  ;;  %v16158_v18 = vld [vmem:[%s17041_s20 + $0x1358] sm:$0xff]  }
 0x37f   : > { %14967 = vmatpush3.bf16.msra.mxu1 %v16112_v34 }
 0x380   : > { %12183 = vmatmul.mubr.bf16.vlgmr.msra.gmra.mrb[68].mxu0 %v5138_v36  ;;  %14996 = vmatprep.subr.bf16.mxu1 %v16115_v29  ;;  %v2342_v47 = vpop.permute.xlu1 %2341  ;;  %v16143_v36 = vld [vmem:[%s17041_s20 + $0x12f8] sm:$0xff]   ;;  %v2369_v29 = vld [vmem:[%s17054_s9 + $0x9] sm:$0x3] }
 0x381   : > { %14975 = vmatpush3.bf16.msra.mxu0 %v16114_v45  ;;  %12262 = vmatprep.mubr.bf16.mxu0 %v5194_v48  ;;  %2344 = vst.msk [vmem:[#allocation2 + $0x55] sm:$0x1] %vm295_vm1, %v2342_v47  ;;  %v16142_v48 = vld [vmem:[%s17041_s20 + $0x1238] sm:$0xff]  }
 0x382   : > { %12223 = vmatmul.mubr.bf16.vlgmr.msra.gmra.mrb[68].mxu1 %v5154_v13  ;;  %14976 = vmatprep.subr.bf16.mxu0 %v16117_v41  ;;  %v16145_v41 = vld [vmem:[%s17041_s20 + $0x1340] sm:$0xff]   ;;  %v2345_v13 = vld [vmem:[%s17054_s9 + $0x7] sm:$0x3] }
 0x383   : > { %14997 = vmatpush3.bf16.msra.mxu1 %v16116_v32  ;;  %12302 = vmatprep.mubr.bf16.mxu1 %v5204_v51 }
 0x384   : > { %14998 = vmatprep.subr.bf16.mxu1 %v16119_v35 }
 0x385   : > { %14977 = vmatpush3.bf16.msra.mxu0 %v16118_v42  ;;  %v2318_v31 = vpop.permute.xlu0 %2317  ;;  %v2370_v42 = vpack.c.bf16 %v2369_v29, %v2369_v29  ;;  %v16164_v29 = vld [vmem:[%s17041_s20 + $0x13e0] sm:$0xff]  }
 0x386   : > { %14978 = vmatprep.subr.bf16.mxu0 %v16121_v6  ;;  %2320 = vst.msk [vmem:[#allocation2 + $0x54] sm:$0x1] %vm295_vm1, %v2318_v31  ;;  %v2346_v6 = vpack.c.bf16 %v2345_v13, %v2345_v13  ;;  %v2717_v31 = vrot.slane %v2709_v14, %v17056_v7  ;;  %v16167_v13 = vld [vmem:[%s17041_s20 + $0x1328] sm:$0xff]   ;;  %v16186_v14 = vld [vmem:[%s17041_s20 + $0x1450] sm:$0xff]  }
 0x387   : > { %14999 = vmatpush3.bf16.msra.mxu1 %v16120_v49  ;;  %v16144_v49 = vld [vmem:[%s17041_s20 + $0x12b8] sm:$0xff]   ;;  %2371 = vst.msk [vmem:[#allocation2 + $0x57] sm:$0x1] %vm273_vm0, %v2370_v42 }
 0x388   : > { %15000 = vmatprep.subr.bf16.mxu1 %v16123_v52  ;;  %v2390_v51 = vpop.permute.xlu1 %2389  ;;  %v2612_v52 = vld [vmem:[%s17054_s9 + $0x1e] sm:$0x3]  ;;  %2347 = vst.msk [vmem:[#allocation2 + $0x56] sm:$0x1] %vm273_vm0, %v2346_v6  ;;  %v16169_v6 = vld [vmem:[%s17041_s20 + $0x13a8] sm:$0xff]  }
 0x389   : > { %14979 = vmatpush3.bf16.msra.mxu0 %v16122_v50  ;;  %v2366_v50 = vpop.permute.xlu0 %2365  ;;  %2392 = vst.msk [vmem:[#allocation2 + $0x57] sm:$0x1] %vm295_vm1, %v2390_v51  ;;  %v2613_v38 = vpack.c.bf16 %v2612_v52, %v2612_v52  ;;  %v16166_v51 = vld [vmem:[%s17041_s20 + $0x1368] sm:$0xff]  }
 0x38a   : > { %14980 = vmatprep.subr.bf16.mxu0 %v16125_v53  ;;  %v16146_v53 = vld [vmem:[%s17041_s20 + $0x1300] sm:$0xff]   ;;  %2368 = vst.msk [vmem:[#allocation2 + $0x56] sm:$0x1] %vm295_vm1, %v2366_v50  ;;  %v16170_v50 = vld [vmem:[%s17041_s20 + $0x1370] sm:$0xff]  }
 0x38b   : > { %15001 = vmatpush3.bf16.msra.mxu1 %v16124_v39  ;;  %v2588_v39 = vld [vmem:[%s17054_s9 + $0x1c] sm:$0x3]  ;;  %v2621_v33 = vrot.slane %v2613_v38, %v17056_v7 }
 0x38c   : > { %15002 = vmatprep.subr.bf16.mxu1 %v16127_v55  ;;  %v16148_v55 = vld [vmem:[%s17041_s20 + $0x13c0] sm:$0xff]  }
 0x38d   : > { %14981 = vmatpush3.bf16.msra.mxu0 %v16126_v1  ;;  %v2589_v1 = vpack.c.bf16 %v2588_v39, %v2588_v39  ;;  %v16171_v39 = vld [vmem:[%s17041_s20 + $0x1330] sm:$0xff]  }
 0x38e   : > { %14982 = vmatprep.subr.bf16.mxu0 %v16129_v59 }
 0x38f   : > { %15003 = vmatpush3.bf16.msra.mxu1 %v16128_v56  ;;  %v2597_v59 = vrot.slane %v2589_v1, %v17056_v7  ;;  %v16172_v1 = vld [vmem:[%s17041_s20 + $0x13f0] sm:$0xff]  }
 0x390   : > { %15004 = vmatprep.subr.bf16.mxu1 %v16131_v40  ;;  %v2661_v40 = vpack.c.bf16 %v2660_v61, %v2660_v61 }
 0x391   : > { %14983 = vmatpush3.bf16.msra.mxu0 %v16130_v63  ;;  %v16151_v63 = vld [vmem:[%s17041_s20 + $0x1308] sm:$0xff]   ;;  %v2604_v44 = vrot.slane %v2597_v59, %v17056_v7  ;;  %v16173_v59 = vld [vmem:[%s17041_s20 + $0x13b0] sm:$0xff]  }
 0x392   : > { %14984 = vmatprep.subr.bf16.mxu0 %v16133_v2  ;;  %v2628_v2 = vrot.slane %v2621_v33, %v17056_v7 }
 0x393   : > { %v14682_v15 = vpop.f32.mrb[44].mxu0  ;;  %15005 = vmatpush3.bf16.msra.mxu1 %v16132_v0  ;;  %v16152_v0 = vld [vmem:[%s17041_s20 + $0x13c8] sm:$0xff]   ;;  %2605 = vrot.lane.b32.xlu0 %v2604_v44, %s16688_s4 }
 0x394   : > { %v14683_v19 = vpop.f32.mrb[45].mxu0  ;;  %15006 = vmatprep.subr.bf16.mxu1 %v16135_v12  ;;  %v2645_v12 = vrot.slane %v2637_v3, %v17056_v7  ;;  %2629 = vrot.lane.b32.xlu1 %v2628_v2, %s16688_s4  ;;  %v16176_v2 = vld [vmem:[%s17041_s20 + $0x13f8] sm:$0xff]  }
 0x395   : > { %v14684_v21 = vadd.f32 %v14683_v19, %v14682_v15  ;;  %v14685_v22 = vpop.f32.mrb[46].mxu0  ;;  %v14704_v24 = vpop.f32.mrb[44].mxu1  ;;  %14985 = vmatpush3.bf16.msra.mxu0 %v16134_v8  ;;  %v2669_v8 = vrot.slane %v2661_v40, %v17056_v7 }
 0x396   : > { %v14686_v57 = vpop.f32.mrb[47].mxu0  ;;  %v14705_v27 = vpop.f32.mrb[45].mxu1  ;;  %14986 = vmatprep.subr.bf16.mxu0 %v16137_v37  ;;  %v2684_v37 = vld [vmem:[%s17054_s9 + $0x24] sm:$0x3]  ;;  %v2652_v62 = vrot.slane %v2645_v12, %v17056_v7  ;;  %v2756_v22 = vld [vmem:[%s17054_s9 + $0x2a] sm:$0x3] }
 0x397   : > { %v11705_v34 = vadd.f32 %v14684_v21, %v18470_v30  ;;  %v14706_v17 = vadd.f32 %v14705_v27, %v14704_v24  ;;  %v14707_v45 = vpop.f32.mrb[46].mxu1  ;;  %15007 = vmatpush3.bf16.msra.mxu1 %v16136_v43  ;;  %v5173_v30 = vcombine.high %v18520_v25, %v18520_v25  ;;  %v16155_v43 = vld [vmem:[%s17041_s20 + $0x1310] sm:$0xff]   ;;  %v2676_v47 = vrot.slane %v2669_v8, %v17056_v7  ;;  %v2732_v24 = vld [vmem:[%s17054_s9 + $0x28] sm:$0x3]  ;;  %v16159_v57 = vld [vmem:[%s17041_s20 + $0x1318] sm:$0xff]  }
 0x398   : > { %v14708_v32 = vpop.f32.mrb[47].mxu1  ;;  %15008 = vmatprep.subr.bf16.mxu1 %v16139_v20  ;;  %v2685_v15 = vpack.c.bf16 %v2684_v37, %v2684_v37  ;;  %v16160_v20 = vld [vmem:[%s17041_s20 + $0x13d8] sm:$0xff]   ;;  %v2724_v21 = vrot.slane %v2717_v31, %v17056_v7  ;;  %2653 = vrot.lane.b32.xlu0 %v2652_v62, %s16688_s4  ;;  %v16163_v45 = vld [vmem:[%s17041_s20 + $0x1320] sm:$0xff]   ;;  %v5187_v8 = vrot.slane %v18520_v25, %v17056_v7  ;;  %v16185_v25 = vld [vmem:[%s17041_s20 + $0x1488] sm:$0xff]  }
 0x399   : > { %v18534_v35 = vadd.f32 %v14706_v17, %v11705_v34  ;;  %14987 = vmatpush3.bf16.msra.mxu0 %v16138_v16  ;;  %v5201_v56 = vrot.slane %v5173_v30, %v17056_v7  ;;  %v16157_v16 = vld [vmem:[%s17041_s20 + $0x1390] sm:$0xff]   ;;  %2677 = vrot.lane.b32.xlu1 %v2676_v47, %s16688_s4  ;;  %v16161_v34 = vld [vmem:[%s17041_s20 + $0x1398] sm:$0xff]   ;;  %v16162_v17 = vld [vmem:[%s17041_s20 + $0x1360] sm:$0xff]  }
 0x39a   : > { %14988 = vmatprep.subr.bf16.mxu0 %v16141_v9  ;;  %v2693_v19 = vrot.slane %v2685_v15, %v17056_v7  ;;  %v2733_v9 = vpack.c.bf16 %v2732_v24, %v2732_v24  ;;  %v16165_v32 = vld [vmem:[%s17041_s20 + $0x13a0] sm:$0xff]   ;;  %v18599_v30 = vld [vmem:[#allocation2 + $0x50] sm:$0xff]  ;;  %v16184_v47 = vld [vmem:[%s17041_s20 + $0x14c8] sm:$0xff]  }
 0x39b   : > { %15009 = vmatpush3.bf16.msra.mxu1 %v16140_v28  ;;  %v5205_v4 = vcombine.high %v5201_v56, %v5201_v56  ;;  %v2757_v28 = vpack.c.bf16 %v2756_v22, %v2756_v22  ;;  %v16181_v12 = vld [vmem:[%s17041_s20 + $0x1480] sm:$0xff]   ;;  %v16187_v15 = vld [vmem:[%s17041_s20 + $0x1410] sm:$0xff]   ;;  %v16191_v31 = vld [vmem:[%s17041_s20 + $0x1418] sm:$0xff]  }
 0x39c   : > { %15010 = vmatprep.subr.bf16.mxu1 %v16143_v36  ;;  %v2700_v27 = vrot.slane %v2693_v19, %v17056_v7  ;;  %v2741_v36 = vrot.slane %v2733_v9, %v17056_v7  ;;  %v16189_v62 = vld [vmem:[%s17041_s20 + $0x1490] sm:$0xff]   ;;  %v16192_v19 = vld [vmem:[%s17041_s20 + $0x14d8] sm:$0xff]   ;;  %v16195_v22 = vld [vmem:[%s17041_s20 + $0x1420] sm:$0xff]  }
 0x39d   : > { %14989 = vmatpush3.bf16.msra.mxu0 %v16142_v48  ;;  %v2765_v48 = vrot.slane %v2757_v28, %v17056_v7  ;;  %2725 = vrot.lane.b32.xlu1 %v2724_v21, %s16688_s4  ;;  %v16194_v21 = vld [vmem:[%s17041_s20 + $0x1460] sm:$0xff]   ;;  %v16198_v28 = vld [vmem:[%s17041_s20 + $0x1468] sm:$0xff]  }
 0x39e   : > { %15018 = vmatprep.subr.bf16.mxu0 %v16145_v41  ;;  %2701 = vrot.lane.b32.xlu0 %v2700_v27, %s16688_s4  ;;  %v2748_v42 = vrot.slane %v2741_v36, %v17056_v7  ;;  %v16196_v24 = vld [vmem:[%s17041_s20 + $0x14e0] sm:$0xff]   ;;  %v16199_v9 = vld [vmem:[%s17041_s20 + $0x1428] sm:$0xff]  }
 0x39f   : > { %15011 = vmatpush3.bf16.msra.mxu1 %v16144_v49  ;;  %v2772_v41 = vrot.slane %v2765_v48, %v17056_v7  ;;  %v16168_v49 = vld [vmem:[%s17041_s20 + $0x13e8] sm:$0xff]  }
 0x3a0   : > { %12263 = vmatmul.mubr.bf16.vlgmr.msra.gmra.mrb[72].mxu0 %v5180_v54  ;;  %15040 = vmatprep.subr.bf16.mxu1 %v16148_v55 }
 0x3a1   : > { %15019 = vmatpush3.bf16.msra.mxu0 %v16146_v53  ;;  %12342 = vmatprep.mubr.bf16.mxu0 %v5201_v56  ;;  %v18607_v53 = vrot.slane %v18599_v30, %v17056_v7 }
 0x3a2   : > { %12303 = vmatmul.mubr.bf16.vlgmr.msra.gmra.mrb[72].mxu1 %v5202_v60  ;;  %15020 = vmatprep.subr.bf16.mxu0 %v16150_v23  ;;  %v16174_v23 = vld [vmem:[%s17041_s20 + $0x1378] sm:$0xff]  }
 0x3a3   : > { %15041 = vmatpush3.bf16.msra.mxu1 %v16149_v46  ;;  %12382 = vmatprep.mubr.bf16.mxu1 %v5205_v4  ;;  %v5221_v60 = vcombine.high %v18607_v53, %v18607_v53  ;;  %v16177_v4 = vld [vmem:[%s17041_s20 + $0x13b8] sm:$0xff]  }
 0x3a4   : > { %15042 = vmatprep.subr.bf16.mxu1 %v16152_v0  ;;  %2773 = vrot.lane.b32.xlu1 %v2772_v41, %s16688_s4 }
 0x3a5   : > { %15021 = vmatpush3.bf16.msra.mxu0 %v16151_v63  ;;  %2749 = vrot.lane.b32.xlu0 %v2748_v42, %s16688_s4  ;;  %v5243_v44 = vrot.slane %v5221_v60, %v17056_v7  ;;  %v16202_v42 = vld [vmem:[%s17041_s20 + $0x1470] sm:$0xff]  }
 0x3a6   : > { %15022 = vmatprep.subr.bf16.mxu0 %v16154_v11  ;;  %v16180_v11 = vld [vmem:[%s17041_s20 + $0x14c0] sm:$0xff]  }
 0x3a7   : > { %15043 = vmatpush3.bf16.msra.mxu1 %v16153_v5  ;;  %v16179_v5 = vld [vmem:[%s17041_s20 + $0x1400] sm:$0xff]   ;;  %v5253_v37 = vcombine.high %v5243_v44, %v5243_v44 }
 0x3a8   : > { %15044 = vmatprep.subr.bf16.mxu1 %v16156_v26  ;;  %v5203_v26 = vcombine.high %v5187_v8, %v5187_v8 }
 0x3a9   : > { %15023 = vmatpush3.bf16.msra.mxu0 %v16155_v43  ;;  %v16182_v43 = vld [vmem:[%s17041_s20 + $0x1448] sm:$0xff]  }
 0x3aa   : > { %15024 = vmatprep.subr.bf16.mxu0 %v16158_v18  ;;  %v16190_v18 = vld [vmem:[%s17041_s20 + $0x1458] sm:$0xff]  }
 0x3ab   : > { %15045 = vmatpush3.bf16.msra.mxu1 %v16157_v16  ;;  %v16188_v16 = vld [vmem:[%s17041_s20 + $0x14d0] sm:$0xff]  }
 0x3ac   : > { %15046 = vmatprep.subr.bf16.mxu1 %v16160_v20  ;;  %v16193_v20 = vld [vmem:[%s17041_s20 + $0x1498] sm:$0xff]  }
 0x3ad   : > { %15025 = vmatpush3.bf16.msra.mxu0 %v16159_v57  ;;  %v16197_v57 = vld [vmem:[%s17041_s20 + $0x14a0] sm:$0xff]  }
 0x3ae   : > { %15026 = vmatprep.subr.bf16.mxu0 %v16162_v17  ;;  %v2393_v17 = vld [vmem:[%s17054_s9 + $0xb] sm:$0x3] }
 0x3af   : > { %15047 = vmatpush3.bf16.msra.mxu1 %v16161_v34  ;;  %v2417_v34 = vld [vmem:[%s17054_s9 + $0xd] sm:$0x3]  ;;  %v2394_v36 = vpack.c.bf16 %v2393_v17, %v2393_v17  ;;  %v16223_v17 = vld [vmem:[%s17041_s20 + $0x1558] sm:$0xff]  }
 0x3b0   : > { %15048 = vmatprep.subr.bf16.mxu1 %v16164_v29  ;;  %v2418_v48 = vpack.c.bf16 %v2417_v34, %v2417_v34  ;;  %v16201_v29 = vld [vmem:[%s17041_s20 + $0x14a8] sm:$0xff]   ;;  %v16222_v34 = vld [vmem:[%s17041_s20 + $0x1590] sm:$0xff]  }
 0x3b1   : > { %15027 = vmatpush3.bf16.msra.mxu0 %v16163_v45  ;;  %v16200_v45 = vld [vmem:[%s17041_s20 + $0x14e8] sm:$0xff]   ;;  %2395 = vst.msk [vmem:[#allocation2 + $0x58] sm:$0x1] %vm273_vm0, %v2394_v36  ;;  %v2804_v36 = vld [vmem:[%s17054_s9 + $0x2e] sm:$0x3] }
 0x3b2   : > { %15028 = vmatprep.subr.bf16.mxu0 %v16166_v51  ;;  %2419 = vst.msk [vmem:[#allocation2 + $0x59] sm:$0x1] %vm273_vm0, %v2418_v48  ;;  %v16225_v48 = vld [vmem:[%s17041_s20 + $0x15d8] sm:$0xff]  }
 0x3b3   : > { %v14726_v52 = vpop.f32.mrb[48].mxu0  ;;  %15049 = vmatpush3.bf16.msra.mxu1 %v16165_v32  ;;  %v5206_v32 = vcombine.high %v18599_v30, %v18599_v30 }
 0x3b4   : > { %v14727_v38 = vpop.f32.mrb[49].mxu0  ;;  %15050 = vmatprep.subr.bf16.mxu1 %v16168_v49  ;;  %v16204_v49 = vld [vmem:[%s17041_s20 + $0x14f0] sm:$0xff]  }
 0x3b5   : > { %v14728_v54 = vadd.f32 %v14727_v38, %v14726_v52  ;;  %v14729_v55 = vpop.f32.mrb[50].mxu0  ;;  %v14748_v56 = vpop.f32.mrb[48].mxu1  ;;  %15029 = vmatpush3.bf16.msra.mxu0 %v16167_v13  ;;  %v16203_v13 = vld [vmem:[%s17041_s20 + $0x1430] sm:$0xff]  }
 0x3b6   : > { %v14730_v46 = vpop.f32.mrb[51].mxu0  ;;  %v14749_v33 = vpop.f32.mrb[49].mxu1  ;;  %15030 = vmatprep.subr.bf16.mxu0 %v16170_v50  ;;  %v16206_v50 = vld [vmem:[%s17041_s20 + $0x1478] sm:$0xff]   ;;  %v2465_v52 = vld [vmem:[%s17054_s9 + $0x11] sm:$0x3] }
 0x3b7   : > { %v11785_v61 = vadd.f32 %v14728_v54, %v18534_v35  ;;  %v14750_v63 = vadd.f32 %v14749_v33, %v14748_v56  ;;  %v14751_v40 = vpop.f32.mrb[50].mxu1  ;;  %15051 = vmatpush3.bf16.msra.mxu1 %v16169_v6  ;;  %v16178_v35 = vld [vmem:[%s17041_s20 + $0x1440] sm:$0xff]   ;;  %v16205_v55 = vld [vmem:[%s17041_s20 + $0x14b0] sm:$0xff]   ;;  %v18663_v56 = vrot.slane %v5206_v32, %v17056_v7  ;;  %v2466_v46 = vpack.c.bf16 %v2465_v52, %v2465_v52 }
 0x3b8   : > { %v14752_v0 = vpop.f32.mrb[51].mxu1  ;;  %15052 = vmatprep.subr.bf16.mxu1 %v16172_v1  ;;  %v2805_v32 = vpack.c.bf16 %v2804_v36, %v2804_v36  ;;  %v16247_v36 = vld [vmem:[%s17041_s20 + $0x1648] sm:$0xff]  }
 0x3b9   : > { %v18617_v3 = vadd.f32 %v14750_v63, %v11785_v61  ;;  %15031 = vmatpush3.bf16.msra.mxu0 %v16171_v39  ;;  %v2414_v41 = vpop.permute.xlu0 %2413  ;;  %v2441_v39 = vld [vmem:[%s17054_s9 + $0xf] sm:$0x3]  ;;  %2467 = vst.msk [vmem:[#allocation2 + $0x5b] sm:$0x1] %vm273_vm0, %v2466_v46 }
 0x3ba   : > { %15032 = vmatprep.subr.bf16.mxu0 %v16174_v23  ;;  %2416 = vst.msk [vmem:[#allocation2 + $0x58] sm:$0x1] %vm295_vm1, %v2414_v41  ;;  %v2442_v33 = vpack.c.bf16 %v2441_v39, %v2441_v39  ;;  %v2780_v41 = vld [vmem:[%s17054_s9 + $0x2c] sm:$0x3]  ;;  %v2852_v39 = vld [vmem:[%s17054_s9 + $0x32] sm:$0x3] }
 0x3bb   : > { %15053 = vmatpush3.bf16.msra.mxu1 %v16173_v59 }
 0x3bc   : > { %15054 = vmatprep.subr.bf16.mxu1 %v16176_v2  ;;  %2443 = vst.msk [vmem:[#allocation2 + $0x5a] sm:$0x1] %vm273_vm0, %v2442_v33  ;;  %v16208_v2 = vld [vmem:[%s17041_s20 + $0x14f8] sm:$0xff]   ;;  %v16232_v33 = vld [vmem:[%s17041_s20 + $0x1528] sm:$0xff]  }
 0x3bd   : > { %15033 = vmatpush3.bf16.msra.mxu0 %v16175_v10  ;;  %v2438_v27 = vpop.permute.xlu1 %2437  ;;  %v16207_v10 = vld [vmem:[%s17041_s20 + $0x1438] sm:$0xff]  }
 0x3be   : > { %15062 = vmatprep.subr.bf16.mxu0 %v16178_v35  ;;  %2440 = vst.msk [vmem:[#allocation2 + $0x59] sm:$0x1] %vm295_vm1, %v2438_v27  ;;  %v5222_v35 = vcombine.high %v18663_v56, %v18663_v56  ;;  %v16219_v27 = vld [vmem:[%s17041_s20 + $0x1550] sm:$0xff]  }
 0x3bf   : > { %15055 = vmatpush3.bf16.msra.mxu1 %v16177_v4  ;;  %v16209_v4 = vld [vmem:[%s17041_s20 + $0x14b8] sm:$0xff]  }
 0x3c0   : > { %12343 = vmatmul.mubr.bf16.vlgmr.msra.gmra.mrb[76].mxu0 %v5187_v8  ;;  %15084 = vmatprep.subr.bf16.mxu1 %v16180_v11  ;;  %v2489_v8 = vld [vmem:[%s17054_s9 + $0x13] sm:$0x3]  ;;  %v16210_v11 = vld [vmem:[%s17041_s20 + $0x1540] sm:$0xff]  }
 0x3c1   : > { %15063 = vmatpush3.bf16.msra.mxu0 %v16179_v5  ;;  %12422 = vmatprep.mubr.bf16.mxu0 %v5243_v44  ;;  %v2513_v5 = vld [vmem:[%s17054_s9 + $0x15] sm:$0x3] }
 0x3c2   : > { %12383 = vmatmul.mubr.bf16.vlgmr.msra.gmra.mrb[76].mxu1 %v5203_v26  ;;  %15064 = vmatprep.subr.bf16.mxu0 %v16182_v43  ;;  %v2462_v60 = vpop.permute.xlu0 %2461  ;;  %v2490_v43 = vpack.c.bf16 %v2489_v8, %v2489_v8  ;;  %v5229_v26 = vrot.slane %v18607_v53, %v17056_v7  ;;  %v16216_v53 = vld [vmem:[%s17041_s20 + $0x1508] sm:$0xff]  }
 0x3c3   : > { %15085 = vmatpush3.bf16.msra.mxu1 %v16181_v12  ;;  %12462 = vmatprep.mubr.bf16.mxu1 %v5253_v37  ;;  %2464 = vst.msk [vmem:[#allocation2 + $0x5a] sm:$0x1] %vm295_vm1, %v2462_v60  ;;  %v2514_v12 = vpack.c.bf16 %v2513_v5, %v2513_v5  ;;  %v16236_v5 = vld [vmem:[%s17041_s20 + $0x1530] sm:$0xff]  }
 0x3c4   : > { %15086 = vmatprep.subr.bf16.mxu1 %v16184_v47  ;;  %v16213_v47 = vld [vmem:[%s17041_s20 + $0x15c0] sm:$0xff]   ;;  %2491 = vst.msk [vmem:[#allocation2 + $0x5c] sm:$0x1] %vm273_vm0, %v2490_v43  ;;  %v16237_v43 = vld [vmem:[%s17041_s20 + $0x15f0] sm:$0xff]  }
 0x3c5   : > { %15065 = vmatpush3.bf16.msra.mxu0 %v16183_v58  ;;  %v2486_v6 = vpop.permute.xlu1 %2485  ;;  %v16211_v58 = vld [vmem:[%s17041_s20 + $0x1500] sm:$0xff]   ;;  %2515 = vst.msk [vmem:[#allocation2 + $0x5d] sm:$0x1] %vm273_vm0, %v2514_v12 }
 0x3c6   : > { %15066 = vmatprep.subr.bf16.mxu0 %v16186_v14  ;;  %2488 = vst.msk [vmem:[#allocation2 + $0x5b] sm:$0x1] %vm295_vm1, %v2486_v6  ;;  %v16214_v14 = vld [vmem:[%s17041_s20 + $0x1580] sm:$0xff]  }
 0x3c7   : > { %15087 = vmatpush3.bf16.msra.mxu1 %v16185_v25  ;;  %v5250_v25 = vrot.slane %v5222_v35, %v17056_v7  ;;  %v16229_v6 = vld [vmem:[%s17041_s20 + $0x15e0] sm:$0xff]  }
 0x3c8   : > { %15088 = vmatprep.subr.bf16.mxu1 %v16188_v16  ;;  %v2561_v16 = vld [vmem:[%s17054_s9 + $0x19] sm:$0x3] }
 0x3c9   : > { %15067 = vmatpush3.bf16.msra.mxu0 %v16187_v15  ;;  %v16215_v15 = vld [vmem:[%s17041_s20 + $0x1548] sm:$0xff]  }
 0x3ca   : > { %15068 = vmatprep.subr.bf16.mxu0 %v16190_v18  ;;  %v2562_v18 = vpack.c.bf16 %v2561_v16, %v2561_v16  ;;  %v16239_v16 = vld [vmem:[%s17041_s20 + $0x1578] sm:$0xff]  }
 0x3cb   : > { %15089 = vmatpush3.bf16.msra.mxu1 %v16189_v62  ;;  %v2534_v44 = vpop.permute.xlu1 %2533  ;;  %v2537_v62 = vld [vmem:[%s17054_s9 + $0x17] sm:$0x3] }
 0x3cc   : > { %15090 = vmatprep.subr.bf16.mxu1 %v16192_v19  ;;  %v2510_v37 = vpop.permute.xlu0 %2509  ;;  %2536 = vst.msk [vmem:[#allocation2 + $0x5d] sm:$0x1] %vm295_vm1, %v2534_v44  ;;  %v2538_v19 = vpack.c.bf16 %v2537_v62, %v2537_v62 }
 0x3cd   : > { %15069 = vmatpush3.bf16.msra.mxu0 %v16191_v31  ;;  %2512 = vst.msk [vmem:[#allocation2 + $0x5c] sm:$0x1] %vm295_vm1, %v2510_v37 }
 0x3ce   : > { %15070 = vmatprep.subr.bf16.mxu0 %v16194_v21  ;;  %v5251_v21 = vcombine.high %v5229_v26, %v5229_v26  ;;  %2563 = vst.msk [vmem:[#allocation2 + $0x5f] sm:$0x1] %vm273_vm0, %v2562_v18  ;;  %2539 = vst.msk [vmem:[#allocation2 + $0x5e] sm:$0x1] %vm273_vm0, %v2538_v19  ;;  %v16240_v19 = vld [vmem:[%s17041_s20 + $0x1538] sm:$0xff]  }
 0x3cf   : > { %15091 = vmatpush3.bf16.msra.mxu1 %v16193_v20  ;;  %v2582_v31 = vpop.permute.xlu1 %2581 }
 0x3d0   : > { %15092 = vmatprep.subr.bf16.mxu1 %v16196_v24  ;;  %v2558_v20 = vpop.permute.xlu0 %2557  ;;  %v5254_v24 = vcombine.high %v5250_v25, %v5250_v25  ;;  %2584 = vst.msk [vmem:[#allocation2 + $0x5f] sm:$0x1] %vm295_vm1, %v2582_v31 }
 0x3d1   : > { %15071 = vmatpush3.bf16.msra.mxu0 %v16195_v22  ;;  %v16217_v22 = vld [vmem:[%s17041_s20 + $0x15c8] sm:$0xff]   ;;  %2560 = vst.msk [vmem:[#allocation2 + $0x5e] sm:$0x1] %vm295_vm1, %v2558_v20 }
 0x3d2   : > { %15072 = vmatprep.subr.bf16.mxu0 %v16198_v28  ;;  %v16220_v28 = vld [vmem:[%s17041_s20 + $0x1510] sm:$0xff]  }
 0x3d3   : > { %v14770_v51 = vpop.f32.mrb[52].mxu0  ;;  %15093 = vmatpush3.bf16.msra.mxu1 %v16197_v57  ;;  %v16218_v57 = vld [vmem:[%s17041_s20 + $0x1588] sm:$0xff]  }
 0x3d4   : > { %v14771_v30 = vpop.f32.mrb[53].mxu0  ;;  %15094 = vmatprep.subr.bf16.mxu1 %v16200_v45  ;;  %v16224_v45 = vld [vmem:[%s17041_s20 + $0x1518] sm:$0xff]  }
 0x3d5   : > { %v14772_v38 = vadd.f32 %v14771_v30, %v14770_v51  ;;  %v14773_v1 = vpop.f32.mrb[54].mxu0  ;;  %v14792_v54 = vpop.f32.mrb[52].mxu1  ;;  %15073 = vmatpush3.bf16.msra.mxu0 %v16199_v9  ;;  %v16221_v9 = vld [vmem:[%s17041_s20 + $0x15d0] sm:$0xff]   ;;  %v2781_v51 = vpack.c.bf16 %v2780_v41, %v2780_v41 }
 0x3d6   : > { %v14774_v59 = vpop.f32.mrb[55].mxu0  ;;  %v14793_v23 = vpop.f32.mrb[53].mxu1  ;;  %15074 = vmatprep.subr.bf16.mxu0 %v16202_v42  ;;  %v16227_v42 = vld [vmem:[%s17041_s20 + $0x1560] sm:$0xff]   ;;  %v16231_v1 = vld [vmem:[%s17041_s20 + $0x1568] sm:$0xff]  }
 0x3d7   : > { %v11865_v61 = vadd.f32 %v14772_v38, %v18617_v3  ;;  %v14794_v63 = vadd.f32 %v14793_v23, %v14792_v54  ;;  %v14795_v40 = vpop.f32.mrb[54].mxu1  ;;  %15095 = vmatpush3.bf16.msra.mxu1 %v16201_v29  ;;  %v16226_v29 = vld [vmem:[%s17041_s20 + $0x1598] sm:$0xff]   ;;  %v2789_v30 = vrot.slane %v2781_v51, %v17056_v7  ;;  %v2828_v38 = vld [vmem:[%s17054_s9 + $0x30] sm:$0x3]  ;;  %v16233_v59 = vld [vmem:[%s17041_s20 + $0x15e8] sm:$0xff]  }
 0x3d8   : > { %v14796_v0 = vpop.f32.mrb[55].mxu1  ;;  %15096 = vmatprep.subr.bf16.mxu1 %v16204_v49  ;;  %v2813_v49 = vrot.slane %v2805_v32, %v17056_v7  ;;  %v2829_v46 = vpack.c.bf16 %v2828_v38, %v2828_v38  ;;  %v16234_v40 = vld [vmem:[%s17041_s20 + $0x15a8] sm:$0xff]   ;;  %v16251_v51 = vld [vmem:[%s17041_s20 + $0x1650] sm:$0xff]   ;;  %v16259_v38 = vld [vmem:[%s17041_s20 + $0x1660] sm:$0xff]  }
 0x3d9   : > { %v18672_v3 = vadd.f32 %v14794_v63, %v11865_v61  ;;  %15075 = vmatpush3.bf16.msra.mxu0 %v16203_v13  ;;  %v16228_v13 = vld [vmem:[%s17041_s20 + $0x1520] sm:$0xff]   ;;  %v2796_v54 = vrot.slane %v2789_v30, %v17056_v7  ;;  %v16255_v30 = vld [vmem:[%s17041_s20 + $0x1658] sm:$0xff]  }
 0x3da   : > { %15076 = vmatprep.subr.bf16.mxu0 %v16206_v50  ;;  %v16230_v50 = vld [vmem:[%s17041_s20 + $0x15a0] sm:$0xff]   ;;  %v2820_v52 = vrot.slane %v2813_v49, %v17056_v7  ;;  %v2837_v61 = vrot.slane %v2829_v46, %v17056_v7  ;;  %v16253_v49 = vld [vmem:[%s17041_s20 + $0x16d0] sm:$0xff]   ;;  %v16263_v46 = vld [vmem:[%s17041_s20 + $0x1668] sm:$0xff]  }
 0x3db   : > { %15097 = vmatpush3.bf16.msra.mxu1 %v16205_v55  ;;  %v2853_v55 = vpack.c.bf16 %v2852_v39, %v2852_v39  ;;  %2797 = vrot.lane.b32.xlu0 %v2796_v54, %s16688_s4  ;;  %v18727_v63 = vld [vmem:[#allocation2 + $0x58] sm:$0xff] }
 0x3dc   : > { %15098 = vmatprep.subr.bf16.mxu1 %v16208_v2  ;;  %2821 = vrot.lane.b32.xlu1 %v2820_v52, %s16688_s4  ;;  %v2844_v0 = vrot.slane %v2837_v61, %v17056_v7  ;;  %v2900_v2 = vld [vmem:[%s17054_s9 + $0x36] sm:$0x3]  ;;  %v18738_v44 = vrot.slane %v18727_v63, %v17056_v7  ;;  %v16261_v54 = vld [vmem:[%s17041_s20 + $0x16e0] sm:$0xff]   ;;  %v5255_v61 = vcombine.high %v18727_v63, %v18727_v63 }
 0x3dd   : > { %15077 = vmatpush3.bf16.msra.mxu0 %v16207_v10  ;;  %v2861_v23 = vrot.slane %v2853_v55, %v17056_v7  ;;  %v16235_v10 = vld [vmem:[%s17041_s20 + $0x1570] sm:$0xff]   ;;  %v2901_v8 = vpack.c.bf16 %v2900_v2, %v2900_v2  ;;  %v16257_v52 = vld [vmem:[%s17041_s20 + $0x16d8] sm:$0xff]   ;;  %v16262_v55 = vld [vmem:[%s17041_s20 + $0x16a0] sm:$0xff]  }
 0x3de   : > { %15106 = vmatprep.subr.bf16.mxu0 %v16210_v11  ;;  %v5270_v20 = vcombine.high %v18738_v44, %v18738_v44  ;;  %v16258_v39 = vld [vmem:[%s17041_s20 + $0x1698] sm:$0xff]   ;;  %v16269_v2 = vld [vmem:[%s17041_s20 + $0x16f0] sm:$0xff]  }
 0x3df   : > { %15099 = vmatpush3.bf16.msra.mxu1 %v16209_v4  ;;  %v2868_v60 = vrot.slane %v2861_v23, %v17056_v7  ;;  %v2876_v4 = vld [vmem:[%s17054_s9 + $0x34] sm:$0x3]  ;;  %2845 = vrot.lane.b32.xlu0 %v2844_v0, %s16688_s4  ;;  %v16266_v23 = vld [vmem:[%s17041_s20 + $0x16a8] sm:$0xff]   ;;  %v2609_v63 = vld [vmem:[%s17054_s9 + $0x1d] sm:$0x3] }
 0x3e0   : > { %12423 = vmatmul.mubr.bf16.vlgmr.msra.gmra.mrb[80].mxu0 %v5229_v26  ;;  %15128 = vmatprep.subr.bf16.mxu1 %v16213_v47  ;;  %v2877_v11 = vpack.c.bf16 %v2876_v4, %v2876_v4  ;;  %v2909_v47 = vrot.slane %v2901_v8, %v17056_v7  ;;  %v16270_v8 = vld [vmem:[%s17041_s20 + $0x16b0] sm:$0xff]  }
 0x3e1   : > { %15107 = vmatpush3.bf16.msra.mxu0 %v16211_v58  ;;  %12502 = vmatprep.mubr.bf16.mxu0 %v5250_v25 }
 0x3e2   : > { %12463 = vmatmul.mubr.bf16.vlgmr.msra.gmra.mrb[80].mxu1 %v5251_v21  ;;  %15108 = vmatprep.subr.bf16.mxu0 %v16215_v15  ;;  %v16238_v15 = vld [vmem:[%s17041_s20 + $0x15b0] sm:$0xff]   ;;  %v2885_v62 = vrot.slane %v2877_v11, %v17056_v7  ;;  %v2916_v21 = vrot.slane %v2909_v47, %v17056_v7  ;;  %v16271_v11 = vld [vmem:[%s17041_s20 + $0x1678] sm:$0xff]  }
 0x3e3   : > { %15129 = vmatpush3.bf16.msra.mxu1 %v16214_v14  ;;  %12542 = vmatprep.mubr.bf16.mxu1 %v5254_v24  ;;  %v16241_v24 = vld [vmem:[%s17041_s20 + $0x15f8] sm:$0xff]  }
 0x3e4   : > { %15130 = vmatprep.subr.bf16.mxu1 %v16217_v22  ;;  %2869 = vrot.lane.b32.xlu1 %v2868_v60, %s16688_s4  ;;  %v16268_v60 = vld [vmem:[%s17041_s20 + $0x1630] sm:$0xff]  }
 0x3e5   : > { %15109 = vmatpush3.bf16.msra.mxu0 %v16216_v53 }
 0x3e6   : > { %15110 = vmatprep.subr.bf16.mxu0 %v16219_v27 }
 0x3e7   : > { %15131 = vmatpush3.bf16.msra.mxu1 %v16218_v57  ;;  %v2892_v57 = vrot.slane %v2885_v62, %v17056_v7 }
 0x3e8   : > { %15132 = vmatprep.subr.bf16.mxu1 %v16221_v9  ;;  %2917 = vrot.lane.b32.xlu1 %v2916_v21, %s16688_s4  ;;  %v16244_v9 = vld [vmem:[%s17041_s20 + $0x1600] sm:$0xff]  }
 0x3e9   : > { %15111 = vmatpush3.bf16.msra.mxu0 %v16220_v28  ;;  %v16243_v28 = vld [vmem:[%s17041_s20 + $0x1640] sm:$0xff]   ;;  %2893 = vrot.lane.b32.xlu0 %v2892_v57, %s16688_s4 }
 0x3ea   : > { %15112 = vmatprep.subr.bf16.mxu0 %v16223_v17  ;;  %v5236_v17 = vrot.slane %v18663_v56, %v17056_v7  ;;  %v16250_v56 = vld [vmem:[%s17041_s20 + $0x1688] sm:$0xff]   ;;  %v2633_v57 = vld [vmem:[%s17054_s9 + $0x1f] sm:$0x3] }
 0x3eb   : > { %15133 = vmatpush3.bf16.msra.mxu1 %v16222_v34  ;;  %v5292_v34 = vrot.slane %v5270_v20, %v17056_v7  ;;  %v16274_v20 = vld [vmem:[%s17041_s20 + $0x16b8] sm:$0xff]  }
 0x3ec   : > { %15134 = vmatprep.subr.bf16.mxu1 %v16225_v48  ;;  %v16246_v48 = vld [vmem:[%s17041_s20 + $0x1680] sm:$0xff]   ;;  %v5252_v41 = vcombine.high %v5236_v17, %v5236_v17 }
 0x3ed   : > { %15113 = vmatpush3.bf16.msra.mxu0 %v16224_v45  ;;  %v16245_v45 = vld [vmem:[%s17041_s20 + $0x16c0] sm:$0xff]   ;;  %v5302_v32 = vcombine.high %v5292_v34, %v5292_v34 }
 0x3ee   : > { %15114 = vmatprep.subr.bf16.mxu0 %v16227_v42  ;;  %v16249_v42 = vld [vmem:[%s17041_s20 + $0x16c8] sm:$0xff]  }
 0x3ef   : > { %15135 = vmatpush3.bf16.msra.mxu1 %v16226_v29  ;;  %v16248_v29 = vld [vmem:[%s17041_s20 + $0x1608] sm:$0xff]  }
 0x3f0   : > { %15136 = vmatprep.subr.bf16.mxu1 %v16229_v6  ;;  %v16254_v6 = vld [vmem:[%s17041_s20 + $0x1690] sm:$0xff]  }
 0x3f1   : > { %15115 = vmatpush3.bf16.msra.mxu0 %v16228_v13  ;;  %v16252_v13 = vld [vmem:[%s17041_s20 + $0x1610] sm:$0xff]  }
 0x3f2   : > { %15116 = vmatprep.subr.bf16.mxu0 %v16231_v1  ;;  %v16260_v1 = vld [vmem:[%s17041_s20 + $0x1620] sm:$0xff]  }
 0x3f3   : > { %v14814_v35 = vpop.f32.mrb[56].mxu0  ;;  %15137 = vmatpush3.bf16.msra.mxu1 %v16230_v50  ;;  %v16256_v50 = vld [vmem:[%s17041_s20 + $0x1618] sm:$0xff]  }
 0x3f4   : > { %v14815_v12 = vpop.f32.mrb[57].mxu0  ;;  %15138 = vmatprep.subr.bf16.mxu1 %v16233_v59  ;;  %v16265_v59 = vld [vmem:[%s17041_s20 + $0x16e8] sm:$0xff]  }
 0x3f5   : > { %v14816_v58 = vadd.f32 %v14815_v12, %v14814_v35  ;;  %v14817_v37 = vpop.f32.mrb[58].mxu0  ;;  %v14836_v26 = vpop.f32.mrb[56].mxu1  ;;  %15117 = vmatpush3.bf16.msra.mxu0 %v16232_v33  ;;  %v16264_v33 = vld [vmem:[%s17041_s20 + $0x1628] sm:$0xff]   ;;  %v18794_v12 = vrot.slane %v5255_v61, %v17056_v7  ;;  %v16288_v61 = vld [vmem:[%s17041_s20 + $0x1758] sm:$0xff]  }
 0x3f6   : > { %v14818_v25 = vpop.f32.mrb[59].mxu0  ;;  %v14837_v14 = vpop.f32.mrb[57].mxu1  ;;  %15118 = vmatprep.subr.bf16.mxu0 %v16235_v10  ;;  %v2610_v37 = vpack.c.bf16 %v2609_v63, %v2609_v63  ;;  %v16299_v63 = vld [vmem:[%s17041_s20 + $0x17a8] sm:$0xff]  }
 0x3f7   : > { %v11945_v53 = vadd.f32 %v14816_v58, %v18672_v3  ;;  %v14838_v18 = vadd.f32 %v14837_v14, %v14836_v26  ;;  %v14839_v31 = vpop.f32.mrb[58].mxu1  ;;  %15139 = vmatpush3.bf16.msra.mxu1 %v16234_v40  ;;  %v16242_v3 = vld [vmem:[%s17041_s20 + $0x15b8] sm:$0xff]   ;;  %v16267_v40 = vld [vmem:[%s17041_s20 + $0x1670] sm:$0xff]   ;;  %v5271_v21 = vcombine.high %v18794_v12, %v18794_v12 }
 0x3f8   : > { %v14840_v22 = vpop.f32.mrb[59].mxu1  ;;  %15140 = vmatprep.subr.bf16.mxu1 %v16237_v43  ;;  %v2585_v26 = vld [vmem:[%s17054_s9 + $0x1b] sm:$0x3]  ;;  %2611 = vst.msk [vmem:[#allocation2 + $0x61] sm:$0x1] %vm273_vm0, %v2610_v37  ;;  %v16301_v37 = vld [vmem:[%s17041_s20 + $0x1730] sm:$0xff]  }
 0x3f9   : > { %v18754_v27 = vadd.f32 %v14838_v18, %v11945_v53  ;;  %15119 = vmatpush3.bf16.msra.mxu0 %v16236_v5  ;;  %v2586_v62 = vpack.c.bf16 %v2585_v26, %v2585_v26  ;;  %v16273_v18 = vld [vmem:[%s17041_s20 + $0x16f8] sm:$0xff]   ;;  %v16275_v22 = vld [vmem:[%s17041_s20 + $0x1740] sm:$0xff]  }
 0x3fa   : > { %15120 = vmatprep.subr.bf16.mxu0 %v16239_v16 }
 0x3fb   : > { %15141 = vmatpush3.bf16.msra.mxu1 %v16238_v15  ;;  %v16272_v15 = vld [vmem:[%s17041_s20 + $0x1638] sm:$0xff]   ;;  %2587 = vst.msk [vmem:[#allocation2 + $0x60] sm:$0x1] %vm273_vm0, %v2586_v62  ;;  %v16303_v62 = vld [vmem:[%s17041_s20 + $0x17b0] sm:$0xff]  }
 0x3fc   : > { %15142 = vmatprep.subr.bf16.mxu1 %v16241_v24  ;;  %v2657_v24 = vld [vmem:[%s17054_s9 + $0x21] sm:$0x3] }
 0x3fd   : > { %15121 = vmatpush3.bf16.msra.mxu0 %v16240_v19 }
 0x3fe   : > { %15150 = vmatprep.subr.bf16.mxu0 %v16243_v28 }
 0x3ff   : > { %15143 = vmatpush3.bf16.msra.mxu1 %v16242_v3  ;;  %v2658_v3 = vpack.c.bf16 %v2657_v24, %v2657_v24 }
 0x400   : > { %12503 = vmatmul.mubr.bf16.vlgmr.msra.gmra.mrb[84].mxu0 %v5236_v17  ;;  %15172 = vmatprep.subr.bf16.mxu1 %v16245_v45  ;;  %v16278_v17 = vld [vmem:[%s17041_s20 + $0x17c0] sm:$0xff]  }
 0x401   : > { %15151 = vmatpush3.bf16.msra.mxu0 %v16244_v9  ;;  %12582 = vmatprep.mubr.bf16.mxu0 %v5292_v34  ;;  %v2634_v9 = vpack.c.bf16 %v2633_v57, %v2633_v57  ;;  %v5278_v34 = vrot.slane %v18738_v44, %v17056_v7  ;;  %2659 = vst.msk [vmem:[#allocation2 + $0x63] sm:$0x1] %vm273_vm0, %v2658_v3  ;;  %v16281_v44 = vld [vmem:[%s17041_s20 + $0x1708] sm:$0xff]   ;;  %v16305_v57 = vld [vmem:[%s17041_s20 + $0x1738] sm:$0xff]  }
 0x402   : > { %12543 = vmatmul.mubr.bf16.vlgmr.msra.gmra.mrb[84].mxu1 %v5252_v41  ;;  %15152 = vmatprep.subr.bf16.mxu0 %v16247_v36  ;;  %v16279_v36 = vld [vmem:[%s17041_s20 + $0x1780] sm:$0xff]  }
 0x403   : > { %15173 = vmatpush3.bf16.msra.mxu1 %v16246_v48  ;;  %12622 = vmatprep.mubr.bf16.mxu1 %v5302_v32  ;;  %v5299_v48 = vrot.slane %v5271_v21, %v17056_v7  ;;  %2635 = vst.msk [vmem:[#allocation2 + $0x62] sm:$0x1] %vm273_vm0, %v2634_v9  ;;  %v2705_v32 = vld [vmem:[%s17054_s9 + $0x25] sm:$0x3] }
 0x404   : > { %15174 = vmatprep.subr.bf16.mxu1 %v16249_v42  ;;  %v2681_v42 = vld [vmem:[%s17054_s9 + $0x23] sm:$0x3] }
 0x405   : > { %15153 = vmatpush3.bf16.msra.mxu0 %v16248_v29  ;;  %v2606_v31 = vpop.permute.xlu0 %2605  ;;  %v16280_v29 = vld [vmem:[%s17041_s20 + $0x1748] sm:$0xff]  }
 0x406   : > { %15154 = vmatprep.subr.bf16.mxu0 %v16251_v51  ;;  %v2630_v16 = vpop.permute.xlu1 %2629  ;;  %2608 = vst.msk [vmem:[#allocation2 + $0x60] sm:$0x1] %vm295_vm1, %v2606_v31  ;;  %v16282_v51 = vld [vmem:[%s17041_s20 + $0x17c8] sm:$0xff]  }
 0x407   : > { %15175 = vmatpush3.bf16.msra.mxu1 %v16250_v56  ;;  %2632 = vst.msk [vmem:[#allocation2 + $0x61] sm:$0x1] %vm295_vm1, %v2630_v16  ;;  %v5300_v56 = vcombine.high %v5278_v34, %v5278_v34 }
 0x408   : > { %15176 = vmatprep.subr.bf16.mxu1 %v16253_v49  ;;  %v2682_v49 = vpack.c.bf16 %v2681_v42, %v2681_v42 }
 0x409   : > { %15155 = vmatpush3.bf16.msra.mxu0 %v16252_v13  ;;  %v2706_v13 = vpack.c.bf16 %v2705_v32, %v2705_v32  ;;  %v16313_v32 = vld [vmem:[%s17041_s20 + $0x1808] sm:$0xff]  }
 0x40a   : > { %15156 = vmatprep.subr.bf16.mxu0 %v16255_v30  ;;  %v2654_v45 = vpop.permute.xlu0 %2653  ;;  %v5303_v30 = vcombine.high %v5299_v48, %v5299_v48  ;;  %2683 = vst.msk [vmem:[#allocation2 + $0x64] sm:$0x1] %vm273_vm0, %v2682_v49  ;;  %v16318_v49 = vld [vmem:[%s17041_s20 + $0x18d0] sm:$0xff]  }
 0x40b   : > { %15177 = vmatpush3.bf16.msra.mxu1 %v16254_v6  ;;  %v2678_v28 = vpop.permute.xlu1 %2677  ;;  %2656 = vst.msk [vmem:[#allocation2 + $0x62] sm:$0x1] %vm295_vm1, %v2654_v45 }
 0x40c   : > { %15178 = vmatprep.subr.bf16.mxu1 %v16257_v52  ;;  %2680 = vst.msk [vmem:[#allocation2 + $0x63] sm:$0x1] %vm295_vm1, %v2678_v28  ;;  %v16284_v52 = vld [vmem:[%s17041_s20 + $0x1750] sm:$0xff]   ;;  %v16306_v28 = vld [vmem:[%s17041_s20 + $0x17f8] sm:$0xff]  }
 0x40d   : > { %15157 = vmatpush3.bf16.msra.mxu0 %v16256_v50  ;;  %v16283_v50 = vld [vmem:[%s17041_s20 + $0x1788] sm:$0xff]   ;;  %2707 = vst.msk [vmem:[#allocation2 + $0x65] sm:$0x1] %vm273_vm0, %v2706_v13  ;;  %v16317_v13 = vld [vmem:[%s17041_s20 + $0x1810] sm:$0xff]  }
 0x40e   : > { %15158 = vmatprep.subr.bf16.mxu0 %v16259_v38  ;;  %v16286_v38 = vld [vmem:[%s17041_s20 + $0x17d0] sm:$0xff]  }
 0x40f   : > { %15179 = vmatpush3.bf16.msra.mxu1 %v16258_v39  ;;  %v2726_v41 = vpop.permute.xlu1 %2725  ;;  %v16285_v39 = vld [vmem:[%s17041_s20 + $0x1710] sm:$0xff]  }
 0x410   : > { %15180 = vmatprep.subr.bf16.mxu1 %v16261_v54  ;;  %v2702_v6 = vpop.permute.xlu0 %2701  ;;  %2728 = vst.msk [vmem:[#allocation2 + $0x65] sm:$0x1] %vm295_vm1, %v2726_v41 }
 0x411   : > { %15159 = vmatpush3.bf16.msra.mxu0 %v16260_v1  ;;  %2704 = vst.msk [vmem:[#allocation2 + $0x64] sm:$0x1] %vm295_vm1, %v2702_v6  ;;  %v2753_v1 = vld [vmem:[%s17054_s9 + $0x29] sm:$0x3]  ;;  %v16319_v6 = vld [vmem:[%s17041_s20 + $0x1890] sm:$0xff]  }
 0x412   : > { %15160 = vmatprep.subr.bf16.mxu0 %v16263_v46  ;;  %v2754_v54 = vpack.c.bf16 %v2753_v1, %v2753_v1  ;;  %v2729_v46 = vld [vmem:[%s17054_s9 + $0x27] sm:$0x3]  ;;  %v16325_v1 = vld [vmem:[%s17041_s20 + $0x1820] sm:$0xff]  }
 0x413   : > { %v14858_v10 = vpop.f32.mrb[60].mxu0  ;;  %15181 = vmatpush3.bf16.msra.mxu1 %v16262_v55 }
 0x414   : > { %v14859_v0 = vpop.f32.mrb[61].mxu0  ;;  %15182 = vmatprep.subr.bf16.mxu1 %v16265_v59  ;;  %v2730_v59 = vpack.c.bf16 %v2729_v46, %v2729_v46  ;;  %2755 = vst.msk [vmem:[#allocation2 + $0x67] sm:$0x1] %vm273_vm0, %v2754_v54  ;;  %v16326_v54 = vld [vmem:[%s17041_s20 + $0x18e0] sm:$0xff]   ;;  %v16328_v46 = vld [vmem:[%s17041_s20 + $0x1868] sm:$0xff]  }
 0x415   : > { %v14860_v4 = vadd.f32 %v14859_v0, %v14858_v10  ;;  %v14861_v35 = vpop.f32.mrb[62].mxu0  ;;  %v14880_v5 = vpop.f32.mrb[60].mxu1  ;;  %15161 = vmatpush3.bf16.msra.mxu0 %v16264_v33  ;;  %v16287_v33 = vld [vmem:[%s17041_s20 + $0x1790] sm:$0xff]   ;;  %v16290_v10 = vld [vmem:[%s17041_s20 + $0x17d8] sm:$0xff]   ;;  %v16292_v0 = vld [vmem:[%s17041_s20 + $0x1760] sm:$0xff]  }
 0x416   : > { %v14862_v43 = vpop.f32.mrb[63].mxu0  ;;  %v14881_v58 = vpop.f32.mrb[61].mxu1  ;;  %15162 = vmatprep.subr.bf16.mxu0 %v16267_v40  ;;  %v16289_v40 = vld [vmem:[%s17041_s20 + $0x1718] sm:$0xff]   ;;  %2731 = vst.msk [vmem:[#allocation2 + $0x66] sm:$0x1] %vm273_vm0, %v2730_v59  ;;  %v16295_v35 = vld [vmem:[%s17041_s20 + $0x17a0] sm:$0xff]  }
 0x417   : > { %v12025_v47 = vadd.f32 %v14860_v4, %v18754_v27  ;;  %v14882_v25 = vadd.f32 %v14881_v58, %v14880_v5  ;;  %v14883_v14 = vpop.f32.mrb[62].mxu1  ;;  %15183 = vmatpush3.bf16.msra.mxu1 %v16266_v23  ;;  %v16276_v27 = vld [vmem:[%s17041_s20 + $0x1700] sm:$0xff]   ;;  %v2774_v55 = vpop.permute.xlu1 %2773  ;;  %v16296_v5 = vld [vmem:[%s17041_s20 + $0x1768] sm:$0xff]   ;;  %v16300_v43 = vld [vmem:[%s17041_s20 + $0x1770] sm:$0xff]  }
 0x418   : > { %v14884_v53 = vpop.f32.mrb[63].mxu1  ;;  %15184 = vmatprep.subr.bf16.mxu1 %v16269_v2  ;;  %v2750_v23 = vpop.permute.xlu0 %2749  ;;  %2776 = vst.msk [vmem:[#allocation2 + $0x67] sm:$0x1] %vm295_vm1, %v2774_v55  ;;  %v16293_v2 = vld [vmem:[%s17041_s20 + $0x1720] sm:$0xff]   ;;  %v16330_v59 = vld [vmem:[%s17041_s20 + $0x18e8] sm:$0xff]  }
 0x419   : > { %v18802_v19 = vadd.f32 %v14882_v25, %v12025_v47  ;;  %15163 = vmatpush3.bf16.msra.mxu0 %v16268_v60  ;;  %2752 = vst.msk [vmem:[#allocation2 + $0x66] sm:$0x1] %vm295_vm1, %v2750_v23  ;;  %v16291_v60 = vld [vmem:[%s17041_s20 + $0x1798] sm:$0xff]   ;;  %v16294_v4 = vld [vmem:[%s17041_s20 + $0x17e0] sm:$0xff]   ;;  %v16302_v47 = vld [vmem:[%s17041_s20 + $0x17f0] sm:$0xff]  }
 0x41a   : > { %15164 = vmatprep.subr.bf16.mxu0 %v16271_v11  ;;  %v16298_v11 = vld [vmem:[%s17041_s20 + $0x17e8] sm:$0xff]   ;;  %v16304_v53 = vld [vmem:[%s17041_s20 + $0x1778] sm:$0xff]   ;;  %v16327_v55 = vld [vmem:[%s17041_s20 + $0x18a0] sm:$0xff]  }
 0x41b   : > { %15185 = vmatpush3.bf16.msra.mxu1 %v16270_v8  ;;  %v16297_v8 = vld [vmem:[%s17041_s20 + $0x1728] sm:$0xff]  }
 0x41c   : > { %15186 = vmatprep.subr.bf16.mxu1 %v16273_v18  ;;  %v16331_v23 = vld [vmem:[%s17041_s20 + $0x18a8] sm:$0xff]  }
 0x41d   : > { %15165 = vmatpush3.bf16.msra.mxu0 %v16272_v15 }
 0x41e   : > { %15194 = vmatprep.subr.bf16.mxu0 %v16275_v22 }
 0x41f   : > { %15187 = vmatpush3.bf16.msra.mxu1 %v16274_v20 }
 0x420   : > { %12583 = vmatmul.mubr.bf16.vlgmr.msra.gmra.mrb[88].mxu0 %v5278_v34  ;;  %15216 = vmatprep.subr.bf16.mxu1 %v16278_v17  ;;  %v18858_v25 = vld [vmem:[#allocation2 + $0x60] sm:$0xff]  ;;  %v16307_v34 = vld [vmem:[%s17041_s20 + $0x17b8] sm:$0xff]  }
 0x421   : > { %15195 = vmatpush3.bf16.msra.mxu0 %v16276_v27  ;;  %12662 = vmatprep.mubr.bf16.mxu0 %v5299_v48  ;;  %v18864_v18 = vrot.slane %v18858_v25, %v17056_v7  ;;  %v16309_v17 = vld [vmem:[%s17041_s20 + $0x1800] sm:$0xff]   ;;  %v5285_v48 = vrot.slane %v18794_v12, %v17056_v7  ;;  %v16315_v12 = vld [vmem:[%s17041_s20 + $0x1888] sm:$0xff]  }
 0x422   : > { %12623 = vmatmul.mubr.bf16.vlgmr.msra.gmra.mrb[88].mxu1 %v5300_v56  ;;  %15196 = vmatprep.subr.bf16.mxu0 %v16280_v29  ;;  %v16311_v29 = vld [vmem:[%s17041_s20 + $0x1880] sm:$0xff]   ;;  %v16314_v56 = vld [vmem:[%s17041_s20 + $0x18c8] sm:$0xff]  }
 0x423   : > { %15217 = vmatpush3.bf16.msra.mxu1 %v16279_v36  ;;  %12702 = vmatprep.mubr.bf16.mxu1 %v5303_v30  ;;  %v5319_v27 = vcombine.high %v18864_v18, %v18864_v18  ;;  %v16310_v36 = vld [vmem:[%s17041_s20 + $0x18c0] sm:$0xff]   ;;  %v5301_v42 = vcombine.high %v5285_v48, %v5285_v48  ;;  %v16320_v30 = vld [vmem:[%s17041_s20 + $0x1858] sm:$0xff]  }
 0x424   : > { %15218 = vmatprep.subr.bf16.mxu1 %v16282_v51  ;;  %v16316_v51 = vld [vmem:[%s17041_s20 + $0x1850] sm:$0xff]  }
 0x425   : > { %15197 = vmatpush3.bf16.msra.mxu0 %v16281_v44  ;;  %v5341_v45 = vrot.slane %v5319_v27, %v17056_v7  ;;  %v16312_v44 = vld [vmem:[%s17041_s20 + $0x1848] sm:$0xff]  }
 0x426   : > { %15198 = vmatprep.subr.bf16.mxu0 %v16284_v52  ;;  %v16322_v52 = vld [vmem:[%s17041_s20 + $0x18d8] sm:$0xff]   ;;  %v16345_v27 = vld [vmem:[%s17041_s20 + $0x1948] sm:$0xff]  }
 0x427   : > { %15219 = vmatpush3.bf16.msra.mxu1 %v16283_v50  ;;  %v5351_v41 = vcombine.high %v5341_v45, %v5341_v45  ;;  %v16321_v50 = vld [vmem:[%s17041_s20 + $0x1818] sm:$0xff]  }
 0x428   : > { %15220 = vmatprep.subr.bf16.mxu1 %v16286_v38  ;;  %v16324_v38 = vld [vmem:[%s17041_s20 + $0x1860] sm:$0xff]  }
 0x429   : > { %15199 = vmatpush3.bf16.msra.mxu0 %v16285_v39  ;;  %v16323_v39 = vld [vmem:[%s17041_s20 + $0x1898] sm:$0xff]  }
 0x42a   : > { %15200 = vmatprep.subr.bf16.mxu0 %v16288_v61  ;;  %v5304_v61 = vcombine.high %v18858_v25, %v18858_v25  ;;  %v16337_v25 = vld [vmem:[%s17041_s20 + $0x1838] sm:$0xff]  }
 0x42b   : > { %15221 = vmatpush3.bf16.msra.mxu1 %v16287_v33  ;;  %v16329_v33 = vld [vmem:[%s17041_s20 + $0x1828] sm:$0xff]  }
 0x42c   : > { %15222 = vmatprep.subr.bf16.mxu1 %v16290_v10 }
 0x42d   : > { %15201 = vmatpush3.bf16.msra.mxu0 %v16289_v40  ;;  %v16332_v40 = vld [vmem:[%s17041_s20 + $0x1870] sm:$0xff]  }
 0x42e   : > { %15202 = vmatprep.subr.bf16.mxu0 %v16292_v0 }
 0x42f   : > { %15223 = vmatpush3.bf16.msra.mxu1 %v16291_v60  ;;  %v16333_v60 = vld [vmem:[%s17041_s20 + $0x1830] sm:$0xff]  }
 0x430   : > { %15224 = vmatprep.subr.bf16.mxu1 %v16294_v4 }
 0x431   : > { %15203 = vmatpush3.bf16.msra.mxu0 %v16293_v2  ;;  %v16334_v2 = vld [vmem:[%s17041_s20 + $0x18f0] sm:$0xff]  }
 0x432   : > { %15204 = vmatprep.subr.bf16.mxu0 %v16296_v5 }
 0x433   : > { %v14902_v58 = vpop.f32.mrb[64].mxu0  ;;  %15225 = vmatpush3.bf16.msra.mxu1 %v16295_v35 }
 0x434   : > { %v14903_v26 = vpop.f32.mrb[65].mxu0  ;;  %15226 = vmatprep.subr.bf16.mxu1 %v16298_v11 }
 0x435   : > { %v14904_v14 = vadd.f32 %v14903_v26, %v14902_v58  ;;  %v14905_v15 = vpop.f32.mrb[66].mxu0  ;;  %v14924_v16 = vpop.f32.mrb[64].mxu1  ;;  %15205 = vmatpush3.bf16.msra.mxu0 %v16297_v8  ;;  %v18907_v8 = vrot.slane %v5304_v61, %v17056_v7  ;;  %v16336_v58 = vld [vmem:[%s17041_s20 + $0x1878] sm:$0xff]   ;;  %v16358_v61 = vld [vmem:[%s17041_s20 + $0x1920] sm:$0xff]  }
 0x436   : > { %v14906_v31 = vpop.f32.mrb[67].mxu0  ;;  %v14925_v20 = vpop.f32.mrb[65].mxu1  ;;  %15206 = vmatprep.subr.bf16.mxu0 %v16300_v43  ;;  %v16335_v43 = vld [vmem:[%s17041_s20 + $0x18b0] sm:$0xff]   ;;  %v16338_v15 = vld [vmem:[%s17041_s20 + $0x18f8] sm:$0xff]  }
 0x437   : > { %v12105_v21 = vadd.f32 %v14904_v14, %v18802_v19  ;;  %v14926_v22 = vadd.f32 %v14925_v20, %v14924_v16  ;;  %v14927_v24 = vpop.f32.mrb[66].mxu1  ;;  %15227 = vmatpush3.bf16.msra.mxu1 %v16299_v63  ;;  %v16308_v19 = vld [vmem:[%s17041_s20 + $0x1840] sm:$0xff]  }
 0x438   : > { %v14928_v3 = vpop.f32.mrb[67].mxu1  ;;  %15228 = vmatprep.subr.bf16.mxu1 %v16302_v47  ;;  %v16340_v31 = vld [vmem:[%s17041_s20 + $0x1940] sm:$0xff]  }
 0x439   : > { %v18871_v9 = vadd.f32 %v14926_v22, %v12105_v21  ;;  %15207 = vmatpush3.bf16.msra.mxu0 %v16301_v37  ;;  %v16341_v20 = vld [vmem:[%s17041_s20 + $0x1900] sm:$0xff]   ;;  %v5327_v21 = vrot.slane %v18864_v18, %v17056_v7  ;;  %v16346_v3 = vld [vmem:[%s17041_s20 + $0x1908] sm:$0xff]  }
 0x43a   : > { %15208 = vmatprep.subr.bf16.mxu0 %v16304_v53  ;;  %v5320_v53 = vcombine.high %v18907_v8, %v18907_v8  ;;  %v16343_v22 = vld [vmem:[%s17041_s20 + $0x19c0] sm:$0xff]  }
 0x43b   : > { %15229 = vmatpush3.bf16.msra.mxu1 %v16303_v62  ;;  %v16339_v62 = vld [vmem:[%s17041_s20 + $0x18b8] sm:$0xff]  }
 0x43c   : > { %15230 = vmatprep.subr.bf16.mxu1 %v16306_v28  ;;  %v5348_v24 = vrot.slane %v5320_v53, %v17056_v7  ;;  %v5349_v28 = vcombine.high %v5327_v21, %v5327_v21  ;;  %v16368_v53 = vld [vmem:[%s17041_s20 + $0x19b0] sm:$0xff]  }
 0x43d   : > { %15209 = vmatpush3.bf16.msra.mxu0 %v16305_v57  ;;  %v16344_v57 = vld [vmem:[%s17041_s20 + $0x1980] sm:$0xff]  }
 0x43e   : > { %15238 = vmatprep.subr.bf16.mxu0 %v16308_v19  ;;  %v5352_v18 = vcombine.high %v5348_v24, %v5348_v24  ;;  %v2801_v19 = vld [vmem:[%s17054_s9 + $0x2d] sm:$0x3] }
 0x43f   : > { %15231 = vmatpush3.bf16.msra.mxu1 %v16307_v34  ;;  %v16348_v34 = vld [vmem:[%s17041_s20 + $0x1988] sm:$0xff]  }
 0x440   : > { %12663 = vmatmul.mubr.bf16.vlgmr.msra.gmra.mrb[92].mxu0 %v5285_v48  ;;  %15260 = vmatprep.subr.bf16.mxu1 %v16310_v36  ;;  %v16349_v48 = vld [vmem:[%s17041_s20 + $0x1950] sm:$0xff]   ;;  %v2802_v36 = vpack.c.bf16 %v2801_v19, %v2801_v19  ;;  %v16376_v19 = vld [vmem:[%s17041_s20 + $0x1a80] sm:$0xff]  }
 0x441   : > { %15239 = vmatpush3.bf16.msra.mxu0 %v16309_v17  ;;  %12742 = vmatprep.mubr.bf16.mxu0 %v5341_v45  ;;  %v2777_v45 = vld [vmem:[%s17054_s9 + $0x2b] sm:$0x3] }
 0x442   : > { %12703 = vmatmul.mubr.bf16.vlgmr.msra.gmra.mrb[92].mxu1 %v5301_v42  ;;  %15240 = vmatprep.subr.bf16.mxu0 %v16312_v44  ;;  %2803 = vst.msk [vmem:[#allocation2 + $0x69] sm:$0x1] %vm273_vm0, %v2802_v36  ;;  %v16352_v42 = vld [vmem:[%s17041_s20 + $0x1990] sm:$0xff]  }
 0x443   : > { %15261 = vmatpush3.bf16.msra.mxu1 %v16311_v29  ;;  %12782 = vmatprep.mubr.bf16.mxu1 %v5351_v41  ;;  %v2778_v29 = vpack.c.bf16 %v2777_v45, %v2777_v45  ;;  %v16351_v41 = vld [vmem:[%s17041_s20 + $0x19d0] sm:$0xff]  }
 0x444   : > { %15262 = vmatprep.subr.bf16.mxu1 %v16314_v56  ;;  %v16353_v56 = vld [vmem:[%s17041_s20 + $0x1958] sm:$0xff]   ;;  %v16381_v36 = vld [vmem:[%s17041_s20 + $0x1a50] sm:$0xff]  }
 0x445   : > { %15241 = vmatpush3.bf16.msra.mxu0 %v16313_v32  ;;  %v16350_v32 = vld [vmem:[%s17041_s20 + $0x1910] sm:$0xff]   ;;  %2779 = vst.msk [vmem:[#allocation2 + $0x68] sm:$0x1] %vm273_vm0, %v2778_v29 }
 0x446   : > { %15242 = vmatprep.subr.bf16.mxu0 %v16316_v51 }
 0x447   : > { %15263 = vmatpush3.bf16.msra.mxu1 %v16315_v12  ;;  %v2849_v12 = vld [vmem:[%s17054_s9 + $0x31] sm:$0x3] }
 0x448   : > { %15264 = vmatprep.subr.bf16.mxu1 %v16318_v49  ;;  %v16354_v49 = vld [vmem:[%s17041_s20 + $0x1918] sm:$0xff]  }
 0x449   : > { %15243 = vmatpush3.bf16.msra.mxu0 %v16317_v13  ;;  %v2825_v13 = vld [vmem:[%s17054_s9 + $0x2f] sm:$0x3] }
 0x44a   : > { %15244 = vmatprep.subr.bf16.mxu0 %v16320_v30  ;;  %v2826_v30 = vpack.c.bf16 %v2825_v13, %v2825_v13  ;;  %v16389_v13 = vld [vmem:[%s17041_s20 + $0x1a60] sm:$0xff]  }
 0x44b   : > { %15265 = vmatpush3.bf16.msra.mxu1 %v16319_v6  ;;  %v2850_v6 = vpack.c.bf16 %v2849_v12, %v2849_v12  ;;  %v16387_v12 = vld [vmem:[%s17041_s20 + $0x1ad8] sm:$0xff]  }
 0x44c   : > { %15266 = vmatprep.subr.bf16.mxu1 %v16322_v52  ;;  %v16355_v52 = vld [vmem:[%s17041_s20 + $0x19d8] sm:$0xff]   ;;  %2827 = vst.msk [vmem:[#allocation2 + $0x6a] sm:$0x1] %vm273_vm0, %v2826_v30  ;;  %v16390_v30 = vld [vmem:[%s17041_s20 + $0x1a20] sm:$0xff]  }
 0x44d   : > { %15245 = vmatpush3.bf16.msra.mxu0 %v16321_v50  ;;  %v2798_v44 = vpop.permute.xlu0 %2797  ;;  %2851 = vst.msk [vmem:[#allocation2 + $0x6b] sm:$0x1] %vm273_vm0, %v2850_v6  ;;  %v16391_v6 = vld [vmem:[%s17041_s20 + $0x1ae0] sm:$0xff]  }
 0x44e   : > { %15246 = vmatprep.subr.bf16.mxu0 %v16324_v38  ;;  %v2822_v17 = vpop.permute.xlu1 %2821  ;;  %2800 = vst.msk [vmem:[#allocation2 + $0x68] sm:$0x1] %vm295_vm1, %v2798_v44  ;;  %v16357_v38 = vld [vmem:[%s17041_s20 + $0x1960] sm:$0xff]   ;;  %v16380_v44 = vld [vmem:[%s17041_s20 + $0x1a88] sm:$0xff]  }
 0x44f   : > { %15267 = vmatpush3.bf16.msra.mxu1 %v16323_v39  ;;  %2824 = vst.msk [vmem:[#allocation2 + $0x69] sm:$0x1] %vm295_vm1, %v2822_v17  ;;  %v16356_v39 = vld [vmem:[%s17041_s20 + $0x1998] sm:$0xff]   ;;  %v16379_v17 = vld [vmem:[%s17041_s20 + $0x1ac8] sm:$0xff]  }
 0x450   : > { %15268 = vmatprep.subr.bf16.mxu1 %v16326_v54 }
 0x451   : > { %15247 = vmatpush3.bf16.msra.mxu0 %v16325_v1  ;;  %v2846_v50 = vpop.permute.xlu0 %2845  ;;  %v2897_v1 = vld [vmem:[%s17054_s9 + $0x35] sm:$0x3] }
 0x452   : > { %15248 = vmatprep.subr.bf16.mxu0 %v16328_v46  ;;  %2848 = vst.msk [vmem:[#allocation2 + $0x6a] sm:$0x1] %vm295_vm1, %v2846_v50  ;;  %v2898_v54 = vpack.c.bf16 %v2897_v1, %v2897_v1  ;;  %v2873_v46 = vld [vmem:[%s17054_s9 + $0x33] sm:$0x3]  ;;  %v16393_v50 = vld [vmem:[%s17041_s20 + $0x1a68] sm:$0xff]  }
 0x453   : > { %v14946_v10 = vpop.f32.mrb[68].mxu0  ;;  %15269 = vmatpush3.bf16.msra.mxu1 %v16327_v55  ;;  %v16397_v1 = vld [vmem:[%s17041_s20 + $0x1a70] sm:$0xff]  }
 0x454   : > { %v14947_v0 = vpop.f32.mrb[69].mxu0  ;;  %15270 = vmatprep.subr.bf16.mxu1 %v16330_v59  ;;  %v2874_v59 = vpack.c.bf16 %v2873_v46, %v2873_v46  ;;  %2899 = vst.msk [vmem:[#allocation2 + $0x6d] sm:$0x1] %vm273_vm0, %v2898_v54 }
 0x455   : > { %v14948_v4 = vadd.f32 %v14947_v0, %v14946_v10  ;;  %v14949_v35 = vpop.f32.mrb[70].mxu0  ;;  %v14968_v5 = vpop.f32.mrb[68].mxu1  ;;  %15249 = vmatpush3.bf16.msra.mxu0 %v16329_v33  ;;  %v16359_v33 = vld [vmem:[%s17041_s20 + $0x19e0] sm:$0xff]   ;;  %v16362_v0 = vld [vmem:[%s17041_s20 + $0x1928] sm:$0xff]  }
 0x456   : > { %v14950_v11 = vpop.f32.mrb[71].mxu0  ;;  %v14969_v63 = vpop.f32.mrb[69].mxu1  ;;  %15250 = vmatprep.subr.bf16.mxu0 %v16332_v40  ;;  %v16361_v40 = vld [vmem:[%s17041_s20 + $0x1968] sm:$0xff]   ;;  %2875 = vst.msk [vmem:[#allocation2 + $0x6c] sm:$0x1] %vm273_vm0, %v2874_v59  ;;  %v16360_v10 = vld [vmem:[%s17041_s20 + $0x19a0] sm:$0xff]  }
 0x457   : > { %v12185_v37 = vadd.f32 %v14948_v4, %v18871_v9  ;;  %v14970_v26 = vadd.f32 %v14969_v63, %v14968_v5  ;;  %v14971_v47 = vpop.f32.mrb[70].mxu1  ;;  %15271 = vmatpush3.bf16.msra.mxu1 %v16331_v23  ;;  %v16347_v9 = vld [vmem:[%s17041_s20 + $0x19c8] sm:$0xff]   ;;  %v2870_v51 = vpop.permute.xlu1 %2869  ;;  %v16367_v11 = vld [vmem:[%s17041_s20 + $0x19f0] sm:$0xff]  }
 0x458   : > { %v14972_v14 = vpop.f32.mrb[71].mxu1  ;;  %15272 = vmatprep.subr.bf16.mxu1 %v16334_v2  ;;  %2872 = vst.msk [vmem:[#allocation2 + $0x6b] sm:$0x1] %vm295_vm1, %v2870_v51  ;;  %v16365_v2 = vld [vmem:[%s17041_s20 + $0x1970] sm:$0xff]   ;;  %v16364_v35 = vld [vmem:[%s17041_s20 + $0x19a8] sm:$0xff]   ;;  %v16386_v51 = vld [vmem:[%s17041_s20 + $0x1a18] sm:$0xff]  }
 0x459   : > { %v18914_v16 = vadd.f32 %v14970_v26, %v12185_v37  ;;  %15251 = vmatpush3.bf16.msra.mxu0 %v16333_v60  ;;  %v16363_v60 = vld [vmem:[%s17041_s20 + $0x19e8] sm:$0xff]   ;;  %v16366_v37 = vld [vmem:[%s17041_s20 + $0x1930] sm:$0xff]   ;;  %v16369_v26 = vld [vmem:[%s17041_s20 + $0x1978] sm:$0xff]  }
 0x45a   : > { %15252 = vmatprep.subr.bf16.mxu0 %v16336_v58  ;;  %v16399_v59 = vld [vmem:[%s17041_s20 + $0x1af0] sm:$0xff]  }
 0x45b   : > { %15273 = vmatpush3.bf16.msra.mxu1 %v16335_v43  ;;  %v2918_v55 = vpop.permute.xlu1 %2917  ;;  %v2894_v23 = vpop.permute.xlu0 %2893 }
 0x45c   : > { %15274 = vmatprep.subr.bf16.mxu1 %v16338_v15  ;;  %2920 = vst.msk [vmem:[#allocation2 + $0x6d] sm:$0x1] %vm295_vm1, %v2918_v55  ;;  %2896 = vst.msk [vmem:[#allocation2 + $0x6c] sm:$0x1] %vm295_vm1, %v2894_v23  ;;  %v16396_v55 = vld [vmem:[%s17041_s20 + $0x1aa8] sm:$0xff]  }
 0x45d   : > { %15253 = vmatpush3.bf16.msra.mxu0 %v16337_v25 }
 0x45e   : > { %15282 = vmatprep.subr.bf16.mxu0 %v16340_v31 }
 0x45f   : > { %15275 = vmatpush3.bf16.msra.mxu1 %v16339_v62 }
 0x460   : > { %12743 = vmatmul.mubr.bf16.vlgmr.msra.gmra.mrb[96].mxu0 %v5327_v21  ;;  %15304 = vmatprep.subr.bf16.mxu1 %v16343_v22  ;;  %v16370_v22 = vld [vmem:[%s17041_s20 + $0x1938] sm:$0xff]  }
 0x461   : > { %15283 = vmatpush3.bf16.msra.mxu0 %v16341_v20  ;;  %12822 = vmatprep.mubr.bf16.mxu0 %v5348_v24  ;;  %v16371_v20 = vld [vmem:[%s17041_s20 + $0x19f8] sm:$0xff]   ;;  %v16373_v24 = vld [vmem:[%s17041_s20 + $0x1a40] sm:$0xff]  }
 0x462   : > { %12783 = vmatmul.mubr.bf16.vlgmr.msra.gmra.mrb[96].mxu1 %v5349_v28  ;;  %15284 = vmatprep.subr.bf16.mxu0 %v16345_v27  ;;  %v5334_v27 = vrot.slane %v18907_v8, %v17056_v7 }
 0x463   : > { %15305 = vmatpush3.bf16.msra.mxu1 %v16344_v57  ;;  %12862 = vmatprep.mubr.bf16.mxu1 %v5352_v18  ;;  %v16372_v57 = vld [vmem:[%s17041_s20 + $0x19b8] sm:$0xff]   ;;  %v16377_v18 = vld [vmem:[%s17041_s20 + $0x1a48] sm:$0xff]  }
 0x464   : > { %15306 = vmatprep.subr.bf16.mxu1 %v16347_v9  ;;  %v16374_v9 = vld [vmem:[%s17041_s20 + $0x1a00] sm:$0xff]   ;;  %v5350_v8 = vcombine.high %v5334_v27, %v5334_v27 }
 0x465   : > { %15285 = vmatpush3.bf16.msra.mxu0 %v16346_v3  ;;  %v16375_v3 = vld [vmem:[%s17041_s20 + $0x1ac0] sm:$0xff]  }
 0x466   : > { %15286 = vmatprep.subr.bf16.mxu0 %v16349_v48  ;;  %v16378_v48 = vld [vmem:[%s17041_s20 + $0x1a08] sm:$0xff]  }
 0x467   : > { %15307 = vmatpush3.bf16.msra.mxu1 %v16348_v34 }
 0x468   : > { %15308 = vmatprep.subr.bf16.mxu1 %v16351_v41  ;;  %v16382_v41 = vld [vmem:[%s17041_s20 + $0x1a10] sm:$0xff]  }
 0x469   : > { %15287 = vmatpush3.bf16.msra.mxu0 %v16350_v32  ;;  %v16383_v32 = vld [vmem:[%s17041_s20 + $0x1ad0] sm:$0xff]  }
 0x46a   : > { %15288 = vmatprep.subr.bf16.mxu0 %v16353_v56  ;;  %v16384_v56 = vld [vmem:[%s17041_s20 + $0x1a90] sm:$0xff]  }
 0x46b   : > { %15309 = vmatpush3.bf16.msra.mxu1 %v16352_v42  ;;  %v16385_v42 = vld [vmem:[%s17041_s20 + $0x1a58] sm:$0xff]  }
 0x46c   : > { %15310 = vmatprep.subr.bf16.mxu1 %v16355_v52  ;;  %v16392_v52 = vld [vmem:[%s17041_s20 + $0x1aa0] sm:$0xff]  }
 0x46d   : > { %15289 = vmatpush3.bf16.msra.mxu0 %v16354_v49  ;;  %v16388_v49 = vld [vmem:[%s17041_s20 + $0x1a98] sm:$0xff]  }
 0x46e   : > { %15290 = vmatprep.subr.bf16.mxu0 %v16357_v38  ;;  %v16394_v38 = vld [vmem:[%s17041_s20 + $0x1a28] sm:$0xff]  }
 0x46f   : > { %15311 = vmatpush3.bf16.msra.mxu1 %v16356_v39  ;;  %v16395_v39 = vld [vmem:[%s17041_s20 + $0x1ae8] sm:$0xff]  }
 0x470   : > { %15312 = vmatprep.subr.bf16.mxu1 %v16359_v33 }
 0x471   : > { %15291 = vmatpush3.bf16.msra.mxu0 %v16358_v61 }
 0x472   : > { %15292 = vmatprep.subr.bf16.mxu0 %v16361_v40 }
 0x473   : > { %v14990_v4 = vpop.f32.mrb[72].mxu0  ;;  %15313 = vmatpush3.bf16.msra.mxu1 %v16360_v10  ;;  %v16398_v10 = vld [vmem:[%s17041_s20 + $0x1a30] sm:$0xff]  }
 0x474   : > { %v14991_v5 = vpop.f32.mrb[73].mxu0  ;;  %15314 = vmatprep.subr.bf16.mxu1 %v16363_v60 }
 0x475   : > { %v14992_v63 = vadd.f32 %v14991_v5, %v14990_v4  ;;  %v14993_v43 = vpop.f32.mrb[74].mxu0  ;;  %v15012_v58 = vpop.f32.mrb[72].mxu1  ;;  %15293 = vmatpush3.bf16.msra.mxu0 %v16362_v0 }
 0x476   : > { %v14994_v47 = vpop.f32.mrb[75].mxu0  ;;  %v15013_v25 = vpop.f32.mrb[73].mxu1  ;;  %15294 = vmatprep.subr.bf16.mxu0 %v16365_v2  ;;  %v16401_v2 = vld [vmem:[%s17041_s20 + $0x1a78] sm:$0xff]  }
 0x477   : > { %v12265_v14 = vadd.f32 %v14992_v63, %v18914_v16  ;;  %v15014_v15 = vadd.f32 %v15013_v25, %v15012_v58  ;;  %v15015_v62 = vpop.f32.mrb[74].mxu1  ;;  %15315 = vmatpush3.bf16.msra.mxu1 %v16364_v35  ;;  %v18976_v16 = vld [vmem:[#allocation2 + $0x68] sm:$0x3f]  ;;  %v16403_v58 = vld [vmem:[%s17041_s20 + $0x1af8] sm:$0xff]   ;;  %v16405_v47 = vld [vmem:[%s17041_s20 + $0x1b40] sm:$0xff]  }
 0x478   : > { %v15016_v31 = vpop.f32.mrb[75].mxu1  ;;  %15316 = vmatprep.subr.bf16.mxu1 %v16367_v11  ;;  %v18983_v28 = vrot.slane %v18976_v16, %v17056_v7  ;;  %v5353_v46 = vcombine.high %v18976_v16, %v18976_v16  ;;  %v16400_v11 = vld [vmem:[%s17041_s20 + $0x1ab0] sm:$0xff]   ;;  %v16404_v25 = vld [vmem:[%s17041_s20 + $0x1ab8] sm:$0xff]   ;;  %v16406_v62 = vld [vmem:[%s17041_s20 + $0x1b00] sm:$0xff]  }
 0x479   : > { %v18971_v21 = vadd.f32 %v15014_v15, %v12265_v14  ;;  %15295 = vmatpush3.bf16.msra.mxu0 %v16366_v37  ;;  %v16413_v16 = vld [vmem:[%s17041_s20 + $0x1b18] sm:$0xff]  }
 0x47a   : > { %15296 = vmatprep.subr.bf16.mxu0 %v16369_v26  ;;  %v5368_v34 = vcombine.high %v18983_v28, %v18983_v28  ;;  %v19019_v63 = vrot.slane %v5353_v46, %v17056_v7  ;;  %v16402_v26 = vld [vmem:[%s17041_s20 + $0x1a38] sm:$0xff]   ;;  %v5376_v15 = vrot.slane %v18983_v28, %v17056_v7  ;;  %v16416_v28 = vld [vmem:[%s17041_s20 + $0x1b68] sm:$0xff]  }
 0x47b   : > { %15317 = vmatpush3.bf16.msra.mxu1 %v16368_v53  ;;  %v16408_v53 = vld [vmem:[%s17041_s20 + $0x1b48] sm:$0xff]  }
 0x47c   : > { %15318 = vmatprep.subr.bf16.mxu1 %v16371_v20  ;;  %v5390_v45 = vrot.slane %v5368_v34, %v17056_v7  ;;  %v5369_v14 = vcombine.high %v19019_v63, %v19019_v63  ;;  %v5398_v20 = vcombine.high %v5376_v15, %v5376_v15 }
 0x47d   : > { %15297 = vmatpush3.bf16.msra.mxu0 %v16370_v22  ;;  %v16410_v22 = vld [vmem:[%s17041_s20 + $0x1b50] sm:$0xff]  }
 0x47e   : > { %15326 = vmatprep.subr.bf16.mxu0 %v16373_v24  ;;  %v5399_v29 = vcombine.high %v5390_v45, %v5390_v45  ;;  %v5397_v31 = vrot.slane %v5369_v14, %v17056_v7  ;;  %v16411_v24 = vld [vmem:[%s17041_s20 + $0x1b10] sm:$0xff]  }
 0x47f   : > { %15319 = vmatpush3.bf16.msra.mxu1 %v16372_v57  ;;  %v16412_v57 = vld [vmem:[%s17041_s20 + $0x1b58] sm:$0xff]  }
 0x480   : > { %12823 = vmatmul.mubr.bf16.vlgmr.msra.gmra.mrb[100].mxu0 %v5334_v27  ;;  %15348 = vmatprep.subr.bf16.mxu1 %v16375_v3  ;;  %v16414_v27 = vld [vmem:[%s17041_s20 + $0x1b60] sm:$0xff]  }
 0x481   : > { %15327 = vmatpush3.bf16.msra.mxu0 %v16374_v9  ;;  %12902 = vmatprep.mubr.bf16.mxu0 %v5390_v45  ;;  %v16415_v3 = vld [vmem:[%s17041_s20 + $0x1b20] sm:$0xff]   ;;  %v16417_v9 = vld [vmem:[%s17041_s20 + $0x1b28] sm:$0xff]  }
 0x482   : > { %12863 = vmatmul.mubr.bf16.vlgmr.msra.gmra.mrb[100].mxu1 %v5350_v8  ;;  %15328 = vmatprep.subr.bf16.mxu0 %v16377_v18  ;;  %v16418_v18 = vld [vmem:[%s17041_s20 + $0x1b70] sm:$0xff]  }
 0x483   : > { %15349 = vmatpush3.bf16.msra.mxu1 %v16376_v19  ;;  %12942 = vmatprep.mubr.bf16.mxu1 %v5399_v29 }
 0x484   : > { %15350 = vmatprep.subr.bf16.mxu1 %v16379_v17 }
 0x485   : > { %15329 = vmatpush3.bf16.msra.mxu0 %v16378_v48  ;;  %v16419_v48 = vld [vmem:[%s17041_s20 + $0x1b30] sm:$0xff]  }
 0x486   : > { %15330 = vmatprep.subr.bf16.mxu0 %v16381_v36 }
 0x487   : > { %15351 = vmatpush3.bf16.msra.mxu1 %v16380_v44  ;;  %v16420_v44 = vld [vmem:[%s17041_s20 + $0x1b78] sm:$0xff]  }
 0x488   : > { %15352 = vmatprep.subr.bf16.mxu1 %v16383_v32 }
 0x489   : > { %15331 = vmatpush3.bf16.msra.mxu0 %v16382_v41 }
 0x48a   : > { %15332 = vmatprep.subr.bf16.mxu0 %v16385_v42 }
 0x48b   : > { %15353 = vmatpush3.bf16.msra.mxu1 %v16384_v56 }
 0x48c   : > { %15354 = vmatprep.subr.bf16.mxu1 %v16387_v12 }
 0x48d   : > { %15333 = vmatpush3.bf16.msra.mxu0 %v16386_v51  ;;  %v16421_v51 = vld [vmem:[%s17041_s20 + $0x1b38] sm:$0xff]  }
 0x48e   : > { %15334 = vmatprep.subr.bf16.mxu0 %v16389_v13  ;;  %v5383_v13 = vrot.slane %v19019_v63, %v17056_v7 }
 0x48f   : > { %15355 = vmatpush3.bf16.msra.mxu1 %v16388_v49 }
 0x490   : > { %15356 = vmatprep.subr.bf16.mxu1 %v16391_v6 }
 0x491   : > { %15335 = vmatpush3.bf16.msra.mxu0 %v16390_v30 }
 0x492   : > { %15336 = vmatprep.subr.bf16.mxu0 %v16393_v50 }
 0x493   : > { %v15034_v54 = vpop.f32.mrb[76].mxu0  ;;  %15357 = vmatpush3.bf16.msra.mxu1 %v16392_v52 }
 0x494   : > { %v15035_v33 = vpop.f32.mrb[77].mxu0  ;;  %15358 = vmatprep.subr.bf16.mxu1 %v16395_v39 }
 0x495   : > { %v15036_v23 = vadd.f32 %v15035_v33, %v15034_v54  ;;  %v15037_v61 = vpop.f32.mrb[78].mxu0  ;;  %v15056_v40 = vpop.f32.mrb[76].mxu1  ;;  %15337 = vmatpush3.bf16.msra.mxu0 %v16394_v38 }
 0x496   : > { %v15038_v60 = vpop.f32.mrb[79].mxu0  ;;  %v15057_v0 = vpop.f32.mrb[77].mxu1  ;;  %15338 = vmatprep.subr.bf16.mxu0 %v16397_v1 }
 0x497   : > { %v12345_v4 = vadd.f32 %v15036_v23, %v18971_v21  ;;  %v15058_v35 = vadd.f32 %v15057_v0, %v15056_v40  ;;  %v15059_v5 = vpop.f32.mrb[78].mxu1  ;;  %15359 = vmatpush3.bf16.msra.mxu1 %v16396_v55  ;;  %v16409_v21 = vld [vmem:[%s17041_s20 + $0x1b08] sm:$0xff]  }
 0x498   : > { %v15060_v43 = vpop.f32.mrb[79].mxu1  ;;  %15360 = vmatprep.subr.bf16.mxu1 %v16399_v59 }
 0x499   : > { %v12385_v37 = vadd.f32 %v15058_v35, %v12345_v4  ;;  %15339 = vmatpush3.bf16.msra.mxu0 %v16398_v10 }
 0x49a   : > { %15340 = vmatprep.subr.bf16.mxu0 %v16401_v2 }
 0x49b   : > { %15361 = vmatpush3.bf16.msra.mxu1 %v16400_v11 }
 0x49c   : > { %15362 = vmatprep.subr.bf16.mxu1 %v16403_v58 }
 0x49d   : > { %15341 = vmatpush3.bf16.msra.mxu0 %v16402_v26 }
 0x49e   : > { %15370 = vmatprep.subr.bf16.mxu0 %v16405_v47 }
 0x49f   : > { %15363 = vmatpush3.bf16.msra.mxu1 %v16404_v25 }
 0x4a0   : > { %12903 = vmatmul.mubr.bf16.vlgmr.msra.gmra.mrb[104].mxu0 %v5376_v15 }
 0x4a1   : > { %15371 = vmatpush3.bf16.msra.mxu0 %v16406_v62  ;;  %12982 = vmatprep.mubr.bf16.mxu0 %v5397_v31 }
 0x4a2   : > { %12943 = vmatmul.mubr.bf16.vlgmr.msra.gmra.mrb[104].mxu1 %v5398_v20  ;;  %15372 = vmatprep.subr.bf16.mxu0 %v16408_v53 }
 0x4a5   : > { %15373 = vmatpush3.bf16.msra.mxu0 %v16409_v21 }
 0x4a6   : > { %15374 = vmatprep.subr.bf16.mxu0 %v16410_v22 }
 0x4a9   : > { %15375 = vmatpush3.bf16.msra.mxu0 %v16411_v24 }
 0x4aa   : > { %15376 = vmatprep.subr.bf16.mxu0 %v16412_v57 }
 0x4ad   : > { %15377 = vmatpush3.bf16.msra.mxu0 %v16413_v16 }
 0x4ae   : > { %15378 = vmatprep.subr.bf16.mxu0 %v16414_v27 }
 0x4b1   : > { %15379 = vmatpush3.bf16.msra.mxu0 %v16415_v3 }
 0x4b2   : > { %15380 = vmatprep.subr.bf16.mxu0 %v16416_v28 }
 0x4b3   : > { %v15078_v34 = vpop.f32.mrb[80].mxu0 }
 0x4b4   : > { %v15079_v19 = vpop.f32.mrb[81].mxu0 }
 0x4b5   : > { %v15080_v8 = vadd.f32 %v15079_v19, %v15078_v34  ;;  %v15081_v17 = vpop.f32.mrb[82].mxu0  ;;  %v15100_v45 = vpop.f32.mrb[80].mxu1  ;;  %15381 = vmatpush3.bf16.msra.mxu0 %v16417_v9 }
 0x4b6   : > { %v15082_v36 = vpop.f32.mrb[83].mxu0  ;;  %v15101_v29 = vpop.f32.mrb[81].mxu1  ;;  %15382 = vmatprep.subr.bf16.mxu0 %v16418_v18 }
 0x4b7   : > { %v12425_v32 = vadd.f32 %v15080_v8, %v12385_v37  ;;  %v15102_v41 = vadd.f32 %v15101_v29, %v15100_v45  ;;  %v15103_v42 = vpop.f32.mrb[82].mxu1 }
 0x4b8   : > { %v15104_v56 = vpop.f32.mrb[83].mxu1 }
 0x4b9   : > { %v12465_v12 = vadd.f32 %v15102_v41, %v12425_v32  ;;  %15383 = vmatpush3.bf16.msra.mxu0 %v16419_v48 }
 0x4ba   : > { %15384 = vmatprep.subr.bf16.mxu0 %v16420_v44 }
 0x4bd   : > { %15385 = vmatpush3.bf16.msra.mxu0 %v16421_v51 }
 0x4c0   : > { %12983 = vmatmul.mubr.bf16.vlgmr.msra.gmra.mrb[108].mxu0 %v5383_v13 }
 0x4d3   : > { %v15122_v49 = vpop.f32.mrb[84].mxu0 }
 0x4d4   : > { %v15123_v6 = vpop.f32.mrb[85].mxu0 }
 0x4d5   : > { %v15124_v30 = vadd.f32 %v15123_v6, %v15122_v49  ;;  %v15125_v50 = vpop.f32.mrb[86].mxu0  ;;  %v15144_v52 = vpop.f32.mrb[84].mxu1 }
 0x4d6   : > { %v15126_v39 = vpop.f32.mrb[87].mxu0  ;;  %v15145_v38 = vpop.f32.mrb[85].mxu1 }
 0x4d7   : > { %v12505_v1 = vadd.f32 %v15124_v30, %v12465_v12  ;;  %v15146_v54 = vadd.f32 %v15145_v38, %v15144_v52  ;;  %v15147_v55 = vpop.f32.mrb[86].mxu1 }
 0x4d8   : > { %v15148_v46 = vpop.f32.mrb[87].mxu1 }
 0x4d9   : > { %v12545_v33 = vadd.f32 %v15146_v54, %v12505_v1 }
 0x4f3   : > { %v15166_v59 = vpop.f32.mrb[88].mxu0 }
 0x4f4   : > { %v15167_v23 = vpop.f32.mrb[89].mxu0 }
 0x4f5   : > { %v15168_v61 = vadd.f32 %v15167_v23, %v15166_v59  ;;  %v15169_v40 = vpop.f32.mrb[90].mxu0  ;;  %v15188_v10 = vpop.f32.mrb[88].mxu1 }
 0x4f6   : > { %v15170_v60 = vpop.f32.mrb[91].mxu0  ;;  %v15189_v7 = vpop.f32.mrb[89].mxu1 }
 0x4f7   : > { %v12585_v0 = vadd.f32 %v15168_v61, %v12545_v33  ;;  %v15190_v2 = vadd.f32 %v15189_v7, %v15188_v10  ;;  %v15191_v4 = vpop.f32.mrb[90].mxu1 }
 0x4f8   : > { %v15192_v35 = vpop.f32.mrb[91].mxu1 }
 0x4f9   : > { %v12625_v5 = vadd.f32 %v15190_v2, %v12585_v0 }
 0x513   : > { %v15210_v11 = vpop.f32.mrb[92].mxu0 }
 0x514   : > { %v15211_v63 = vpop.f32.mrb[93].mxu0 }
 0x515   : > { %v15212_v43 = vadd.f32 %v15211_v63, %v15210_v11  ;;  %v15213_v58 = vpop.f32.mrb[94].mxu0  ;;  %v15232_v37 = vpop.f32.mrb[92].mxu1 }
 0x516   : > { %v15214_v26 = vpop.f32.mrb[95].mxu0  ;;  %v15233_v47 = vpop.f32.mrb[93].mxu1 }
 0x517   : > { %v12665_v25 = vadd.f32 %v15212_v43, %v12625_v5  ;;  %v15234_v14 = vadd.f32 %v15233_v47, %v15232_v37  ;;  %v15235_v15 = vpop.f32.mrb[94].mxu1 }
 0x518   : > { %v15236_v62 = vpop.f32.mrb[95].mxu1 }
 0x519   : > { %v12705_v53 = vadd.f32 %v15234_v14, %v12665_v25 }
 0x533   : > { %v15254_v31 = vpop.f32.mrb[96].mxu0 }
 0x534   : > { %v15255_v20 = vpop.f32.mrb[97].mxu0 }
 0x535   : > { %v15256_v21 = vadd.f32 %v15255_v20, %v15254_v31  ;;  %v15257_v22 = vpop.f32.mrb[98].mxu0  ;;  %v15276_v24 = vpop.f32.mrb[96].mxu1 }
 0x536   : > { %v15258_v57 = vpop.f32.mrb[99].mxu0  ;;  %v15277_v16 = vpop.f32.mrb[97].mxu1 }
 0x537   : > { %v12745_v27 = vadd.f32 %v15256_v21, %v12705_v53  ;;  %v15278_v3 = vadd.f32 %v15277_v16, %v15276_v24  ;;  %v15279_v28 = vpop.f32.mrb[98].mxu1 }
 0x538   : > { %v15280_v9 = vpop.f32.mrb[99].mxu1 }
 0x539   : > { %v12785_v18 = vadd.f32 %v15278_v3, %v12745_v27 }
 0x553   : > { %v15298_v34 = vpop.f32.mrb[100].mxu0 }
 0x554   : > { %v15299_v19 = vpop.f32.mrb[101].mxu0 }
 0x555   : > { %v15300_v8 = vadd.f32 %v15299_v19, %v15298_v34  ;;  %v15301_v17 = vpop.f32.mrb[102].mxu0  ;;  %v15320_v45 = vpop.f32.mrb[100].mxu1 }
 0x556   : > { %v15302_v48 = vpop.f32.mrb[103].mxu0  ;;  %v15321_v36 = vpop.f32.mrb[101].mxu1 }
 0x557   : > { %v12825_v29 = vadd.f32 %v15300_v8, %v12785_v18  ;;  %v15322_v44 = vadd.f32 %v15321_v36, %v15320_v45  ;;  %v15323_v32 = vpop.f32.mrb[102].mxu1 }
 0x558   : > { %v15324_v41 = vpop.f32.mrb[103].mxu1 }
 0x559   : > { %v12865_v42 = vadd.f32 %v15322_v44, %v12825_v29 }
 0x573   : > { %v15342_v56 = vpop.f32.mrb[104].mxu0 }
 0x574   : > { %v15343_v12 = vpop.f32.mrb[105].mxu0 }
 0x575   : > { %v15344_v51 = vadd.f32 %v15343_v12, %v15342_v56  ;;  %v15345_v13 = vpop.f32.mrb[106].mxu0  ;;  %v15364_v49 = vpop.f32.mrb[104].mxu1 }
 0x576   : > { %v15346_v6 = vpop.f32.mrb[107].mxu0  ;;  %v15365_v30 = vpop.f32.mrb[105].mxu1 }
 0x577   : > { %v12905_v50 = vadd.f32 %v15344_v51, %v12865_v42  ;;  %v15366_v52 = vadd.f32 %v15365_v30, %v15364_v49  ;;  %v15367_v39 = vpop.f32.mrb[106].mxu1 }
 0x578   : > { %v15368_v38 = vpop.f32.mrb[107].mxu1 }
 0x579   : > { %v12945_v1 = vadd.f32 %v15366_v52, %v12905_v50 }
 0x593   : > { %v15386_v54 = vpop.f32.mrb[108].mxu0 }
 0x594   : > { %v15387_v55 = vpop.f32.mrb[109].mxu0 }
 0x595   : > { %v15388_v46 = vadd.f32 %v15387_v55, %v15386_v54  ;;  %v15389_v33 = vpop.f32.mrb[110].mxu0 }
 0x596   : > { %v15390_v59 = vpop.f32.mrb[111].mxu0 }
 0x597   : > { %v12985_v23 = vadd.f32 %v15388_v46, %v12945_v1 }
 0x599   : > { %v12990_v61 = vadd.f32 3.0, %v12985_v23 }
 0x59b   : > { %v12991_v40 = vmax.f32 %v12990_v61, 0.0 }
 0x59d   : > { %v12992_v10 = vmin.f32 %v12991_v40, 6.0 }
 0x59f   : > { %v12993_v60 = vmul.f32 0.16666667, %v12992_v10 }
 0x5a1   : > { %12994 = vst [vmem:[%s262_s30] sm:$0x3] %v12993_v60 }
 0x5a2   : > { %16563 = shalt.err (!%p16560_p13)
}
 0x5a3   : > { %s16564_s11 = scalar_lea.hbm %s19056_s21, 32  ;;  %s16568_s28 = scalar_lea.hbm %s19120_s7, 192 }
 0x5a4   : > { %p16565_p6 = scmp.ne.s32.totalorder %s19056_s21, %s16564_s11  ;;  %p16569_p9 = scmp.lt.u32.totalorder %s19056_s21, %s19120_s7 }
 0x5a5   : > { %p16570_p11 = scmp.lt.u32.totalorder %s16568_s28, %s16564_s11  ;;  %p16572_p0 = scmp.lt.u32.totalorder %s16564_s11, %s19056_s21 }
 0x5a6   : > { %p16566_p4 = pnand %p16565_p6, %p19172_p7 }
 0x5a7   : > { %p16571_p2 = por %p16570_p11, %p16569_p9 }
 0x5a8   : > { %p16567_p10 = pneg %p16566_p4 }
 0x5a9   : > { %p16573_p1 = por %p16572_p0, %p16571_p2 }
 0x5ab   : > { %p16574_p12 = pnand %p16573_p1, %p16567_p10 }
 0x5ad   : > { %16577 = shalt.err (!%p16574_p12)
}
 0x5ae   : > { %15412 = dma.vmem_to_hbm [thread:$0]  (%p19172_p7), %s19058_s27, 32, %s19056_s21, %s12996_s23  }
 0x5af PF: > { %s19173_s4 = sld [smem:[#allocation29_spill]]  ;;  %p15436_p3 = scmp.ge.s32.totalorder %s16674_s22, 2 }
 0x5b0   : > { %s13022_s18 = sand.u32 1, %s16638_s2  }
 0x5b1   : > { %s13023_s14 = scalar_lea.sflag [#allocation10], %s13022_s18 }
 0x5b5   : > { %p19174_p8 = scmp.ne.s32.totalorder %s19173_s4, 0 }
 0x5b7   : > { %p15430_p5 = pnand %p15436_p3, %p19174_p8 }
 0x5b9   : > { %16633 = dma.done.wait (!%p15430_p5), %s13023_s14, 32  }
 0x5ba   : > { %16635 = vsyncadd (!%p15430_p5), %s13023_s14, 4294967264  ;;  %s19175_s22 = sld [smem:[#allocation27_spill]]  ;;  %s19176_s15 = sld [smem:[#allocation25_spill]] }
 0x5bb   : > { %s19177_s17 = sld [smem:[#allocation30_spill]]  ;;  %s19178_s12 = sld [smem:[#allocation28_spill]] }
 0x5bc   : > { %s19179_s10 = sld [smem:[#allocation26_spill]]  ;;  %s19180_s21 = sld [smem:[#allocation31_spill]] }
 0x5bd   : > { %s19181_s2 = smov %s16642_s16  ;;  %s19183_s18 = smov %s16654_s19 }
 0x5be   : > { %s19184_s19 = smov %s16658_s3  ;;  %s19186_s20 = smov %s16666_s0 }
 0x5c0   : > { %p33_p7 = scmp.ge.s32.totalorder %s19175_s22, 8   ;;  %s19182_s16 = smov %s19176_s15 }
 0x5c1   : > { %s19185_s3 = smov %s19178_s12 }
 0x5c2   : > { %s19187_s0 = smov %s19179_s10  ;;  %35 = sbr.rel (!%p33_p7) target bundleno = 44 (0x2c), region = 98 }
 0x5c9   :  { %13028 = vsyncpa [#allocation9], 1 }
 0x5ca   :  { %13030 = vsyncpa [#allocation9 + $0x1], 1 }
 0x5cb   :  { %13031 = vsyncpa [#allocation12], 1 }
 0x5cc   :  { %13033 = vsyncpa [#allocation12 + $0x1], 1 }
 0x5cd   :  { %13034 = vsyncpa [#allocation10], 1 }
 0x5ce   :  { %13036 = vsyncpa [#allocation10 + $0x1], 1 }

</bundles_post_ra>
